<compile_context>
chip_gen: v6e
topology: v6e:2x2x1
jax: 0.10.0
libtpu: 0.0.40
codegen_flags: <defaults>
</compile_context>

<pallas_src>
import numpy as np
import jax
import jax.numpy as jnp
from jax.experimental import pallas as pl
from jax.experimental.pallas import tpu as pltpu

BN_EPS = 1e-5
_VMEM_LIMIT_BYTES = 32 * 1024 * 1024   # explicit scoped-VMEM limit (safe on v5e/v6e/v7x)
_VMEM_TILE_BUDGET = 4 * 1024 * 1024    # rough per-block budget used when picking tiles


def _largest_divisor_at_most(n, cap):
    cap = max(1, min(n, cap))
    for d in range(cap, 0, -1):
        if n % d == 0:
            return d
    return 1


# ---------------------------------------------------------------------------
# Kernel 1: batched 2-D DFT (F = cos - i*sin) + high-pass filter
# ---------------------------------------------------------------------------
def _fft_filter_kernel(x_ref, cos_ref, sin_ref, filt_ref, o_ref):
    """x_ref: (TB, C, H, W) NCHW tile.  o_ref: (TB, 2C, H, W), [0:C]=Re, [C:2C]=Im, filtered.

    Stage 1:  Z   = X @ F      as one (TB*C*H, W) @ (W, W) matmul pair.
    Stage 2:  Y^T = Z^T @ F    as (TB*C*W, H) @ (H, H) matmuls (F symmetric),
              using Karatsuba (3 real matmuls instead of 4).
    """
    tb, c, h, w = x_ref.shape
    n = tb * c
    A = cos_ref[...]                    # cos(2*pi*u*h/H), symmetric
    B = sin_ref[...]                    # sin(2*pi*u*h/H), symmetric
    x = x_ref[...].reshape(n * h, w)

    # stage 1: DFT along W.  F = A - iB  ->  Z = X A  - i X B
    zr = jnp.dot(x, A, preferred_element_type=jnp.float32)
    zi = -jnp.dot(x, B, preferred_element_type=jnp.float32)

    # transpose each (H, W) plane so stage 2 is again a big row-major matmul
    zr_t = jnp.swapaxes(zr.reshape(n, h, w), 1, 2).reshape(n * w, h)
    zi_t = jnp.swapaxes(zi.reshape(n, h, w), 1, 2).reshape(n * w, h)

    # stage 2 (Karatsuba):  Y^T = (ZR^T + i ZI^T) (A - iB)
    #   real = ZR^T A + ZI^T B ,  imag = ZI^T A - ZR^T B
    k1 = jnp.dot(zr_t + zi_t, A, preferred_element_type=jnp.float32)
    k2 = jnp.dot(zr_t, A + B, preferred_element_type=jnp.float32)
    k3 = jnp.dot(zi_t, A - B, preferred_element_type=jnp.float32)
    yt_r = k1 - k3
    yt_i = k1 - k2

    yr = jnp.swapaxes(yt_r.reshape(n, w, h), 1, 2).reshape(tb, c, h, w)
    yi = jnp.swapaxes(yt_i.reshape(n, w, h), 1, 2).reshape(tb, c, h, w)

    f = filt_ref[...]
    o_ref[:, :c] = yr * f
    o_ref[:, c:] = yi * f


def high_pass_filter(size):
    # torch.linspace(-size // 2, size // 2, size) with the default 'ij' meshgrid
    lin = np.linspace((-size) // 2, size // 2, size, dtype=np.float64)
    yy, xx = np.meshgrid(lin, lin, indexing="ij")
    filt = 1.0 - np.exp(-(xx ** 2 + yy ** 2) / (2.0 * 5.0 ** 2))
    return jnp.asarray(filt, dtype=jnp.float32)


def fft_highpass(x_nchw, filt_hw):
    """fft2(x) -> real/imag stacked along channels -> * high-pass filter.  (B, 2C, H, W)."""
    Bsz, C, H, W = x_nchw.shape
    assert H == W, "FrequencyModule assumes square spatial dims"

    idx = np.arange(H)
    theta = 2.0 * np.pi * np.outer(idx, idx) / H
    cos_m = jnp.asarray(np.cos(theta), dtype=jnp.float32)
    sin_m = jnp.asarray(np.sin(theta), dtype=jnp.float32)

    per_item = 4 * C * H * W * 12                       # rough VMEM bytes per batch image
    tb = _largest_divisor_at_most(Bsz, _VMEM_TILE_BUDGET // max(per_item, 1))

    return pl.pallas_call(
        _fft_filter_kernel,
        out_shape=jax.ShapeDtypeStruct((Bsz, 2 * C, H, W), jnp.float32),
        grid_spec=pltpu.PrefetchScalarGridSpec(
            num_scalar_prefetch=0,
            grid=(Bsz // tb,),
            in_specs=[
                pl.BlockSpec((tb, C, H, W), lambda b: (b, 0, 0, 0)),
                pl.BlockSpec((H, H), lambda b: (0, 0)),
                pl.BlockSpec((H, H), lambda b: (0, 0)),
                pl.BlockSpec((H, W), lambda b: (0, 0)),
            ],
            out_specs=pl.BlockSpec((tb, 2 * C, H, W), lambda b: (b, 0, 0, 0)),
        ),
        compiler_params=pltpu.CompilerParams(
            dimension_semantics=("parallel",),
            vmem_limit_bytes=_VMEM_LIMIT_BYTES),
    )(x_nchw, cos_m, sin_m, filt_hw)


# ---------------------------------------------------------------------------
# Kernel 2: conv3x3 + inference-BN + ReLU with in-kernel tap accumulation
# ---------------------------------------------------------------------------
def _make_conv_kernel(n_phase, taps, Ho, Wo):
    def kernel(*refs):
        phase_vals = [r[...] for r in refs[:n_phase]]        # each (TB, Hp, Wp, Cin)
        w_ref, scale_ref, bias_ref, o_ref = refs[n_phase:]
        w_all = w_ref[...]                                    # (9, Cin, TCout)
        tb = phase_vals[0].shape[0]
        cin = phase_vals[0].shape[-1]
        m = tb * Ho * Wo
        acc = None
        for t, (p, oy, ox) in enumerate(taps):
            v = phase_vals[p][:, oy:oy + Ho, ox:ox + Wo, :].reshape(m, cin)
            contrib = jnp.dot(v, w_all[t], preferred_element_type=jnp.float32)
            acc = contrib if acc is None else acc + contrib
        o_ref[...] = jnp.maximum(acc * scale_ref[...] + bias_ref[...], 0.0)
    return kernel


def conv_bn_relu(x_nhwc, w_oihw, conv_b, gamma, beta, mean, var, stride):
    N, H, W, Cin = x_nhwc.shape
    Cout, cin_w, kh, kw = w_oihw.shape
    assert cin_w == Cin and kh == 3 and kw == 3
    pad = 1
    Ho = (H + 2 * pad - 3) // stride + 1
    Wo = (W + 2 * pad - 3) // stride + 1

    xpad = jnp.pad(x_nhwc, ((0, 0), (pad, pad), (pad, pad), (0, 0)))
    if stride == 1:
        phases = (xpad,)
        taps = [(0, dy, dx) for dy in range(3) for dx in range(3)]
    else:
        assert stride == 2 and H % 2 == 0 and W % 2 == 0
        # space-to-depth phase split so all in-kernel tap slices are contiguous
        phases = tuple(xpad[:, p::2, q::2, :] for p in (0, 1) for q in (0, 1))
        taps = [((dy % 2) * 2 + (dx % 2), dy // 2, dx // 2)
                for dy in range(3) for dx in range(3)]
    Hp, Wp = phases[0].shape[1], phases[0].shape[2]
    for ph in phases:
        assert ph.shape == (N, Hp, Wp, Cin)

    # weights (O, I, kh, kw) -> (9, Cin, Cout) so tap t = dy*3 + dx is w[t]
    w_t = jnp.transpose(w_oihw, (2, 3, 1, 0)).reshape(9, Cin, Cout).astype(jnp.float32)
    scale = (gamma / jnp.sqrt(var + BN_EPS)).astype(jnp.float32)
    bias = ((conv_b - mean) * scale + beta).astype(jnp.float32)
    scale2 = scale.reshape(1, Cout)
    bias2 = bias.reshape(1, Cout)

    t_cout = Cout if Cout <= 128 else 128            # second parallel axis (v7x dual TC)
    per_item = 4 * (2 * len(phases) * Hp * Wp * Cin
                    + 3 * Ho * Wo * t_cout + 2 * Ho * Wo * Cin)
    tb = _largest_divisor_at_most(N, _VMEM_TILE_BUDGET // max(per_item, 1))
    m_blk = tb * Ho * Wo

    kernel = _make_conv_kernel(len(phases), taps, Ho, Wo)
    phase_spec = pl.BlockSpec((tb, Hp, Wp, Cin), lambda b, co: (b, 0, 0, 0))
    in_specs = [phase_spec] * len(phases) + [
        pl.BlockSpec((9, Cin, t_cout), lambda b, co: (0, 0, co)),
        pl.BlockSpec((1, t_cout), lambda b, co: (0, co)),
        pl.BlockSpec((1, t_cout), lambda b, co: (0, co)),
    ]
    out = pl.pallas_call(
        kernel,
        out_shape=jax.ShapeDtypeStruct((N * Ho * Wo, Cout), jnp.float32),
        grid_spec=pltpu.PrefetchScalarGridSpec(
            num_scalar_prefetch=0,
            grid=(N // tb, Cout // t_cout),
            in_specs=in_specs,
            out_specs=pl.BlockSpec((m_blk, t_cout), lambda b, co: (b, co)),
        ),
        compiler_params=pltpu.CompilerParams(
            dimension_semantics=("parallel", "parallel"),
            vmem_limit_bytes=_VMEM_LIMIT_BYTES),
    )(*phases, w_t, scale2, bias2)
    return out.reshape(N, Ho, Wo, Cout)


# ---------------------------------------------------------------------------
# Forward pass (NCHW in / NCHW out, like the PyTorch module)
# ---------------------------------------------------------------------------
def frequency_module_forward(x_nchw, params):
    Bsz, C, H, W = x_nchw.shape
    filt = high_pass_filter(H)
    fft_high = fft_highpass(x_nchw, filt)                  # (B, 2C, H, W)
    x = jnp.transpose(fft_high, (0, 2, 3, 1))              # NHWC for the conv chain

    w1, b1 = params["conv1"]; g1, be1, m1, v1 = params["bn1"]
    w2, b2 = params["conv2"]; g2, be2, m2, v2 = params["bn2"]
    w3, b3 = params["conv3"]; g3, be3, m3, v3 = params["bn3"]

    f1 = conv_bn_relu(x, w1, b1, g1, be1, m1, v1, stride=1)    # (B, H,   W,   64)
    f2 = conv_bn_relu(f1, w2, b2, g2, be2, m2, v2, stride=2)   # (B, H/2, W/2, 128)
    f3 = conv_bn_relu(f2, w3, b3, g3, be3, m3, v3, stride=2)   # (B, H/4, W/4, 256)

    to_nchw = lambda t: jnp.transpose(t, (0, 3, 1, 2))
    return to_nchw(f1), to_nchw(f2), to_nchw(f3)


# ---------------------------------------------------------------------------
# Deterministic parameter init (shapes from the module's __init__)
# ---------------------------------------------------------------------------
def init_params(key):
    ks = jax.random.split(key, 6)

    def conv_init(k, cout, cin):
        kw_, kb = jax.random.split(k)
        bound = 1.0 / np.sqrt(cin * 9)
        w = jax.random.uniform(kw_, (cout, cin, 3, 3), jnp.float32, -bound, bound)
        b = jax.random.uniform(kb, (cout,), jnp.float32, -bound, bound)
        return w, b

    def bn_init(k, c):
        k1, k2, k3, k4 = jax.random.split(k, 4)
        gamma = 1.0 + 0.1 * jax.random.normal(k1, (c,), jnp.float32)
        beta = 0.1 * jax.random.normal(k2, (c,), jnp.float32)
        mean = 0.1 * jax.random.normal(k3, (c,), jnp.float32)
        var = jax.random.uniform(k4, (c,), jnp.float32, 0.5, 1.5)
        return gamma, beta, mean, var

    return {
        "conv1": conv_init(ks[0], 64, 6),    "bn1": bn_init(ks[1], 64),
        "conv2": conv_init(ks[2], 128, 64),  "bn2": bn_init(ks[3], 128),
        "conv3": conv_init(ks[4], 256, 128), "bn3": bn_init(ks[5], 256),
    }


# ---------------------------------------------------------------------------
# Pure-numpy float64 reference (correctness smoke test)
# ---------------------------------------------------------------------------
def _np_conv_bn_relu(x, w, b, gamma, beta, mean, var, stride):
    N, C, H, W = x.shape
    Cout = w.shape[0]
    xp = np.pad(x, ((0, 0), (0, 0), (1, 1), (1, 1)))
    Ho = (H + 2 - 3) // stride + 1
    Wo = (W + 2 - 3) // stride + 1
    out = np.zeros((N, Cout, Ho, Wo), dtype=np.float64)
    for dy in range(3):
        for dx in range(3):
            patch = xp[:, :, dy:dy + stride * Ho:stride, dx:dx + stride * Wo:stride]
            out += np.einsum("nchw,oc->nohw", patch, w[:, :, dy, dx])
    out += b[None, :, None, None]
    out = (out - mean[None, :, None, None]) / np.sqrt(var[None, :, None, None] + BN_EPS)
    out = out * gamma[None, :, None, None] + beta[None, :, None, None]
    return np.maximum(out, 0.0)


def reference_forward(x_nchw, params):
    fft = np.fft.fft2(x_nchw, axes=(-2, -1))
    fft_input = np.concatenate([fft.real, fft.imag], axis=1)
    filt = np.asarray(high_pass_filter(x_nchw.shape[2]), np.float64)
    fft_high = fft_input * filt[None, None]
    f1 = _np_conv_bn_relu(fft_high, *params["conv1"], *params["bn1"], stride=1)
    f2 = _np_conv_bn_relu(f1, *params["conv2"], *params["bn2"], stride=2)
    f3 = _np_conv_bn_relu(f2, *params["conv3"], *params["bn3"], stride=2)
    return f1, f2, f3


if __name__ == "__main__":
    key = jax.random.PRNGKey(0)
    kx, kp = jax.random.split(key)
    B, C, H, W = 2, 3, 16, 16          # conv1 expects 6 = 2*C input channels -> C = 3
    x = jax.random.normal(kx, (B, C, H, W), jnp.float32)
    params = init_params(kp)

    outs = jax.jit(frequency_module_forward)(x, params)
    outs = jax.block_until_ready(outs)

    np_params = {k: tuple(np.asarray(a, np.float64) for a in v) for k, v in params.items()}
    refs = reference_forward(np.asarray(x, np.float64), np_params)

    expected_shapes = [(B, 64, H, W), (B, 128, H // 2, W // 2), (B, 256, H // 4, W // 4)]
    for o, r, es in zip(outs, refs, expected_shapes):
        o = np.asarray(o, np.float64)
        assert o.shape == es and r.shape == es, (o.shape, r.shape, es)
        err = np.max(np.abs(o - r))
        scale = np.max(np.abs(r)) + 1e-6
        # loose tolerance: TPU matmul default precision (bf16 passes) vs float64 reference
        assert err / scale < 1e-1, (err, scale)

    print("KERNEL_OK")
</pallas_src>

<mosaic_0001>
module attributes {stable_mosaic.version = 11 : i64} {
  func.func @_fft_filter_kernel(%arg0: i32, %arg1: memref<2x3x16x16xf32, #tpu.memory_space<vmem>>, %arg2: memref<16x16xf32, #tpu.memory_space<vmem>>, %arg3: memref<16x16xf32, #tpu.memory_space<vmem>>, %arg4: memref<16x16xf32, #tpu.memory_space<vmem>>, %arg5: memref<2x6x16x16xf32, #tpu.memory_space<vmem>>) attributes {dimension_semantics = [#tpu.dimension_semantics<parallel>], iteration_bounds = array<i64: 1>, scalar_prefetch = 0 : i64, scratch_operands = 0 : i64, tpu.core_type = #tpu.core_type<tc>, window_params = [{transform_indices = @transform_0, window_bounds = array<i64: 2, 3, 16, 16>}, {pipeline_mode = #tpu.pipeline_mode<synchronous>, transform_indices = @transform_1, window_bounds = array<i64: 16, 16>}, {pipeline_mode = #tpu.pipeline_mode<synchronous>, transform_indices = @transform_2, window_bounds = array<i64: 16, 16>}, {pipeline_mode = #tpu.pipeline_mode<synchronous>, transform_indices = @transform_3, window_bounds = array<i64: 16, 16>}, {transform_indices = @transform_4, window_bounds = array<i64: 2, 6, 16, 16>}]} {
    %c0 = arith.constant 0 : index
    %c0_0 = arith.constant 0 : index
    %0 = vector.load %arg2[%c0, %c0_0] : memref<16x16xf32, #tpu.memory_space<vmem>>, vector<16x16xf32>
    %c0_1 = arith.constant 0 : index
    %c0_2 = arith.constant 0 : index
    %1 = vector.load %arg3[%c0_1, %c0_2] : memref<16x16xf32, #tpu.memory_space<vmem>>, vector<16x16xf32>
    %c0_3 = arith.constant 0 : index
    %c0_4 = arith.constant 0 : index
    %c0_5 = arith.constant 0 : index
    %c0_6 = arith.constant 0 : index
    %2 = vector.load %arg1[%c0_3, %c0_4, %c0_5, %c0_6] : memref<2x3x16x16xf32, #tpu.memory_space<vmem>>, vector<2x3x16x16xf32>
    %3 = vector.shape_cast %2 : vector<2x3x16x16xf32> to vector<96x16xf32>
    %cst = arith.constant dense<0.000000e+00> : vector<96x16xf32>
    %4 = tpu.matmul %3, %0, %cst {dimension_numbers = #tpu.dot_dimension_numbers<[1], [0], [0], [1], [0, 0, 1, 1], [], []>} : vector<96x16xf32>, vector<16x16xf32>, vector<96x16xf32> -> vector<96x16xf32>
    %cst_7 = arith.constant dense<0.000000e+00> : vector<96x16xf32>
    %5 = tpu.matmul %3, %1, %cst_7 {dimension_numbers = #tpu.dot_dimension_numbers<[1], [0], [0], [1], [0, 0, 1, 1], [], []>} : vector<96x16xf32>, vector<16x16xf32>, vector<96x16xf32> -> vector<96x16xf32>
    %cst_8 = arith.constant 0.000000e+00 : f32
    %6 = vector.broadcast %cst_8 : f32 to vector<96x16xf32>
    %7 = arith.subf %6, %5 : vector<96x16xf32>
    %8 = vector.shape_cast %4 : vector<96x16xf32> to vector<6x16x16xf32>
    %9 = tpu.transpose %8, [0, 2, 1] : vector<6x16x16xf32> -> vector<6x16x16xf32>
    %10 = vector.shape_cast %9 : vector<6x16x16xf32> to vector<96x16xf32>
    %11 = vector.shape_cast %7 : vector<96x16xf32> to vector<6x16x16xf32>
    %12 = tpu.transpose %11, [0, 2, 1] : vector<6x16x16xf32> -> vector<6x16x16xf32>
    %13 = vector.shape_cast %12 : vector<6x16x16xf32> to vector<96x16xf32>
    %14 = arith.addf %10, %13 : vector<96x16xf32>
    %cst_9 = arith.constant dense<0.000000e+00> : vector<96x16xf32>
    %15 = tpu.matmul %14, %0, %cst_9 {dimension_numbers = #tpu.dot_dimension_numbers<[1], [0], [0], [1], [0, 0, 1, 1], [], []>} : vector<96x16xf32>, vector<16x16xf32>, vector<96x16xf32> -> vector<96x16xf32>
    %16 = arith.addf %0, %1 : vector<16x16xf32>
    %cst_10 = arith.constant dense<0.000000e+00> : vector<96x16xf32>
    %17 = tpu.matmul %10, %16, %cst_10 {dimension_numbers = #tpu.dot_dimension_numbers<[1], [0], [0], [1], [0, 0, 1, 1], [], []>} : vector<96x16xf32>, vector<16x16xf32>, vector<96x16xf32> -> vector<96x16xf32>
    %18 = arith.subf %0, %1 : vector<16x16xf32>
    %cst_11 = arith.constant dense<0.000000e+00> : vector<96x16xf32>
    %19 = tpu.matmul %13, %18, %cst_11 {dimension_numbers = #tpu.dot_dimension_numbers<[1], [0], [0], [1], [0, 0, 1, 1], [], []>} : vector<96x16xf32>, vector<16x16xf32>, vector<96x16xf32> -> vector<96x16xf32>
    %20 = arith.subf %15, %19 : vector<96x16xf32>
    %21 = arith.subf %15, %17 : vector<96x16xf32>
    %22 = vector.shape_cast %20 : vector<96x16xf32> to vector<6x16x16xf32>
    %23 = tpu.transpose %22, [0, 2, 1] : vector<6x16x16xf32> -> vector<6x16x16xf32>
    %24 = vector.shape_cast %23 : vector<6x16x16xf32> to vector<2x3x16x16xf32>
    %25 = vector.shape_cast %21 : vector<96x16xf32> to vector<6x16x16xf32>
    %26 = tpu.transpose %25, [0, 2, 1] : vector<6x16x16xf32> -> vector<6x16x16xf32>
    %27 = vector.shape_cast %26 : vector<6x16x16xf32> to vector<2x3x16x16xf32>
    %c0_12 = arith.constant 0 : index
    %c0_13 = arith.constant 0 : index
    %28 = vector.load %arg4[%c0_12, %c0_13] : memref<16x16xf32, #tpu.memory_space<vmem>>, vector<16x16xf32>
    %29 = vector.shape_cast %28 : vector<16x16xf32> to vector<1x1x16x16xf32>
    %30 = vector.broadcast %29 : vector<1x1x16x16xf32> to vector<2x3x16x16xf32>
    %31 = arith.mulf %24, %30 : vector<2x3x16x16xf32>
    %c0_14 = arith.constant 0 : index
    %c0_15 = arith.constant 0 : index
    %c0_16 = arith.constant 0 : index
    %c0_17 = arith.constant 0 : index
    %32 = vector.load %arg5[%c0_14, %c0_15, %c0_16, %c0_17] : memref<2x6x16x16xf32, #tpu.memory_space<vmem>>, vector<2x3x16x16xf32>
    tpu.vector_store %arg5[%c0_14, %c0_15, %c0_16, %c0_17], %31 {strides = array<i32>} : memref<2x6x16x16xf32, #tpu.memory_space<vmem>>, vector<2x3x16x16xf32>,
    %33 = vector.shape_cast %28 : vector<16x16xf32> to vector<1x1x16x16xf32>
    %34 = vector.broadcast %33 : vector<1x1x16x16xf32> to vector<2x3x16x16xf32>
    %35 = arith.mulf %27, %34 : vector<2x3x16x16xf32>
    %c0_18 = arith.constant 0 : index
    %c3 = arith.constant 3 : index
    %c0_19 = arith.constant 0 : index
    %c0_20 = arith.constant 0 : index
    %36 = vector.load %arg5[%c0_18, %c3, %c0_19, %c0_20] : memref<2x6x16x16xf32, #tpu.memory_space<vmem>>, vector<2x3x16x16xf32>
    tpu.vector_store %arg5[%c0_18, %c3, %c0_19, %c0_20], %35 {strides = array<i32>} : memref<2x6x16x16xf32, #tpu.memory_space<vmem>>, vector<2x3x16x16xf32>,
    return
  }
  func.func @transform_0(%arg0: i32) -> (i32, i32, i32, i32) {
    %c0_i32 = arith.constant 0 : i32
    %c0_i32_0 = arith.constant 0 : i32
    %c0_i32_1 = arith.constant 0 : i32
    %c0_i32_2 = arith.constant 0 : i32
    return %arg0, %c0_i32, %c0_i32_0, %c0_i32_1 : i32, i32, i32, i32
  }
  func.func @transform_1(%arg0: i32) -> (i32, i32) {
    %c0_i32 = arith.constant 0 : i32
    %c0_i32_0 = arith.constant 0 : i32
    %c0_i32_1 = arith.constant 0 : i32
    return %c0_i32, %c0_i32_0 : i32, i32
  }
  func.func @transform_2(%arg0: i32) -> (i32, i32) {
    %c0_i32 = arith.constant 0 : i32
    %c0_i32_0 = arith.constant 0 : i32
    %c0_i32_1 = arith.constant 0 : i32
    return %c0_i32, %c0_i32_0 : i32, i32
  }
  func.func @transform_3(%arg0: i32) -> (i32, i32) {
    %c0_i32 = arith.constant 0 : i32
    %c0_i32_0 = arith.constant 0 : i32
    %c0_i32_1 = arith.constant 0 : i32
    return %c0_i32, %c0_i32_0 : i32, i32
  }
  func.func @transform_4(%arg0: i32) -> (i32, i32, i32, i32) {
    %c0_i32 = arith.constant 0 : i32
    %c0_i32_0 = arith.constant 0 : i32
    %c0_i32_1 = arith.constant 0 : i32
    %c0_i32_2 = arith.constant 0 : i32
    return %arg0, %c0_i32, %c0_i32_0, %c0_i32_1 : i32, i32, i32, i32
  }
}

module attributes {stable_mosaic.version = 11 : i64} {
  func.func @kernel(%arg0: i32, %arg1: i32, %arg2: memref<2x18x18x6xf32, #tpu.memory_space<vmem>>, %arg3: memref<9x6x64xf32, #tpu.memory_space<vmem>>, %arg4: memref<1x64xf32, #tpu.memory_space<vmem>>, %arg5: memref<1x64xf32, #tpu.memory_space<vmem>>, %arg6: memref<512x64xf32, #tpu.memory_space<vmem>>) attributes {dimension_semantics = [#tpu.dimension_semantics<parallel>, #tpu.dimension_semantics<parallel>], iteration_bounds = array<i64: 1, 1>, scalar_prefetch = 0 : i64, scratch_operands = 0 : i64, tpu.core_type = #tpu.core_type<tc>, window_params = [{transform_indices = @transform_0, window_bounds = array<i64: 2, 18, 18, 6>}, {transform_indices = @transform_1, window_bounds = array<i64: 9, 6, 64>}, {transform_indices = @transform_2, window_bounds = array<i64: 1, 64>}, {transform_indices = @transform_3, window_bounds = array<i64: 1, 64>}, {transform_indices = @transform_4, window_bounds = array<i64: 512, 64>}]} {
    %c0 = arith.constant 0 : index
    %c0_0 = arith.constant 0 : index
    %c0_1 = arith.constant 0 : index
    %c0_2 = arith.constant 0 : index
    %0 = vector.load %arg2[%c0, %c0_0, %c0_1, %c0_2] : memref<2x18x18x6xf32, #tpu.memory_space<vmem>>, vector<2x18x18x6xf32>
    %c0_3 = arith.constant 0 : index
    %c0_4 = arith.constant 0 : index
    %c0_5 = arith.constant 0 : index
    %1 = vector.load %arg3[%c0_3, %c0_4, %c0_5] : memref<9x6x64xf32, #tpu.memory_space<vmem>>, vector<9x6x64xf32>
    %2 = vector.extract_strided_slice %0 {offsets = [0, 0, 0, 0], sizes = [2, 16, 16, 6], strides = [1, 1, 1, 1]} : vector<2x18x18x6xf32> to vector<2x16x16x6xf32>
    %3 = vector.shape_cast %2 : vector<2x16x16x6xf32> to vector<512x6xf32>
    %4 = vector.extract_strided_slice %1 {offsets = [0, 0, 0], sizes = [1, 6, 64], strides = [1, 1, 1]} : vector<9x6x64xf32> to vector<1x6x64xf32>
    %5 = vector.shape_cast %4 : vector<1x6x64xf32> to vector<6x64xf32>
    %cst = arith.constant dense<0.000000e+00> : vector<512x64xf32>
    %6 = tpu.matmul %3, %5, %cst {dimension_numbers = #tpu.dot_dimension_numbers<[1], [0], [0], [1], [0, 0, 1, 1], [], []>} : vector<512x6xf32>, vector<6x64xf32>, vector<512x64xf32> -> vector<512x64xf32>
    %7 = vector.extract_strided_slice %0 {offsets = [0, 0, 1, 0], sizes = [2, 16, 16, 6], strides = [1, 1, 1, 1]} : vector<2x18x18x6xf32> to vector<2x16x16x6xf32>
    %8 = vector.shape_cast %7 : vector<2x16x16x6xf32> to vector<512x6xf32>
    %9 = vector.extract_strided_slice %1 {offsets = [1, 0, 0], sizes = [1, 6, 64], strides = [1, 1, 1]} : vector<9x6x64xf32> to vector<1x6x64xf32>
    %10 = vector.shape_cast %9 : vector<1x6x64xf32> to vector<6x64xf32>
    %cst_6 = arith.constant dense<0.000000e+00> : vector<512x64xf32>
    %11 = tpu.matmul %8, %10, %cst_6 {dimension_numbers = #tpu.dot_dimension_numbers<[1], [0], [0], [1], [0, 0, 1, 1], [], []>} : vector<512x6xf32>, vector<6x64xf32>, vector<512x64xf32> -> vector<512x64xf32>
    %12 = arith.addf %6, %11 : vector<512x64xf32>
    %13 = vector.extract_strided_slice %0 {offsets = [0, 0, 2, 0], sizes = [2, 16, 16, 6], strides = [1, 1, 1, 1]} : vector<2x18x18x6xf32> to vector<2x16x16x6xf32>
    %14 = vector.shape_cast %13 : vector<2x16x16x6xf32> to vector<512x6xf32>
    %15 = vector.extract_strided_slice %1 {offsets = [2, 0, 0], sizes = [1, 6, 64], strides = [1, 1, 1]} : vector<9x6x64xf32> to vector<1x6x64xf32>
    %16 = vector.shape_cast %15 : vector<1x6x64xf32> to vector<6x64xf32>
    %cst_7 = arith.constant dense<0.000000e+00> : vector<512x64xf32>
    %17 = tpu.matmul %14, %16, %cst_7 {dimension_numbers = #tpu.dot_dimension_numbers<[1], [0], [0], [1], [0, 0, 1, 1], [], []>} : vector<512x6xf32>, vector<6x64xf32>, vector<512x64xf32> -> vector<512x64xf32>
    %18 = arith.addf %12, %17 : vector<512x64xf32>
    %19 = vector.extract_strided_slice %0 {offsets = [0, 1, 0, 0], sizes = [2, 16, 16, 6], strides = [1, 1, 1, 1]} : vector<2x18x18x6xf32> to vector<2x16x16x6xf32>
    %20 = vector.shape_cast %19 : vector<2x16x16x6xf32> to vector<512x6xf32>
    %21 = vector.extract_strided_slice %1 {offsets = [3, 0, 0], sizes = [1, 6, 64], strides = [1, 1, 1]} : vector<9x6x64xf32> to vector<1x6x64xf32>
    %22 = vector.shape_cast %21 : vector<1x6x64xf32> to vector<6x64xf32>
    %cst_8 = arith.constant dense<0.000000e+00> : vector<512x64xf32>
    %23 = tpu.matmul %20, %22, %cst_8 {dimension_numbers = #tpu.dot_dimension_numbers<[1], [0], [0], [1], [0, 0, 1, 1], [], []>} : vector<512x6xf32>, vector<6x64xf32>, vector<512x64xf32> -> vector<512x64xf32>
    %24 = arith.addf %18, %23 : vector<512x64xf32>
    %25 = vector.extract_strided_slice %0 {offsets = [0, 1, 1, 0], sizes = [2, 16, 16, 6], strides = [1, 1, 1, 1]} : vector<2x18x18x6xf32> to vector<2x16x16x6xf32>
    %26 = vector.shape_cast %25 : vector<2x16x16x6xf32> to vector<512x6xf32>
    %27 = vector.extract_strided_slice %1 {offsets = [4, 0, 0], sizes = [1, 6, 64], strides = [1, 1, 1]} : vector<9x6x64xf32> to vector<1x6x64xf32>
    %28 = vector.shape_cast %27 : vector<1x6x64xf32> to vector<6x64xf32>
    %cst_9 = arith.constant dense<0.000000e+00> : vector<512x64xf32>
    %29 = tpu.matmul %26, %28, %cst_9 {dimension_numbers = #tpu.dot_dimension_numbers<[1], [0], [0], [1], [0, 0, 1, 1], [], []>} : vector<512x6xf32>, vector<6x64xf32>, vector<512x64xf32> -> vector<512x64xf32>
    %30 = arith.addf %24, %29 : vector<512x64xf32>
    %31 = vector.extract_strided_slice %0 {offsets = [0, 1, 2, 0], sizes = [2, 16, 16, 6], strides = [1, 1, 1, 1]} : vector<2x18x18x6xf32> to vector<2x16x16x6xf32>
    %32 = vector.shape_cast %31 : vector<2x16x16x6xf32> to vector<512x6xf32>
    %33 = vector.extract_strided_slice %1 {offsets = [5, 0, 0], sizes = [1, 6, 64], strides = [1, 1, 1]} : vector<9x6x64xf32> to vector<1x6x64xf32>
    %34 = vector.shape_cast %33 : vector<1x6x64xf32> to vector<6x64xf32>
    %cst_10 = arith.constant dense<0.000000e+00> : vector<512x64xf32>
    %35 = tpu.matmul %32, %34, %cst_10 {dimension_numbers = #tpu.dot_dimension_numbers<[1], [0], [0], [1], [0, 0, 1, 1], [], []>} : vector<512x6xf32>, vector<6x64xf32>, vector<512x64xf32> -> vector<512x64xf32>
    %36 = arith.addf %30, %35 : vector<512x64xf32>
    %37 = vector.extract_strided_slice %0 {offsets = [0, 2, 0, 0], sizes = [2, 16, 16, 6], strides = [1, 1, 1, 1]} : vector<2x18x18x6xf32> to vector<2x16x16x6xf32>
    %38 = vector.shape_cast %37 : vector<2x16x16x6xf32> to vector<512x6xf32>
    %39 = vector.extract_strided_slice %1 {offsets = [6, 0, 0], sizes = [1, 6, 64], strides = [1, 1, 1]} : vector<9x6x64xf32> to vector<1x6x64xf32>
    %40 = vector.shape_cast %39 : vector<1x6x64xf32> to vector<6x64xf32>
    %cst_11 = arith.constant dense<0.000000e+00> : vector<512x64xf32>
    %41 = tpu.matmul %38, %40, %cst_11 {dimension_numbers = #tpu.dot_dimension_numbers<[1], [0], [0], [1], [0, 0, 1, 1], [], []>} : vector<512x6xf32>, vector<6x64xf32>, vector<512x64xf32> -> vector<512x64xf32>
    %42 = arith.addf %36, %41 : vector<512x64xf32>
    %43 = vector.extract_strided_slice %0 {offsets = [0, 2, 1, 0], sizes = [2, 16, 16, 6], strides = [1, 1, 1, 1]} : vector<2x18x18x6xf32> to vector<2x16x16x6xf32>
    %44 = vector.shape_cast %43 : vector<2x16x16x6xf32> to vector<512x6xf32>
    %45 = vector.extract_strided_slice %1 {offsets = [7, 0, 0], sizes = [1, 6, 64], strides = [1, 1, 1]} : vector<9x6x64xf32> to vector<1x6x64xf32>
    %46 = vector.shape_cast %45 : vector<1x6x64xf32> to vector<6x64xf32>
    %cst_12 = arith.constant dense<0.000000e+00> : vector<512x64xf32>
    %47 = tpu.matmul %44, %46, %cst_12 {dimension_numbers = #tpu.dot_dimension_numbers<[1], [0], [0], [1], [0, 0, 1, 1], [], []>} : vector<512x6xf32>, vector<6x64xf32>, vector<512x64xf32> -> vector<512x64xf32>
    %48 = arith.addf %42, %47 : vector<512x64xf32>
    %49 = vector.extract_strided_slice %0 {offsets = [0, 2, 2, 0], sizes = [2, 16, 16, 6], strides = [1, 1, 1, 1]} : vector<2x18x18x6xf32> to vector<2x16x16x6xf32>
    %50 = vector.shape_cast %49 : vector<2x16x16x6xf32> to vector<512x6xf32>
    %51 = vector.extract_strided_slice %1 {offsets = [8, 0, 0], sizes = [1, 6, 64], strides = [1, 1, 1]} : vector<9x6x64xf32> to vector<1x6x64xf32>
    %52 = vector.shape_cast %51 : vector<1x6x64xf32> to vector<6x64xf32>
    %cst_13 = arith.constant dense<0.000000e+00> : vector<512x64xf32>
    %53 = tpu.matmul %50, %52, %cst_13 {dimension_numbers = #tpu.dot_dimension_numbers<[1], [0], [0], [1], [0, 0, 1, 1], [], []>} : vector<512x6xf32>, vector<6x64xf32>, vector<512x64xf32> -> vector<512x64xf32>
    %54 = arith.addf %48, %53 : vector<512x64xf32>
    %c0_14 = arith.constant 0 : index
    %c0_15 = arith.constant 0 : index
    %55 = vector.load %arg4[%c0_14, %c0_15] : memref<1x64xf32, #tpu.memory_space<vmem>>, vector<1x64xf32>
    %56 = vector.broadcast %55 : vector<1x64xf32> to vector<512x64xf32>
    %57 = arith.mulf %54, %56 : vector<512x64xf32>
    %c0_16 = arith.constant 0 : index
    %c0_17 = arith.constant 0 : index
    %58 = vector.load %arg5[%c0_16, %c0_17] : memref<1x64xf32, #tpu.memory_space<vmem>>, vector<1x64xf32>
    %59 = vector.broadcast %58 : vector<1x64xf32> to vector<512x64xf32>
    %60 = arith.addf %57, %59 : vector<512x64xf32>
    %cst_18 = arith.constant 0.000000e+00 : f32
    %61 = vector.broadcast %cst_18 : f32 to vector<512x64xf32>
    %62 = arith.maximumf %60, %61 : vector<512x64xf32>
    %c0_19 = arith.constant 0 : index
    %c0_20 = arith.constant 0 : index
    %63 = vector.load %arg6[%c0_19, %c0_20] : memref<512x64xf32, #tpu.memory_space<vmem>>, vector<512x64xf32>
    tpu.vector_store %arg6[%c0_19, %c0_20], %62 {strides = array<i32>} : memref<512x64xf32, #tpu.memory_space<vmem>>, vector<512x64xf32>,
    return
  }
  func.func @transform_0(%arg0: i32, %arg1: i32) -> (i32, i32, i32, i32) {
    %c0_i32 = arith.constant 0 : i32
    %c0_i32_0 = arith.constant 0 : i32
    %c0_i32_1 = arith.constant 0 : i32
    %c0_i32_2 = arith.constant 0 : i32
    return %arg0, %c0_i32, %c0_i32_0, %c0_i32_1 : i32, i32, i32, i32
  }
  func.func @transform_1(%arg0: i32, %arg1: i32) -> (i32, i32, i32) {
    %c0_i32 = arith.constant 0 : i32
    %c0_i32_0 = arith.constant 0 : i32
    %c0_i32_1 = arith.constant 0 : i32
    return %c0_i32, %c0_i32_0, %arg1 : i32, i32, i32
  }
  func.func @transform_2(%arg0: i32, %arg1: i32) -> (i32, i32) {
    %c0_i32 = arith.constant 0 : i32
    %c0_i32_0 = arith.constant 0 : i32
    return %c0_i32, %arg1 : i32, i32
  }
  func.func @transform_3(%arg0: i32, %arg1: i32) -> (i32, i32) {
    %c0_i32 = arith.constant 0 : i32
    %c0_i32_0 = arith.constant 0 : i32
    return %c0_i32, %arg1 : i32, i32
  }
  func.func @transform_4(%arg0: i32, %arg1: i32) -> (i32, i32) {
    %c0_i32 = arith.constant 0 : i32
    return %arg0, %arg1 : i32, i32
  }
}

module attributes {stable_mosaic.version = 11 : i64} {
  func.func @kernel(%arg0: i32, %arg1: i32, %arg2: memref<2x9x9x64xf32, #tpu.memory_space<vmem>>, %arg3: memref<2x9x9x64xf32, #tpu.memory_space<vmem>>, %arg4: memref<2x9x9x64xf32, #tpu.memory_space<vmem>>, %arg5: memref<2x9x9x64xf32, #tpu.memory_space<vmem>>, %arg6: memref<9x64x128xf32, #tpu.memory_space<vmem>>, %arg7: memref<1x128xf32, #tpu.memory_space<vmem>>, %arg8: memref<1x128xf32, #tpu.memory_space<vmem>>, %arg9: memref<128x128xf32, #tpu.memory_space<vmem>>) attributes {dimension_semantics = [#tpu.dimension_semantics<parallel>, #tpu.dimension_semantics<parallel>], iteration_bounds = array<i64: 1, 1>, scalar_prefetch = 0 : i64, scratch_operands = 0 : i64, tpu.core_type = #tpu.core_type<tc>, window_params = [{transform_indices = @transform_0, window_bounds = array<i64: 2, 9, 9, 64>}, {transform_indices = @transform_1, window_bounds = array<i64: 2, 9, 9, 64>}, {transform_indices = @transform_2, window_bounds = array<i64: 2, 9, 9, 64>}, {transform_indices = @transform_3, window_bounds = array<i64: 2, 9, 9, 64>}, {transform_indices = @transform_4, window_bounds = array<i64: 9, 64, 128>}, {transform_indices = @transform_5, window_bounds = array<i64: 1, 128>}, {transform_indices = @transform_6, window_bounds = array<i64: 1, 128>}, {transform_indices = @transform_7, window_bounds = array<i64: 128, 128>}]} {
    %c0 = arith.constant 0 : index
    %c0_0 = arith.constant 0 : index
    %c0_1 = arith.constant 0 : index
    %c0_2 = arith.constant 0 : index
    %0 = vector.load %arg2[%c0, %c0_0, %c0_1, %c0_2] : memref<2x9x9x64xf32, #tpu.memory_space<vmem>>, vector<2x9x9x64xf32>
    %c0_3 = arith.constant 0 : index
    %c0_4 = arith.constant 0 : index
    %c0_5 = arith.constant 0 : index
    %c0_6 = arith.constant 0 : index
    %1 = vector.load %arg3[%c0_3, %c0_4, %c0_5, %c0_6] : memref<2x9x9x64xf32, #tpu.memory_space<vmem>>, vector<2x9x9x64xf32>
    %c0_7 = arith.constant 0 : index
    %c0_8 = arith.constant 0 : index
    %c0_9 = arith.constant 0 : index
    %c0_10 = arith.constant 0 : index
    %2 = vector.load %arg4[%c0_7, %c0_8, %c0_9, %c0_10] : memref<2x9x9x64xf32, #tpu.memory_space<vmem>>, vector<2x9x9x64xf32>
    %c0_11 = arith.constant 0 : index
    %c0_12 = arith.constant 0 : index
    %c0_13 = arith.constant 0 : index
    %c0_14 = arith.constant 0 : index
    %3 = vector.load %arg5[%c0_11, %c0_12, %c0_13, %c0_14] : memref<2x9x9x64xf32, #tpu.memory_space<vmem>>, vector<2x9x9x64xf32>
    %c0_15 = arith.constant 0 : index
    %c0_16 = arith.constant 0 : index
    %c0_17 = arith.constant 0 : index
    %4 = vector.load %arg6[%c0_15, %c0_16, %c0_17] : memref<9x64x128xf32, #tpu.memory_space<vmem>>, vector<9x64x128xf32>
    %5 = vector.extract_strided_slice %0 {offsets = [0, 0, 0, 0], sizes = [2, 8, 8, 64], strides = [1, 1, 1, 1]} : vector<2x9x9x64xf32> to vector<2x8x8x64xf32>
    %6 = vector.shape_cast %5 : vector<2x8x8x64xf32> to vector<128x64xf32>
    %7 = vector.extract_strided_slice %4 {offsets = [0, 0, 0], sizes = [1, 64, 128], strides = [1, 1, 1]} : vector<9x64x128xf32> to vector<1x64x128xf32>
    %8 = vector.shape_cast %7 : vector<1x64x128xf32> to vector<64x128xf32>
    %cst = arith.constant dense<0.000000e+00> : vector<128x128xf32>
    %9 = tpu.matmul %6, %8, %cst {dimension_numbers = #tpu.dot_dimension_numbers<[1], [0], [0], [1], [0, 0, 1, 1], [], []>} : vector<128x64xf32>, vector<64x128xf32>, vector<128x128xf32> -> vector<128x128xf32>
    %10 = vector.extract_strided_slice %1 {offsets = [0, 0, 0, 0], sizes = [2, 8, 8, 64], strides = [1, 1, 1, 1]} : vector<2x9x9x64xf32> to vector<2x8x8x64xf32>
    %11 = vector.shape_cast %10 : vector<2x8x8x64xf32> to vector<128x64xf32>
    %12 = vector.extract_strided_slice %4 {offsets = [1, 0, 0], sizes = [1, 64, 128], strides = [1, 1, 1]} : vector<9x64x128xf32> to vector<1x64x128xf32>
    %13 = vector.shape_cast %12 : vector<1x64x128xf32> to vector<64x128xf32>
    %cst_18 = arith.constant dense<0.000000e+00> : vector<128x128xf32>
    %14 = tpu.matmul %11, %13, %cst_18 {dimension_numbers = #tpu.dot_dimension_numbers<[1], [0], [0], [1], [0, 0, 1, 1], [], []>} : vector<128x64xf32>, vector<64x128xf32>, vector<128x128xf32> -> vector<128x128xf32>
    %15 = arith.addf %9, %14 : vector<128x128xf32>
    %16 = vector.extract_strided_slice %0 {offsets = [0, 0, 1, 0], sizes = [2, 8, 8, 64], strides = [1, 1, 1, 1]} : vector<2x9x9x64xf32> to vector<2x8x8x64xf32>
    %17 = vector.shape_cast %16 : vector<2x8x8x64xf32> to vector<128x64xf32>
    %18 = vector.extract_strided_slice %4 {offsets = [2, 0, 0], sizes = [1, 64, 128], strides = [1, 1, 1]} : vector<9x64x128xf32> to vector<1x64x128xf32>
    %19 = vector.shape_cast %18 : vector<1x64x128xf32> to vector<64x128xf32>
    %cst_19 = arith.constant dense<0.000000e+00> : vector<128x128xf32>
    %20 = tpu.matmul %17, %19, %cst_19 {dimension_numbers = #tpu.dot_dimension_numbers<[1], [0], [0], [1], [0, 0, 1, 1], [], []>} : vector<128x64xf32>, vector<64x128xf32>, vector<128x128xf32> -> vector<128x128xf32>
    %21 = arith.addf %15, %20 : vector<128x128xf32>
    %22 = vector.extract_strided_slice %2 {offsets = [0, 0, 0, 0], sizes = [2, 8, 8, 64], strides = [1, 1, 1, 1]} : vector<2x9x9x64xf32> to vector<2x8x8x64xf32>
    %23 = vector.shape_cast %22 : vector<2x8x8x64xf32> to vector<128x64xf32>
    %24 = vector.extract_strided_slice %4 {offsets = [3, 0, 0], sizes = [1, 64, 128], strides = [1, 1, 1]} : vector<9x64x128xf32> to vector<1x64x128xf32>
    %25 = vector.shape_cast %24 : vector<1x64x128xf32> to vector<64x128xf32>
    %cst_20 = arith.constant dense<0.000000e+00> : vector<128x128xf32>
    %26 = tpu.matmul %23, %25, %cst_20 {dimension_numbers = #tpu.dot_dimension_numbers<[1], [0], [0], [1], [0, 0, 1, 1], [], []>} : vector<128x64xf32>, vector<64x128xf32>, vector<128x128xf32> -> vector<128x128xf32>
    %27 = arith.addf %21, %26 : vector<128x128xf32>
    %28 = vector.extract_strided_slice %3 {offsets = [0, 0, 0, 0], sizes = [2, 8, 8, 64], strides = [1, 1, 1, 1]} : vector<2x9x9x64xf32> to vector<2x8x8x64xf32>
    %29 = vector.shape_cast %28 : vector<2x8x8x64xf32> to vector<128x64xf32>
    %30 = vector.extract_strided_slice %4 {offsets = [4, 0, 0], sizes = [1, 64, 128], strides = [1, 1, 1]} : vector<9x64x128xf32> to vector<1x64x128xf32>
    %31 = vector.shape_cast %30 : vector<1x64x128xf32> to vector<64x128xf32>
    %cst_21 = arith.constant dense<0.000000e+00> : vector<128x128xf32>
    %32 = tpu.matmul %29, %31, %cst_21 {dimension_numbers = #tpu.dot_dimension_numbers<[1], [0], [0], [1], [0, 0, 1, 1], [], []>} : vector<128x64xf32>, vector<64x128xf32>, vector<128x128xf32> -> vector<128x128xf32>
    %33 = arith.addf %27, %32 : vector<128x128xf32>
    %34 = vector.extract_strided_slice %2 {offsets = [0, 0, 1, 0], sizes = [2, 8, 8, 64], strides = [1, 1, 1, 1]} : vector<2x9x9x64xf32> to vector<2x8x8x64xf32>
    %35 = vector.shape_cast %34 : vector<2x8x8x64xf32> to vector<128x64xf32>
    %36 = vector.extract_strided_slice %4 {offsets = [5, 0, 0], sizes = [1, 64, 128], strides = [1, 1, 1]} : vector<9x64x128xf32> to vector<1x64x128xf32>
    %37 = vector.shape_cast %36 : vector<1x64x128xf32> to vector<64x128xf32>
    %cst_22 = arith.constant dense<0.000000e+00> : vector<128x128xf32>
    %38 = tpu.matmul %35, %37, %cst_22 {dimension_numbers = #tpu.dot_dimension_numbers<[1], [0], [0], [1], [0, 0, 1, 1], [], []>} : vector<128x64xf32>, vector<64x128xf32>, vector<128x128xf32> -> vector<128x128xf32>
    %39 = arith.addf %33, %38 : vector<128x128xf32>
    %40 = vector.extract_strided_slice %0 {offsets = [0, 1, 0, 0], sizes = [2, 8, 8, 64], strides = [1, 1, 1, 1]} : vector<2x9x9x64xf32> to vector<2x8x8x64xf32>
    %41 = vector.shape_cast %40 : vector<2x8x8x64xf32> to vector<128x64xf32>
    %42 = vector.extract_strided_slice %4 {offsets = [6, 0, 0], sizes = [1, 64, 128], strides = [1, 1, 1]} : vector<9x64x128xf32> to vector<1x64x128xf32>
    %43 = vector.shape_cast %42 : vector<1x64x128xf32> to vector<64x128xf32>
    %cst_23 = arith.constant dense<0.000000e+00> : vector<128x128xf32>
    %44 = tpu.matmul %41, %43, %cst_23 {dimension_numbers = #tpu.dot_dimension_numbers<[1], [0], [0], [1], [0, 0, 1, 1], [], []>} : vector<128x64xf32>, vector<64x128xf32>, vector<128x128xf32> -> vector<128x128xf32>
    %45 = arith.addf %39, %44 : vector<128x128xf32>
    %46 = vector.extract_strided_slice %1 {offsets = [0, 1, 0, 0], sizes = [2, 8, 8, 64], strides = [1, 1, 1, 1]} : vector<2x9x9x64xf32> to vector<2x8x8x64xf32>
    %47 = vector.shape_cast %46 : vector<2x8x8x64xf32> to vector<128x64xf32>
    %48 = vector.extract_strided_slice %4 {offsets = [7, 0, 0], sizes = [1, 64, 128], strides = [1, 1, 1]} : vector<9x64x128xf32> to vector<1x64x128xf32>
    %49 = vector.shape_cast %48 : vector<1x64x128xf32> to vector<64x128xf32>
    %cst_24 = arith.constant dense<0.000000e+00> : vector<128x128xf32>
    %50 = tpu.matmul %47, %49, %cst_24 {dimension_numbers = #tpu.dot_dimension_numbers<[1], [0], [0], [1], [0, 0, 1, 1], [], []>} : vector<128x64xf32>, vector<64x128xf32>, vector<128x128xf32> -> vector<128x128xf32>
    %51 = arith.addf %45, %50 : vector<128x128xf32>
    %52 = vector.extract_strided_slice %0 {offsets = [0, 1, 1, 0], sizes = [2, 8, 8, 64], strides = [1, 1, 1, 1]} : vector<2x9x9x64xf32> to vector<2x8x8x64xf32>
    %53 = vector.shape_cast %52 : vector<2x8x8x64xf32> to vector<128x64xf32>
    %54 = vector.extract_strided_slice %4 {offsets = [8, 0, 0], sizes = [1, 64, 128], strides = [1, 1, 1]} : vector<9x64x128xf32> to vector<1x64x128xf32>
    %55 = vector.shape_cast %54 : vector<1x64x128xf32> to vector<64x128xf32>
    %cst_25 = arith.constant dense<0.000000e+00> : vector<128x128xf32>
    %56 = tpu.matmul %53, %55, %cst_25 {dimension_numbers = #tpu.dot_dimension_numbers<[1], [0], [0], [1], [0, 0, 1, 1], [], []>} : vector<128x64xf32>, vector<64x128xf32>, vector<128x128xf32> -> vector<128x128xf32>
    %57 = arith.addf %51, %56 : vector<128x128xf32>
    %c0_26 = arith.constant 0 : index
    %c0_27 = arith.constant 0 : index
    %58 = vector.load %arg7[%c0_26, %c0_27] : memref<1x128xf32, #tpu.memory_space<vmem>>, vector<1x128xf32>
    %59 = vector.broadcast %58 : vector<1x128xf32> to vector<128x128xf32>
    %60 = arith.mulf %57, %59 : vector<128x128xf32>
    %c0_28 = arith.constant 0 : index
    %c0_29 = arith.constant 0 : index
    %61 = vector.load %arg8[%c0_28, %c0_29] : memref<1x128xf32, #tpu.memory_space<vmem>>, vector<1x128xf32>
    %62 = vector.broadcast %61 : vector<1x128xf32> to vector<128x128xf32>
    %63 = arith.addf %60, %62 : vector<128x128xf32>
    %cst_30 = arith.constant 0.000000e+00 : f32
    %64 = vector.broadcast %cst_30 : f32 to vector<128x128xf32>
    %65 = arith.maximumf %63, %64 : vector<128x128xf32>
    %c0_31 = arith.constant 0 : index
    %c0_32 = arith.constant 0 : index
    %66 = vector.load %arg9[%c0_31, %c0_32] : memref<128x128xf32, #tpu.memory_space<vmem>>, vector<128x128xf32>
    tpu.vector_store %arg9[%c0_31, %c0_32], %65 {strides = array<i32>} : memref<128x128xf32, #tpu.memory_space<vmem>>, vector<128x128xf32>,
    return
  }
  func.func @transform_0(%arg0: i32, %arg1: i32) -> (i32, i32, i32, i32) {
    %c0_i32 = arith.constant 0 : i32
    %c0_i32_0 = arith.constant 0 : i32
    %c0_i32_1 = arith.constant 0 : i32
    %c0_i32_2 = arith.constant 0 : i32
    return %arg0, %c0_i32, %c0_i32_0, %c0_i32_1 : i32, i32, i32, i32
  }
  func.func @transform_1(%arg0: i32, %arg1: i32) -> (i32, i32, i32, i32) {
    %c0_i32 = arith.constant 0 : i32
    %c0_i32_0 = arith.constant 0 : i32
    %c0_i32_1 = arith.constant 0 : i32
    %c0_i32_2 = arith.constant 0 : i32
    return %arg0, %c0_i32, %c0_i32_0, %c0_i32_1 : i32, i32, i32, i32
  }
  func.func @transform_2(%arg0: i32, %arg1: i32) -> (i32, i32, i32, i32) {
    %c0_i32 = arith.constant 0 : i32
    %c0_i32_0 = arith.constant 0 : i32
    %c0_i32_1 = arith.constant 0 : i32
    %c0_i32_2 = arith.constant 0 : i32
    return %arg0, %c0_i32, %c0_i32_0, %c0_i32_1 : i32, i32, i32, i32
  }
  func.func @transform_3(%arg0: i32, %arg1: i32) -> (i32, i32, i32, i32) {
    %c0_i32 = arith.constant 0 : i32
    %c0_i32_0 = arith.constant 0 : i32
    %c0_i32_1 = arith.constant 0 : i32
    %c0_i32_2 = arith.constant 0 : i32
    return %arg0, %c0_i32, %c0_i32_0, %c0_i32_1 : i32, i32, i32, i32
  }
  func.func @transform_4(%arg0: i32, %arg1: i32) -> (i32, i32, i32) {
    %c0_i32 = arith.constant 0 : i32
    %c0_i32_0 = arith.constant 0 : i32
    %c0_i32_1 = arith.constant 0 : i32
    return %c0_i32, %c0_i32_0, %arg1 : i32, i32, i32
  }
  func.func @transform_5(%arg0: i32, %arg1: i32) -> (i32, i32) {
    %c0_i32 = arith.constant 0 : i32
    %c0_i32_0 = arith.constant 0 : i32
    return %c0_i32, %arg1 : i32, i32
  }
  func.func @transform_6(%arg0: i32, %arg1: i32) -> (i32, i32) {
    %c0_i32 = arith.constant 0 : i32
    %c0_i32_0 = arith.constant 0 : i32
    return %c0_i32, %arg1 : i32, i32
  }
  func.func @transform_7(%arg0: i32, %arg1: i32) -> (i32, i32) {
    %c0_i32 = arith.constant 0 : i32
    return %arg0, %arg1 : i32, i32
  }
}

module attributes {stable_mosaic.version = 11 : i64} {
  func.func @kernel(%arg0: i32, %arg1: i32, %arg2: memref<2x5x5x128xf32, #tpu.memory_space<vmem>>, %arg3: memref<2x5x5x128xf32, #tpu.memory_space<vmem>>, %arg4: memref<2x5x5x128xf32, #tpu.memory_space<vmem>>, %arg5: memref<2x5x5x128xf32, #tpu.memory_space<vmem>>, %arg6: memref<9x128x128xf32, #tpu.memory_space<vmem>>, %arg7: memref<1x128xf32, #tpu.memory_space<vmem>>, %arg8: memref<1x128xf32, #tpu.memory_space<vmem>>, %arg9: memref<32x128xf32, #tpu.memory_space<vmem>>) attributes {dimension_semantics = [#tpu.dimension_semantics<parallel>, #tpu.dimension_semantics<parallel>], iteration_bounds = array<i64: 1, 2>, scalar_prefetch = 0 : i64, scratch_operands = 0 : i64, tpu.core_type = #tpu.core_type<tc>, window_params = [{transform_indices = @transform_0, window_bounds = array<i64: 2, 5, 5, 128>}, {transform_indices = @transform_1, window_bounds = array<i64: 2, 5, 5, 128>}, {transform_indices = @transform_2, window_bounds = array<i64: 2, 5, 5, 128>}, {transform_indices = @transform_3, window_bounds = array<i64: 2, 5, 5, 128>}, {transform_indices = @transform_4, window_bounds = array<i64: 9, 128, 128>}, {transform_indices = @transform_5, window_bounds = array<i64: 1, 128>}, {transform_indices = @transform_6, window_bounds = array<i64: 1, 128>}, {transform_indices = @transform_7, window_bounds = array<i64: 32, 128>}]} {
    %c0 = arith.constant 0 : index
    %c0_0 = arith.constant 0 : index
    %c0_1 = arith.constant 0 : index
    %c0_2 = arith.constant 0 : index
    %0 = vector.load %arg2[%c0, %c0_0, %c0_1, %c0_2] : memref<2x5x5x128xf32, #tpu.memory_space<vmem>>, vector<2x5x5x128xf32>
    %c0_3 = arith.constant 0 : index
    %c0_4 = arith.constant 0 : index
    %c0_5 = arith.constant 0 : index
    %c0_6 = arith.constant 0 : index
    %1 = vector.load %arg3[%c0_3, %c0_4, %c0_5, %c0_6] : memref<2x5x5x128xf32, #tpu.memory_space<vmem>>, vector<2x5x5x128xf32>
    %c0_7 = arith.constant 0 : index
    %c0_8 = arith.constant 0 : index
    %c0_9 = arith.constant 0 : index
    %c0_10 = arith.constant 0 : index
    %2 = vector.load %arg4[%c0_7, %c0_8, %c0_9, %c0_10] : memref<2x5x5x128xf32, #tpu.memory_space<vmem>>, vector<2x5x5x128xf32>
    %c0_11 = arith.constant 0 : index
    %c0_12 = arith.constant 0 : index
    %c0_13 = arith.constant 0 : index
    %c0_14 = arith.constant 0 : index
    %3 = vector.load %arg5[%c0_11, %c0_12, %c0_13, %c0_14] : memref<2x5x5x128xf32, #tpu.memory_space<vmem>>, vector<2x5x5x128xf32>
    %c0_15 = arith.constant 0 : index
    %c0_16 = arith.constant 0 : index
    %c0_17 = arith.constant 0 : index
    %4 = vector.load %arg6[%c0_15, %c0_16, %c0_17] : memref<9x128x128xf32, #tpu.memory_space<vmem>>, vector<9x128x128xf32>
    %5 = vector.extract_strided_slice %0 {offsets = [0, 0, 0, 0], sizes = [2, 4, 4, 128], strides = [1, 1, 1, 1]} : vector<2x5x5x128xf32> to vector<2x4x4x128xf32>
    %6 = vector.shape_cast %5 : vector<2x4x4x128xf32> to vector<32x128xf32>
    %7 = vector.extract_strided_slice %4 {offsets = [0, 0, 0], sizes = [1, 128, 128], strides = [1, 1, 1]} : vector<9x128x128xf32> to vector<1x128x128xf32>
    %8 = vector.shape_cast %7 : vector<1x128x128xf32> to vector<128x128xf32>
    %cst = arith.constant dense<0.000000e+00> : vector<32x128xf32>
    %9 = tpu.matmul %6, %8, %cst {dimension_numbers = #tpu.dot_dimension_numbers<[1], [0], [0], [1], [0, 0, 1, 1], [], []>} : vector<32x128xf32>, vector<128x128xf32>, vector<32x128xf32> -> vector<32x128xf32>
    %10 = vector.extract_strided_slice %1 {offsets = [0, 0, 0, 0], sizes = [2, 4, 4, 128], strides = [1, 1, 1, 1]} : vector<2x5x5x128xf32> to vector<2x4x4x128xf32>
    %11 = vector.shape_cast %10 : vector<2x4x4x128xf32> to vector<32x128xf32>
    %12 = vector.extract_strided_slice %4 {offsets = [1, 0, 0], sizes = [1, 128, 128], strides = [1, 1, 1]} : vector<9x128x128xf32> to vector<1x128x128xf32>
    %13 = vector.shape_cast %12 : vector<1x128x128xf32> to vector<128x128xf32>
    %cst_18 = arith.constant dense<0.000000e+00> : vector<32x128xf32>
    %14 = tpu.matmul %11, %13, %cst_18 {dimension_numbers = #tpu.dot_dimension_numbers<[1], [0], [0], [1], [0, 0, 1, 1], [], []>} : vector<32x128xf32>, vector<128x128xf32>, vector<32x128xf32> -> vector<32x128xf32>
    %15 = arith.addf %9, %14 : vector<32x128xf32>
    %16 = vector.extract_strided_slice %0 {offsets = [0, 0, 1, 0], sizes = [2, 4, 4, 128], strides = [1, 1, 1, 1]} : vector<2x5x5x128xf32> to vector<2x4x4x128xf32>
    %17 = vector.shape_cast %16 : vector<2x4x4x128xf32> to vector<32x128xf32>
    %18 = vector.extract_strided_slice %4 {offsets = [2, 0, 0], sizes = [1, 128, 128], strides = [1, 1, 1]} : vector<9x128x128xf32> to vector<1x128x128xf32>
    %19 = vector.shape_cast %18 : vector<1x128x128xf32> to vector<128x128xf32>
    %cst_19 = arith.constant dense<0.000000e+00> : vector<32x128xf32>
    %20 = tpu.matmul %17, %19, %cst_19 {dimension_numbers = #tpu.dot_dimension_numbers<[1], [0], [0], [1], [0, 0, 1, 1], [], []>} : vector<32x128xf32>, vector<128x128xf32>, vector<32x128xf32> -> vector<32x128xf32>
    %21 = arith.addf %15, %20 : vector<32x128xf32>
    %22 = vector.extract_strided_slice %2 {offsets = [0, 0, 0, 0], sizes = [2, 4, 4, 128], strides = [1, 1, 1, 1]} : vector<2x5x5x128xf32> to vector<2x4x4x128xf32>
    %23 = vector.shape_cast %22 : vector<2x4x4x128xf32> to vector<32x128xf32>
    %24 = vector.extract_strided_slice %4 {offsets = [3, 0, 0], sizes = [1, 128, 128], strides = [1, 1, 1]} : vector<9x128x128xf32> to vector<1x128x128xf32>
    %25 = vector.shape_cast %24 : vector<1x128x128xf32> to vector<128x128xf32>
    %cst_20 = arith.constant dense<0.000000e+00> : vector<32x128xf32>
    %26 = tpu.matmul %23, %25, %cst_20 {dimension_numbers = #tpu.dot_dimension_numbers<[1], [0], [0], [1], [0, 0, 1, 1], [], []>} : vector<32x128xf32>, vector<128x128xf32>, vector<32x128xf32> -> vector<32x128xf32>
    %27 = arith.addf %21, %26 : vector<32x128xf32>
    %28 = vector.extract_strided_slice %3 {offsets = [0, 0, 0, 0], sizes = [2, 4, 4, 128], strides = [1, 1, 1, 1]} : vector<2x5x5x128xf32> to vector<2x4x4x128xf32>
    %29 = vector.shape_cast %28 : vector<2x4x4x128xf32> to vector<32x128xf32>
    %30 = vector.extract_strided_slice %4 {offsets = [4, 0, 0], sizes = [1, 128, 128], strides = [1, 1, 1]} : vector<9x128x128xf32> to vector<1x128x128xf32>
    %31 = vector.shape_cast %30 : vector<1x128x128xf32> to vector<128x128xf32>
    %cst_21 = arith.constant dense<0.000000e+00> : vector<32x128xf32>
    %32 = tpu.matmul %29, %31, %cst_21 {dimension_numbers = #tpu.dot_dimension_numbers<[1], [0], [0], [1], [0, 0, 1, 1], [], []>} : vector<32x128xf32>, vector<128x128xf32>, vector<32x128xf32> -> vector<32x128xf32>
    %33 = arith.addf %27, %32 : vector<32x128xf32>
    %34 = vector.extract_strided_slice %2 {offsets = [0, 0, 1, 0], sizes = [2, 4, 4, 128], strides = [1, 1, 1, 1]} : vector<2x5x5x128xf32> to vector<2x4x4x128xf32>
    %35 = vector.shape_cast %34 : vector<2x4x4x128xf32> to vector<32x128xf32>
    %36 = vector.extract_strided_slice %4 {offsets = [5, 0, 0], sizes = [1, 128, 128], strides = [1, 1, 1]} : vector<9x128x128xf32> to vector<1x128x128xf32>
    %37 = vector.shape_cast %36 : vector<1x128x128xf32> to vector<128x128xf32>
    %cst_22 = arith.constant dense<0.000000e+00> : vector<32x128xf32>
    %38 = tpu.matmul %35, %37, %cst_22 {dimension_numbers = #tpu.dot_dimension_numbers<[1], [0], [0], [1], [0, 0, 1, 1], [], []>} : vector<32x128xf32>, vector<128x128xf32>, vector<32x128xf32> -> vector<32x128xf32>
    %39 = arith.addf %33, %38 : vector<32x128xf32>
    %40 = vector.extract_strided_slice %0 {offsets = [0, 1, 0, 0], sizes = [2, 4, 4, 128], strides = [1, 1, 1, 1]} : vector<2x5x5x128xf32> to vector<2x4x4x128xf32>
    %41 = vector.shape_cast %40 : vector<2x4x4x128xf32> to vector<32x128xf32>
    %42 = vector.extract_strided_slice %4 {offsets = [6, 0, 0], sizes = [1, 128, 128], strides = [1, 1, 1]} : vector<9x128x128xf32> to vector<1x128x128xf32>
    %43 = vector.shape_cast %42 : vector<1x128x128xf32> to vector<128x128xf32>
    %cst_23 = arith.constant dense<0.000000e+00> : vector<32x128xf32>
    %44 = tpu.matmul %41, %43, %cst_23 {dimension_numbers = #tpu.dot_dimension_numbers<[1], [0], [0], [1], [0, 0, 1, 1], [], []>} : vector<32x128xf32>, vector<128x128xf32>, vector<32x128xf32> -> vector<32x128xf32>
    %45 = arith.addf %39, %44 : vector<32x128xf32>
    %46 = vector.extract_strided_slice %1 {offsets = [0, 1, 0, 0], sizes = [2, 4, 4, 128], strides = [1, 1, 1, 1]} : vector<2x5x5x128xf32> to vector<2x4x4x128xf32>
    %47 = vector.shape_cast %46 : vector<2x4x4x128xf32> to vector<32x128xf32>
    %48 = vector.extract_strided_slice %4 {offsets = [7, 0, 0], sizes = [1, 128, 128], strides = [1, 1, 1]} : vector<9x128x128xf32> to vector<1x128x128xf32>
    %49 = vector.shape_cast %48 : vector<1x128x128xf32> to vector<128x128xf32>
    %cst_24 = arith.constant dense<0.000000e+00> : vector<32x128xf32>
    %50 = tpu.matmul %47, %49, %cst_24 {dimension_numbers = #tpu.dot_dimension_numbers<[1], [0], [0], [1], [0, 0, 1, 1], [], []>} : vector<32x128xf32>, vector<128x128xf32>, vector<32x128xf32> -> vector<32x128xf32>
    %51 = arith.addf %45, %50 : vector<32x128xf32>
    %52 = vector.extract_strided_slice %0 {offsets = [0, 1, 1, 0], sizes = [2, 4, 4, 128], strides = [1, 1, 1, 1]} : vector<2x5x5x128xf32> to vector<2x4x4x128xf32>
    %53 = vector.shape_cast %52 : vector<2x4x4x128xf32> to vector<32x128xf32>
    %54 = vector.extract_strided_slice %4 {offsets = [8, 0, 0], sizes = [1, 128, 128], strides = [1, 1, 1]} : vector<9x128x128xf32> to vector<1x128x128xf32>
    %55 = vector.shape_cast %54 : vector<1x128x128xf32> to vector<128x128xf32>
    %cst_25 = arith.constant dense<0.000000e+00> : vector<32x128xf32>
    %56 = tpu.matmul %53, %55, %cst_25 {dimension_numbers = #tpu.dot_dimension_numbers<[1], [0], [0], [1], [0, 0, 1, 1], [], []>} : vector<32x128xf32>, vector<128x128xf32>, vector<32x128xf32> -> vector<32x128xf32>
    %57 = arith.addf %51, %56 : vector<32x128xf32>
    %c0_26 = arith.constant 0 : index
    %c0_27 = arith.constant 0 : index
    %58 = vector.load %arg7[%c0_26, %c0_27] : memref<1x128xf32, #tpu.memory_space<vmem>>, vector<1x128xf32>
    %59 = vector.broadcast %58 : vector<1x128xf32> to vector<32x128xf32>
    %60 = arith.mulf %57, %59 : vector<32x128xf32>
    %c0_28 = arith.constant 0 : index
    %c0_29 = arith.constant 0 : index
    %61 = vector.load %arg8[%c0_28, %c0_29] : memref<1x128xf32, #tpu.memory_space<vmem>>, vector<1x128xf32>
    %62 = vector.broadcast %61 : vector<1x128xf32> to vector<32x128xf32>
    %63 = arith.addf %60, %62 : vector<32x128xf32>
    %cst_30 = arith.constant 0.000000e+00 : f32
    %64 = vector.broadcast %cst_30 : f32 to vector<32x128xf32>
    %65 = arith.maximumf %63, %64 : vector<32x128xf32>
    %c0_31 = arith.constant 0 : index
    %c0_32 = arith.constant 0 : index
    %66 = vector.load %arg9[%c0_31, %c0_32] : memref<32x128xf32, #tpu.memory_space<vmem>>, vector<32x128xf32>
    tpu.vector_store %arg9[%c0_31, %c0_32], %65 {strides = array<i32>} : memref<32x128xf32, #tpu.memory_space<vmem>>, vector<32x128xf32>,
    return
  }
  func.func @transform_0(%arg0: i32, %arg1: i32) -> (i32, i32, i32, i32) {
    %c0_i32 = arith.constant 0 : i32
    %c0_i32_0 = arith.constant 0 : i32
    %c0_i32_1 = arith.constant 0 : i32
    %c0_i32_2 = arith.constant 0 : i32
    return %arg0, %c0_i32, %c0_i32_0, %c0_i32_1 : i32, i32, i32, i32
  }
  func.func @transform_1(%arg0: i32, %arg1: i32) -> (i32, i32, i32, i32) {
    %c0_i32 = arith.constant 0 : i32
    %c0_i32_0 = arith.constant 0 : i32
    %c0_i32_1 = arith.constant 0 : i32
    %c0_i32_2 = arith.constant 0 : i32
    return %arg0, %c0_i32, %c0_i32_0, %c0_i32_1 : i32, i32, i32, i32
  }
  func.func @transform_2(%arg0: i32, %arg1: i32) -> (i32, i32, i32, i32) {
    %c0_i32 = arith.constant 0 : i32
    %c0_i32_0 = arith.constant 0 : i32
    %c0_i32_1 = arith.constant 0 : i32
    %c0_i32_2 = arith.constant 0 : i32
    return %arg0, %c0_i32, %c0_i32_0, %c0_i32_1 : i32, i32, i32, i32
  }
  func.func @transform_3(%arg0: i32, %arg1: i32) -> (i32, i32, i32, i32) {
    %c0_i32 = arith.constant 0 : i32
    %c0_i32_0 = arith.constant 0 : i32
    %c0_i32_1 = arith.constant 0 : i32
    %c0_i32_2 = arith.constant 0 : i32
    return %arg0, %c0_i32, %c0_i32_0, %c0_i32_1 : i32, i32, i32, i32
  }
  func.func @transform_4(%arg0: i32, %arg1: i32) -> (i32, i32, i32) {
    %c0_i32 = arith.constant 0 : i32
    %c0_i32_0 = arith.constant 0 : i32
    %c0_i32_1 = arith.constant 0 : i32
    return %c0_i32, %c0_i32_0, %arg1 : i32, i32, i32
  }
  func.func @transform_5(%arg0: i32, %arg1: i32) -> (i32, i32) {
    %c0_i32 = arith.constant 0 : i32
    %c0_i32_0 = arith.constant 0 : i32
    return %c0_i32, %arg1 : i32, i32
  }
  func.func @transform_6(%arg0: i32, %arg1: i32) -> (i32, i32) {
    %c0_i32 = arith.constant 0 : i32
    %c0_i32_0 = arith.constant 0 : i32
    return %c0_i32, %arg1 : i32, i32
  }
  func.func @transform_7(%arg0: i32, %arg1: i32) -> (i32, i32) {
    %c0_i32 = arith.constant 0 : i32
    return %arg0, %arg1 : i32, i32
  }
}

</mosaic_0001>

<bundles_post_ra>
// kernel: frequency_module_forward.4
= control target key start
LH: loop header
LB: loop body
LE: loop exit
PB: predicated region body
PF: predicated region fallthrough
CT: control target
= control target key end

     0   :  { %9 = vsyncpa [#allocation3], 0  ;;  %s2356_s0 = inlined_call_operand.hbm [shape: f32[2,3,16,16], index: 0, kind: input, shape index: {}]   ;;  %s2357_s1 = inlined_call_operand.hbm [shape: f32[16,16], index: 1, kind: input, shape index: {}]   ;;  %s2358_s2 = inlined_call_operand.hbm [shape: f32[16,16], index: 2, kind: input, shape index: {}]   ;;  %s2359_s3 = inlined_call_operand.hbm [shape: f32[16,16], index: 3, kind: input, shape index: {}]   ;;  %s2360_s4 = inlined_call_operand.vmem [shape: f32[2,6,16,16], index: 4, kind: output, shape index: {}]  }
   0x1   :  { %10 = vsyncpa [#allocation5], 0 }
   0x2   :  { %11 = vsyncpa [#allocation8], 0  ;;  %s2085_s15 = smov [#allocation4]   ;;  %s2086_s17 = smov [#allocation2]  }
   0x3   :  { %s29_s16 = sshll.u32 %s2085_s15, 4  ;;  %s17_s18 = sshll.u32 %s2086_s17, 4  ;;  %s30_s16 = int_to_ptr.vmem [resolvable:$true] %s29_s16  ;;  %s18_s18 = int_to_ptr.vmem [resolvable:$true] %s17_s18 }
   0x4   :  { %s2007_s19 = scalar_lea.vmem %s30_s16, 256  ;;  %p2012_p1 = scmp.lt.s32.totalorder %s30_s16, %s30_s16 }
   0x5   :  { %p2008_p0 = scmp.ne.s32.totalorder %s30_s16, %s2007_s19  ;;  %p2013_p2 = scmp.lt.s32.totalorder %s2007_s19, %s2007_s19 }
   0x7   :  { %p2014_p3 = por %p2013_p2, %p2012_p1 }
   0x9   :  { %p2015_p4 = pnand %p2014_p3, %p2008_p0 }
   0xb   :  { %2018 = shalt.err (!%p2015_p4)
}
   0xc   :  { %s2087_s20 = smov 128   ;;  %s2088_s21 = smov 8  }
   0xd   :  { %35 = dma.hbm_to_vmem [thread:$0]  %s2357_s1, 256, %s30_s16, [#allocation5], %s2087_s20, %s2087_s20, %s2088_s21  }
   0xe   :  { %s2027_s24 = scalar_lea.vmem %s18_s18, 1536  ;;  %p2032_p6 = scmp.lt.s32.totalorder %s18_s18, %s18_s18 }
   0xf   :  { %p2028_p5 = scmp.ne.s32.totalorder %s18_s18, %s2027_s24  ;;  %p2033_p7 = scmp.lt.s32.totalorder %s2027_s24, %s2027_s24 }
  0x11   :  { %p2034_p8 = por %p2033_p7, %p2032_p6 }
  0x13   :  { %p2035_p9 = pnand %p2034_p8, %p2028_p5 }
  0x15   :  { %2038 = shalt.err (!%p2035_p9)
}
  0x16   :  { %23 = dma.hbm_to_vmem [thread:$0]  %s2356_s0, 1536, %s18_s18, [#allocation3], %s2087_s20, %s2087_s20, %s2088_s21  }
  0x17   :  { %s2089_s27 = smov [#allocation6]   ;;  %s2090_s29 = smov [#allocation7]  }
  0x18   :  { %s41_s28 = sshll.u32 %s2089_s27, 4  ;;  %s53_s30 = sshll.u32 %s2090_s29, 4  ;;  %s42_s28 = int_to_ptr.vmem [resolvable:$true] %s41_s28  ;;  %s54_s30 = int_to_ptr.vmem [resolvable:$true] %s53_s30 }
  0x19   :  { %s2047_s1 = scalar_lea.vmem %s42_s28, 256  ;;  %p2052_p11 = scmp.lt.s32.totalorder %s42_s28, %s42_s28 }
  0x1a   :  { %p2048_p10 = scmp.ne.s32.totalorder %s42_s28, %s2047_s1  ;;  %p2053_p12 = scmp.lt.s32.totalorder %s2047_s1, %s2047_s1 }
  0x1c   :  { %p2054_p13 = por %p2053_p12, %p2052_p11 }
  0x1e   :  { %p2055_p0 = pnand %p2054_p13, %p2048_p10 }
  0x20   :  { %2058 = shalt.err (!%p2055_p0)
}
  0x21   :  { %47 = dma.hbm_to_vmem [thread:$0]  %s2358_s2, 256, %s42_s28, [#allocation5], %s2087_s20, %s2087_s20, %s2088_s21  }
  0x22   :  { %s2067_s0 = scalar_lea.vmem %s54_s30, 256  ;;  %p2072_p2 = scmp.lt.s32.totalorder %s54_s30, %s54_s30 }
  0x23   :  { %p2068_p1 = scmp.ne.s32.totalorder %s54_s30, %s2067_s0  ;;  %p2073_p3 = scmp.lt.s32.totalorder %s2067_s0, %s2067_s0 }
  0x25   :  { %p2074_p4 = por %p2073_p3, %p2072_p2 }
  0x27   :  { %p2075_p5 = pnand %p2074_p4, %p2068_p1 }
  0x29   :  { %2078 = shalt.err (!%p2075_p5)
}
  0x2a   :  { %59 = dma.hbm_to_vmem [thread:$0]  %s2359_s3, 256, %s54_s30, [#allocation8], %s2087_s20, %s2087_s20, %s2088_s21  }
  0x2b   :  { %2079 = dma.done.wait [#allocation3], 1536  }
  0x2c   :  { %2080 = vsyncadd [#allocation3], 4294965760 }
  0x2d   :  { %2081 = dma.done.wait [#allocation5], 512  }
  0x2e   :  { %2082 = vsyncadd [#allocation5], 4294966784 }
  0x2f   :  { %2083 = dma.done.wait [#allocation8], 256  }
  0x30   :  { %2084 = vsyncadd [#allocation8], 4294967040  ;;  %v2140_v0 = vld [vmem:[#allocation4 + $0x8] sm:$0xff]  ;;  %v2142_v1 = vld [vmem:[#allocation4] sm:$0xff]  ;;  %vm88_vm0 = vcmask 130048  }
  0x31   :  { %1878 = vmatprep.subr.mxu0 %v2140_v0  ;;  %1988 = vmatprep.subr.mxu1 %v2140_v0  ;;  %v76_v2 = vld [vmem:[#allocation2] sm:$0xff]  ;;  %v82_v3 = vld [vmem:[#allocation2 + $0x30] sm:$0xff]  ;;  %v77_v4 = vld [vmem:[#allocation2 + $0x8] sm:$0xff] }
  0x32   :  { %1879 = vmatpush3.msra.mxu0 %v2140_v0  ;;  %1990 = vmatpush3.msra.mxu1 %v2140_v0  ;;  %v83_v5 = vld [vmem:[#allocation2 + $0x38] sm:$0xff]  ;;  %v84_v7 = vld [vmem:[#allocation2 + $0x40] sm:$0xff]  ;;  %v78_v8 = vld [vmem:[#allocation2 + $0x10] sm:$0xff] }
  0x33   :  { %1880 = vmatprep.subr.mxu0 %v2142_v1  ;;  %1989 = vmatprep.subr.mxu1 %v2142_v1  ;;  %v2152_v6 = vld [vmem:[#allocation6 + $0x8] sm:$0xff]  ;;  %v2158_v9 = vld [vmem:[#allocation6] sm:$0xff]  ;;  %v85_v10 = vld [vmem:[#allocation2 + $0x48] sm:$0xff] }
  0x34   :  { %1881 = vmatpush3.msra.mxu0 %v2142_v1  ;;  %1991 = vmatpush3.msra.mxu1 %v2142_v1  ;;  %v79_v11 = vld [vmem:[#allocation2 + $0x18] sm:$0xff]  ;;  %v86_v12 = vld [vmem:[#allocation2 + $0x50] sm:$0xff]  ;;  %v80_v13 = vld [vmem:[#allocation2 + $0x20] sm:$0xff]  ;;  %v945_v24 = vadd.f32 %v2152_v6, %v2140_v0  ;;  %v944_v27 = vadd.f32 %v2158_v9, %v2142_v1  ;;  %v1108_v46 = vsub.f32 %v2140_v0, %v2152_v6 }
  0x35   :  { %1882 = vmatprep.mubr.msk.f32.mxu0 %vm88_vm0, %v76_v2  ;;  %1891 = vmatprep.mubr.msk.f32.mxu1 %vm88_vm0, %v82_v3  ;;  %v87_v14 = vld [vmem:[#allocation2 + $0x58] sm:$0xff]  ;;  %v81_v15 = vld [vmem:[#allocation2 + $0x28] sm:$0xff] }
  0x36   :  { %1883 = vmatmul.mubr.msk.f32.vlgmr.msra.gmra.mxu0 %vm88_vm0, %v77_v4  ;;  %1892 = vmatmul.mubr.msk.f32.vlgmr.msra.gmra.mxu1 %vm88_vm0, %v83_v5 }
  0x37   :  { %1900 = vmatprep.subr.mxu1 %v2152_v6  ;;  %1894 = vmatprep.mubr.msk.f32.mxu1 %vm88_vm0, %v84_v7 }
  0x38   :  { %1901 = vmatpush3.msra.mxu1 %v2152_v6  ;;  %1885 = vmatprep.mubr.msk.f32.mxu0 %vm88_vm0, %v78_v8 }
  0x39   :  { %1902 = vmatprep.subr.mxu1 %v2158_v9  ;;  %1922 = vmatprep.subr.mxu0 %v2140_v0 }
  0x3a   :  { %1895 = vmatmul.mubr.msk.f32.gmra.mxu1 %vm88_vm0, %v85_v10  ;;  %1886 = vmatmul.mubr.msk.f32.gmra.mxu0 %vm88_vm0, %v79_v11 }
  0x3b   :  { %1897 = vmatprep.mubr.msk.f32.mxu1 %vm88_vm0, %v86_v12  ;;  %1903 = vmatpush3.msra.mxu1 %v2158_v9 }
  0x3c   :  { %1888 = vmatprep.mubr.msk.f32.mxu0 %vm88_vm0, %v80_v13  ;;  %1923 = vmatpush3.msra.mxu0 %v2140_v0  ;;  %v1107_v0 = vsub.f32 %v2142_v1, %v2158_v9 }
  0x3d   :  { %1924 = vmatprep.subr.mxu0 %v2142_v1  ;;  %1944 = vmatprep.subr.mxu1 %v945_v24 }
  0x3e   :  { %1898 = vmatmul.mubr.msk.f32.gmra.mxu1 %vm88_vm0, %v87_v14  ;;  %1889 = vmatmul.mubr.msk.f32.gmra.mxu0 %vm88_vm0, %v81_v15 }
  0x3f   :  { %1904 = vmatprep.mubr.msk.f32.mxu1 %vm88_vm0, %v76_v2  ;;  %1925 = vmatpush3.msra.mxu0 %v2142_v1 }
  0x40   :  { %1966 = vmatprep.subr.mxu0 %v1108_v46 }
  0x42   :  { %1905 = vmatmul.mubr.msk.f32.vlgmr.msra.gmra.mxu1 %vm88_vm0, %v77_v4 }
  0x43   :  { %1907 = vmatprep.mubr.msk.f32.mxu1 %vm88_vm0, %v78_v8  ;;  %1945 = vmatpush3.msra.mxu1 %v945_v24 }
  0x44   :  { %1946 = vmatprep.subr.mxu1 %v944_v27 }
  0x45   :  { %1947 = vmatpush3.msra.mxu1 %v944_v27 }
  0x46   :  { %1908 = vmatmul.mubr.msk.f32.gmra.mxu1 %vm88_vm0, %v79_v11 }
  0x47   :  { %1910 = vmatprep.mubr.msk.f32.mxu1 %vm88_vm0, %v80_v13 }
  0x4a   :  { %1911 = vmatmul.mubr.msk.f32.gmra.mxu1 %vm88_vm0, %v81_v15 }
  0x4b   :  { %1913 = vmatprep.mubr.msk.f32.mxu1 %vm88_vm0, %v82_v3 }
  0x4e   :  { %1914 = vmatmul.mubr.msk.f32.gmra.mxu1 %vm88_vm0, %v83_v5 }
  0x4f   :  { %1916 = vmatprep.mubr.msk.f32.mxu1 %vm88_vm0, %v84_v7 }
  0x52   :  { %1917 = vmatmul.mubr.msk.f32.gmra.mxu1 %vm88_vm0, %v85_v10 }
  0x53   :  { %1919 = vmatprep.mubr.msk.f32.mxu1 %vm88_vm0, %v86_v12 }
  0x56   :  { %1920 = vmatmul.mubr.msk.f32.gmra.mxu1 %vm88_vm0, %v87_v14 }
  0xf6   :  { %v1884_v16 = vpop.f32.mrf.mxu0  ;;  %v1893_v17 = vpop.f32.mrf.mxu1 }
  0xf8   :  { %v191_v18 = vpop.f32.mrf.mxu0  ;;  %v221_v19 = vpop.f32.mrf.mxu1 }
  0xf9   :  { %387 = vxpose.xlu0.b32.start [1/2] (short) (narrow) %v191_v18, 16 }
  0xfa   :  { %v1896_v20 = vpop.f32.mrf.mxu1  ;;  %v1887_v26 = vpop.f32.mrf.mxu0 }
  0xfc   :  { %v231_v21 = vpop.f32.mrf.mxu1  ;;  %v201_v30 = vpop.f32.mrf.mxu0 }
  0xfd   :  { %388 = vxpose.xlu0.b32.end [2/2] (short) (narrow) %v1884_v16, 16 }
  0xfe   :  { %v1899_v22 = vpop.f32.mrf.mxu1  ;;  %v1890_v34 = vpop.f32.mrf.mxu0 }
 0x100   :  { %v241_v23 = vpop.f32.mrf.mxu1  ;;  %v211_v36 = vpop.f32.mrf.mxu0 }
 0x101   :  { %483 = vxpose.xlu0.b32.start [1/2] (short) (narrow) %v221_v19, 16 }
 0x102   :  { %v1906_v25 = vpop.f32.mrf.mxu1 }
 0x103   :  { %v376_v32 = vsub.f32 0.0, %v1906_v25 }
 0x104   :  { %v316_v28 = vpop.f32.mrf.mxu1 }
 0x105   :  { %484 = vxpose.xlu0.b32.end [2/2] (short) (narrow) %v1893_v17, 16  ;;  %v375_v29 = vsub.f32 0.0, %v316_v28 }
 0x106   :  { %v1909_v31 = vpop.f32.mrf.mxu1 }
 0x107   :  { %579 = vxpose.xlu1.b32.start [1/2] (short) (narrow) %v375_v29, 16  ;;  %v378_v38 = vsub.f32 0.0, %v1909_v31 }
 0x108   :  { %v326_v33 = vpop.f32.mrf.mxu1 }
 0x109   :  { %419 = vxpose.xlu0.b32.start [1/2] (short) (narrow) %v201_v30, 16  ;;  %v377_v35 = vsub.f32 0.0, %v326_v33 }
 0x10a   :  { %v1912_v37 = vpop.f32.mrf.mxu1 }
 0x10b   :  { %580 = vxpose.xlu1.b32.end [2/2] (short) (narrow) %v376_v32, 16  ;;  %v380_v42 = vsub.f32 0.0, %v1912_v37 }
 0x10c   :  { %v336_v39 = vpop.f32.mrf.mxu1 }
 0x10d   :  { %420 = vxpose.xlu0.b32.end [2/2] (short) (narrow) %v1887_v26, 16  ;;  %v379_v40 = vsub.f32 0.0, %v336_v39 }
 0x10e   :  { %v1915_v41 = vpop.f32.mrf.mxu1 }
 0x10f   :  { %611 = vxpose.xlu1.b32.start [1/2] (short) (narrow) %v377_v35, 16  ;;  %v382_v47 = vsub.f32 0.0, %v1915_v41 }
 0x110   :  { %v346_v43 = vpop.f32.mrf.mxu1 }
 0x111   :  { %451 = vxpose.xlu0.b32.start [1/2] (short) (narrow) %v211_v36, 16  ;;  %v381_v44 = vsub.f32 0.0, %v346_v43 }
 0x112   :  { %v1918_v45 = vpop.f32.mrf.mxu1 }
 0x113   :  { %612 = vxpose.xlu1.b32.end [2/2] (short) (narrow) %v378_v38, 16  ;;  %v384_v51 = vsub.f32 0.0, %v1918_v45 }
 0x114   :  { %v356_v48 = vpop.f32.mrf.mxu1 }
 0x115   :  { %452 = vxpose.xlu0.b32.end [2/2] (short) (narrow) %v1890_v34, 16  ;;  %v383_v49 = vsub.f32 0.0, %v356_v48 }
 0x116   :  { %v1921_v50 = vpop.f32.mrf.mxu1 }
 0x117   :  { %643 = vxpose.xlu1.b32.start [1/2] (short) (narrow) %v379_v40, 16  ;;  %v386_v54 = vsub.f32 0.0, %v1921_v50 }
 0x118   :  { %v366_v52 = vpop.f32.mrf.mxu1 }
 0x119   :  { %515 = vxpose.xlu0.b32.start [1/2] (short) (narrow) %v231_v21, 16  ;;  %v385_v53 = vsub.f32 0.0, %v366_v52 }
 0x11b   :  { %644 = vxpose.xlu1.b32.end [2/2] (short) (narrow) %v380_v42, 16 }
 0x11d   :  { %516 = vxpose.xlu0.b32.end [2/2] (short) (narrow) %v1896_v20, 16 }
 0x11f   :  { %675 = vxpose.xlu1.b32.start [1/2] (short) (narrow) %v381_v44, 16 }
 0x121   :  { %547 = vxpose.xlu0.b32.start [1/2] (short) (narrow) %v241_v23, 16 }
 0x123   :  { %676 = vxpose.xlu1.b32.end [2/2] (short) (narrow) %v382_v47, 16 }
 0x125   :  { %548 = vxpose.xlu0.b32.end [2/2] (short) (narrow) %v1899_v22, 16 }
 0x127   :  { %707 = vxpose.xlu1.b32.start [1/2] (short) (narrow) %v383_v49, 16 }
 0x12b   :  { %708 = vxpose.xlu1.b32.end [2/2] (short) (narrow) %v384_v51, 16 }
 0x12f   :  { %739 = vxpose.xlu1.b32.start [1/2] (short) (narrow) %v385_v53, 16 }
 0x133   :  { %740 = vxpose.xlu1.b32.end [2/2] (short) (narrow) %v386_v54, 16 }
 0x175   :  { %v403_v55 = vpop.trf.xlu0 }
 0x176   :  { %1948 = vmatprep.mubr.msk.f32.mxu1 %vm88_vm0, %v403_v55 }
 0x179   :  { %v404_v56 = vpop.trf.xlu0 }
 0x17a   :  { %1949 = vmatmul.mubr.msk.f32.vlgmr.msra.gmra.mxu1 %vm88_vm0, %v404_v56 }
 0x17d   :  { %v499_v57 = vpop.trf.xlu0 }
 0x181   :  { %v500_v58 = vpop.trf.xlu0 }
 0x183   :  { %v595_v59 = vpop.trf.xlu1 }
 0x184   :  { %v771_v60 = vadd.f32 %v595_v59, %v403_v55 }
 0x185   :  { %v435_v61 = vpop.trf.xlu0 }
 0x186   :  { %1926 = vmatprep.mubr.msk.f32.mxu0 %vm88_vm0, %v771_v60  ;;  %1951 = vmatprep.mubr.msk.f32.mxu1 %vm88_vm0, %v435_v61 }
 0x187   :  { %v596_v62 = vpop.trf.xlu1 }
 0x188   :  { %v772_v63 = vadd.f32 %v596_v62, %v404_v56 }
 0x189   :  { %v436_v2 = vpop.trf.xlu0 }
 0x18a   :  { %1927 = vmatmul.mubr.msk.f32.vlgmr.msra.gmra.mxu0 %vm88_vm0, %v772_v63  ;;  %1952 = vmatmul.mubr.msk.f32.gmra.mxu1 %vm88_vm0, %v436_v2 }
 0x18b   :  { %v627_v3 = vpop.trf.xlu1  ;;  %1967 = vmatpush3.msra.mxu0 %v1108_v46 }
 0x18c   :  { %v773_v4 = vadd.f32 %v627_v3, %v435_v61  ;;  %1968 = vmatprep.subr.mxu0 %v1107_v0 }
 0x18d   :  { %v467_v5 = vpop.trf.xlu0  ;;  %1969 = vmatpush3.msra.mxu0 %v1107_v0 }
 0x18e   :  { %1929 = vmatprep.mubr.msk.f32.mxu0 %vm88_vm0, %v773_v4  ;;  %1954 = vmatprep.mubr.msk.f32.mxu1 %vm88_vm0, %v467_v5 }
 0x18f   :  { %v628_v6 = vpop.trf.xlu1 }
 0x190   :  { %v774_v7 = vadd.f32 %v628_v6, %v436_v2 }
 0x191   :  { %v468_v8 = vpop.trf.xlu0 }
 0x192   :  { %1930 = vmatmul.mubr.msk.f32.gmra.mxu0 %vm88_vm0, %v774_v7  ;;  %1955 = vmatmul.mubr.msk.f32.gmra.mxu1 %vm88_vm0, %v468_v8 }
 0x193   :  { %v659_v1 = vpop.trf.xlu1  ;;  %1957 = vmatprep.mubr.msk.f32.mxu1 %vm88_vm0, %v499_v57 }
 0x194   :  { %v775_v9 = vadd.f32 %v659_v1, %v467_v5 }
 0x195   :  { %v531_v10 = vpop.trf.xlu0 }
 0x196   :  { %1958 = vmatmul.mubr.msk.f32.gmra.mxu1 %vm88_vm0, %v500_v58  ;;  %1932 = vmatprep.mubr.msk.f32.mxu0 %vm88_vm0, %v775_v9 }
 0x197   :  { %v660_v11 = vpop.trf.xlu1  ;;  %1960 = vmatprep.mubr.msk.f32.mxu1 %vm88_vm0, %v531_v10 }
 0x198   :  { %v776_v12 = vadd.f32 %v660_v11, %v468_v8 }
 0x199   :  { %v532_v13 = vpop.trf.xlu0 }
 0x19a   :  { %1933 = vmatmul.mubr.msk.f32.gmra.mxu0 %vm88_vm0, %v776_v12  ;;  %1961 = vmatmul.mubr.msk.f32.gmra.mxu1 %vm88_vm0, %v532_v13 }
 0x19b   :  { %v691_v14 = vpop.trf.xlu1 }
 0x19c   :  { %v777_v15 = vadd.f32 %v691_v14, %v499_v57 }
 0x19d   :  { %v563_v16 = vpop.trf.xlu0 }
 0x19e   :  { %1935 = vmatprep.mubr.msk.f32.mxu0 %vm88_vm0, %v777_v15  ;;  %1963 = vmatprep.mubr.msk.f32.mxu1 %vm88_vm0, %v563_v16 }
 0x19f   :  { %v692_v17 = vpop.trf.xlu1 }
 0x1a0   :  { %v778_v18 = vadd.f32 %v692_v17, %v500_v58 }
 0x1a1   :  { %v564_v19 = vpop.trf.xlu0 }
 0x1a2   :  { %1936 = vmatmul.mubr.msk.f32.gmra.mxu0 %vm88_vm0, %v778_v18  ;;  %1964 = vmatmul.mubr.msk.f32.gmra.mxu1 %vm88_vm0, %v564_v19 }
 0x1a3   :  { %v723_v20 = vpop.trf.xlu1 }
 0x1a4   :  { %v779_v21 = vadd.f32 %v723_v20, %v531_v10 }
 0x1a6   :  { %1938 = vmatprep.mubr.msk.f32.mxu0 %vm88_vm0, %v779_v21 }
 0x1a7   :  { %v724_v22 = vpop.trf.xlu1 }
 0x1a8   :  { %v780_v23 = vadd.f32 %v724_v22, %v532_v13 }
 0x1aa   :  { %1939 = vmatmul.mubr.msk.f32.gmra.mxu0 %vm88_vm0, %v780_v23 }
 0x1ab   :  { %v755_v24 = vpop.trf.xlu1 }
 0x1ac   :  { %v781_v25 = vadd.f32 %v755_v24, %v563_v16 }
 0x1ae   :  { %1941 = vmatprep.mubr.msk.f32.mxu0 %vm88_vm0, %v781_v25 }
 0x1af   :  { %v756_v26 = vpop.trf.xlu1 }
 0x1b0   :  { %v782_v27 = vadd.f32 %v756_v26, %v564_v19 }
 0x1b2   :  { %1942 = vmatmul.mubr.msk.f32.gmra.mxu0 %vm88_vm0, %v782_v27  ;;  %v2235_v27 = vld [vmem:[#allocation7 + $0x8] sm:$0xff] }
 0x1b3   :  { %1970 = vmatprep.mubr.msk.f32.mxu0 %vm88_vm0, %v595_v59 }
 0x1b6   :  { %1971 = vmatmul.mubr.msk.f32.vlgmr.msra.gmra.mxu0 %vm88_vm0, %v596_v62 }
 0x1b7   :  { %1973 = vmatprep.mubr.msk.f32.mxu0 %vm88_vm0, %v627_v3 }
 0x1ba   :  { %1974 = vmatmul.mubr.msk.f32.gmra.mxu0 %vm88_vm0, %v628_v6 }
 0x1bb   :  { %1976 = vmatprep.mubr.msk.f32.mxu0 %vm88_vm0, %v659_v1 }
 0x1be   :  { %1977 = vmatmul.mubr.msk.f32.gmra.mxu0 %vm88_vm0, %v660_v11 }
 0x1bf   :  { %1979 = vmatprep.mubr.msk.f32.mxu0 %vm88_vm0, %v691_v14 }
 0x1c2   :  { %1980 = vmatmul.mubr.msk.f32.gmra.mxu0 %vm88_vm0, %v692_v17 }
 0x1c3   :  { %1982 = vmatprep.mubr.msk.f32.mxu0 %vm88_vm0, %v723_v20 }
 0x1c6   :  { %1983 = vmatmul.mubr.msk.f32.gmra.mxu0 %vm88_vm0, %v724_v22 }
 0x1c7   :  { %1985 = vmatprep.mubr.msk.f32.mxu0 %vm88_vm0, %v755_v24  ;;  %v2232_v24 = vld [vmem:[#allocation7] sm:$0xff] }
 0x1ca   :  { %1986 = vmatmul.mubr.msk.f32.gmra.mxu0 %vm88_vm0, %v756_v26 }
 0x23a   :  { %v1950_v28 = vpop.f32.mrf.mxu1 }
 0x23c   :  { %v1048_v30 = vpop.f32.mrf.mxu1 }
 0x24a   :  { %v1928_v29 = vpop.f32.mrf.mxu0  ;;  %v1953_v33 = vpop.f32.mrf.mxu1 }
 0x24b   :  { %v1283_v34 = vsub.f32 %v1928_v29, %v1950_v28 }
 0x24c   :  { %v885_v31 = vpop.f32.mrf.mxu0  ;;  %v1058_v36 = vpop.f32.mrf.mxu1 }
 0x24d   :  { %v1282_v32 = vsub.f32 %v885_v31, %v1048_v30 }
 0x24f   :  { %1486 = vxpose.xlu0.b32.start [1/2] (short) (narrow) %v1282_v32, 16 }
 0x252   :  { %v1931_v35 = vpop.f32.mrf.mxu0  ;;  %v1956_v39 = vpop.f32.mrf.mxu1 }
 0x253   :  { %1487 = vxpose.xlu0.b32.end [2/2] (short) (narrow) %v1283_v34, 16  ;;  %v1285_v40 = vsub.f32 %v1931_v35, %v1953_v33 }
 0x254   :  { %v895_v37 = vpop.f32.mrf.mxu0  ;;  %v1068_v42 = vpop.f32.mrf.mxu1 }
 0x255   :  { %v1284_v38 = vsub.f32 %v895_v37, %v1058_v36 }
 0x256   :  { %v1959_v45 = vpop.f32.mrf.mxu1 }
 0x257   :  { %1518 = vxpose.xlu1.b32.start [1/2] (short) (narrow) %v1284_v38, 16 }
 0x258   :  { %v1078_v48 = vpop.f32.mrf.mxu1 }
 0x25a   :  { %v1934_v41 = vpop.f32.mrf.mxu0  ;;  %v1962_v11 = vpop.f32.mrf.mxu1 }
 0x25b   :  { %1519 = vxpose.xlu1.b32.end [2/2] (short) (narrow) %v1285_v40, 16  ;;  %v1287_v46 = vsub.f32 %v1934_v41, %v1956_v39 }
 0x25c   :  { %v905_v43 = vpop.f32.mrf.mxu0  ;;  %v1088_v16 = vpop.f32.mrf.mxu1 }
 0x25d   :  { %v1286_v44 = vsub.f32 %v905_v43, %v1068_v42 }
 0x25f   :  { %1550 = vxpose.xlu0.b32.start [1/2] (short) (narrow) %v1286_v44, 16 }
 0x262   :  { %v1937_v47 = vpop.f32.mrf.mxu0  ;;  %v1965_v17 = vpop.f32.mrf.mxu1 }
 0x263   :  { %1551 = vxpose.xlu0.b32.end [2/2] (short) (narrow) %v1287_v46, 16  ;;  %v1289_v51 = vsub.f32 %v1937_v47, %v1959_v45 }
 0x264   :  { %v915_v49 = vpop.f32.mrf.mxu0  ;;  %v1098_v20 = vpop.f32.mrf.mxu1 }
 0x265   :  { %v1288_v50 = vsub.f32 %v915_v49, %v1078_v48 }
 0x267   :  { %1582 = vxpose.xlu1.b32.start [1/2] (short) (narrow) %v1288_v50, 16 }
 0x26a   :  { %v1940_v52 = vpop.f32.mrf.mxu0 }
 0x26b   :  { %1583 = vxpose.xlu1.b32.end [2/2] (short) (narrow) %v1289_v51, 16  ;;  %v1291_v21 = vsub.f32 %v1940_v52, %v1962_v11 }
 0x26c   :  { %v925_v53 = vpop.f32.mrf.mxu0 }
 0x26d   :  { %v1290_v19 = vsub.f32 %v925_v53, %v1088_v16 }
 0x272   :  { %v1943_v54 = vpop.f32.mrf.mxu0 }
 0x273   :  { %v1293_v23 = vsub.f32 %v1943_v54, %v1965_v17 }
 0x274   :  { %v935_v55 = vpop.f32.mrf.mxu0 }
 0x275   :  { %v1292_v22 = vsub.f32 %v935_v55, %v1098_v20 }
 0x276   :  { %v1972_v56 = vpop.f32.mrf.mxu0 }
 0x277   :  { %v1271_v61 = vsub.f32 %v1928_v29, %v1972_v56 }
 0x278   :  { %v1211_v57 = vpop.f32.mrf.mxu0 }
 0x279   :  { %v1270_v58 = vsub.f32 %v885_v31, %v1211_v57 }
 0x27a   :  { %v1975_v59 = vpop.f32.mrf.mxu0 }
 0x27b   :  { %1294 = vxpose.xlu0.b32.start [1/2] (short) (narrow) %v1270_v58, 16  ;;  %v1273_v2 = vsub.f32 %v1931_v35, %v1975_v59 }
 0x27c   :  { %v1221_v60 = vpop.f32.mrf.mxu0 }
 0x27d   :  { %v1272_v62 = vsub.f32 %v895_v37, %v1221_v60 }
 0x27e   :  { %v1978_v63 = vpop.f32.mrf.mxu0 }
 0x27f   :  { %1295 = vxpose.xlu0.b32.end [2/2] (short) (narrow) %v1271_v61, 16  ;;  %1326 = vxpose.xlu1.b32.start [1/2] (short) (narrow) %v1272_v62, 16  ;;  %v1275_v6 = vsub.f32 %v1934_v41, %v1978_v63 }
 0x280   :  { %v1231_v0 = vpop.f32.mrf.mxu0 }
 0x281   :  { %v1274_v3 = vsub.f32 %v905_v43, %v1231_v0 }
 0x282   :  { %v1981_v4 = vpop.f32.mrf.mxu0 }
 0x283   :  { %1327 = vxpose.xlu1.b32.end [2/2] (short) (narrow) %v1273_v2, 16  ;;  %1358 = vxpose.xlu0.b32.start [1/2] (short) (narrow) %v1274_v3, 16  ;;  %v1277_v9 = vsub.f32 %v1937_v47, %v1981_v4 }
 0x284   :  { %v1241_v5 = vpop.f32.mrf.mxu0 }
 0x285   :  { %v1276_v7 = vsub.f32 %v915_v49, %v1241_v5 }
 0x286   :  { %v1984_v8 = vpop.f32.mrf.mxu0 }
 0x287   :  { %1359 = vxpose.xlu0.b32.end [2/2] (short) (narrow) %v1275_v6, 16  ;;  %1390 = vxpose.xlu1.b32.start [1/2] (short) (narrow) %v1276_v7, 16  ;;  %v1279_v14 = vsub.f32 %v1940_v52, %v1984_v8 }
 0x288   :  { %v1251_v1 = vpop.f32.mrf.mxu0 }
 0x289   :  { %v1278_v10 = vsub.f32 %v925_v53, %v1251_v1 }
 0x28a   :  { %v1987_v12 = vpop.f32.mrf.mxu0 }
 0x28b   :  { %1391 = vxpose.xlu1.b32.end [2/2] (short) (narrow) %v1277_v9, 16  ;;  %1422 = vxpose.xlu0.b32.start [1/2] (short) (narrow) %v1278_v10, 16  ;;  %v1281_v18 = vsub.f32 %v1943_v54, %v1987_v12 }
 0x28c   :  { %v1261_v13 = vpop.f32.mrf.mxu0 }
 0x28d   :  { %v1280_v15 = vsub.f32 %v935_v55, %v1261_v13 }
 0x28f   :  { %1423 = vxpose.xlu0.b32.end [2/2] (short) (narrow) %v1279_v14, 16  ;;  %1454 = vxpose.xlu1.b32.start [1/2] (short) (narrow) %v1280_v15, 16 }
 0x293   :  { %1614 = vxpose.xlu0.b32.start [1/2] (short) (narrow) %v1290_v19, 16  ;;  %1455 = vxpose.xlu1.b32.end [2/2] (short) (narrow) %v1281_v18, 16 }
 0x297   :  { %1615 = vxpose.xlu0.b32.end [2/2] (short) (narrow) %v1291_v21, 16  ;;  %1646 = vxpose.xlu1.b32.start [1/2] (short) (narrow) %v1292_v22, 16 }
 0x29b   :  { %1647 = vxpose.xlu1.b32.end [2/2] (short) (narrow) %v1293_v23, 16 }
 0x2cb   :  { %v1502_v25 = vpop.trf.xlu0 }
 0x2cc   :  { %v1704_v26 = vmul.f32 %v2232_v24, %v1502_v25 }
 0x2ce   :  { %1796 = vst.msk [vmem:[%s2360_s4 + $0x30] sm:$0xff] %vm88_vm0, %v1704_v26 }
 0x2cf   :  { %v1503_v28 = vpop.trf.xlu0 }
 0x2d0   :  { %v1705_v29 = vmul.f32 %v2235_v27, %v1503_v28 }
 0x2d2   :  { %1797 = vst.msk [vmem:[%s2360_s4 + $0x38] sm:$0xff] %vm88_vm0, %v1705_v29 }
 0x2d3   :  { %v1534_v30 = vpop.trf.xlu1 }
 0x2d4   :  { %v1706_v31 = vmul.f32 %v2232_v24, %v1534_v30 }
 0x2d6   :  { %1798 = vst.msk [vmem:[%s2360_s4 + $0x40] sm:$0xff] %vm88_vm0, %v1706_v31 }
 0x2d7   :  { %v1535_v32 = vpop.trf.xlu1 }
 0x2d8   :  { %v1707_v33 = vmul.f32 %v2235_v27, %v1535_v32 }
 0x2da   :  { %1799 = vst.msk [vmem:[%s2360_s4 + $0x48] sm:$0xff] %vm88_vm0, %v1707_v33 }
 0x2db   :  { %v1566_v34 = vpop.trf.xlu0 }
 0x2dc   :  { %v1708_v35 = vmul.f32 %v2232_v24, %v1566_v34 }
 0x2de   :  { %1800 = vst.msk [vmem:[%s2360_s4 + $0x50] sm:$0xff] %vm88_vm0, %v1708_v35 }
 0x2df   :  { %v1567_v36 = vpop.trf.xlu0 }
 0x2e0   :  { %v1709_v37 = vmul.f32 %v2235_v27, %v1567_v36 }
 0x2e2   :  { %1801 = vst.msk [vmem:[%s2360_s4 + $0x58] sm:$0xff] %vm88_vm0, %v1709_v37 }
 0x2e3   :  { %v1598_v38 = vpop.trf.xlu1 }
 0x2e4   :  { %v1710_v39 = vmul.f32 %v2232_v24, %v1598_v38 }
 0x2e6   :  { %1802 = vst.msk [vmem:[%s2360_s4 + $0x90] sm:$0xff] %vm88_vm0, %v1710_v39 }
 0x2e7   :  { %v1599_v40 = vpop.trf.xlu1 }
 0x2e8   :  { %v1711_v41 = vmul.f32 %v2235_v27, %v1599_v40 }
 0x2ea   :  { %1803 = vst.msk [vmem:[%s2360_s4 + $0x98] sm:$0xff] %vm88_vm0, %v1711_v41 }
 0x2f7   :  { %v1310_v42 = vpop.trf.xlu0 }
 0x2f8   :  { %v1680_v43 = vmul.f32 %v2232_v24, %v1310_v42 }
 0x2fa   :  { %1692 = vst.msk [vmem:[%s2360_s4] sm:$0xff] %vm88_vm0, %v1680_v43 }
 0x2fb   :  { %v1342_v44 = vpop.trf.xlu1  ;;  %v1311_v45 = vpop.trf.xlu0 }
 0x2fc   :  { %v1682_v46 = vmul.f32 %v2232_v24, %v1342_v44  ;;  %v1681_v47 = vmul.f32 %v2235_v27, %v1311_v45 }
 0x2fe   :  { %1694 = vst.msk [vmem:[%s2360_s4 + $0x10] sm:$0xff] %vm88_vm0, %v1682_v46  ;;  %1693 = vst.msk [vmem:[%s2360_s4 + $0x8] sm:$0xff] %vm88_vm0, %v1681_v47 }
 0x2ff   :  { %v1343_v48 = vpop.trf.xlu1  ;;  %v1374_v49 = vpop.trf.xlu0 }
 0x300   :  { %v1683_v50 = vmul.f32 %v2235_v27, %v1343_v48  ;;  %v1684_v51 = vmul.f32 %v2232_v24, %v1374_v49 }
 0x302   :  { %1695 = vst.msk [vmem:[%s2360_s4 + $0x18] sm:$0xff] %vm88_vm0, %v1683_v50  ;;  %1696 = vst.msk [vmem:[%s2360_s4 + $0x20] sm:$0xff] %vm88_vm0, %v1684_v51 }
 0x303   :  { %v1406_v52 = vpop.trf.xlu1  ;;  %v1375_v53 = vpop.trf.xlu0 }
 0x304   :  { %v1686_v54 = vmul.f32 %v2232_v24, %v1406_v52  ;;  %v1685_v55 = vmul.f32 %v2235_v27, %v1375_v53 }
 0x306   :  { %1698 = vst.msk [vmem:[%s2360_s4 + $0x60] sm:$0xff] %vm88_vm0, %v1686_v54  ;;  %1697 = vst.msk [vmem:[%s2360_s4 + $0x28] sm:$0xff] %vm88_vm0, %v1685_v55 }
 0x307   :  { %v1407_v56 = vpop.trf.xlu1  ;;  %v1438_v57 = vpop.trf.xlu0 }
 0x308   :  { %v1687_v58 = vmul.f32 %v2235_v27, %v1407_v56  ;;  %v1688_v59 = vmul.f32 %v2232_v24, %v1438_v57 }
 0x30a   :  { %1699 = vst.msk [vmem:[%s2360_s4 + $0x68] sm:$0xff] %vm88_vm0, %v1687_v58  ;;  %1700 = vst.msk [vmem:[%s2360_s4 + $0x70] sm:$0xff] %vm88_vm0, %v1688_v59 }
 0x30b   :  { %v1470_v60 = vpop.trf.xlu1  ;;  %v1439_v61 = vpop.trf.xlu0 }
 0x30c   :  { %v1690_v62 = vmul.f32 %v2232_v24, %v1470_v60  ;;  %v1689_v63 = vmul.f32 %v2235_v27, %v1439_v61 }
 0x30e   :  { %1702 = vst.msk [vmem:[%s2360_s4 + $0x80] sm:$0xff] %vm88_vm0, %v1690_v62  ;;  %1701 = vst.msk [vmem:[%s2360_s4 + $0x78] sm:$0xff] %vm88_vm0, %v1689_v63 }
 0x30f   :  { %v1471_v0 = vpop.trf.xlu1  ;;  %v1630_v2 = vpop.trf.xlu0 }
 0x310   :  { %v1691_v3 = vmul.f32 %v2235_v27, %v1471_v0  ;;  %v1712_v4 = vmul.f32 %v2232_v24, %v1630_v2 }
 0x312   :  { %1703 = vst.msk [vmem:[%s2360_s4 + $0x88] sm:$0xff] %vm88_vm0, %v1691_v3  ;;  %1804 = vst.msk [vmem:[%s2360_s4 + $0xa0] sm:$0xff] %vm88_vm0, %v1712_v4 }
 0x313   :  { %v1662_v5 = vpop.trf.xlu1  ;;  %v1631_v6 = vpop.trf.xlu0 }
 0x314   :  { %v1714_v7 = vmul.f32 %v2232_v24, %v1662_v5  ;;  %v1713_v8 = vmul.f32 %v2235_v27, %v1631_v6 }
 0x316   :  { %1806 = vst.msk [vmem:[%s2360_s4 + $0xb0] sm:$0xff] %vm88_vm0, %v1714_v7  ;;  %1805 = vst.msk [vmem:[%s2360_s4 + $0xa8] sm:$0xff] %vm88_vm0, %v1713_v8 }
 0x317   :  { %v1663_v1 = vpop.trf.xlu1 }
 0x318   :  { %v1715_v9 = vmul.f32 %v2235_v27, %v1663_v1 }
 0x31a   :  { %1807 = vst.msk [vmem:[%s2360_s4 + $0xb8] sm:$0xff] %vm88_vm0, %v1715_v9 }
 0x31b   :  { %1733 = vsyncpa [#allocation3], 1 }
 0x31c   :  { %1734 = vsyncpa [#allocation5], 1 }
 0x31d   :  { %1735 = vsyncpa [#allocation8], 1 }

// kernel: frequency_module_forward.5
= control target key start
LH: loop header
LB: loop body
LE: loop exit
PB: predicated region body
PF: predicated region fallthrough
CT: control target
= control target key end

     0   :  { %vm520_vm0 = vcmask 1045504   ;;  %vm230_vm1 = vcmask 1046528   ;;  %vm391_vm2 = vcmask 48128   ;;  %vm5183_vm3 = vcmask 523264   ;;  %s11168_s1 = inlined_call_operand.vmem [shape: f32[9,6,64], index: 1, kind: input, shape index: {}]   ;;  %s11169_s0 = inlined_call_operand.vmem [shape: f32[2,18,18,6], index: 0, kind: input, shape index: {}]   ;;  %s11170_s2 = inlined_call_operand.vmem [shape: f32[1,64], index: 2, kind: input, shape index: {}]   ;;  %s11171_s3 = inlined_call_operand.vmem [shape: f32[1,64], index: 3, kind: input, shape index: {}]   ;;  %s11172_s4 = inlined_call_operand.vmem [shape: f32[512,64], index: 4, kind: output, shape index: {}]  }
   0x1   :  { %v126_v0 = vld [vmem:[%s11168_s1 + $0x8] sm:$0x3f]  ;;  %v7399_v1 = vld [vmem:[%s11169_s0] sm:$0xff]  ;;  %v7413_v5 = vld [vmem:[%s11169_s0 + $0x1b0] sm:$0xff] }
   0x2   :  { %v7404_v2 = vld [vmem:[%s11169_s0 + $0x8] sm:$0xff]  ;;  %7306 = vmatprep.subr.msk.mxu1 %vm520_vm0, %v126_v0  ;;  %6424 = vmatprep.subr.msk.mxu0 %vm520_vm0, %v126_v0  ;;  %v231_v3 = vrot.slane %v7399_v1, 1  ;;  %11513 = vst [vmem:[#allocation2_spill] sm:$0xff] %v7413_v5  ;;  %v7418_v6 = vld [vmem:[%s11169_s0 + $0x1b8] sm:$0xff]  ;;  %v125_v7 = vld [vmem:[%s11168_s1] sm:$0x3f] }
   0x3   :  { %v232_v4 = vrot.slane %v7404_v2, 1  ;;  %11514 = vst [vmem:[#allocation3_spill] sm:$0xff] %v7418_v6  ;;  %7307 = vmatpush3.msk.msra.mxu1 %vm520_vm0, %v126_v0  ;;  %6425 = vmatpush3.msk.msra.mxu0 %vm520_vm0, %v126_v0  ;;  %v311_v8 = vrot.slane %v7413_v5, 1  ;;  %v312_v9 = vrot.slane %v7418_v6, 1  ;;  %v7430_v10 = vld [vmem:[%s11169_s0 + $0x10] sm:$0x3] }
   0x4   :  { %v7435_v11 = vld [vmem:[%s11169_s0 + $0x1c0] sm:$0x3]  ;;  %6522 = vmatprep.subr.msk.mxu1 %vm520_vm0, %v125_v7  ;;  %v234_v13 = vrot.slane %v7430_v10, 1  ;;  %v127_v15 = vld [vmem:[%s11168_s1 + $0x10] sm:$0x3f]  ;;  %v7447_v16 = vld [vmem:[%s11169_s0 + $0x18] sm:$0xff] }
   0x5   :  { %11515 = vst [vmem:[#allocation4_spill] sm:$0xff] %v7435_v11  ;;  %v233_v12 = vsel %vm230_vm1, %v231_v3, %v232_v4  ;;  %v314_v14 = vrot.slane %v7435_v11, 1  ;;  %v313_v17 = vsel %vm230_vm1, %v311_v8, %v312_v9  ;;  %6620 = vmatprep.subr.msk.mxu0 %vm520_vm0, %v127_v15  ;;  %v7455_v18 = vld [vmem:[%s11169_s0 + $0x20] sm:$0xff]  ;;  %v236_v19 = vrot.slane %v7447_v16, 1  ;;  %v7461_v20 = vld [vmem:[%s11169_s0 + $0x1c8] sm:$0xff]  ;;  %v7466_v21 = vld [vmem:[%s11169_s0 + $0x1d0] sm:$0xff] }
   0x6   :  { %6426 = vmatprep.mubr.msk.f32.mxu0 %vm391_vm2, %v233_v12  ;;  %11516 = vst [vmem:[#allocation5_spill] sm:$0xff] %v7461_v20  ;;  %11517 = vst [vmem:[#allocation6_spill] sm:$0xff] %v7466_v21  ;;  %6474 = vmatprep.mubr.msk.f32.mxu1 %vm391_vm2, %v313_v17  ;;  %v235_v22 = vsel %vm230_vm1, %v232_v4, %v234_v13  ;;  %v237_v24 = vrot.slane %v7455_v18, 1  ;;  %v316_v25 = vrot.slane %v7461_v20, 1  ;;  %v7476_v26 = vld [vmem:[%s11169_s0 + $0x28] sm:$0x3] }
   0x7   :  { %v315_v23 = vsel %vm230_vm1, %v312_v9, %v314_v14  ;;  %v7481_v27 = vld [vmem:[%s11169_s0 + $0x1d8] sm:$0x3]  ;;  %6427 = vmatmul.mubr.msk.f32.vlgmr.msra.gmra.mxu0 %vm391_vm2, %v235_v22  ;;  %v317_v28 = vrot.slane %v7466_v21, 1  ;;  %v239_v29 = vrot.slane %v7476_v26, 1  ;;  %v7491_v31 = vld [vmem:[%s11169_s0 + $0x30] sm:$0xff]  ;;  %v7501_v33 = vld [vmem:[%s11169_s0 + $0x1e0] sm:$0xff] }
   0x8   :  { %11518 = vst [vmem:[#allocation7_spill] sm:$0xff] %v7481_v27  ;;  %6475 = vmatmul.mubr.msk.f32.vlgmr.msra.gmra.mxu1 %vm391_vm2, %v315_v23  ;;  %v319_v30 = vrot.slane %v7481_v27, 1  ;;  %v7496_v32 = vld [vmem:[%s11169_s0 + $0x38] sm:$0xff]  ;;  %11519 = vst [vmem:[#allocation8_spill] sm:$0xff] %v7501_v33  ;;  %6621 = vmatpush3.msk.msra.mxu0 %vm520_vm0, %v127_v15  ;;  %v7506_v34 = vsel %vm230_vm1, %v236_v19, %v237_v24  ;;  %v241_v35 = vrot.slane %v7491_v31, 1  ;;  %v7513_v37 = vld [vmem:[%s11169_s0 + $0x1e8] sm:$0xff] }
   0x9   :  { %6523 = vmatpush3.msk.msra.mxu1 %vm520_vm0, %v125_v7  ;;  %11520 = vst [vmem:[#allocation9_spill] sm:$0xff] %v7506_v34  ;;  %v242_v36 = vrot.slane %v7496_v32, 1  ;;  %11521 = vst [vmem:[#allocation10_spill] sm:$0xff] %v7513_v37  ;;  %v321_v38 = vrot.slane %v7501_v33, 1  ;;  %v7519_v39 = vld [vmem:[%s11169_s0 + $0x40] sm:$0x3]  ;;  %6429 = vmatprep.mubr.msk.f32.mxu0 %vm391_vm2, %v7506_v34  ;;  %v7524_v40 = vsel %vm230_vm1, %v316_v25, %v317_v28 }
   0xa   :  { %11522 = vst [vmem:[#allocation11_spill] sm:$0xff] %v7524_v40  ;;  %v7527_v41 = vsel %vm230_vm1, %v237_v24, %v239_v29  ;;  %v7530_v42 = vsel %vm230_vm1, %v317_v28, %v319_v30  ;;  %v322_v43 = vrot.slane %v7513_v37, 1  ;;  %v7536_v44 = vld [vmem:[%s11169_s0 + $0x1f0] sm:$0x3]  ;;  %v7541_v45 = vld [vmem:[%s11169_s0 + $0x48] sm:$0xff]  ;;  %6477 = vmatprep.mubr.msk.f32.mxu1 %vm391_vm2, %v7524_v40  ;;  %v244_v48 = vrot.slane %v7519_v39, 1 }
   0xb   :  { %11523 = vst [vmem:[#allocation12_spill] sm:$0xff] %v7527_v41  ;;  %11524 = vst [vmem:[#allocation13_spill] sm:$0xff] %v7530_v42  ;;  %v7546_v46 = vld [vmem:[%s11169_s0 + $0x50] sm:$0xff]  ;;  %v7551_v47 = vsel %vm230_vm1, %v241_v35, %v242_v36  ;;  %v324_v49 = vrot.slane %v7536_v44, 1  ;;  %v246_v50 = vrot.slane %v7541_v45, 1  ;;  %v7559_v51 = vld [vmem:[%s11169_s0 + $0x1f8] sm:$0xff]  ;;  %6430 = vmatmul.mubr.msk.f32.gmra.mxu0 %vm391_vm2, %v7527_v41 }
   0xc   :  { %11525 = vst [vmem:[#allocation14_spill] sm:$0xff] %v7536_v44  ;;  %11526 = vst [vmem:[#allocation15_spill] sm:$0xff] %v7551_v47  ;;  %v7564_v52 = vld [vmem:[%s11169_s0 + $0x200] sm:$0xff]  ;;  %6478 = vmatmul.mubr.msk.f32.gmra.mxu1 %vm391_vm2, %v7530_v42  ;;  %v7576_v54 = vsel %vm230_vm1, %v321_v38, %v322_v43  ;;  %v247_v55 = vrot.slane %v7546_v46, 1  ;;  %v326_v56 = vrot.slane %v7559_v51, 1  ;;  %v7589_v59 = vld [vmem:[%s11169_s0 + $0x68] sm:$0xff]  ;;  %6432 = vmatprep.mubr.msk.f32.mxu0 %vm391_vm2, %v7551_v47 }
   0xd   :  { %11527 = vst [vmem:[#allocation16_spill] sm:$0xff] %v7559_v51  ;;  %11528 = vst [vmem:[#allocation17_spill] sm:$0xff] %v7564_v52  ;;  %v7569_v53 = vld [vmem:[%s11169_s0 + $0x60] sm:$0xff]  ;;  %v327_v57 = vrot.slane %v7564_v52, 1  ;;  %v7584_v58 = vld [vmem:[%s11169_s0 + $0x58] sm:$0x3]  ;;  %6480 = vmatprep.mubr.msk.f32.mxu1 %vm391_vm2, %v7576_v54  ;;  %v7596_v60 = vsel %vm230_vm1, %v242_v36, %v244_v48  ;;  %v7599_v61 = vsel %vm230_vm1, %v322_v43, %v324_v49 }
   0xe   :  { %11529 = vst [vmem:[#allocation18_spill] sm:$0xff] %v7576_v54  ;;  %11530 = vst [vmem:[#allocation19_spill] sm:$0xff] %v7596_v60  ;;  %v249_v62 = vrot.slane %v7584_v58, 1  ;;  %v7605_v63 = vld [vmem:[%s11169_s0 + $0x208] sm:$0x3]  ;;  %v251_v0 = vrot.slane %v7569_v53, 1  ;;  %v7619_v7 = vsel %vm230_vm1, %v246_v50, %v247_v55 }
   0xf   :  { %11531 = vst [vmem:[#allocation20_spill] sm:$0xff] %v7599_v61  ;;  %11532 = vst [vmem:[#allocation21_spill] sm:$0xff] %v7605_v63  ;;  %v7611_v3 = vld [vmem:[%s11169_s0 + $0x210] sm:$0xff]  ;;  %v7616_v4 = vld [vmem:[%s11169_s0 + $0x218] sm:$0xff]  ;;  %v7622_v8 = vsel %vm230_vm1, %v326_v56, %v327_v57  ;;  %v329_v9 = vrot.slane %v7605_v63, 1  ;;  %v252_v12 = vrot.slane %v7589_v59, 1  ;;  %6433 = vmatmul.mubr.msk.f32.gmra.mxu0 %vm391_vm2, %v7596_v60 }
  0x10   :  { %11533 = vst [vmem:[#allocation22_spill] sm:$0xff] %v7611_v3  ;;  %11534 = vst [vmem:[#allocation23_spill] sm:$0xff] %v7616_v4  ;;  %v7629_v13 = vld [vmem:[%s11169_s0 + $0x70] sm:$0x3]  ;;  %v7634_v14 = vld [vmem:[%s11169_s0 + $0x220] sm:$0x3]  ;;  %6481 = vmatmul.mubr.msk.f32.gmra.mxu1 %vm391_vm2, %v7599_v61  ;;  %v7658_v24 = vsel %vm230_vm1, %v247_v55, %v249_v62  ;;  %6435 = vmatprep.mubr.msk.f32.mxu0 %vm391_vm2, %v7619_v7 }
  0x11   :  { %11535 = vst [vmem:[#allocation24_spill] sm:$0xff] %v7619_v7  ;;  %11536 = vst [vmem:[#allocation25_spill] sm:$0xff] %v7622_v8  ;;  %v331_v15 = vrot.slane %v7611_v3, 1  ;;  %v332_v17 = vrot.slane %v7616_v4, 1  ;;  %v7641_v19 = vld [vmem:[%s11169_s0 + $0x78] sm:$0xff]  ;;  %v7646_v22 = vld [vmem:[%s11169_s0 + $0x80] sm:$0xff]  ;;  %6483 = vmatprep.mubr.msk.f32.mxu1 %vm391_vm2, %v7622_v8  ;;  %v7671_v29 = vsel %vm230_vm1, %v327_v57, %v329_v9  ;;  %v7674_v30 = vsel %vm230_vm1, %v251_v0, %v252_v12 }
  0x12   :  { %11537 = vst [vmem:[#allocation26_spill] sm:$0xff] %v7634_v14  ;;  %v7651_v23 = vld [vmem:[%s11169_s0 + $0x228] sm:$0xff]  ;;  %11539 = vst [vmem:[#allocation28_spill] sm:$0xff] %v7658_v24  ;;  %v254_v25 = vrot.slane %v7629_v13, 1  ;;  %v7664_v28 = vld [vmem:[%s11169_s0 + $0x230] sm:$0xff]  ;;  %v334_v35 = vrot.slane %v7634_v14, 1 }
  0x13   :  { %11538 = vst [vmem:[#allocation27_spill] sm:$0xff] %v7651_v23  ;;  %11540 = vst [vmem:[#allocation29_spill] sm:$0xff] %v7664_v28  ;;  %v256_v36 = vrot.slane %v7641_v19, 1  ;;  %v7681_v38 = vld [vmem:[%s11169_s0 + $0x88] sm:$0x3]  ;;  %v7686_v43 = vld [vmem:[%s11169_s0 + $0x90] sm:$0xff]  ;;  %v7689_v48 = vsel %vm230_vm1, %v331_v15, %v332_v17  ;;  %6436 = vmatmul.mubr.msk.f32.gmra.mxu0 %vm391_vm2, %v7658_v24 }
  0x14   :  { %11541 = vst [vmem:[#allocation30_spill] sm:$0xff] %v7671_v29  ;;  %11542 = vst [vmem:[#allocation31_spill] sm:$0xff] %v7674_v30  ;;  %v257_v49 = vrot.slane %v7646_v22, 1  ;;  %v336_v50 = vrot.slane %v7651_v23, 1  ;;  %v337_v55 = vrot.slane %v7664_v28, 1  ;;  %v7702_v57 = vld [vmem:[%s11169_s0 + $0x98] sm:$0xff]  ;;  %6484 = vmatmul.mubr.msk.f32.gmra.mxu1 %vm391_vm2, %v7671_v29  ;;  %v7719_v9 = vsel %vm230_vm1, %v252_v12, %v254_v25  ;;  %6438 = vmatprep.mubr.msk.f32.mxu0 %vm391_vm2, %v7674_v30 }
  0x15   :  { %11543 = vst [vmem:[#allocation32_spill] sm:$0xff] %v7689_v48  ;;  %v7697_v56 = vld [vmem:[%s11169_s0 + $0x238] sm:$0x3]  ;;  %v7707_v62 = vld [vmem:[%s11169_s0 + $0x240] sm:$0xff]  ;;  %v7712_v0 = vld [vmem:[%s11169_s0 + $0x248] sm:$0xff]  ;;  %v259_v15 = vrot.slane %v7681_v38, 1  ;;  %6486 = vmatprep.mubr.msk.f32.mxu1 %vm391_vm2, %v7689_v48  ;;  %v7727_v8 = vsel %vm230_vm1, %v332_v17, %v334_v35 }
  0x16   :  { %11544 = vst [vmem:[#allocation33_spill] sm:$0xff] %v7697_v56  ;;  %11545 = vst [vmem:[#allocation34_spill] sm:$0xff] %v7707_v62  ;;  %v339_v61 = vrot.slane %v7697_v56, 1  ;;  %v261_v54 = vrot.slane %v7686_v43, 1  ;;  %v262_v29 = vrot.slane %v7702_v57, 1  ;;  %v7738_v25 = vsel %vm230_vm1, %v256_v36, %v257_v49  ;;  %v7753_v40 = vld [vmem:[%s11169_s0 + $0xa8] sm:$0xff] }
  0x17   :  { %11546 = vst [vmem:[#allocation35_spill] sm:$0xff] %v7712_v0  ;;  %11547 = vst [vmem:[#allocation36_spill] sm:$0xff] %v7719_v9  ;;  %v7735_v12 = vld [vmem:[%s11169_s0 + $0xa0] sm:$0x3]  ;;  %v7741_v42 = vsel %vm230_vm1, %v336_v50, %v337_v55  ;;  %v341_v17 = vrot.slane %v7707_v62, 1  ;;  %v342_v35 = vrot.slane %v7712_v0, 1  ;;  %6439 = vmatmul.mubr.msk.f32.gmra.mxu0 %vm391_vm2, %v7719_v9  ;;  %v7775_v24 = vsel %vm230_vm1, %v257_v49, %v259_v15 }
  0x18   :  { %11548 = vst [vmem:[#allocation37_spill] sm:$0xff] %v7727_v8  ;;  %11549 = vst [vmem:[#allocation38_spill] sm:$0xff] %v7738_v25  ;;  %v7748_v48 = vld [vmem:[%s11169_s0 + $0x250] sm:$0x3]  ;;  %v7763_v50 = vld [vmem:[%s11169_s0 + $0x258] sm:$0xff]  ;;  %6487 = vmatmul.mubr.msk.f32.gmra.mxu1 %vm391_vm2, %v7727_v8  ;;  %v264_v7 = vrot.slane %v7735_v12, 1  ;;  %6441 = vmatprep.mubr.msk.f32.mxu0 %vm391_vm2, %v7738_v25  ;;  %v7783_v60 = vsel %vm230_vm1, %v337_v55, %v339_v61  ;;  %v7786_v47 = vsel %vm230_vm1, %v261_v54, %v262_v29 }
  0x19   :  { %11550 = vst [vmem:[#allocation39_spill] sm:$0xff] %v7741_v42  ;;  %11551 = vst [vmem:[#allocation40_spill] sm:$0xff] %v7748_v48  ;;  %v7758_v36 = vld [vmem:[%s11169_s0 + $0xb0] sm:$0xff]  ;;  %v7768_v30 = vld [vmem:[%s11169_s0 + $0x260] sm:$0xff]  ;;  %6489 = vmatprep.mubr.msk.f32.mxu1 %vm391_vm2, %v7741_v42  ;;  %v344_v9 = vrot.slane %v7748_v48, 1  ;;  %v266_v8 = vrot.slane %v7753_v40, 1  ;;  %v7801_v61 = vsel %vm230_vm1, %v341_v17, %v342_v35 }
  0x1a   :  { %11552 = vst [vmem:[#allocation41_spill] sm:$0xff] %v7763_v50  ;;  %11553 = vst [vmem:[#allocation42_spill] sm:$0xff] %v7768_v30  ;;  %v7793_v49 = vld [vmem:[%s11169_s0 + $0xb8] sm:$0x3]  ;;  %v7798_v15 = vld [vmem:[%s11169_s0 + $0xc0] sm:$0xff]  ;;  %v267_v54 = vrot.slane %v7758_v36, 1 }
  0x1b   :  { %11554 = vst [vmem:[#allocation43_spill] sm:$0xff] %v7775_v24  ;;  %11555 = vst [vmem:[#allocation44_spill] sm:$0xff] %v7783_v60  ;;  %v346_v55 = vrot.slane %v7763_v50, 1  ;;  %v347_v42 = vrot.slane %v7768_v30, 1  ;;  %v7809_v25 = vld [vmem:[%s11169_s0 + $0x268] sm:$0x3]  ;;  %6442 = vmatmul.mubr.msk.f32.gmra.mxu0 %vm391_vm2, %v7775_v24  ;;  %v7831_v30 = vsel %vm230_vm1, %v262_v29, %v264_v7  ;;  %v7839_v48 = vsel %vm230_vm1, %v342_v35, %v344_v9 }
  0x1c   :  { %11556 = vst [vmem:[#allocation45_spill] sm:$0xff] %v7786_v47  ;;  %11557 = vst [vmem:[#allocation46_spill] sm:$0xff] %v7801_v61  ;;  %v7814_v41 = vld [vmem:[%s11169_s0 + $0xc8] sm:$0xff]  ;;  %v7819_v17 = vld [vmem:[%s11169_s0 + $0x270] sm:$0xff]  ;;  %6490 = vmatmul.mubr.msk.f32.gmra.mxu1 %vm391_vm2, %v7783_v60  ;;  %v269_v50 = vrot.slane %v7793_v49, 1  ;;  %6444 = vmatprep.mubr.msk.f32.mxu0 %vm391_vm2, %v7786_v47  ;;  %v349_v0 = vrot.slane %v7809_v25, 1  ;;  %v7850_v29 = vsel %vm230_vm1, %v266_v8, %v267_v54 }
  0x1d   :  { %11558 = vst [vmem:[#allocation47_spill] sm:$0xff] %v7809_v25  ;;  %11559 = vst [vmem:[#allocation48_spill] sm:$0xff] %v7819_v17  ;;  %v7824_v34 = vld [vmem:[%s11169_s0 + $0x278] sm:$0xff]  ;;  %6492 = vmatprep.mubr.msk.f32.mxu1 %vm391_vm2, %v7801_v61  ;;  %v271_v24 = vrot.slane %v7798_v15, 1  ;;  %v272_v60 = vrot.slane %v7814_v41, 1  ;;  %v7853_v47 = vsel %vm230_vm1, %v346_v55, %v347_v42  ;;  %v351_v9 = vrot.slane %v7819_v17, 1 }
  0x1e   :  { %11560 = vst [vmem:[#allocation49_spill] sm:$0xff] %v7824_v34  ;;  %11561 = vst [vmem:[#allocation50_spill] sm:$0xff] %v7831_v30  ;;  %v7847_v7 = vld [vmem:[%s11169_s0 + $0xd0] sm:$0x3]  ;;  %v352_v35 = vrot.slane %v7824_v34, 1  ;;  %v7865_v25 = vld [vmem:[%s11169_s0 + $0xd8] sm:$0xff]  ;;  %v7887_v17 = vsel %vm230_vm1, %v267_v54, %v269_v50  ;;  %v7895_v56 = vsel %vm230_vm1, %v347_v42, %v349_v0 }
  0x1f   :  { %11562 = vst [vmem:[#allocation51_spill] sm:$0xff] %v7839_v48  ;;  %11563 = vst [vmem:[#allocation52_spill] sm:$0xff] %v7850_v29  ;;  %v7860_v61 = vld [vmem:[%s11169_s0 + $0x280] sm:$0x3]  ;;  %v7875_v55 = vld [vmem:[%s11169_s0 + $0x288] sm:$0xff]  ;;  %6445 = vmatmul.mubr.msk.f32.gmra.mxu0 %vm391_vm2, %v7831_v30  ;;  %v274_v62 = vrot.slane %v7847_v7, 1  ;;  %v7898_v28 = vsel %vm230_vm1, %v271_v24, %v272_v60 }
  0x20   :  { %11564 = vst [vmem:[#allocation53_spill] sm:$0xff] %v7853_v47  ;;  %11565 = vst [vmem:[#allocation54_spill] sm:$0xff] %v7860_v61  ;;  %v7870_v8 = vld [vmem:[%s11169_s0 + $0xe0] sm:$0xff]  ;;  %v7880_v34 = vld [vmem:[%s11169_s0 + $0x290] sm:$0xff]  ;;  %6493 = vmatmul.mubr.msk.f32.gmra.mxu1 %vm391_vm2, %v7839_v48  ;;  %6447 = vmatprep.mubr.msk.f32.mxu0 %vm391_vm2, %v7850_v29  ;;  %v354_v30 = vrot.slane %v7860_v61, 1  ;;  %v276_v48 = vrot.slane %v7865_v25, 1  ;;  %v7913_v42 = vsel %vm230_vm1, %v351_v9, %v352_v35 }
  0x21   :  { %11566 = vst [vmem:[#allocation55_spill] sm:$0xff] %v7875_v55  ;;  %11567 = vst [vmem:[#allocation56_spill] sm:$0xff] %v7880_v34  ;;  %6495 = vmatprep.mubr.msk.f32.mxu1 %vm391_vm2, %v7853_v47  ;;  %v7905_v50 = vld [vmem:[%s11169_s0 + $0xe8] sm:$0x3]  ;;  %v7910_v54 = vld [vmem:[%s11169_s0 + $0x298] sm:$0x3] }
  0x22   :  { %11568 = vst [vmem:[#allocation57_spill] sm:$0xff] %v7887_v17  ;;  %11569 = vst [vmem:[#allocation58_spill] sm:$0xff] %v7895_v56  ;;  %v277_v24 = vrot.slane %v7870_v8, 1  ;;  %v356_v0 = vrot.slane %v7875_v55, 1  ;;  %v357_v47 = vrot.slane %v7880_v34, 1  ;;  %v7921_v29 = vld [vmem:[%s11169_s0 + $0xf0] sm:$0xff]  ;;  %v7943_v34 = vsel %vm230_vm1, %v272_v60, %v274_v62 }
  0x23   :  { %11570 = vst [vmem:[#allocation59_spill] sm:$0xff] %v7898_v28  ;;  %11571 = vst [vmem:[#allocation60_spill] sm:$0xff] %v7910_v54  ;;  %v7926_v61 = vld [vmem:[%s11169_s0 + $0xf8] sm:$0xff]  ;;  %v7931_v9 = vld [vmem:[%s11169_s0 + $0x2a0] sm:$0xff]  ;;  %6448 = vmatmul.mubr.msk.f32.gmra.mxu0 %vm391_vm2, %v7887_v17  ;;  %v279_v23 = vrot.slane %v7905_v50, 1  ;;  %v7951_v14 = vsel %vm230_vm1, %v352_v35, %v354_v30  ;;  %v359_v4 = vrot.slane %v7910_v54, 1 }
  0x24   :  { %11572 = vst [vmem:[#allocation61_spill] sm:$0xff] %v7913_v42  ;;  %11573 = vst [vmem:[#allocation62_spill] sm:$0xff] %v7931_v9  ;;  %v7936_v55 = vld [vmem:[%s11169_s0 + $0x2a8] sm:$0xff]  ;;  %6496 = vmatmul.mubr.msk.f32.gmra.mxu1 %vm391_vm2, %v7895_v56  ;;  %6450 = vmatprep.mubr.msk.f32.mxu0 %vm391_vm2, %v7898_v28  ;;  %v281_v17 = vrot.slane %v7921_v29, 1  ;;  %v282_v56 = vrot.slane %v7926_v61, 1  ;;  %v7962_v62 = vsel %vm230_vm1, %v276_v48, %v277_v24  ;;  %v361_v30 = vrot.slane %v7931_v9, 1 }
  0x25   :  { %11574 = vst [vmem:[#allocation63_spill] sm:$0xff] %v7936_v55  ;;  %11575 = vst [vmem:[#allocation64_spill] sm:$0xff] %v7943_v34  ;;  %6498 = vmatprep.mubr.msk.f32.mxu1 %vm391_vm2, %v7913_v42  ;;  %v7959_v60 = vld [vmem:[%s11169_s0 + $0x100] sm:$0x3]  ;;  %v7965_v28 = vsel %vm230_vm1, %v356_v0, %v357_v47  ;;  %v362_v35 = vrot.slane %v7936_v55, 1  ;;  %v7977_v54 = vld [vmem:[%s11169_s0 + $0x108] sm:$0xff]  ;;  %v7999_v9 = vsel %vm230_vm1, %v277_v24, %v279_v23 }
  0x26   :  { %11576 = vst [vmem:[#allocation65_spill] sm:$0xff] %v7951_v14  ;;  %11577 = vst [vmem:[#allocation66_spill] sm:$0xff] %v7962_v62  ;;  %v7972_v42 = vld [vmem:[%s11169_s0 + $0x2b0] sm:$0x3]  ;;  %v7987_v0 = vld [vmem:[%s11169_s0 + $0x2b8] sm:$0xff]  ;;  %v284_v3 = vrot.slane %v7959_v60, 1  ;;  %v8017_v23 = vsel %vm230_vm1, %v357_v47, %v359_v4  ;;  %v8020_v24 = vsel %vm230_vm1, %v281_v17, %v282_v56 }
  0x27   :  { %11578 = vst [vmem:[#allocation67_spill] sm:$0xff] %v7965_v28  ;;  %11579 = vst [vmem:[#allocation68_spill] sm:$0xff] %v7972_v42  ;;  %v7982_v48 = vld [vmem:[%s11169_s0 + $0x110] sm:$0xff]  ;;  %v7992_v55 = vld [vmem:[%s11169_s0 + $0x2c0] sm:$0xff]  ;;  %6451 = vmatmul.mubr.msk.f32.gmra.mxu0 %vm391_vm2, %v7943_v34  ;;  %v286_v34 = vrot.slane %v7977_v54, 1  ;;  %v8035_v47 = vsel %vm230_vm1, %v361_v30, %v362_v35  ;;  %v366_v17 = vrot.slane %v7987_v0, 1 }
  0x28   :  { %11580 = vst [vmem:[#allocation69_spill] sm:$0xff] %v7987_v0  ;;  %11581 = vst [vmem:[#allocation70_spill] sm:$0xff] %v7992_v55  ;;  %6499 = vmatmul.mubr.msk.f32.gmra.mxu1 %vm391_vm2, %v7951_v14  ;;  %v8005_v63 = vld [vmem:[%s11169_s0 + $0x118] sm:$0x3]  ;;  %6453 = vmatprep.mubr.msk.f32.mxu0 %vm391_vm2, %v7962_v62  ;;  %v364_v14 = vrot.slane %v7972_v42, 1  ;;  %v287_v4 = vrot.slane %v7982_v48, 1  ;;  %v8075_v33 = vsel %vm230_vm1, %v282_v56, %v284_v3 }
  0x29   :  { %11582 = vst [vmem:[#allocation71_spill] sm:$0xff] %v7999_v9  ;;  %v8010_v52 = vld [vmem:[%s11168_s1 + $0x18] sm:$0x3f]  ;;  %6501 = vmatprep.mubr.msk.f32.mxu1 %vm391_vm2, %v7965_v28  ;;  %11583 = vst [vmem:[#allocation72_spill] sm:$0xff] %v8017_v23  ;;  %v8027_v51 = vld [vmem:[%s11169_s0 + $0x2c8] sm:$0x3] }
  0x2a   :  { %11584 = vst [vmem:[#allocation73_spill] sm:$0xff] %v8020_v24  ;;  %11585 = vst [vmem:[#allocation74_spill] sm:$0xff] %v8027_v51  ;;  %v8032_v62 = vld [vmem:[%s11168_s1 + $0x20] sm:$0x3f]  ;;  %v367_v28 = vrot.slane %v7992_v55, 1  ;;  %v8048_v44 = vld [vmem:[%s11169_s0 + $0x128] sm:$0xff]  ;;  %6718 = vmatprep.subr.msk.mxu1 %vm520_vm0, %v8010_v52  ;;  %v8078_v27 = vsel %vm230_vm1, %v362_v35, %v364_v14 }
  0x2b   :  { %11586 = vst [vmem:[#allocation75_spill] sm:$0xff] %v8035_v47  ;;  %v8043_v42 = vld [vmem:[%s11169_s0 + $0x120] sm:$0xff]  ;;  %6816 = vmatprep.subr.msk.mxu0 %vm520_vm0, %v8032_v62  ;;  %v8057_v30 = vld [vmem:[%s11169_s0 + $0x2d0] sm:$0xff]  ;;  %v8062_v55 = vld [vmem:[%s11169_s0 + $0x2d8] sm:$0xff]  ;;  %6454 = vmatmul.mubr.msk.f32.gmra.mxu0 %vm391_vm2, %v7999_v9  ;;  %v289_v0 = vrot.slane %v8005_v63, 1  ;;  %v369_v37 = vrot.slane %v8027_v51, 1 }
  0x2c   :  { %11587 = vst [vmem:[#allocation76_spill] sm:$0xff] %v8057_v30  ;;  %11588 = vst [vmem:[#allocation77_spill] sm:$0xff] %v8062_v55  ;;  %6502 = vmatmul.mubr.msk.f32.gmra.mxu1 %vm391_vm2, %v8017_v23  ;;  %6456 = vmatprep.mubr.msk.f32.mxu0 %vm391_vm2, %v8020_v24  ;;  %v291_v9 = vrot.slane %v8043_v42, 1  ;;  %v292_v23 = vrot.slane %v8048_v44, 1  ;;  %v8085_v51 = vld [vmem:[%s11169_s0 + $0x138] sm:$0xff]  ;;  %v8088_v24 = vsel %vm230_vm1, %v286_v34, %v287_v4  ;;  %v371_v3 = vrot.slane %v8057_v30, 1 }
  0x2d   :  { %6504 = vmatprep.mubr.msk.f32.mxu1 %vm391_vm2, %v8035_v47  ;;  %11589 = vst [vmem:[#allocation78_spill] sm:$0xff] %v8075_v33  ;;  %11590 = vst [vmem:[#allocation79_spill] sm:$0xff] %v8078_v27  ;;  %v8091_v47 = vsel %vm230_vm1, %v366_v17, %v367_v28  ;;  %v372_v14 = vrot.slane %v8062_v55, 1  ;;  %v8098_v56 = vld [vmem:[%s11169_s0 + $0x130] sm:$0x3]  ;;  %v8108_v34 = vld [vmem:[%s11169_s0 + $0x140] sm:$0xff]  ;;  %v8125_v30 = vsel %vm230_vm1, %v287_v4, %v289_v0 }
  0x2e   :  { %11591 = vst [vmem:[#allocation80_spill] sm:$0xff] %v8088_v24  ;;  %11592 = vst [vmem:[#allocation81_spill] sm:$0xff] %v8091_v47  ;;  %v8103_v35 = vld [vmem:[%s11169_s0 + $0x2e0] sm:$0x3]  ;;  %v8113_v17 = vld [vmem:[%s11169_s0 + $0x2e8] sm:$0xff]  ;;  %v8128_v21 = vsel %vm230_vm1, %v367_v28, %v369_v37  ;;  %v294_v0 = vrot.slane %v8098_v56, 1 }
  0x2f   :  { %11593 = vst [vmem:[#allocation82_spill] sm:$0xff] %v8103_v35  ;;  %11594 = vst [vmem:[#allocation83_spill] sm:$0xff] %v8108_v34  ;;  %v8118_v55 = vld [vmem:[%s11169_s0 + $0x2f0] sm:$0xff]  ;;  %6457 = vmatmul.mubr.msk.f32.gmra.mxu0 %vm391_vm2, %v8075_v33  ;;  %v8133_v20 = vld [vmem:[%s11169_s0 + $0x148] sm:$0x3]  ;;  %v8140_v33 = vsel %vm230_vm1, %v291_v9, %v292_v23  ;;  %v374_v4 = vrot.slane %v8103_v35, 1 }
  0x30   :  { %11595 = vst [vmem:[#allocation84_spill] sm:$0xff] %v8113_v17  ;;  %11596 = vst [vmem:[#allocation85_spill] sm:$0xff] %v8118_v55  ;;  %6505 = vmatmul.mubr.msk.f32.gmra.mxu1 %vm391_vm2, %v8078_v27  ;;  %6459 = vmatprep.mubr.msk.f32.mxu0 %vm391_vm2, %v8088_v24  ;;  %v296_v37 = vrot.slane %v8085_v51, 1  ;;  %v8148_v28 = vld [vmem:[%s11169_s0 + $0x2f8] sm:$0x3]  ;;  %v8151_v27 = vsel %vm230_vm1, %v371_v3, %v372_v14  ;;  %v297_v24 = vrot.slane %v8108_v34, 1 }
  0x31   :  { %11597 = vst [vmem:[#allocation86_spill] sm:$0xff] %v8125_v30  ;;  %11598 = vst [vmem:[#allocation87_spill] sm:$0xff] %v8128_v21  ;;  %6507 = vmatprep.mubr.msk.f32.mxu1 %vm391_vm2, %v8091_v47  ;;  %v376_v47 = vrot.slane %v8113_v17, 1  ;;  %v377_v9 = vrot.slane %v8118_v55, 1  ;;  %v8159_v35 = vld [vmem:[%s11169_s0 + $0x150] sm:$0xff]  ;;  %v8164_v11 = vld [vmem:[%s11169_s0 + $0x158] sm:$0xff]  ;;  %v8187_v5 = vsel %vm230_vm1, %v292_v23, %v294_v0  ;;  %v8190_v34 = vsel %vm230_vm1, %v372_v14, %v374_v4 }
  0x32   :  { %11599 = vst [vmem:[#allocation88_spill] sm:$0xff] %v8133_v20  ;;  %11600 = vst [vmem:[#allocation89_spill] sm:$0xff] %v8140_v33  ;;  %v8169_v3 = vld [vmem:[%s11169_s0 + $0x300] sm:$0xff]  ;;  %v8174_v17 = vld [vmem:[%s11169_s0 + $0x308] sm:$0xff]  ;;  %v299_v55 = vrot.slane %v8133_v20, 1  ;;  %v379_v6 = vrot.slane %v8148_v28, 1 }
  0x33   :  { %11601 = vst [vmem:[#allocation90_spill] sm:$0xff] %v8148_v28  ;;  %11602 = vst [vmem:[#allocation91_spill] sm:$0xff] %v8151_v27  ;;  %6460 = vmatmul.mubr.msk.f32.gmra.mxu0 %vm391_vm2, %v8125_v30  ;;  %v301_v30 = vrot.slane %v8159_v35, 1  ;;  %v8197_v28 = vld [vmem:[%s11169_s0 + $0x160] sm:$0x3]  ;;  %v381_v23 = vrot.slane %v8169_v3, 1 }
  0x34   :  { %11603 = vst [vmem:[#allocation92_spill] sm:$0xff] %v8159_v35  ;;  %11604 = vst [vmem:[#allocation93_spill] sm:$0xff] %v8164_v11  ;;  %6508 = vmatmul.mubr.msk.f32.gmra.mxu1 %vm391_vm2, %v8128_v21  ;;  %6462 = vmatprep.mubr.msk.f32.mxu0 %vm391_vm2, %v8140_v33  ;;  %v302_v21 = vrot.slane %v8164_v11, 1  ;;  %v8200_v33 = vsel %vm230_vm1, %v296_v37, %v297_v24  ;;  %v382_v14 = vrot.slane %v8174_v17, 1  ;;  %v8210_v0 = vld [vmem:[%s11169_s0 + $0x310] sm:$0x3] }
  0x35   :  { %11605 = vst [vmem:[#allocation94_spill] sm:$0xff] %v8169_v3  ;;  %11606 = vst [vmem:[#allocation95_spill] sm:$0xff] %v8174_v17  ;;  %6510 = vmatprep.mubr.msk.f32.mxu1 %vm391_vm2, %v8151_v27  ;;  %v8203_v27 = vsel %vm230_vm1, %v376_v47, %v377_v9  ;;  %v8215_v4 = vld [vmem:[%s11169_s0 + $0x168] sm:$0xff]  ;;  %v8220_v37 = vld [vmem:[%s11169_s0 + $0x170] sm:$0xff]  ;;  %v8237_v3 = vsel %vm230_vm1, %v297_v24, %v299_v55  ;;  %v8240_v11 = vsel %vm230_vm1, %v377_v9, %v379_v6 }
  0x36   :  { %11607 = vst [vmem:[#allocation96_spill] sm:$0xff] %v8187_v5  ;;  %11608 = vst [vmem:[#allocation97_spill] sm:$0xff] %v8190_v34  ;;  %v8225_v47 = vld [vmem:[%s11169_s0 + $0x318] sm:$0xff]  ;;  %v8230_v17 = vld [vmem:[%s11169_s0 + $0x320] sm:$0xff]  ;;  %v8247_v35 = vsel %vm230_vm1, %v301_v30, %v302_v21  ;;  %v384_v20 = vrot.slane %v8210_v0, 1  ;;  %v8258_v55 = vsel %vm230_vm1, %v381_v23, %v382_v14  ;;  %v307_v24 = vrot.slane %v8220_v37, 1 }
  0x37   :  { %11609 = vst [vmem:[#allocation98_spill] sm:$0xff] %v8200_v33  ;;  %11610 = vst [vmem:[#allocation99_spill] sm:$0xff] %v8203_v27  ;;  %6463 = vmatmul.mubr.msk.f32.gmra.mxu0 %vm391_vm2, %v8187_v5  ;;  %v304_v5 = vrot.slane %v8197_v28, 1  ;;  %v8255_v6 = vld [vmem:[%s11169_s0 + $0x178] sm:$0x3]  ;;  %v386_v9 = vrot.slane %v8225_v47, 1 }
  0x38   :  { %11611 = vst [vmem:[#allocation100_spill] sm:$0xff] %v8225_v47  ;;  %11612 = vst [vmem:[#allocation101_spill] sm:$0xff] %v8230_v17  ;;  %6511 = vmatmul.mubr.msk.f32.gmra.mxu1 %vm391_vm2, %v8190_v34  ;;  %6465 = vmatprep.mubr.msk.f32.mxu0 %vm391_vm2, %v8200_v33  ;;  %v306_v34 = vrot.slane %v8215_v4, 1  ;;  %v387_v30 = vrot.slane %v8230_v17, 1  ;;  %v8280_v33 = vsel %vm230_vm1, %v382_v14, %v384_v20  ;;  %v309_v17 = vrot.slane %v8255_v6, 1 }
  0x39   :  { %11613 = vst [vmem:[#allocation102_spill] sm:$0xff] %v8237_v3  ;;  %11614 = vst [vmem:[#allocation103_spill] sm:$0xff] %v8240_v11  ;;  %6513 = vmatprep.mubr.msk.f32.mxu1 %vm391_vm2, %v8203_v27  ;;  %v8266_v27 = vld [vmem:[%s11169_s0 + $0x328] sm:$0x3]  ;;  %v8277_v23 = vsel %vm230_vm1, %v302_v21, %v304_v5  ;;  %v1428_v5 = vrot.slane %v7430_v10, 2  ;;  %v1430_v14 = vrot.slane %v7447_v16, 2 }
  0x3a   :  { %11615 = vst [vmem:[#allocation104_spill] sm:$0xff] %v8247_v35  ;;  %11616 = vst [vmem:[#allocation105_spill] sm:$0xff] %v8258_v55  ;;  %v389_v47 = vrot.slane %v8266_v27, 1  ;;  %v8302_v20 = vsel %vm230_vm1, %v307_v24, %v309_v17  ;;  %v1433_v17 = vrot.slane %v7476_v26, 2 }
  0x3b   :  { %6466 = vmatmul.mubr.msk.f32.gmra.mxu0 %vm391_vm2, %v8237_v3  ;;  %11617 = vst [vmem:[#allocation106_spill] sm:$0xff] %v8277_v23  ;;  %11618 = vst [vmem:[#allocation107_spill] sm:$0xff] %v8280_v33  ;;  %v8285_v3 = vsel %vm230_vm1, %v306_v34, %v307_v24 }
  0x3c   :  { %6514 = vmatmul.mubr.msk.f32.gmra.mxu1 %vm391_vm2, %v8240_v11  ;;  %6468 = vmatprep.mubr.msk.f32.mxu0 %vm391_vm2, %v8247_v35  ;;  %11619 = vst [vmem:[#allocation108_spill] sm:$0xff] %v8285_v3  ;;  %v8288_v11 = vsel %vm230_vm1, %v386_v9, %v387_v30  ;;  %v1425_v35 = vrot.slane %v7399_v1, 2  ;;  %11621 = vst [vmem:[#allocation110_spill] sm:$0xff] %v8302_v20  ;;  %v8305_v21 = vsel %vm230_vm1, %v387_v30, %v389_v47 }
  0x3d   :  { %6516 = vmatprep.mubr.msk.f32.mxu1 %vm391_vm2, %v8258_v55  ;;  %11620 = vst [vmem:[#allocation109_spill] sm:$0xff] %v8288_v11  ;;  %v1426_v55 = vrot.slane %v7404_v2, 2  ;;  %11622 = vst [vmem:[#allocation111_spill] sm:$0xff] %v8305_v21  ;;  %v1431_v9 = vrot.slane %v7455_v18, 2  ;;  %v1436_v47 = vrot.slane %v7496_v32, 2  ;;  %v1441_v30 = vrot.slane %v7546_v46, 2 }
  0x3f   :  { %6469 = vmatmul.mubr.msk.f32.gmra.mxu0 %vm391_vm2, %v8277_v23  ;;  %v1427_v34 = vsel %vm520_vm0, %v1425_v35, %v1426_v55  ;;  %v1429_v10 = vsel %vm520_vm0, %v1426_v55, %v1428_v5  ;;  %v1435_v35 = vrot.slane %v7491_v31, 2  ;;  %v8322_v24 = vsel %vm520_vm0, %v1430_v14, %v1431_v9 }
  0x40   :  { %6517 = vmatmul.mubr.msk.f32.gmra.mxu1 %vm391_vm2, %v8280_v33  ;;  %6471 = vmatprep.mubr.msk.f32.mxu0 %vm391_vm2, %v8285_v3  ;;  %v8337_v26 = vsel %vm520_vm0, %v1431_v9, %v1433_v17  ;;  %v1438_v55 = vrot.slane %v7519_v39, 2  ;;  %v1443_v39 = vrot.slane %v7584_v58, 2  ;;  %v1448_v58 = vrot.slane %v7629_v13, 2 }
  0x41   :  { %6519 = vmatprep.mubr.msk.f32.mxu1 %vm391_vm2, %v8288_v11  ;;  %v1450_v9 = vrot.slane %v7641_v19, 2  ;;  %v1453_v13 = vrot.slane %v7681_v38, 2  ;;  %v1455_v17 = vrot.slane %v7686_v43, 2  ;;  %v1458_v38 = vrot.slane %v7735_v12, 2 }
  0x42   :  { %v1463_v12 = vrot.slane %v7793_v49, 2  ;;  %v1468_v49 = vrot.slane %v7847_v7, 2  ;;  %v1473_v7 = vrot.slane %v7905_v50, 2  ;;  %v1478_v50 = vrot.slane %v7959_v60, 2 }
  0x43   :  { %6472 = vmatmul.mubr.msk.f32.gmra.mxu0 %vm391_vm2, %v8302_v20  ;;  %v1483_v60 = vrot.slane %v8005_v63, 2 }
  0x44   :  { %6520 = vmatmul.mubr.msk.f32.gmra.mxu1 %vm391_vm2, %v8305_v21  ;;  %6622 = vmatprep.mubr.msk.f32.mxu0 %vm391_vm2, %v1427_v34  ;;  %v1445_v34 = vrot.slane %v7569_v53, 2 }
  0x45   :  { %6524 = vmatprep.mubr.msk.f32.mxu1 %vm391_vm2, %v7399_v1  ;;  %v8330_v1 = vld [vmem:[%s11168_s1 + $0x28] sm:$0x3f] }
  0x47   :  { %6623 = vmatmul.mubr.msk.f32.vlgmr.msra.gmra.mxu0 %vm391_vm2, %v1429_v10 }
  0x48   :  { %6525 = vmatmul.mubr.msk.f32.vlgmr.msra.gmra.mxu1 %vm391_vm2, %v7404_v2  ;;  %6817 = vmatpush3.msk.msra.mxu0 %vm520_vm0, %v8032_v62  ;;  %v8343_v2 = vld [vmem:[%s11168_s1 + $0x30] sm:$0x3f]  ;;  %v1440_v62 = vrot.slane %v7541_v45, 2 }
  0x49   :  { %6719 = vmatpush3.msk.msra.mxu1 %vm520_vm0, %v8010_v52  ;;  %6527 = vmatprep.mubr.msk.f32.mxu1 %vm391_vm2, %v7447_v16  ;;  %v8350_v52 = vsel %vm520_vm0, %v1435_v35, %v1436_v47  ;;  %v8367_v16 = vsel %vm520_vm0, %v1436_v47, %v1438_v55  ;;  %v1460_v47 = vrot.slane %v7753_v40, 2 }
  0x4a   :  { %6625 = vmatprep.mubr.msk.f32.mxu0 %vm391_vm2, %v8322_v24  ;;  %6914 = vmatprep.subr.msk.mxu1 %vm520_vm0, %v8330_v1  ;;  %v8371_v5 = vsel %vm520_vm0, %v1440_v62, %v1441_v30  ;;  %v1465_v62 = vrot.slane %v7798_v15, 2 }
  0x4b   :  { %7012 = vmatprep.subr.msk.mxu0 %vm520_vm0, %v8343_v2  ;;  %6626 = vmatmul.mubr.msk.f32.gmra.mxu0 %vm391_vm2, %v8337_v26 }
  0x4c   :  { %6528 = vmatmul.mubr.msk.f32.gmra.mxu1 %vm391_vm2, %v7455_v18  ;;  %6628 = vmatprep.mubr.msk.f32.mxu0 %vm391_vm2, %v8350_v52  ;;  %v1446_v18 = vrot.slane %v7589_v59, 2 }
  0x4d   :  { %6530 = vmatprep.mubr.msk.f32.mxu1 %vm391_vm2, %v7491_v31  ;;  %v8384_v31 = vsel %vm520_vm0, %v1441_v30, %v1443_v39  ;;  %v1470_v39 = vrot.slane %v7865_v25, 2 }
  0x4e   :  { %v8388_v14 = vsel %vm520_vm0, %v1445_v34, %v1446_v18 }
  0x4f   :  { %6629 = vmatmul.mubr.msk.f32.gmra.mxu0 %vm391_vm2, %v8367_v16  ;;  %11623 = vst [vmem:[#allocation112_spill] sm:$0xff] %v8388_v14 }
  0x50   :  { %6531 = vmatmul.mubr.msk.f32.gmra.mxu1 %vm391_vm2, %v7496_v32  ;;  %6631 = vmatprep.mubr.msk.f32.mxu0 %vm391_vm2, %v8371_v5  ;;  %v1451_v32 = vrot.slane %v7646_v22, 2 }
  0x51   :  { %6533 = vmatprep.mubr.msk.f32.mxu1 %vm391_vm2, %v7541_v45  ;;  %v8401_v45 = vsel %vm520_vm0, %v1446_v18, %v1448_v58  ;;  %v1475_v18 = vrot.slane %v7921_v29, 2 }
  0x52   :  { %11624 = vst [vmem:[#allocation113_spill] sm:$0xff] %v8401_v45  ;;  %v8405_v10 = vsel %vm520_vm0, %v1450_v9, %v1451_v32  ;;  %v1480_v9 = vrot.slane %v7977_v54, 2 }
  0x53   :  { %6632 = vmatmul.mubr.msk.f32.gmra.mxu0 %vm391_vm2, %v8384_v31  ;;  %11625 = vst [vmem:[#allocation114_spill] sm:$0xff] %v8405_v10 }
  0x54   :  { %6534 = vmatmul.mubr.msk.f32.gmra.mxu1 %vm391_vm2, %v7546_v46  ;;  %6634 = vmatprep.mubr.msk.f32.mxu0 %vm391_vm2, %v8388_v14  ;;  %v1456_v46 = vrot.slane %v7702_v57, 2 }
  0x55   :  { %6536 = vmatprep.mubr.msk.f32.mxu1 %vm391_vm2, %v7569_v53  ;;  %v8418_v53 = vsel %vm520_vm0, %v1451_v32, %v1453_v13  ;;  %v1485_v13 = vrot.slane %v8043_v42, 2 }
  0x56   :  { %11626 = vst [vmem:[#allocation115_spill] sm:$0xff] %v8418_v53  ;;  %v8422_v35 = vsel %vm520_vm0, %v1455_v17, %v1456_v46 }
  0x57   :  { %6635 = vmatmul.mubr.msk.f32.gmra.mxu0 %vm391_vm2, %v8401_v45  ;;  %11627 = vst [vmem:[#allocation116_spill] sm:$0xff] %v8422_v35 }
  0x58   :  { %6537 = vmatmul.mubr.msk.f32.gmra.mxu1 %vm391_vm2, %v7589_v59  ;;  %6637 = vmatprep.mubr.msk.f32.mxu0 %vm391_vm2, %v8405_v10  ;;  %v1461_v59 = vrot.slane %v7758_v36, 2 }
  0x59   :  { %6539 = vmatprep.mubr.msk.f32.mxu1 %vm391_vm2, %v7641_v19  ;;  %v8435_v19 = vsel %vm520_vm0, %v1456_v46, %v1458_v38  ;;  %v1490_v46 = vrot.slane %v8085_v51, 2 }
  0x5a   :  { %11628 = vst [vmem:[#allocation117_spill] sm:$0xff] %v8435_v19  ;;  %v8439_v55 = vsel %vm520_vm0, %v1460_v47, %v1461_v59  ;;  %v11642_v47 = vld [vmem:[#allocation88_spill] sm:$0xff] }
  0x5b   :  { %6638 = vmatmul.mubr.msk.f32.gmra.mxu0 %vm391_vm2, %v8418_v53  ;;  %11629 = vst [vmem:[#allocation118_spill] sm:$0xff] %v8439_v55 }
  0x5c   :  { %6540 = vmatmul.mubr.msk.f32.gmra.mxu1 %vm391_vm2, %v7646_v22  ;;  %6640 = vmatprep.mubr.msk.f32.mxu0 %vm391_vm2, %v8422_v35  ;;  %v1466_v22 = vrot.slane %v7814_v41, 2 }
  0x5d   :  { %6542 = vmatprep.mubr.msk.f32.mxu1 %vm391_vm2, %v7686_v43  ;;  %v8452_v43 = vsel %vm520_vm0, %v1461_v59, %v1463_v12  ;;  %v1493_v59 = vrot.slane %v11642_v47, 2 }
  0x5e   :  { %11630 = vst [vmem:[#allocation119_spill] sm:$0xff] %v8452_v43  ;;  %v8456_v30 = vsel %vm520_vm0, %v1465_v62, %v1466_v22  ;;  %v11644_v62 = vld [vmem:[#allocation92_spill] sm:$0xff] }
  0x5f   :  { %6641 = vmatmul.mubr.msk.f32.gmra.mxu0 %vm391_vm2, %v8435_v19  ;;  %11631 = vst [vmem:[#allocation120_spill] sm:$0xff] %v8456_v30 }
  0x60   :  { %6543 = vmatmul.mubr.msk.f32.gmra.mxu1 %vm391_vm2, %v7702_v57  ;;  %6643 = vmatprep.mubr.msk.f32.mxu0 %vm391_vm2, %v8439_v55  ;;  %v1471_v57 = vrot.slane %v7870_v8, 2  ;;  %v11749_v55 = vld [vmem:[#allocation50_spill] sm:$0xff] }
  0x61   :  { %6545 = vmatprep.mubr.msk.f32.mxu1 %vm391_vm2, %v7753_v40  ;;  %v8469_v40 = vsel %vm520_vm0, %v1466_v22, %v1468_v49  ;;  %v1495_v22 = vrot.slane %v11644_v62, 2  ;;  %v11645_v49 = vld [vmem:[#allocation93_spill] sm:$0xff] }
  0x62   :  { %11632 = vst [vmem:[#allocation121_spill] sm:$0xff] %v8469_v40  ;;  %v8473_v34 = vsel %vm520_vm0, %v1470_v39, %v1471_v57  ;;  %v1496_v39 = vrot.slane %v11645_v49, 2 }
  0x63   :  { %6644 = vmatmul.mubr.msk.f32.gmra.mxu0 %vm391_vm2, %v8452_v43  ;;  %11633 = vst [vmem:[#allocation122_spill] sm:$0xff] %v8473_v34 }
  0x64   :  { %6546 = vmatmul.mubr.msk.f32.gmra.mxu1 %vm391_vm2, %v7758_v36  ;;  %6646 = vmatprep.mubr.msk.f32.mxu0 %vm391_vm2, %v8456_v30  ;;  %v1476_v36 = vrot.slane %v7926_v61, 2 }
  0x65   :  { %6548 = vmatprep.mubr.msk.f32.mxu1 %vm391_vm2, %v7798_v15  ;;  %v8486_v15 = vsel %vm520_vm0, %v1471_v57, %v1473_v7  ;;  %v1498_v7 = vrot.slane %v8197_v28, 2 }
  0x66   :  { %11634 = vst [vmem:[#allocation123_spill] sm:$0xff] %v8486_v15  ;;  %v8490_v58 = vsel %vm520_vm0, %v1475_v18, %v1476_v36  ;;  %v8558_v18 = vsel %vm520_vm0, %v1495_v22, %v1496_v39 }
  0x67   :  { %6647 = vmatmul.mubr.msk.f32.gmra.mxu0 %vm391_vm2, %v8469_v40  ;;  %11635 = vst [vmem:[#allocation124_spill] sm:$0xff] %v8490_v58  ;;  %11647 = vst [vmem:[#allocation93_spill] sm:$0xff] %v8558_v18  ;;  %v8571_v28 = vsel %vm520_vm0, %v1496_v39, %v1498_v7  ;;  %v11655_v39 = vld [vmem:[#allocation6_spill] sm:$0xff] }
  0x68   :  { %6549 = vmatmul.mubr.msk.f32.gmra.mxu1 %vm391_vm2, %v7814_v41  ;;  %6649 = vmatprep.mubr.msk.f32.mxu0 %vm391_vm2, %v8473_v34  ;;  %v1481_v41 = vrot.slane %v7982_v48, 2  ;;  %11648 = vst [vmem:[#allocation129_spill] sm:$0xff] %v8571_v28  ;;  %v1511_v7 = vrot.slane %v11655_v39, 2 }
  0x69   :  { %6551 = vmatprep.mubr.msk.f32.mxu1 %vm391_vm2, %v7865_v25  ;;  %v8503_v25 = vsel %vm520_vm0, %v1476_v36, %v1478_v50  ;;  %v1500_v36 = vrot.slane %v8215_v4, 2  ;;  %v1501_v50 = vrot.slane %v8220_v37, 2 }
  0x6a   :  { %11636 = vst [vmem:[#allocation125_spill] sm:$0xff] %v8503_v25  ;;  %v8507_v32 = vsel %vm520_vm0, %v1480_v9, %v1481_v41  ;;  %v8520_v63 = vsel %vm520_vm0, %v1481_v41, %v1483_v60  ;;  %v1503_v9 = vrot.slane %v8255_v6, 2  ;;  %v11650_v60 = vld [vmem:[#allocation2_spill] sm:$0xff] }
  0x6b   :  { %6650 = vmatmul.mubr.msk.f32.gmra.mxu0 %vm391_vm2, %v8486_v15  ;;  %11637 = vst [vmem:[#allocation126_spill] sm:$0xff] %v8507_v32  ;;  %11638 = vst [vmem:[#allocation127_spill] sm:$0xff] %v8520_v63  ;;  %v8575_v41 = vsel %vm520_vm0, %v1500_v36, %v1501_v50  ;;  %v11745_v15 = vld [vmem:[#allocation45_spill] sm:$0xff] }
  0x6c   :  { %6552 = vmatmul.mubr.msk.f32.gmra.mxu1 %vm391_vm2, %v7870_v8  ;;  %6652 = vmatprep.mubr.msk.f32.mxu0 %vm391_vm2, %v8490_v58  ;;  %v1486_v8 = vrot.slane %v8048_v44, 2  ;;  %11649 = vst [vmem:[#allocation130_spill] sm:$0xff] %v8575_v41  ;;  %v8588_v6 = vsel %vm520_vm0, %v1501_v50, %v1503_v9  ;;  %v11656_v50 = vld [vmem:[#allocation7_spill] sm:$0xff] }
  0x6d   :  { %6554 = vmatprep.mubr.msk.f32.mxu1 %vm391_vm2, %v7921_v29  ;;  %v1488_v29 = vrot.slane %v8098_v56, 2  ;;  %11652 = vst [vmem:[#allocation2_spill] sm:$0xff] %v8588_v6  ;;  %v1513_v9 = vrot.slane %v11656_v50, 2  ;;  %v11743_v58 = vld [vmem:[#allocation43_spill] sm:$0xff] }
  0x6e   :  { %v8524_v17 = vsel %vm520_vm0, %v1485_v13, %v1486_v8  ;;  %v1505_v13 = vrot.slane %v11650_v60, 2 }
  0x6f   :  { %6653 = vmatmul.mubr.msk.f32.gmra.mxu0 %vm391_vm2, %v8503_v25  ;;  %11639 = vst [vmem:[#allocation128_spill] sm:$0xff] %v8524_v17  ;;  %v8537_v56 = vsel %vm520_vm0, %v1486_v8, %v1488_v29  ;;  %v11651_v8 = vld [vmem:[#allocation3_spill] sm:$0xff] }
  0x70   :  { %6555 = vmatmul.mubr.msk.f32.gmra.mxu1 %vm391_vm2, %v7926_v61  ;;  %6655 = vmatprep.mubr.msk.f32.mxu0 %vm391_vm2, %v8507_v32  ;;  %v11640_v61 = vld [vmem:[#allocation83_spill] sm:$0xff]  ;;  %v1506_v29 = vrot.slane %v11651_v8, 2 }
  0x71   :  { %6557 = vmatprep.mubr.msk.f32.mxu1 %vm391_vm2, %v7977_v54  ;;  %v1491_v38 = vrot.slane %v11640_v61, 2  ;;  %11641 = vst [vmem:[#allocation83_spill] sm:$0xff] %v8537_v56 }
  0x72   :  { %v1507_v47 = vsel %vm520_vm0, %v1505_v13, %v1506_v29 }
  0x73   :  { %6656 = vmatmul.mubr.msk.f32.gmra.mxu0 %vm391_vm2, %v8520_v63  ;;  %v8541_v12 = vsel %vm520_vm0, %v1490_v46, %v1491_v38  ;;  %v8554_v57 = vsel %vm520_vm0, %v1491_v38, %v1493_v59  ;;  %v11653_v46 = vld [vmem:[#allocation4_spill] sm:$0xff]  ;;  %v11654_v59 = vld [vmem:[#allocation5_spill] sm:$0xff] }
  0x74   :  { %6558 = vmatmul.mubr.msk.f32.gmra.mxu1 %vm391_vm2, %v7982_v48  ;;  %6658 = vmatprep.mubr.msk.f32.mxu0 %vm391_vm2, %v8524_v17  ;;  %11643 = vst [vmem:[#allocation88_spill] sm:$0xff] %v8541_v12  ;;  %11646 = vst [vmem:[#allocation92_spill] sm:$0xff] %v8554_v57  ;;  %v1508_v38 = vrot.slane %v11653_v46, 2  ;;  %v1510_v22 = vrot.slane %v11654_v59, 2  ;;  %v11658_v46 = vld [vmem:[#allocation8_spill] sm:$0xff] }
  0x75   :  { %6560 = vmatprep.mubr.msk.f32.mxu1 %vm391_vm2, %v8043_v42 }
  0x76   :  { %v1509_v36 = vsel %vm520_vm0, %v1506_v29, %v1508_v38  ;;  %v8604_v13 = vsel %vm520_vm0, %v1510_v22, %v1511_v7  ;;  %v11661_v29 = vld [vmem:[#allocation14_spill] sm:$0xff]  ;;  %v11663_v22 = vld [vmem:[#allocation16_spill] sm:$0xff] }
  0x77   :  { %6659 = vmatmul.mubr.msk.f32.gmra.mxu0 %vm391_vm2, %v8537_v56  ;;  %11657 = vst [vmem:[#allocation3_spill] sm:$0xff] %v8604_v13  ;;  %v1518_v38 = vrot.slane %v11661_v29, 2  ;;  %v1520_v50 = vrot.slane %v11663_v22, 2  ;;  %v11739_v56 = vld [vmem:[#allocation38_spill] sm:$0xff] }
  0x78   :  { %6561 = vmatmul.mubr.msk.f32.gmra.mxu1 %vm391_vm2, %v8048_v44  ;;  %6661 = vmatprep.mubr.msk.f32.mxu0 %vm391_vm2, %v8541_v12  ;;  %v11737_v12 = vld [vmem:[#allocation36_spill] sm:$0xff] }
  0x79   :  { %6563 = vmatprep.mubr.msk.f32.mxu1 %vm391_vm2, %v8085_v51 }
  0x7b   :  { %6662 = vmatmul.mubr.msk.f32.gmra.mxu0 %vm391_vm2, %v8554_v57 }
  0x7c   :  { %6564 = vmatmul.mubr.msk.f32.gmra.mxu1 %vm391_vm2, %v11640_v61  ;;  %6664 = vmatprep.mubr.msk.f32.mxu0 %vm391_vm2, %v8558_v18 }
  0x7d   :  { %6566 = vmatprep.mubr.msk.f32.mxu1 %vm391_vm2, %v11644_v62 }
  0x7f   :  { %6665 = vmatmul.mubr.msk.f32.gmra.mxu0 %vm391_vm2, %v8571_v28  ;;  %v11659_v28 = vld [vmem:[#allocation10_spill] sm:$0xff] }
  0x80   :  { %6567 = vmatmul.mubr.msk.f32.gmra.mxu1 %vm391_vm2, %v11645_v49  ;;  %6667 = vmatprep.mubr.msk.f32.mxu0 %vm391_vm2, %v8575_v41  ;;  %v1515_v41 = vrot.slane %v11658_v46, 2  ;;  %v1516_v18 = vrot.slane %v11659_v28, 2 }
  0x81   :  { %6569 = vmatprep.mubr.msk.f32.mxu1 %vm391_vm2, %v8215_v4 }
  0x83   :  { %6668 = vmatmul.mubr.msk.f32.gmra.mxu0 %vm391_vm2, %v8588_v6  ;;  %v11664_v6 = vld [vmem:[#allocation17_spill] sm:$0xff] }
  0x84   :  { %6570 = vmatmul.mubr.msk.f32.gmra.mxu1 %vm391_vm2, %v8220_v37  ;;  %6670 = vmatprep.mubr.msk.f32.mxu0 %vm391_vm2, %v1507_v47  ;;  %v8620_v47 = vsel %vm520_vm0, %v1515_v41, %v1516_v18  ;;  %v11666_v41 = vld [vmem:[#allocation21_spill] sm:$0xff] }
  0x85   :  { %6572 = vmatprep.mubr.msk.f32.mxu1 %vm391_vm2, %v11650_v60  ;;  %v8616_v60 = vsel %vm520_vm0, %v1511_v7, %v1513_v9  ;;  %11662 = vst [vmem:[#allocation5_spill] sm:$0xff] %v8620_v47  ;;  %v1523_v7 = vrot.slane %v11666_v41, 2  ;;  %v11668_v9 = vld [vmem:[#allocation22_spill] sm:$0xff]  ;;  %v11673_v41 = vld [vmem:[#allocation27_spill] sm:$0xff] }
  0x86   :  { %11660 = vst [vmem:[#allocation4_spill] sm:$0xff] %v8616_v60  ;;  %v1525_v29 = vrot.slane %v11668_v9, 2 }
  0x87   :  { %6671 = vmatmul.mubr.msk.f32.gmra.mxu0 %vm391_vm2, %v1509_v36 }
  0x88   :  { %6573 = vmatmul.mubr.msk.f32.gmra.mxu1 %vm391_vm2, %v11651_v8  ;;  %6673 = vmatprep.mubr.msk.f32.mxu0 %vm391_vm2, %v8604_v13  ;;  %v1521_v8 = vrot.slane %v11664_v6, 2 }
  0x89   :  { %6575 = vmatprep.mubr.msk.f32.mxu1 %vm391_vm2, %v11654_v59  ;;  %v8633_v59 = vsel %vm520_vm0, %v1516_v18, %v1518_v38 }
  0x8a   :  { %11665 = vst [vmem:[#allocation6_spill] sm:$0xff] %v8633_v59  ;;  %v8637_v36 = vsel %vm520_vm0, %v1520_v50, %v1521_v8  ;;  %v8650_v18 = vsel %vm520_vm0, %v1521_v8, %v1523_v7  ;;  %v11676_v8 = vld [vmem:[#allocation33_spill] sm:$0xff] }
  0x8b   :  { %6674 = vmatmul.mubr.msk.f32.gmra.mxu0 %vm391_vm2, %v8616_v60  ;;  %11667 = vst [vmem:[#allocation7_spill] sm:$0xff] %v8637_v36  ;;  %11670 = vst [vmem:[#allocation8_spill] sm:$0xff] %v8650_v18  ;;  %v1533_v7 = vrot.slane %v11676_v8, 2  ;;  %v11683_v8 = vld [vmem:[#allocation41_spill] sm:$0xff] }
  0x8c   :  { %6576 = vmatmul.mubr.msk.f32.gmra.mxu1 %vm391_vm2, %v11655_v39  ;;  %6676 = vmatprep.mubr.msk.f32.mxu0 %vm391_vm2, %v8620_v47  ;;  %v11669_v39 = vld [vmem:[#allocation23_spill] sm:$0xff]  ;;  %v1530_v47 = vrot.slane %v11673_v41, 2 }
  0x8d   :  { %6578 = vmatprep.mubr.msk.f32.mxu1 %vm391_vm2, %v11658_v46  ;;  %v1526_v13 = vrot.slane %v11669_v39, 2  ;;  %v11671_v46 = vld [vmem:[#allocation26_spill] sm:$0xff] }
  0x8e   :  { %v1528_v38 = vrot.slane %v11671_v46, 2  ;;  %v11678_v46 = vld [vmem:[#allocation34_spill] sm:$0xff] }
  0x8f   :  { %6677 = vmatmul.mubr.msk.f32.gmra.mxu0 %vm391_vm2, %v8633_v59  ;;  %v8654_v50 = vsel %vm520_vm0, %v1525_v29, %v1526_v13 }
  0x90   :  { %6579 = vmatmul.mubr.msk.f32.gmra.mxu1 %vm391_vm2, %v11659_v28  ;;  %6679 = vmatprep.mubr.msk.f32.mxu0 %vm391_vm2, %v8637_v36  ;;  %11672 = vst [vmem:[#allocation10_spill] sm:$0xff] %v8654_v50  ;;  %v11674_v28 = vld [vmem:[#allocation29_spill] sm:$0xff]  ;;  %v1535_v36 = vrot.slane %v11678_v46, 2 }
  0x91   :  { %6581 = vmatprep.mubr.msk.f32.mxu1 %vm391_vm2, %v11663_v22  ;;  %v1531_v60 = vrot.slane %v11674_v28, 2  ;;  %v8667_v22 = vsel %vm520_vm0, %v1526_v13, %v1528_v38 }
  0x92   :  { %11675 = vst [vmem:[#allocation14_spill] sm:$0xff] %v8667_v22 }
  0x93   :  { %6680 = vmatmul.mubr.msk.f32.gmra.mxu0 %vm391_vm2, %v8650_v18  ;;  %v8671_v29 = vsel %vm520_vm0, %v1530_v47, %v1531_v60  ;;  %v8684_v13 = vsel %vm520_vm0, %v1531_v60, %v1533_v7  ;;  %v11681_v47 = vld [vmem:[#allocation40_spill] sm:$0xff] }
  0x94   :  { %6582 = vmatmul.mubr.msk.f32.gmra.mxu1 %vm391_vm2, %v11664_v6  ;;  %6682 = vmatprep.mubr.msk.f32.mxu0 %vm391_vm2, %v8654_v50  ;;  %11677 = vst [vmem:[#allocation16_spill] sm:$0xff] %v8671_v29  ;;  %v11679_v6 = vld [vmem:[#allocation35_spill] sm:$0xff]  ;;  %11680 = vst [vmem:[#allocation17_spill] sm:$0xff] %v8684_v13  ;;  %v1540_v50 = vrot.slane %v11683_v8, 2 }
  0x95   :  { %6584 = vmatprep.mubr.msk.f32.mxu1 %vm391_vm2, %v11668_v9  ;;  %v1536_v59 = vrot.slane %v11679_v6, 2  ;;  %v1538_v9 = vrot.slane %v11681_v47, 2  ;;  %v11688_v47 = vld [vmem:[#allocation48_spill] sm:$0xff] }
  0x97   :  { %6683 = vmatmul.mubr.msk.f32.gmra.mxu0 %vm391_vm2, %v8667_v22  ;;  %v8688_v38 = vsel %vm520_vm0, %v1535_v36, %v1536_v59  ;;  %v8701_v60 = vsel %vm520_vm0, %v1536_v59, %v1538_v9  ;;  %v11686_v36 = vld [vmem:[#allocation47_spill] sm:$0xff] }
  0x98   :  { %6585 = vmatmul.mubr.msk.f32.gmra.mxu1 %vm391_vm2, %v11669_v39  ;;  %6685 = vmatprep.mubr.msk.f32.mxu0 %vm391_vm2, %v8671_v29  ;;  %11682 = vst [vmem:[#allocation21_spill] sm:$0xff] %v8688_v38  ;;  %v11684_v39 = vld [vmem:[#allocation42_spill] sm:$0xff]  ;;  %11685 = vst [vmem:[#allocation22_spill] sm:$0xff] %v8701_v60  ;;  %v1545_v29 = vrot.slane %v11688_v47, 2 }
  0x99   :  { %6587 = vmatprep.mubr.msk.f32.mxu1 %vm391_vm2, %v11673_v41  ;;  %v1541_v18 = vrot.slane %v11684_v39, 2  ;;  %v1543_v41 = vrot.slane %v11686_v36, 2  ;;  %v11693_v36 = vld [vmem:[#allocation55_spill] sm:$0xff] }
  0x9b   :  { %6686 = vmatmul.mubr.msk.f32.gmra.mxu0 %vm391_vm2, %v8684_v13  ;;  %v8705_v7 = vsel %vm520_vm0, %v1540_v50, %v1541_v18  ;;  %v8718_v59 = vsel %vm520_vm0, %v1541_v18, %v1543_v41  ;;  %v11691_v50 = vld [vmem:[#allocation54_spill] sm:$0xff] }
  0x9c   :  { %6588 = vmatmul.mubr.msk.f32.gmra.mxu1 %vm391_vm2, %v11674_v28  ;;  %6688 = vmatprep.mubr.msk.f32.mxu0 %vm391_vm2, %v8688_v38  ;;  %11687 = vst [vmem:[#allocation23_spill] sm:$0xff] %v8705_v7  ;;  %v11689_v28 = vld [vmem:[#allocation49_spill] sm:$0xff]  ;;  %11690 = vst [vmem:[#allocation26_spill] sm:$0xff] %v8718_v59  ;;  %v1550_v38 = vrot.slane %v11693_v36, 2 }
  0x9d   :  { %6590 = vmatprep.mubr.msk.f32.mxu1 %vm391_vm2, %v11678_v46  ;;  %v1546_v22 = vrot.slane %v11689_v28, 2  ;;  %v1548_v46 = vrot.slane %v11691_v50, 2  ;;  %v11698_v50 = vld [vmem:[#allocation62_spill] sm:$0xff] }
  0x9f   :  { %6689 = vmatmul.mubr.msk.f32.gmra.mxu0 %vm391_vm2, %v8701_v60  ;;  %v8722_v9 = vsel %vm520_vm0, %v1545_v29, %v1546_v22  ;;  %v8735_v18 = vsel %vm520_vm0, %v1546_v22, %v1548_v46  ;;  %v11696_v29 = vld [vmem:[#allocation60_spill] sm:$0xff] }
  0xa0   :  { %6591 = vmatmul.mubr.msk.f32.gmra.mxu1 %vm391_vm2, %v11679_v6  ;;  %6691 = vmatprep.mubr.msk.f32.mxu0 %vm391_vm2, %v8705_v7  ;;  %11692 = vst [vmem:[#allocation27_spill] sm:$0xff] %v8722_v9  ;;  %v11694_v6 = vld [vmem:[#allocation56_spill] sm:$0xff]  ;;  %11695 = vst [vmem:[#allocation29_spill] sm:$0xff] %v8735_v18  ;;  %v1555_v7 = vrot.slane %v11698_v50, 2 }
  0xa1   :  { %6593 = vmatprep.mubr.msk.f32.mxu1 %vm391_vm2, %v11683_v8  ;;  %v1551_v13 = vrot.slane %v11694_v6, 2  ;;  %v1553_v8 = vrot.slane %v11696_v29, 2  ;;  %v11703_v29 = vld [vmem:[#allocation69_spill] sm:$0xff] }
  0xa3   :  { %6692 = vmatmul.mubr.msk.f32.gmra.mxu0 %vm391_vm2, %v8718_v59  ;;  %v8739_v41 = vsel %vm520_vm0, %v1550_v38, %v1551_v13  ;;  %v8752_v22 = vsel %vm520_vm0, %v1551_v13, %v1553_v8  ;;  %v11701_v38 = vld [vmem:[#allocation68_spill] sm:$0xff] }
  0xa4   :  { %6594 = vmatmul.mubr.msk.f32.gmra.mxu1 %vm391_vm2, %v11684_v39  ;;  %6694 = vmatprep.mubr.msk.f32.mxu0 %vm391_vm2, %v8722_v9  ;;  %11697 = vst [vmem:[#allocation33_spill] sm:$0xff] %v8739_v41  ;;  %v11699_v39 = vld [vmem:[#allocation63_spill] sm:$0xff]  ;;  %11700 = vst [vmem:[#allocation34_spill] sm:$0xff] %v8752_v22  ;;  %v1560_v9 = vrot.slane %v11703_v29, 2 }
  0xa5   :  { %6596 = vmatprep.mubr.msk.f32.mxu1 %vm391_vm2, %v11688_v47  ;;  %v1556_v60 = vrot.slane %v11699_v39, 2  ;;  %v1558_v47 = vrot.slane %v11701_v38, 2  ;;  %v11708_v38 = vld [vmem:[#allocation76_spill] sm:$0xff] }
  0xa7   :  { %6695 = vmatmul.mubr.msk.f32.gmra.mxu0 %vm391_vm2, %v8735_v18  ;;  %v8756_v46 = vsel %vm520_vm0, %v1555_v7, %v1556_v60  ;;  %v8769_v13 = vsel %vm520_vm0, %v1556_v60, %v1558_v47  ;;  %v11706_v7 = vld [vmem:[#allocation74_spill] sm:$0xff] }
  0xa8   :  { %6597 = vmatmul.mubr.msk.f32.gmra.mxu1 %vm391_vm2, %v11689_v28  ;;  %6697 = vmatprep.mubr.msk.f32.mxu0 %vm391_vm2, %v8739_v41  ;;  %11702 = vst [vmem:[#allocation35_spill] sm:$0xff] %v8756_v46  ;;  %v11704_v28 = vld [vmem:[#allocation70_spill] sm:$0xff]  ;;  %11705 = vst [vmem:[#allocation40_spill] sm:$0xff] %v8769_v13  ;;  %v1565_v41 = vrot.slane %v11708_v38, 2 }
  0xa9   :  { %6599 = vmatprep.mubr.msk.f32.mxu1 %vm391_vm2, %v11693_v36  ;;  %v1561_v59 = vrot.slane %v11704_v28, 2  ;;  %v1563_v36 = vrot.slane %v11706_v7, 2  ;;  %v11713_v7 = vld [vmem:[#allocation84_spill] sm:$0xff] }
  0xab   :  { %6698 = vmatmul.mubr.msk.f32.gmra.mxu0 %vm391_vm2, %v8752_v22  ;;  %v8773_v8 = vsel %vm520_vm0, %v1560_v9, %v1561_v59  ;;  %v8786_v60 = vsel %vm520_vm0, %v1561_v59, %v1563_v36  ;;  %v11711_v9 = vld [vmem:[#allocation82_spill] sm:$0xff] }
  0xac   :  { %6600 = vmatmul.mubr.msk.f32.gmra.mxu1 %vm391_vm2, %v11694_v6  ;;  %6700 = vmatprep.mubr.msk.f32.mxu0 %vm391_vm2, %v8756_v46  ;;  %11707 = vst [vmem:[#allocation41_spill] sm:$0xff] %v8773_v8  ;;  %v11709_v6 = vld [vmem:[#allocation77_spill] sm:$0xff]  ;;  %11710 = vst [vmem:[#allocation42_spill] sm:$0xff] %v8786_v60  ;;  %v1570_v46 = vrot.slane %v11713_v7, 2 }
  0xad   :  { %6602 = vmatprep.mubr.msk.f32.mxu1 %vm391_vm2, %v11698_v50  ;;  %v1566_v18 = vrot.slane %v11709_v6, 2  ;;  %v1568_v50 = vrot.slane %v11711_v9, 2  ;;  %v11718_v9 = vld [vmem:[#allocation94_spill] sm:$0xff] }
  0xaf   :  { %6701 = vmatmul.mubr.msk.f32.gmra.mxu0 %vm391_vm2, %v8769_v13  ;;  %v8790_v47 = vsel %vm520_vm0, %v1565_v41, %v1566_v18  ;;  %v8803_v59 = vsel %vm520_vm0, %v1566_v18, %v1568_v50  ;;  %v11716_v41 = vld [vmem:[#allocation90_spill] sm:$0xff]  ;;  %v11722_v50 = vld [vmem:[#allocation100_spill] sm:$0xff] }
  0xb0   :  { %6603 = vmatmul.mubr.msk.f32.gmra.mxu1 %vm391_vm2, %v11699_v39  ;;  %6703 = vmatprep.mubr.msk.f32.mxu0 %vm391_vm2, %v8773_v8  ;;  %11712 = vst [vmem:[#allocation47_spill] sm:$0xff] %v8790_v47  ;;  %v11714_v39 = vld [vmem:[#allocation85_spill] sm:$0xff]  ;;  %11715 = vst [vmem:[#allocation48_spill] sm:$0xff] %v8803_v59  ;;  %v1575_v8 = vrot.slane %v11718_v9, 2 }
  0xb1   :  { %6605 = vmatprep.mubr.msk.f32.mxu1 %vm391_vm2, %v11703_v29  ;;  %v1571_v22 = vrot.slane %v11714_v39, 2  ;;  %v1573_v29 = vrot.slane %v11716_v41, 2  ;;  %v1580_v41 = vrot.slane %v11722_v50, 2 }
  0xb3   :  { %6704 = vmatmul.mubr.msk.f32.gmra.mxu0 %vm391_vm2, %v8786_v60  ;;  %v8807_v36 = vsel %vm520_vm0, %v1570_v46, %v1571_v22  ;;  %v8820_v18 = vsel %vm520_vm0, %v1571_v22, %v1573_v29  ;;  %v1578_v46 = vrot.slane %v8210_v0, 2  ;;  %v1583_v22 = vrot.slane %v8266_v27, 2  ;;  %v7308_v27 = vld [vmem:[%s11169_s0 + $0x18] sm:$0xff] }
  0xb4   :  { %6606 = vmatmul.mubr.msk.f32.gmra.mxu1 %vm391_vm2, %v11704_v28  ;;  %6706 = vmatprep.mubr.msk.f32.mxu0 %vm391_vm2, %v8790_v47  ;;  %11717 = vst [vmem:[#allocation49_spill] sm:$0xff] %v8807_v36  ;;  %v11719_v28 = vld [vmem:[#allocation95_spill] sm:$0xff]  ;;  %11720 = vst [vmem:[#allocation54_spill] sm:$0xff] %v8820_v18 }
  0xb5   :  { %6608 = vmatprep.mubr.msk.f32.mxu1 %vm391_vm2, %v11708_v38  ;;  %v1576_v13 = vrot.slane %v11719_v28, 2 }
  0xb7   :  { %6707 = vmatmul.mubr.msk.f32.gmra.mxu0 %vm391_vm2, %v8803_v59  ;;  %v8824_v38 = vsel %vm520_vm0, %v1575_v8, %v1576_v13  ;;  %v8837_v0 = vsel %vm520_vm0, %v1576_v13, %v1578_v46 }
  0xb8   :  { %6609 = vmatmul.mubr.msk.f32.gmra.mxu1 %vm391_vm2, %v11709_v6  ;;  %6709 = vmatprep.mubr.msk.f32.mxu0 %vm391_vm2, %v8807_v36  ;;  %11721 = vst [vmem:[#allocation55_spill] sm:$0xff] %v8824_v38  ;;  %v11723_v6 = vld [vmem:[#allocation101_spill] sm:$0xff]  ;;  %11724 = vst [vmem:[#allocation56_spill] sm:$0xff] %v8837_v0 }
  0xb9   :  { %6611 = vmatprep.mubr.msk.f32.mxu1 %vm391_vm2, %v11713_v7  ;;  %v1581_v47 = vrot.slane %v11723_v6, 2  ;;  %v11727_v7 = vld [vmem:[#allocation9_spill] sm:$0xff] }
  0xbb   :  { %6710 = vmatmul.mubr.msk.f32.gmra.mxu0 %vm391_vm2, %v8820_v18  ;;  %v8841_v8 = vsel %vm520_vm0, %v1580_v41, %v1581_v47  ;;  %v8852_v13 = vsel %vm520_vm0, %v1581_v47, %v1583_v22  ;;  %v7309_v47 = vld [vmem:[%s11169_s0 + $0x20] sm:$0xff]  ;;  %v8890_v41 = vld [vmem:[%s11169_s0 + $0x30] sm:$0xff]  ;;  %v11734_v18 = vld [vmem:[#allocation31_spill] sm:$0xff] }
  0xbc   :  { %6612 = vmatmul.mubr.msk.f32.gmra.mxu1 %vm391_vm2, %v11714_v39  ;;  %6712 = vmatprep.mubr.msk.f32.mxu0 %vm391_vm2, %v8824_v38  ;;  %11725 = vst [vmem:[#allocation60_spill] sm:$0xff] %v8841_v8  ;;  %11726 = vst [vmem:[#allocation62_spill] sm:$0xff] %v8852_v13  ;;  %v8947_v38 = vld [vmem:[%s11169_s0 + $0x60] sm:$0xff] }
  0xbd   :  { %6614 = vmatprep.mubr.msk.f32.mxu1 %vm391_vm2, %v11718_v9  ;;  %v11728_v9 = vld [vmem:[#allocation12_spill] sm:$0xff] }
  0xbf   :  { %6713 = vmatmul.mubr.msk.f32.gmra.mxu0 %vm391_vm2, %v8837_v0  ;;  %v8938_v0 = vld [vmem:[%s11169_s0 + $0x50] sm:$0xff] }
  0xc0   :  { %6615 = vmatmul.mubr.msk.f32.gmra.mxu1 %vm391_vm2, %v11719_v28  ;;  %6715 = vmatprep.mubr.msk.f32.mxu0 %vm391_vm2, %v8841_v8  ;;  %v8881_v28 = vld [vmem:[%s11168_s1 + $0x38] sm:$0x3f] }
  0xc1   :  { %6617 = vmatprep.mubr.msk.f32.mxu1 %vm391_vm2, %v11722_v50 }
  0xc3   :  { %6716 = vmatmul.mubr.msk.f32.gmra.mxu0 %vm391_vm2, %v8852_v13 }
  0xc4   :  { %6618 = vmatmul.mubr.msk.f32.gmra.mxu1 %vm391_vm2, %v11723_v6  ;;  %6818 = vmatprep.mubr.msk.f32.mxu0 %vm391_vm2, %v11727_v7  ;;  %v11730_v7 = vld [vmem:[#allocation19_spill] sm:$0xff] }
  0xc5   :  { %6720 = vmatprep.mubr.msk.f32.mxu1 %vm391_vm2, %v7308_v27  ;;  %v8910_v27 = vld [vmem:[%s11169_s0 + $0x38] sm:$0xff] }
  0xc7   :  { %v8864_v39 = vpop.f32.mrf.mxu0  ;;  %6819 = vmatmul.mubr.msk.f32.vlgmr.msra.gmra.mxu0 %vm391_vm2, %v11728_v9  ;;  %v11731_v9 = vld [vmem:[#allocation24_spill] sm:$0xff] }
  0xc8   :  { %v8866_v29 = vpop.f32.mrf.mxu1  ;;  %6721 = vmatmul.mubr.msk.f32.vlgmr.msra.gmra.mxu1 %vm391_vm2, %v7309_v47  ;;  %7013 = vmatpush3.msk.msra.mxu0 %vm520_vm0, %v8343_v2  ;;  %v8901_v2 = vld [vmem:[%s11168_s1 + $0x40] sm:$0x3f]  ;;  %v8919_v47 = vld [vmem:[%s11169_s0 + $0x48] sm:$0xff] }
  0xc9   :  { %6915 = vmatpush3.msk.msra.mxu1 %vm520_vm0, %v8330_v1  ;;  %v8883_v46 = vpop.f32.mrf.mxu0  ;;  %6723 = vmatprep.mubr.msk.f32.mxu1 %vm391_vm2, %v8890_v41  ;;  %v11729_v1 = vld [vmem:[#allocation15_spill] sm:$0xff] }
  0xca   :  { %v8885_v50 = vpop.f32.mrf.mxu1  ;;  %6821 = vmatprep.mubr.msk.f32.mxu0 %vm391_vm2, %v11729_v1  ;;  %7110 = vmatprep.subr.msk.mxu1 %vm520_vm0, %v8881_v28 }
  0xcb   :  { %v8903_v6 = vpop.f32.mrf.mxu0  ;;  %6822 = vmatmul.mubr.msk.f32.gmra.mxu0 %vm391_vm2, %v11730_v7  ;;  %7208 = vmatprep.subr.msk.mxu0 %vm520_vm0, %v8901_v2 }
  0xcc   :  { %v8905_v22 = vpop.f32.mrf.mxu1  ;;  %6724 = vmatmul.mubr.msk.f32.gmra.mxu1 %vm391_vm2, %v8910_v27  ;;  %6824 = vmatprep.mubr.msk.f32.mxu0 %vm391_vm2, %v11731_v9  ;;  %v11733_v9 = vld [vmem:[#allocation28_spill] sm:$0xff] }
  0xcd   :  { %6726 = vmatprep.mubr.msk.f32.mxu1 %vm391_vm2, %v8919_v47  ;;  %v8925_v1 = vpop.f32.mrf.mxu0 }
  0xce   :  { %v8927_v13 = vpop.f32.mrf.mxu1 }
  0xcf   :  { %v8931_v8 = vpop.f32.mrf.mxu0  ;;  %6825 = vmatmul.mubr.msk.f32.gmra.mxu0 %vm391_vm2, %v11733_v9  ;;  %v8964_v9 = vld [vmem:[%s11169_s0 + $0x68] sm:$0xff] }
  0xd0   :  { %v8933_v7 = vpop.f32.mrf.mxu1  ;;  %6727 = vmatmul.mubr.msk.f32.gmra.mxu1 %vm391_vm2, %v8938_v0  ;;  %6827 = vmatprep.mubr.msk.f32.mxu0 %vm391_vm2, %v11734_v18  ;;  %v8973_v18 = vld [vmem:[%s11169_s0 + $0x78] sm:$0xff] }
  0xd1   :  { %11732 = vst [vmem:[#allocation63_spill] sm:$0xff] %v8933_v7  ;;  %6729 = vmatprep.mubr.msk.f32.mxu1 %vm391_vm2, %v8947_v38  ;;  %v8953_v36 = vpop.f32.mrf.mxu0  ;;  %11738 = vst [vmem:[#allocation70_spill] sm:$0xff] %v8973_v18 }
  0xd2   :  { %v8955_v59 = vpop.f32.mrf.mxu1 }
  0xd3   :  { %11735 = vst [vmem:[#allocation68_spill] sm:$0xff] %v8955_v59  ;;  %v8957_v60 = vpop.f32.mrf.mxu0  ;;  %6828 = vmatmul.mubr.msk.f32.gmra.mxu0 %vm391_vm2, %v11737_v12  ;;  %v8990_v12 = vld [vmem:[%s11169_s0 + $0x80] sm:$0xff] }
  0xd4   :  { %v8959_v57 = vpop.f32.mrf.mxu1  ;;  %6730 = vmatmul.mubr.msk.f32.gmra.mxu1 %vm391_vm2, %v8964_v9  ;;  %6830 = vmatprep.mubr.msk.f32.mxu0 %vm391_vm2, %v11739_v56  ;;  %11742 = vst [vmem:[#allocation77_spill] sm:$0xff] %v8990_v12  ;;  %v8999_v56 = vld [vmem:[%s11169_s0 + $0x90] sm:$0xff] }
  0xd5   :  { %11736 = vst [vmem:[#allocation69_spill] sm:$0xff] %v8959_v57  ;;  %6732 = vmatprep.mubr.msk.f32.mxu1 %vm391_vm2, %v8973_v18  ;;  %v8979_v17 = vpop.f32.mrf.mxu0  ;;  %11744 = vst [vmem:[#allocation82_spill] sm:$0xff] %v8999_v56 }
  0xd6   :  { %v8981_v63 = vpop.f32.mrf.mxu1 }
  0xd7   :  { %11740 = vst [vmem:[#allocation74_spill] sm:$0xff] %v8981_v63  ;;  %v8983_v32 = vpop.f32.mrf.mxu0  ;;  %6831 = vmatmul.mubr.msk.f32.gmra.mxu0 %vm391_vm2, %v11743_v58  ;;  %v9016_v58 = vld [vmem:[%s11169_s0 + $0x98] sm:$0xff] }
  0xd8   :  { %v8985_v25 = vpop.f32.mrf.mxu1  ;;  %6733 = vmatmul.mubr.msk.f32.gmra.mxu1 %vm391_vm2, %v8990_v12  ;;  %6833 = vmatprep.mubr.msk.f32.mxu0 %vm391_vm2, %v11745_v15  ;;  %11748 = vst [vmem:[#allocation90_spill] sm:$0xff] %v9016_v58  ;;  %v9025_v15 = vld [vmem:[%s11169_s0 + $0xa8] sm:$0xff] }
  0xd9   :  { %11741 = vst [vmem:[#allocation76_spill] sm:$0xff] %v8985_v25  ;;  %6735 = vmatprep.mubr.msk.f32.mxu1 %vm391_vm2, %v8999_v56  ;;  %v9005_v34 = vpop.f32.mrf.mxu0  ;;  %11750 = vst [vmem:[#allocation94_spill] sm:$0xff] %v9025_v15 }
  0xda   :  { %v9007_v40 = vpop.f32.mrf.mxu1 }
  0xdb   :  { %11746 = vst [vmem:[#allocation84_spill] sm:$0xff] %v9007_v40  ;;  %v9009_v30 = vpop.f32.mrf.mxu0  ;;  %6834 = vmatmul.mubr.msk.f32.gmra.mxu0 %vm391_vm2, %v11749_v55  ;;  %v9042_v55 = vld [vmem:[%s11169_s0 + $0xb0] sm:$0xff] }
  0xdc   :  { %v9011_v43 = vpop.f32.mrf.mxu1  ;;  %6736 = vmatmul.mubr.msk.f32.gmra.mxu1 %vm391_vm2, %v9016_v58  ;;  %11754 = vst [vmem:[#allocation101_spill] sm:$0xff] %v9042_v55 }
  0xdd   :  { %11747 = vst [vmem:[#allocation85_spill] sm:$0xff] %v9011_v43  ;;  %6738 = vmatprep.mubr.msk.f32.mxu1 %vm391_vm2, %v9025_v15  ;;  %v11751_v43 = vld [vmem:[#allocation52_spill] sm:$0xff]  ;;  %v9031_v19 = vpop.f32.mrf.mxu0  ;;  %v11755_v15 = vld [vmem:[#allocation57_spill] sm:$0xff] }
  0xde   :  { %6836 = vmatprep.mubr.msk.f32.mxu0 %vm391_vm2, %v11751_v43  ;;  %v9033_v40 = vpop.f32.mrf.mxu1  ;;  %v9051_v43 = vld [vmem:[%s11169_s0 + $0xc0] sm:$0xff] }
  0xdf   :  { %11752 = vst [vmem:[#allocation95_spill] sm:$0xff] %v9033_v40  ;;  %v9035_v35 = vpop.f32.mrf.mxu0  ;;  %6837 = vmatmul.mubr.msk.f32.gmra.mxu0 %vm391_vm2, %v11755_v15  ;;  %11756 = vst [vmem:[#allocation9_spill] sm:$0xff] %v9051_v43  ;;  %v9068_v15 = vld [vmem:[%s11169_s0 + $0xc8] sm:$0xff] }
  0xe0   :  { %v9037_v25 = vpop.f32.mrf.mxu1  ;;  %6739 = vmatmul.mubr.msk.f32.gmra.mxu1 %vm391_vm2, %v9042_v55  ;;  %11760 = vst [vmem:[#allocation132_spill] sm:$0xff] %v9068_v15 }
  0xe1   :  { %11753 = vst [vmem:[#allocation100_spill] sm:$0xff] %v9037_v25  ;;  %6741 = vmatprep.mubr.msk.f32.mxu1 %vm391_vm2, %v9051_v43  ;;  %v11757_v25 = vld [vmem:[#allocation59_spill] sm:$0xff]  ;;  %v9057_v40 = vpop.f32.mrf.mxu0  ;;  %v11761_v43 = vld [vmem:[#allocation64_spill] sm:$0xff] }
  0xe2   :  { %6839 = vmatprep.mubr.msk.f32.mxu0 %vm391_vm2, %v11757_v25  ;;  %v9059_v58 = vpop.f32.mrf.mxu1  ;;  %v9077_v25 = vld [vmem:[%s11169_s0 + $0xd8] sm:$0xff] }
  0xe3   :  { %11758 = vst [vmem:[#allocation12_spill] sm:$0xff] %v9059_v58  ;;  %v9061_v53 = vpop.f32.mrf.mxu0  ;;  %6840 = vmatmul.mubr.msk.f32.gmra.mxu0 %vm391_vm2, %v11761_v43  ;;  %11762 = vst [vmem:[#allocation133_spill] sm:$0xff] %v9077_v25  ;;  %v9094_v43 = vld [vmem:[%s11169_s0 + $0xe0] sm:$0xff] }
  0xe4   :  { %v9063_v55 = vpop.f32.mrf.mxu1  ;;  %6742 = vmatmul.mubr.msk.f32.gmra.mxu1 %vm391_vm2, %v9068_v15  ;;  %11766 = vst [vmem:[#allocation136_spill] sm:$0xff] %v9094_v43 }
  0xe5   :  { %11759 = vst [vmem:[#allocation131_spill] sm:$0xff] %v9063_v55  ;;  %6744 = vmatprep.mubr.msk.f32.mxu1 %vm391_vm2, %v9077_v25  ;;  %v11763_v55 = vld [vmem:[#allocation66_spill] sm:$0xff]  ;;  %v9083_v58 = vpop.f32.mrf.mxu0  ;;  %v11767_v25 = vld [vmem:[#allocation71_spill] sm:$0xff] }
  0xe6   :  { %6842 = vmatprep.mubr.msk.f32.mxu0 %vm391_vm2, %v11763_v55  ;;  %v9085_v63 = vpop.f32.mrf.mxu1  ;;  %v9103_v55 = vld [vmem:[%s11169_s0 + $0xf0] sm:$0xff] }
  0xe7   :  { %11764 = vst [vmem:[#allocation134_spill] sm:$0xff] %v9085_v63  ;;  %v9087_v56 = vpop.f32.mrf.mxu0  ;;  %6843 = vmatmul.mubr.msk.f32.gmra.mxu0 %vm391_vm2, %v11767_v25  ;;  %11768 = vst [vmem:[#allocation137_spill] sm:$0xff] %v9103_v55  ;;  %v9120_v25 = vld [vmem:[%s11169_s0 + $0xf8] sm:$0xff] }
  0xe8   :  { %v9089_v15 = vpop.f32.mrf.mxu1  ;;  %6745 = vmatmul.mubr.msk.f32.gmra.mxu1 %vm391_vm2, %v9094_v43  ;;  %11772 = vst [vmem:[#allocation140_spill] sm:$0xff] %v9120_v25 }
  0xe9   :  { %11765 = vst [vmem:[#allocation135_spill] sm:$0xff] %v9089_v15  ;;  %6747 = vmatprep.mubr.msk.f32.mxu1 %vm391_vm2, %v9103_v55  ;;  %v11769_v15 = vld [vmem:[#allocation73_spill] sm:$0xff]  ;;  %v9109_v63 = vpop.f32.mrf.mxu0  ;;  %v11773_v55 = vld [vmem:[#allocation78_spill] sm:$0xff] }
  0xea   :  { %6845 = vmatprep.mubr.msk.f32.mxu0 %vm391_vm2, %v11769_v15  ;;  %v9111_v10 = vpop.f32.mrf.mxu1  ;;  %v11774_v15 = vld [vmem:[#allocation80_spill] sm:$0xff] }
  0xeb   :  { %11770 = vst [vmem:[#allocation138_spill] sm:$0xff] %v9111_v10  ;;  %v9113_v57 = vpop.f32.mrf.mxu0  ;;  %6846 = vmatmul.mubr.msk.f32.gmra.mxu0 %vm391_vm2, %v11773_v55 }
  0xec   :  { %v9115_v43 = vpop.f32.mrf.mxu1  ;;  %6748 = vmatmul.mubr.msk.f32.gmra.mxu1 %vm391_vm2, %v9120_v25  ;;  %6848 = vmatprep.mubr.msk.f32.mxu0 %vm391_vm2, %v11774_v15  ;;  %v11777_v25 = vld [vmem:[#allocation86_spill] sm:$0xff] }
  0xed   :  { %11771 = vst [vmem:[#allocation139_spill] sm:$0xff] %v9115_v43  ;;  %6750 = vmatprep.mubr.msk.f32.mxu1 %vm391_vm2, %v7977_v54  ;;  %v9130_v10 = vpop.f32.mrf.mxu0  ;;  %v11778_v54 = vld [vmem:[#allocation89_spill] sm:$0xff] }
  0xee   :  { %v9132_v43 = vpop.f32.mrf.mxu1 }
  0xef   :  { %11775 = vst [vmem:[#allocation141_spill] sm:$0xff] %v9132_v43  ;;  %v9134_v12 = vpop.f32.mrf.mxu0  ;;  %6849 = vmatmul.mubr.msk.f32.gmra.mxu0 %vm391_vm2, %v11777_v25 }
  0xf0   :  { %v9136_v45 = vpop.f32.mrf.mxu1  ;;  %6751 = vmatmul.mubr.msk.f32.gmra.mxu1 %vm391_vm2, %v7982_v48  ;;  %6851 = vmatprep.mubr.msk.f32.mxu0 %vm391_vm2, %v11778_v54  ;;  %v11781_v48 = vld [vmem:[#allocation96_spill] sm:$0xff] }
  0xf1   :  { %11776 = vst [vmem:[#allocation142_spill] sm:$0xff] %v9136_v45  ;;  %6753 = vmatprep.mubr.msk.f32.mxu1 %vm391_vm2, %v8043_v42  ;;  %v9146_v15 = vpop.f32.mrf.mxu0  ;;  %v11782_v42 = vld [vmem:[#allocation98_spill] sm:$0xff] }
  0xf2   :  { %v9148_v55 = vpop.f32.mrf.mxu1 }
  0xf3   :  { %11779 = vst [vmem:[#allocation143_spill] sm:$0xff] %v9148_v55  ;;  %v9150_v43 = vpop.f32.mrf.mxu0  ;;  %6852 = vmatmul.mubr.msk.f32.gmra.mxu0 %vm391_vm2, %v11781_v48 }
  0xf4   :  { %v9152_v59 = vpop.f32.mrf.mxu1  ;;  %6754 = vmatmul.mubr.msk.f32.gmra.mxu1 %vm391_vm2, %v8048_v44  ;;  %6854 = vmatprep.mubr.msk.f32.mxu0 %vm391_vm2, %v11782_v42  ;;  %v9174_v44 = vld [vmem:[%s11169_s0 + $0x188] sm:$0xff]  ;;  %v11787_v42 = vld [vmem:[#allocation102_spill] sm:$0xff] }
  0xf5   :  { %11780 = vst [vmem:[#allocation144_spill] sm:$0xff] %v9152_v59  ;;  %6756 = vmatprep.mubr.msk.f32.mxu1 %vm391_vm2, %v8085_v51  ;;  %v9162_v54 = vpop.f32.mrf.mxu0  ;;  %v9169_v59 = vld [vmem:[%s11169_s0 + $0x180] sm:$0xff]  ;;  %11785 = vst [vmem:[#allocation147_spill] sm:$0xff] %v9174_v44 }
  0xf6   :  { %v9164_v25 = vpop.f32.mrf.mxu1  ;;  %11784 = vst [vmem:[#allocation146_spill] sm:$0xff] %v9169_v59  ;;  %v2631_v18 = vrot.slane %v9169_v59, 1 }
  0xf7   :  { %11783 = vst [vmem:[#allocation145_spill] sm:$0xff] %v9164_v25  ;;  %v9176_v48 = vpop.f32.mrf.mxu0  ;;  %6855 = vmatmul.mubr.msk.f32.gmra.mxu0 %vm391_vm2, %v11787_v42  ;;  %v11788_v25 = vld [vmem:[#allocation104_spill] sm:$0xff] }
  0xf8   :  { %v9178_v51 = vpop.f32.mrf.mxu1  ;;  %6757 = vmatmul.mubr.msk.f32.gmra.mxu1 %vm391_vm2, %v11640_v61  ;;  %6857 = vmatprep.mubr.msk.f32.mxu0 %vm391_vm2, %v11788_v25  ;;  %v9197_v61 = vld [vmem:[%s11169_s0 + $0x190] sm:$0x3] }
  0xf9   :  { %11786 = vst [vmem:[#allocation148_spill] sm:$0xff] %v9178_v51  ;;  %6759 = vmatprep.mubr.msk.f32.mxu1 %vm391_vm2, %v11644_v62  ;;  %v9188_v55 = vpop.f32.mrf.mxu0  ;;  %v2632_v51 = vrot.slane %v9174_v44, 1  ;;  %11790 = vst [vmem:[#allocation150_spill] sm:$0xff] %v9197_v61  ;;  %v2634_v62 = vrot.slane %v9197_v61, 1 }
  0xfa   :  { %v9190_v45 = vpop.f32.mrf.mxu1 }
  0xfb   :  { %11789 = vst [vmem:[#allocation149_spill] sm:$0xff] %v9190_v45  ;;  %v9199_v42 = vpop.f32.mrf.mxu0  ;;  %6858 = vmatmul.mubr.msk.f32.gmra.mxu0 %vm391_vm2, %v8277_v23 }
  0xfc   :  { %v9201_v14 = vpop.f32.mrf.mxu1  ;;  %6760 = vmatmul.mubr.msk.f32.gmra.mxu1 %vm391_vm2, %v11645_v49  ;;  %6860 = vmatprep.mubr.msk.f32.mxu0 %vm391_vm2, %v8285_v3 }
  0xfd   :  { %11791 = vst [vmem:[#allocation151_spill] sm:$0xff] %v9201_v14  ;;  %6762 = vmatprep.mubr.msk.f32.mxu1 %vm391_vm2, %v8215_v4  ;;  %v9212_v25 = vpop.f32.mrf.mxu0  ;;  %v9217_v14 = vsel %vm230_vm1, %v2631_v18, %v2632_v51  ;;  %v9232_v4 = vsel %vm230_vm1, %v2632_v51, %v2634_v62  ;;  %v11798_v51 = vld [vmem:[#allocation11_spill] sm:$0xff] }
  0xfe   :  { %v9214_v45 = vpop.f32.mrf.mxu1  ;;  %11793 = vst [vmem:[#allocation153_spill] sm:$0xff] %v9217_v14  ;;  %11795 = vst [vmem:[#allocation155_spill] sm:$0xff] %v9232_v4 }
  0xff   :  { %11792 = vst [vmem:[#allocation152_spill] sm:$0xff] %v9214_v45  ;;  %v9219_v7 = vpop.f32.mrf.mxu0  ;;  %6861 = vmatmul.mubr.msk.f32.gmra.mxu0 %vm391_vm2, %v8302_v20 }
 0x100   :  { %v9221_v49 = vpop.f32.mrf.mxu1  ;;  %6763 = vmatmul.mubr.msk.f32.gmra.mxu1 %vm391_vm2, %v8220_v37  ;;  %6863 = vmatprep.mubr.msk.f32.mxu0 %vm391_vm2, %v9217_v14  ;;  %v7328_v37 = vld [vmem:[%s11169_s0 + $0x1c8] sm:$0xff] }
 0x101   :  { %11794 = vst [vmem:[#allocation154_spill] sm:$0xff] %v9221_v49  ;;  %6765 = vmatprep.mubr.msk.f32.mxu1 %vm391_vm2, %v9169_v59  ;;  %v9234_v18 = vpop.f32.mrf.mxu0 }
 0x102   :  { %v9236_v3 = vpop.f32.mrf.mxu1 }
 0x103   :  { %11796 = vst [vmem:[#allocation156_spill] sm:$0xff] %v9236_v3  ;;  %v9238_v23 = vpop.f32.mrf.mxu0  ;;  %6864 = vmatmul.mubr.msk.f32.gmra.mxu0 %vm391_vm2, %v9232_v4  ;;  %v7329_v3 = vld [vmem:[%s11169_s0 + $0x1d0] sm:$0xff]  ;;  %v11800_v4 = vld [vmem:[#allocation13_spill] sm:$0xff] }
 0x104   :  { %v9240_v49 = vpop.f32.mrf.mxu1  ;;  %6766 = vmatmul.mubr.msk.f32.gmra.mxu1 %vm391_vm2, %v9174_v44  ;;  %6866 = vmatprep.mubr.msk.f32.mxu0 %vm391_vm2, %v11798_v51  ;;  %v9266_v51 = vld [vmem:[%s11169_s0 + $0x1e0] sm:$0xff] }
 0x105   :  { %11797 = vst [vmem:[#allocation157_spill] sm:$0xff] %v9240_v49  ;;  %6768 = vmatprep.mubr.msk.f32.mxu1 %vm391_vm2, %v7328_v37  ;;  %v9252_v62 = vpop.f32.mrf.mxu0 }
 0x106   :  { %v9254_v14 = vpop.f32.mrf.mxu1 }
 0x107   :  { %11799 = vst [vmem:[#allocation11_spill] sm:$0xff] %v9254_v14  ;;  %v6624_v49 = vpop.f32.mrf.mxu0  ;;  %6867 = vmatmul.mubr.msk.f32.gmra.mxu0 %vm391_vm2, %v11800_v4  ;;  %v11801_v14 = vld [vmem:[#allocation18_spill] sm:$0xff] }
 0x108   :  { %v6526_v20 = vpop.f32.mrf.mxu1  ;;  %6769 = vmatmul.mubr.msk.f32.gmra.mxu1 %vm391_vm2, %v7329_v3  ;;  %6869 = vmatprep.mubr.msk.f32.mxu0 %vm391_vm2, %v11801_v14 }
 0x109   :  { %v1112_v37 = vadd.f32 %v6526_v20, %v8864_v39  ;;  %6771 = vmatprep.mubr.msk.f32.mxu1 %vm391_vm2, %v9266_v51  ;;  %v1782_v61 = vpop.f32.mrf.mxu0  ;;  %v9278_v20 = vld [vmem:[%s11169_s0 + $0x1e8] sm:$0xff]  ;;  %v11804_v39 = vld [vmem:[#allocation20_spill] sm:$0xff] }
 0x10a   :  { %v1106_v45 = vpop.f32.mrf.mxu1  ;;  %11803 = vst [vmem:[#allocation158_spill] sm:$0xff] %v9278_v20 }
 0x10b   :  { %v9272_v44 = vadd.f32 %v6624_v49, %v1112_v37  ;;  %v1107_v3 = vadd.f32 %v1106_v45, %v8883_v46  ;;  %v6627_v59 = vpop.f32.mrf.mxu0  ;;  %6870 = vmatmul.mubr.msk.f32.gmra.mxu0 %vm391_vm2, %v11804_v39  ;;  %v9290_v45 = vld [vmem:[%s11169_s0 + $0x1f8] sm:$0xff] }
 0x10c   :  { %v6529_v4 = vpop.f32.mrf.mxu1  ;;  %6772 = vmatmul.mubr.msk.f32.gmra.mxu1 %vm391_vm2, %v9278_v20  ;;  %v11805_v46 = vld [vmem:[#allocation25_spill] sm:$0xff] }
 0x10d   :  { %11802 = vst [vmem:[#allocation13_spill] sm:$0xff] %v9272_v44  ;;  %v9284_v14 = vadd.f32 %v1782_v61, %v1107_v3  ;;  %v1122_v49 = vadd.f32 %v6529_v4, %v8903_v6  ;;  %6774 = vmatprep.mubr.msk.f32.mxu1 %vm391_vm2, %v9290_v45  ;;  %6872 = vmatprep.mubr.msk.f32.mxu0 %vm391_vm2, %v11805_v46  ;;  %v1792_v44 = vpop.f32.mrf.mxu0  ;;  %v9302_v6 = vld [vmem:[%s11169_s0 + $0x200] sm:$0xff] }
 0x10e   :  { %v1116_v37 = vpop.f32.mrf.mxu1  ;;  %11807 = vst [vmem:[#allocation160_spill] sm:$0xff] %v9302_v6  ;;  %v11808_v4 = vld [vmem:[#allocation30_spill] sm:$0xff] }
 0x10f   :  { %v9296_v20 = vadd.f32 %v6627_v59, %v1122_v49  ;;  %v1117_v61 = vadd.f32 %v1116_v37, %v8925_v1  ;;  %v6630_v39 = vpop.f32.mrf.mxu0  ;;  %6873 = vmatmul.mubr.msk.f32.gmra.mxu0 %vm391_vm2, %v11808_v4  ;;  %v9314_v1 = vld [vmem:[%s11169_s0 + $0x210] sm:$0xff] }
 0x110   :  { %v6532_v3 = vpop.f32.mrf.mxu1  ;;  %6775 = vmatmul.mubr.msk.f32.gmra.mxu1 %vm391_vm2, %v9302_v6  ;;  %v11809_v49 = vld [vmem:[#allocation32_spill] sm:$0xff] }
 0x111   :  { %11806 = vst [vmem:[#allocation159_spill] sm:$0xff] %v9296_v20  ;;  %v9308_v46 = vadd.f32 %v1792_v44, %v1117_v61  ;;  %v1132_v59 = vadd.f32 %v6532_v3, %v8931_v8  ;;  %6777 = vmatprep.mubr.msk.f32.mxu1 %vm391_vm2, %v9314_v1  ;;  %6875 = vmatprep.mubr.msk.f32.mxu0 %vm391_vm2, %v11809_v49  ;;  %v1802_v20 = vpop.f32.mrf.mxu0  ;;  %v9326_v8 = vld [vmem:[%s11169_s0 + $0x218] sm:$0xff] }
 0x112   :  { %v1126_v37 = vpop.f32.mrf.mxu1  ;;  %11811 = vst [vmem:[#allocation162_spill] sm:$0xff] %v9326_v8  ;;  %v11812_v3 = vld [vmem:[#allocation37_spill] sm:$0xff] }
 0x113   :  { %v9320_v6 = vadd.f32 %v6630_v39, %v1132_v59  ;;  %v1127_v44 = vadd.f32 %v1126_v37, %v8953_v36  ;;  %v6633_v4 = vpop.f32.mrf.mxu0  ;;  %6876 = vmatmul.mubr.msk.f32.gmra.mxu0 %vm391_vm2, %v11812_v3  ;;  %v9338_v36 = vld [vmem:[%s11169_s0 + $0x228] sm:$0xff] }
 0x114   :  { %v6535_v61 = vpop.f32.mrf.mxu1  ;;  %6778 = vmatmul.mubr.msk.f32.gmra.mxu1 %vm391_vm2, %v9326_v8  ;;  %v11813_v59 = vld [vmem:[#allocation39_spill] sm:$0xff] }
 0x115   :  { %11810 = vst [vmem:[#allocation161_spill] sm:$0xff] %v9320_v6  ;;  %v9332_v49 = vadd.f32 %v1802_v20, %v1127_v44  ;;  %v1142_v39 = vadd.f32 %v6535_v61, %v8957_v60  ;;  %6780 = vmatprep.mubr.msk.f32.mxu1 %vm391_vm2, %v9338_v36  ;;  %6878 = vmatprep.mubr.msk.f32.mxu0 %vm391_vm2, %v11813_v59  ;;  %v1812_v6 = vpop.f32.mrf.mxu0  ;;  %v9350_v60 = vld [vmem:[%s11169_s0 + $0x230] sm:$0xff] }
 0x116   :  { %v1136_v37 = vpop.f32.mrf.mxu1  ;;  %11815 = vst [vmem:[#allocation164_spill] sm:$0xff] %v9350_v60  ;;  %v11816_v61 = vld [vmem:[#allocation44_spill] sm:$0xff] }
 0x117   :  { %v9344_v8 = vadd.f32 %v6633_v4, %v1142_v39  ;;  %v1137_v20 = vadd.f32 %v1136_v37, %v8979_v17  ;;  %v6636_v3 = vpop.f32.mrf.mxu0  ;;  %6879 = vmatmul.mubr.msk.f32.gmra.mxu0 %vm391_vm2, %v11816_v61  ;;  %v9362_v17 = vld [vmem:[%s11169_s0 + $0x240] sm:$0xff] }
 0x118   :  { %v6538_v44 = vpop.f32.mrf.mxu1  ;;  %6781 = vmatmul.mubr.msk.f32.gmra.mxu1 %vm391_vm2, %v9350_v60  ;;  %v11817_v39 = vld [vmem:[#allocation46_spill] sm:$0xff] }
 0x119   :  { %11814 = vst [vmem:[#allocation163_spill] sm:$0xff] %v9344_v8  ;;  %v9356_v59 = vadd.f32 %v1812_v6, %v1137_v20  ;;  %v1152_v4 = vadd.f32 %v6538_v44, %v8983_v32  ;;  %6783 = vmatprep.mubr.msk.f32.mxu1 %vm391_vm2, %v9362_v17  ;;  %6881 = vmatprep.mubr.msk.f32.mxu0 %vm391_vm2, %v11817_v39  ;;  %v1822_v8 = vpop.f32.mrf.mxu0  ;;  %v9374_v32 = vld [vmem:[%s11169_s0 + $0x248] sm:$0xff] }
 0x11a   :  { %v1146_v37 = vpop.f32.mrf.mxu1  ;;  %11819 = vst [vmem:[#allocation166_spill] sm:$0xff] %v9374_v32  ;;  %v11820_v44 = vld [vmem:[#allocation51_spill] sm:$0xff] }
 0x11b   :  { %v9368_v60 = vadd.f32 %v6636_v3, %v1152_v4  ;;  %v1147_v6 = vadd.f32 %v1146_v37, %v9005_v34  ;;  %v6639_v61 = vpop.f32.mrf.mxu0  ;;  %6882 = vmatmul.mubr.msk.f32.gmra.mxu0 %vm391_vm2, %v11820_v44  ;;  %v9386_v34 = vld [vmem:[%s11169_s0 + $0x258] sm:$0xff] }
 0x11c   :  { %v6541_v20 = vpop.f32.mrf.mxu1  ;;  %6784 = vmatmul.mubr.msk.f32.gmra.mxu1 %vm391_vm2, %v9374_v32  ;;  %v11821_v4 = vld [vmem:[#allocation53_spill] sm:$0xff] }
 0x11d   :  { %11818 = vst [vmem:[#allocation165_spill] sm:$0xff] %v9368_v60  ;;  %v9380_v39 = vadd.f32 %v1822_v8, %v1147_v6  ;;  %v1162_v3 = vadd.f32 %v6541_v20, %v9009_v30  ;;  %6786 = vmatprep.mubr.msk.f32.mxu1 %vm391_vm2, %v9386_v34  ;;  %6884 = vmatprep.mubr.msk.f32.mxu0 %vm391_vm2, %v11821_v4  ;;  %v1832_v60 = vpop.f32.mrf.mxu0  ;;  %v9398_v30 = vld [vmem:[%s11169_s0 + $0x260] sm:$0xff] }
 0x11e   :  { %v1156_v37 = vpop.f32.mrf.mxu1  ;;  %11823 = vst [vmem:[#allocation168_spill] sm:$0xff] %v9398_v30  ;;  %v11824_v20 = vld [vmem:[#allocation58_spill] sm:$0xff] }
 0x11f   :  { %v9392_v32 = vadd.f32 %v6639_v61, %v1162_v3  ;;  %v1157_v8 = vadd.f32 %v1156_v37, %v9031_v19  ;;  %v6642_v44 = vpop.f32.mrf.mxu0  ;;  %6885 = vmatmul.mubr.msk.f32.gmra.mxu0 %vm391_vm2, %v11824_v20  ;;  %v9410_v19 = vld [vmem:[%s11169_s0 + $0x270] sm:$0xff]  ;;  %v11825_v3 = vld [vmem:[#allocation61_spill] sm:$0xff] }
 0x120   :  { %v6544_v6 = vpop.f32.mrf.mxu1  ;;  %6787 = vmatmul.mubr.msk.f32.gmra.mxu1 %vm391_vm2, %v9398_v30  ;;  %6887 = vmatprep.mubr.msk.f32.mxu0 %vm391_vm2, %v11825_v3 }
 0x121   :  { %11822 = vst [vmem:[#allocation167_spill] sm:$0xff] %v9392_v32  ;;  %v9404_v4 = vadd.f32 %v1832_v60, %v1157_v8  ;;  %v1172_v61 = vadd.f32 %v6544_v6, %v9035_v35  ;;  %6789 = vmatprep.mubr.msk.f32.mxu1 %vm391_vm2, %v9410_v19  ;;  %v1842_v32 = vpop.f32.mrf.mxu0  ;;  %v9422_v35 = vld [vmem:[%s11169_s0 + $0x278] sm:$0xff] }
 0x122   :  { %v1166_v37 = vpop.f32.mrf.mxu1  ;;  %11827 = vst [vmem:[#allocation170_spill] sm:$0xff] %v9422_v35  ;;  %v11828_v6 = vld [vmem:[#allocation65_spill] sm:$0xff] }
 0x123   :  { %v9416_v30 = vadd.f32 %v6642_v44, %v1172_v61  ;;  %v1167_v60 = vadd.f32 %v1166_v37, %v9057_v40  ;;  %v6645_v20 = vpop.f32.mrf.mxu0  ;;  %6888 = vmatmul.mubr.msk.f32.gmra.mxu0 %vm391_vm2, %v11828_v6  ;;  %v9434_v40 = vld [vmem:[%s11169_s0 + $0x288] sm:$0xff] }
 0x124   :  { %v6547_v8 = vpop.f32.mrf.mxu1  ;;  %6790 = vmatmul.mubr.msk.f32.gmra.mxu1 %vm391_vm2, %v9422_v35  ;;  %v11829_v61 = vld [vmem:[#allocation67_spill] sm:$0xff] }
 0x125   :  { %11826 = vst [vmem:[#allocation169_spill] sm:$0xff] %v9416_v30  ;;  %v9428_v3 = vadd.f32 %v1842_v32, %v1167_v60  ;;  %v1182_v44 = vadd.f32 %v6547_v8, %v9061_v53  ;;  %6792 = vmatprep.mubr.msk.f32.mxu1 %vm391_vm2, %v9434_v40  ;;  %6890 = vmatprep.mubr.msk.f32.mxu0 %vm391_vm2, %v11829_v61  ;;  %v1852_v30 = vpop.f32.mrf.mxu0  ;;  %v9446_v53 = vld [vmem:[%s11169_s0 + $0x290] sm:$0xff] }
 0x126   :  { %v1176_v37 = vpop.f32.mrf.mxu1  ;;  %11831 = vst [vmem:[#allocation172_spill] sm:$0xff] %v9446_v53  ;;  %v11832_v8 = vld [vmem:[#allocation72_spill] sm:$0xff] }
 0x127   :  { %v9440_v35 = vadd.f32 %v6645_v20, %v1182_v44  ;;  %v1177_v32 = vadd.f32 %v1176_v37, %v9083_v58  ;;  %v6648_v6 = vpop.f32.mrf.mxu0  ;;  %6891 = vmatmul.mubr.msk.f32.gmra.mxu0 %vm391_vm2, %v11832_v8  ;;  %v9458_v58 = vld [vmem:[%s11169_s0 + $0x2a0] sm:$0xff]  ;;  %v11833_v44 = vld [vmem:[#allocation75_spill] sm:$0xff] }
 0x128   :  { %v6550_v60 = vpop.f32.mrf.mxu1  ;;  %6793 = vmatmul.mubr.msk.f32.gmra.mxu1 %vm391_vm2, %v9446_v53  ;;  %6893 = vmatprep.mubr.msk.f32.mxu0 %vm391_vm2, %v11833_v44 }
 0x129   :  { %11830 = vst [vmem:[#allocation171_spill] sm:$0xff] %v9440_v35  ;;  %v9452_v61 = vadd.f32 %v1852_v30, %v1177_v32  ;;  %v1192_v20 = vadd.f32 %v6550_v60, %v9087_v56  ;;  %6795 = vmatprep.mubr.msk.f32.mxu1 %vm391_vm2, %v9458_v58  ;;  %v1862_v35 = vpop.f32.mrf.mxu0  ;;  %v9470_v56 = vld [vmem:[%s11169_s0 + $0x2a8] sm:$0xff] }
 0x12a   :  { %v1186_v37 = vpop.f32.mrf.mxu1  ;;  %11835 = vst [vmem:[#allocation174_spill] sm:$0xff] %v9470_v56  ;;  %v11836_v60 = vld [vmem:[#allocation79_spill] sm:$0xff] }
 0x12b   :  { %v9464_v53 = vadd.f32 %v6648_v6, %v1192_v20  ;;  %v1187_v30 = vadd.f32 %v1186_v37, %v9109_v63  ;;  %v6651_v8 = vpop.f32.mrf.mxu0  ;;  %6894 = vmatmul.mubr.msk.f32.gmra.mxu0 %vm391_vm2, %v11836_v60  ;;  %v9482_v63 = vld [vmem:[%s11169_s0 + $0x2b8] sm:$0xff] }
 0x12c   :  { %v6553_v32 = vpop.f32.mrf.mxu1  ;;  %6796 = vmatmul.mubr.msk.f32.gmra.mxu1 %vm391_vm2, %v9470_v56  ;;  %v11837_v20 = vld [vmem:[#allocation81_spill] sm:$0xff] }
 0x12d   :  { %11834 = vst [vmem:[#allocation173_spill] sm:$0xff] %v9464_v53  ;;  %v9476_v44 = vadd.f32 %v1862_v35, %v1187_v30  ;;  %v1202_v6 = vadd.f32 %v6553_v32, %v9113_v57  ;;  %6798 = vmatprep.mubr.msk.f32.mxu1 %vm391_vm2, %v9482_v63  ;;  %6896 = vmatprep.mubr.msk.f32.mxu0 %vm391_vm2, %v11837_v20  ;;  %v1872_v53 = vpop.f32.mrf.mxu0  ;;  %v9494_v57 = vld [vmem:[%s11169_s0 + $0x2c0] sm:$0xff]  ;;  %v11840_v32 = vld [vmem:[#allocation87_spill] sm:$0xff] }
 0x12e   :  { %v1196_v37 = vpop.f32.mrf.mxu1  ;;  %11839 = vst [vmem:[#allocation176_spill] sm:$0xff] %v9494_v57 }
 0x12f   :  { %v9488_v56 = vadd.f32 %v6651_v8, %v1202_v6  ;;  %v1197_v35 = vadd.f32 %v1196_v37, %v9130_v10  ;;  %v6654_v60 = vpop.f32.mrf.mxu0  ;;  %6897 = vmatmul.mubr.msk.f32.gmra.mxu0 %vm391_vm2, %v11840_v32  ;;  %v9506_v10 = vld [vmem:[%s11169_s0 + $0x2d0] sm:$0xff]  ;;  %v11841_v6 = vld [vmem:[#allocation91_spill] sm:$0xff] }
 0x130   :  { %v6556_v30 = vpop.f32.mrf.mxu1  ;;  %6799 = vmatmul.mubr.msk.f32.gmra.mxu1 %vm391_vm2, %v9494_v57  ;;  %6899 = vmatprep.mubr.msk.f32.mxu0 %vm391_vm2, %v11841_v6 }
 0x131   :  { %11838 = vst [vmem:[#allocation175_spill] sm:$0xff] %v9488_v56  ;;  %v9500_v20 = vadd.f32 %v1872_v53, %v1197_v35  ;;  %v1212_v8 = vadd.f32 %v6556_v30, %v9134_v12  ;;  %6801 = vmatprep.mubr.msk.f32.mxu1 %vm391_vm2, %v9506_v10  ;;  %v1882_v56 = vpop.f32.mrf.mxu0  ;;  %v9518_v12 = vld [vmem:[%s11169_s0 + $0x2d8] sm:$0xff] }
 0x132   :  { %v1206_v37 = vpop.f32.mrf.mxu1  ;;  %11843 = vst [vmem:[#allocation178_spill] sm:$0xff] %v9518_v12  ;;  %v11844_v30 = vld [vmem:[#allocation97_spill] sm:$0xff] }
 0x133   :  { %v9512_v57 = vadd.f32 %v6654_v60, %v1212_v8  ;;  %v1207_v53 = vadd.f32 %v1206_v37, %v9146_v15  ;;  %v6657_v32 = vpop.f32.mrf.mxu0  ;;  %6900 = vmatmul.mubr.msk.f32.gmra.mxu0 %vm391_vm2, %v11844_v30  ;;  %v9530_v15 = vld [vmem:[%s11169_s0 + $0x2e8] sm:$0xff] }
 0x134   :  { %v6559_v35 = vpop.f32.mrf.mxu1  ;;  %6802 = vmatmul.mubr.msk.f32.gmra.mxu1 %vm391_vm2, %v9518_v12  ;;  %11846 = vst [vmem:[#allocation180_spill] sm:$0xff] %v9530_v15  ;;  %v11847_v8 = vld [vmem:[#allocation99_spill] sm:$0xff] }
 0x135   :  { %11842 = vst [vmem:[#allocation177_spill] sm:$0xff] %v9512_v57  ;;  %v9524_v6 = vadd.f32 %v1882_v56, %v1207_v53  ;;  %v1222_v60 = vadd.f32 %v6559_v35, %v9150_v43  ;;  %6804 = vmatprep.mubr.msk.f32.mxu1 %vm391_vm2, %v9530_v15  ;;  %6902 = vmatprep.mubr.msk.f32.mxu0 %vm391_vm2, %v11847_v8  ;;  %v1892_v57 = vpop.f32.mrf.mxu0  ;;  %v9542_v43 = vld [vmem:[%s11169_s0 + $0x330] sm:$0xff]  ;;  %v9547_v53 = vld [vmem:[%s11169_s0 + $0x338] sm:$0xff] }
 0x136   :  { %v1216_v37 = vpop.f32.mrf.mxu1  ;;  %v9552_v8 = vld [vmem:[%s11169_s0 + $0x2f0] sm:$0xff]  ;;  %v2636_v15 = vrot.slane %v9542_v43, 1 }
 0x137   :  { %11845 = vst [vmem:[#allocation179_spill] sm:$0xff] %v9524_v6  ;;  %v9536_v12 = vadd.f32 %v6657_v32, %v1222_v60  ;;  %v1217_v56 = vadd.f32 %v1216_v37, %v9162_v54  ;;  %v6660_v30 = vpop.f32.mrf.mxu0  ;;  %11849 = vst [vmem:[#allocation182_spill] sm:$0xff] %v9552_v8  ;;  %v11850_v54 = vld [vmem:[#allocation103_spill] sm:$0xff]  ;;  %v9564_v37 = vld [vmem:[%s11169_s0 + $0x300] sm:$0xff] }
 0x138   :  { %v6562_v35 = vpop.f32.mrf.mxu1  ;;  %6805 = vmatmul.mubr.msk.f32.gmra.mxu1 %vm391_vm2, %v9552_v8  ;;  %6903 = vmatmul.mubr.msk.f32.gmra.mxu0 %vm391_vm2, %v11850_v54  ;;  %11852 = vst [vmem:[#allocation184_spill] sm:$0xff] %v9564_v37 }
 0x139   :  { %11848 = vst [vmem:[#allocation181_spill] sm:$0xff] %v9536_v12  ;;  %v9558_v32 = vadd.f32 %v1892_v57, %v1217_v56  ;;  %v1232_v60 = vadd.f32 %v6562_v35, %v9176_v48  ;;  %6807 = vmatprep.mubr.msk.f32.mxu1 %vm391_vm2, %v9564_v37  ;;  %v11853_v12 = vld [vmem:[#allocation105_spill] sm:$0xff]  ;;  %v1902_v8 = vpop.f32.mrf.mxu0  ;;  %v2637_v57 = vrot.slane %v9547_v53, 1  ;;  %v9575_v48 = vld [vmem:[%s11169_s0 + $0x340] sm:$0x3] }
 0x13a   :  { %6905 = vmatprep.mubr.msk.f32.mxu0 %vm391_vm2, %v11853_v12  ;;  %v1226_v6 = vpop.f32.mrf.mxu1  ;;  %11854 = vst [vmem:[#allocation185_spill] sm:$0xff] %v9575_v48  ;;  %v9583_v12 = vld [vmem:[%s11169_s0 + $0x308] sm:$0xff] }
 0x13b   :  { %11851 = vst [vmem:[#allocation183_spill] sm:$0xff] %v9558_v32  ;;  %v9577_v56 = vadd.f32 %v6660_v30, %v1232_v60  ;;  %v1227_v35 = vadd.f32 %v1226_v6, %v9188_v55  ;;  %v6663_v32 = vpop.f32.mrf.mxu0  ;;  %v9595_v55 = vld [vmem:[%s11169_s0 + $0x318] sm:$0xff]  ;;  %v2639_v6 = vrot.slane %v9575_v48, 1 }
 0x13c   :  { %v6565_v54 = vpop.f32.mrf.mxu1  ;;  %6808 = vmatmul.mubr.msk.f32.gmra.mxu1 %vm391_vm2, %v9583_v12  ;;  %6906 = vmatmul.mubr.msk.f32.gmra.mxu0 %vm391_vm2, %v8280_v33 }
 0x13d   :  { %11855 = vst [vmem:[#allocation186_spill] sm:$0xff] %v9577_v56  ;;  %v9589_v37 = vadd.f32 %v1902_v8, %v1227_v35  ;;  %v1242_v30 = vadd.f32 %v6565_v54, %v9199_v42  ;;  %6810 = vmatprep.mubr.msk.f32.mxu1 %vm391_vm2, %v9595_v55  ;;  %6908 = vmatprep.mubr.msk.f32.mxu0 %vm391_vm2, %v8288_v11  ;;  %v1912_v56 = vpop.f32.mrf.mxu0 }
 0x13e   :  { %v1236_v60 = vpop.f32.mrf.mxu1  ;;  %v9603_v8 = vsel %vm230_vm1, %v2636_v15, %v2637_v57 }
 0x13f   :  { %11856 = vst [vmem:[#allocation187_spill] sm:$0xff] %v9589_v37  ;;  %11857 = vst [vmem:[#allocation188_spill] sm:$0xff] %v9603_v8  ;;  %v9605_v35 = vadd.f32 %v6663_v32, %v1242_v30  ;;  %v1237_v42 = vadd.f32 %v1236_v60, %v9212_v25  ;;  %v6666_v33 = vpop.f32.mrf.mxu0  ;;  %v9611_v37 = vld [vmem:[%s11169_s0 + $0x320] sm:$0xff]  ;;  %v9625_v25 = vsel %vm230_vm1, %v2637_v57, %v2639_v6 }
 0x140   :  { %v6568_v54 = vpop.f32.mrf.mxu1  ;;  %6811 = vmatmul.mubr.msk.f32.gmra.mxu1 %vm391_vm2, %v9611_v37  ;;  %6909 = vmatmul.mubr.msk.f32.gmra.mxu0 %vm391_vm2, %v8305_v21  ;;  %11858 = vst [vmem:[#allocation189_spill] sm:$0xff] %v9625_v25 }
 0x141   :  { %v9617_v11 = vadd.f32 %v1912_v56, %v1237_v42  ;;  %v1252_v15 = vadd.f32 %v6568_v54, %v9219_v7  ;;  %6813 = vmatprep.mubr.msk.f32.mxu1 %vm391_vm2, %v9542_v43  ;;  %6911 = vmatprep.mubr.msk.f32.mxu0 %vm391_vm2, %v9603_v8  ;;  %v1922_v30 = vpop.f32.mrf.mxu0 }
 0x142   :  { %v1246_v32 = vpop.f32.mrf.mxu1 }
 0x143   :  { %v9627_v60 = vadd.f32 %v6666_v33, %v1252_v15  ;;  %v1247_v48 = vadd.f32 %v1246_v32, %v9234_v18  ;;  %v6669_v56 = vpop.f32.mrf.mxu0 }
 0x144   :  { %v6571_v21 = vpop.f32.mrf.mxu1  ;;  %6814 = vmatmul.mubr.msk.f32.gmra.mxu1 %vm391_vm2, %v9547_v53  ;;  %6912 = vmatmul.mubr.msk.f32.gmra.mxu0 %vm391_vm2, %v9625_v25 }
 0x145   :  { %v9634_v7 = vadd.f32 %v1922_v30, %v1247_v48  ;;  %v1262_v42 = vadd.f32 %v6571_v21, %v9238_v23  ;;  %6916 = vmatprep.mubr.msk.f32.mxu1 %vm391_vm2, %v8322_v24  ;;  %7014 = vmatprep.mubr.msk.f32.mxu0 %vm391_vm2, %v8890_v41  ;;  %v1932_v18 = vpop.f32.mrf.mxu0 }
 0x146   :  { %v1256_v33 = vpop.f32.mrf.mxu1 }
 0x147   :  { %v9641_v57 = vadd.f32 %v6669_v56, %v1262_v42  ;;  %v1257_v6 = vadd.f32 %v1256_v33, %v9252_v62  ;;  %v6672_v15 = vpop.f32.mrf.mxu0  ;;  %v11860_v33 = vld [vmem:[#allocation112_spill] sm:$0xff] }
 0x148   :  { %v6574_v54 = vpop.f32.mrf.mxu1  ;;  %6917 = vmatmul.mubr.msk.f32.vlgmr.msra.gmra.mxu1 %vm391_vm2, %v8337_v26  ;;  %7015 = vmatmul.mubr.msk.f32.vlgmr.msra.gmra.mxu0 %vm391_vm2, %v8910_v27 }
 0x149   :  { %v9648_v23 = vadd.f32 %v1932_v18, %v1257_v6  ;;  %v1272_v21 = vadd.f32 %v6574_v54, %v8866_v29  ;;  %7111 = vmatpush3.msk.msra.mxu1 %vm520_vm0, %v8881_v28  ;;  %7209 = vmatpush3.msk.msra.mxu0 %vm520_vm0, %v8901_v2  ;;  %v1942_v41 = vpop.f32.mrf.mxu0  ;;  %v11862_v54 = vld [vmem:[#allocation68_spill] sm:$0xff] }
 0x14a   :  { %v1266_v24 = vpop.f32.mrf.mxu1  ;;  %6919 = vmatprep.mubr.msk.f32.mxu1 %vm391_vm2, %v8350_v52  ;;  %7017 = vmatprep.mubr.msk.f32.mxu0 %vm391_vm2, %v8919_v47 }
 0x14b   :  { %v9659_v26 = vadd.f32 %v6672_v15, %v1272_v21  ;;  %v1267_v27 = vadd.f32 %v1266_v24, %v8885_v50  ;;  %v6675_v29 = vpop.f32.mrf.mxu0 }
 0x14c   :  { %v6577_v62 = vpop.f32.mrf.mxu1  ;;  %6920 = vmatmul.mubr.msk.f32.gmra.mxu1 %vm391_vm2, %v8367_v16  ;;  %7018 = vmatmul.mubr.msk.f32.gmra.mxu0 %vm391_vm2, %v8938_v0 }
 0x14d   :  { %v9666_v28 = vadd.f32 %v1942_v41, %v1267_v27  ;;  %v1282_v2 = vadd.f32 %v6577_v62, %v8905_v22  ;;  %6922 = vmatprep.mubr.msk.f32.mxu1 %vm391_vm2, %v8371_v5  ;;  %7020 = vmatprep.mubr.msk.f32.mxu0 %vm391_vm2, %v8947_v38  ;;  %v1952_v50 = vpop.f32.mrf.mxu0  ;;  %v11859_v22 = vld [vmem:[#allocation63_spill] sm:$0xff]  ;;  %v11861_v38 = vld [vmem:[#allocation70_spill] sm:$0xff]  ;;  %v11863_v41 = vld [vmem:[#allocation113_spill] sm:$0xff] }
 0x14e   :  { %v1276_v47 = vpop.f32.mrf.mxu1  ;;  %v11865_v62 = vld [vmem:[#allocation69_spill] sm:$0xff] }
 0x14f   :  { %v9673_v48 = vadd.f32 %v6675_v29, %v1282_v2  ;;  %v1277_v32 = vadd.f32 %v1276_v47, %v8927_v13  ;;  %v6678_v56 = vpop.f32.mrf.mxu0  ;;  %v11866_v2 = vld [vmem:[#allocation114_spill] sm:$0xff] }
 0x150   :  { %v6580_v30 = vpop.f32.mrf.mxu1  ;;  %6923 = vmatmul.mubr.msk.f32.gmra.mxu1 %vm391_vm2, %v8384_v31  ;;  %7021 = vmatmul.mubr.msk.f32.gmra.mxu0 %vm391_vm2, %v8964_v9  ;;  %v11864_v9 = vld [vmem:[#allocation77_spill] sm:$0xff]  ;;  %v11867_v47 = vld [vmem:[#allocation82_spill] sm:$0xff] }
 0x151   :  { %v9680_v0 = vadd.f32 %v1952_v50, %v1277_v32  ;;  %v1292_v42 = vadd.f32 %v6580_v30, %v11859_v22  ;;  %6925 = vmatprep.mubr.msk.f32.mxu1 %vm391_vm2, %v11860_v33  ;;  %7023 = vmatprep.mubr.msk.f32.mxu0 %vm391_vm2, %v11861_v38  ;;  %v1962_v13 = vpop.f32.mrf.mxu0 }
 0x152   :  { %v1286_v18 = vpop.f32.mrf.mxu1 }
 0x153   :  { %v9687_v6 = vadd.f32 %v6678_v56, %v1292_v42  ;;  %v1287_v15 = vadd.f32 %v1286_v18, %v11862_v54  ;;  %v6681_v24 = vpop.f32.mrf.mxu0  ;;  %v11869_v56 = vld [vmem:[#allocation74_spill] sm:$0xff]  ;;  %v11870_v18 = vld [vmem:[#allocation115_spill] sm:$0xff] }
 0x154   :  { %v6583_v21 = vpop.f32.mrf.mxu1  ;;  %6926 = vmatmul.mubr.msk.f32.gmra.mxu1 %vm391_vm2, %v11863_v41  ;;  %7024 = vmatmul.mubr.msk.f32.gmra.mxu0 %vm391_vm2, %v11864_v9  ;;  %v11874_v9 = vld [vmem:[#allocation116_spill] sm:$0xff] }
 0x155   :  { %v9694_v27 = vadd.f32 %v1962_v13, %v1287_v15  ;;  %v1302_v29 = vadd.f32 %v6583_v21, %v11865_v62  ;;  %6928 = vmatprep.mubr.msk.f32.mxu1 %vm391_vm2, %v11866_v2  ;;  %7026 = vmatprep.mubr.msk.f32.mxu0 %vm391_vm2, %v11867_v47  ;;  %v1972_v32 = vpop.f32.mrf.mxu0  ;;  %v11871_v13 = vld [vmem:[#allocation90_spill] sm:$0xff]  ;;  %v11873_v15 = vld [vmem:[#allocation76_spill] sm:$0xff] }
 0x156   :  { %v1296_v50 = vpop.f32.mrf.mxu1  ;;  %v11875_v62 = vld [vmem:[#allocation94_spill] sm:$0xff] }
 0x157   :  { %v9701_v30 = vadd.f32 %v6681_v24, %v1302_v29  ;;  %v1297_v22 = vadd.f32 %v1296_v50, %v11869_v56  ;;  %v6684_v38 = vpop.f32.mrf.mxu0  ;;  %v11877_v50 = vld [vmem:[#allocation84_spill] sm:$0xff] }
 0x158   :  { %v6586_v42 = vpop.f32.mrf.mxu1  ;;  %6929 = vmatmul.mubr.msk.f32.gmra.mxu1 %vm391_vm2, %v11870_v18  ;;  %7027 = vmatmul.mubr.msk.f32.gmra.mxu0 %vm391_vm2, %v11871_v13  ;;  %v11938_v18 = vld [vmem:[#allocation130_spill] sm:$0xff] }
 0x159   :  { %11868 = vst [vmem:[#allocation63_spill] sm:$0xff] %v9701_v30  ;;  %v9708_v54 = vadd.f32 %v1972_v32, %v1297_v22  ;;  %v1312_v21 = vadd.f32 %v6586_v42, %v11873_v15  ;;  %6931 = vmatprep.mubr.msk.f32.mxu1 %vm391_vm2, %v11874_v9  ;;  %7029 = vmatprep.mubr.msk.f32.mxu0 %vm391_vm2, %v11875_v62  ;;  %v1982_v29 = vpop.f32.mrf.mxu0  ;;  %v11878_v30 = vld [vmem:[#allocation117_spill] sm:$0xff]  ;;  %v11882_v15 = vld [vmem:[#allocation118_spill] sm:$0xff]  ;;  %v11886_v9 = vld [vmem:[#allocation119_spill] sm:$0xff] }
 0x15a   :  { %v1306_v24 = vpop.f32.mrf.mxu1  ;;  %v11879_v32 = vld [vmem:[#allocation101_spill] sm:$0xff] }
 0x15b   :  { %11872 = vst [vmem:[#allocation112_spill] sm:$0xff] %v9708_v54  ;;  %v9715_v47 = vadd.f32 %v6684_v38, %v1312_v21  ;;  %v1307_v56 = vadd.f32 %v1306_v24, %v11877_v50  ;;  %v6687_v8 = vpop.f32.mrf.mxu0  ;;  %v11881_v42 = vld [vmem:[#allocation85_spill] sm:$0xff]  ;;  %v11885_v50 = vld [vmem:[#allocation95_spill] sm:$0xff] }
 0x15c   :  { %v6589_v25 = vpop.f32.mrf.mxu1  ;;  %6932 = vmatmul.mubr.msk.f32.gmra.mxu1 %vm391_vm2, %v11878_v30  ;;  %7030 = vmatmul.mubr.msk.f32.gmra.mxu0 %vm391_vm2, %v11879_v32  ;;  %v11883_v62 = vld [vmem:[#allocation9_spill] sm:$0xff] }
 0x15d   :  { %11876 = vst [vmem:[#allocation70_spill] sm:$0xff] %v9715_v47  ;;  %v9722_v22 = vadd.f32 %v1982_v29, %v1307_v56  ;;  %v1322_v13 = vadd.f32 %v6589_v25, %v11881_v42  ;;  %6934 = vmatprep.mubr.msk.f32.mxu1 %vm391_vm2, %v11882_v15  ;;  %7032 = vmatprep.mubr.msk.f32.mxu0 %vm391_vm2, %v11883_v62  ;;  %v1992_v21 = vpop.f32.mrf.mxu0  ;;  %v11887_v29 = vld [vmem:[#allocation132_spill] sm:$0xff]  ;;  %v11891_v62 = vld [vmem:[#allocation133_spill] sm:$0xff] }
 0x15e   :  { %v1316_v38 = vpop.f32.mrf.mxu1  ;;  %v11889_v56 = vld [vmem:[#allocation100_spill] sm:$0xff]  ;;  %v11894_v15 = vld [vmem:[#allocation121_spill] sm:$0xff] }
 0x15f   :  { %11880 = vst [vmem:[#allocation68_spill] sm:$0xff] %v9722_v22  ;;  %v9729_v24 = vadd.f32 %v6687_v8, %v1322_v13  ;;  %v1317_v47 = vadd.f32 %v1316_v38, %v11885_v50  ;;  %v6690_v54 = vpop.f32.mrf.mxu0  ;;  %v11890_v42 = vld [vmem:[#allocation120_spill] sm:$0xff] }
 0x160   :  { %v6592_v30 = vpop.f32.mrf.mxu1  ;;  %6935 = vmatmul.mubr.msk.f32.gmra.mxu1 %vm391_vm2, %v11886_v9  ;;  %7033 = vmatmul.mubr.msk.f32.gmra.mxu0 %vm391_vm2, %v11887_v29  ;;  %v11893_v50 = vld [vmem:[#allocation12_spill] sm:$0xff] }
 0x161   :  { %11884 = vst [vmem:[#allocation113_spill] sm:$0xff] %v9729_v24  ;;  %v9736_v25 = vadd.f32 %v1992_v21, %v1317_v47  ;;  %v1332_v32 = vadd.f32 %v6592_v30, %v11889_v56  ;;  %6937 = vmatprep.mubr.msk.f32.mxu1 %vm391_vm2, %v11890_v42  ;;  %7035 = vmatprep.mubr.msk.f32.mxu0 %vm391_vm2, %v11891_v62  ;;  %v2002_v13 = vpop.f32.mrf.mxu0  ;;  %v11895_v47 = vld [vmem:[#allocation136_spill] sm:$0xff]  ;;  %v11897_v21 = vld [vmem:[#allocation131_spill] sm:$0xff]  ;;  %v11898_v56 = vld [vmem:[#allocation122_spill] sm:$0xff] }
 0x162   :  { %v1326_v8 = vpop.f32.mrf.mxu1  ;;  %v11899_v62 = vld [vmem:[#allocation137_spill] sm:$0xff]  ;;  %v11902_v42 = vld [vmem:[#allocation123_spill] sm:$0xff] }
 0x163   :  { %11888 = vst [vmem:[#allocation77_spill] sm:$0xff] %v9736_v25  ;;  %v9743_v38 = vadd.f32 %v6690_v54, %v1332_v32  ;;  %v1327_v24 = vadd.f32 %v1326_v8, %v11893_v50  ;;  %v6693_v22 = vpop.f32.mrf.mxu0  ;;  %v11901_v50 = vld [vmem:[#allocation134_spill] sm:$0xff] }
 0x164   :  { %v6595_v9 = vpop.f32.mrf.mxu1  ;;  %6938 = vmatmul.mubr.msk.f32.gmra.mxu1 %vm391_vm2, %v11894_v15  ;;  %7036 = vmatmul.mubr.msk.f32.gmra.mxu0 %vm391_vm2, %v11895_v47 }
 0x165   :  { %11892 = vst [vmem:[#allocation69_spill] sm:$0xff] %v9743_v38  ;;  %v9750_v30 = vadd.f32 %v2002_v13, %v1327_v24  ;;  %v1342_v29 = vadd.f32 %v6595_v9, %v11897_v21  ;;  %6940 = vmatprep.mubr.msk.f32.mxu1 %vm391_vm2, %v11898_v56  ;;  %7038 = vmatprep.mubr.msk.f32.mxu0 %vm391_vm2, %v11899_v62  ;;  %v2012_v32 = vpop.f32.mrf.mxu0  ;;  %v11903_v24 = vld [vmem:[#allocation140_spill] sm:$0xff]  ;;  %v11905_v13 = vld [vmem:[#allocation135_spill] sm:$0xff] }
 0x166   :  { %v1336_v54 = vpop.f32.mrf.mxu1  ;;  %v11906_v21 = vld [vmem:[#allocation124_spill] sm:$0xff] }
 0x167   :  { %11896 = vst [vmem:[#allocation114_spill] sm:$0xff] %v9750_v30  ;;  %v9757_v8 = vadd.f32 %v6693_v22, %v1342_v29  ;;  %v1337_v38 = vadd.f32 %v1336_v54, %v11901_v50  ;;  %v6696_v25 = vpop.f32.mrf.mxu0  ;;  %v7358_v22 = vld [vmem:[%s11169_s0 + $0x108] sm:$0xff]  ;;  %v11908_v50 = vld [vmem:[#allocation138_spill] sm:$0xff] }
 0x168   :  { %v6598_v15 = vpop.f32.mrf.mxu1  ;;  %6941 = vmatmul.mubr.msk.f32.gmra.mxu1 %vm391_vm2, %v11902_v42  ;;  %7039 = vmatmul.mubr.msk.f32.gmra.mxu0 %vm391_vm2, %v11903_v24  ;;  %v11937_v30 = vld [vmem:[#allocation151_spill] sm:$0xff] }
 0x169   :  { %11900 = vst [vmem:[#allocation82_spill] sm:$0xff] %v9757_v8  ;;  %v9764_v9 = vadd.f32 %v2012_v32, %v1337_v38  ;;  %v1352_v47 = vadd.f32 %v6598_v15, %v11905_v13  ;;  %6943 = vmatprep.mubr.msk.f32.mxu1 %vm391_vm2, %v11906_v21  ;;  %7041 = vmatprep.mubr.msk.f32.mxu0 %vm391_vm2, %v7358_v22  ;;  %v2022_v62 = vpop.f32.mrf.mxu0  ;;  %v11909_v32 = vld [vmem:[#allocation125_spill] sm:$0xff]  ;;  %v7359_v15 = vld [vmem:[%s11169_s0 + $0x110] sm:$0xff]  ;;  %v11911_v22 = vld [vmem:[#allocation139_spill] sm:$0xff] }
 0x16a   :  { %v1346_v29 = vpop.f32.mrf.mxu1  ;;  %v11912_v21 = vld [vmem:[#allocation126_spill] sm:$0xff] }
 0x16b   :  { %11904 = vst [vmem:[#allocation74_spill] sm:$0xff] %v9764_v9  ;;  %v9773_v54 = vadd.f32 %v6696_v25, %v1352_v47  ;;  %v1347_v8 = vadd.f32 %v1346_v29, %v11908_v50  ;;  %v6699_v38 = vpop.f32.mrf.mxu0  ;;  %v7360_v25 = vld [vmem:[%s11169_s0 + $0x120] sm:$0xff] }
 0x16c   :  { %v6601_v24 = vpop.f32.mrf.mxu1  ;;  %6944 = vmatmul.mubr.msk.f32.gmra.mxu1 %vm391_vm2, %v11909_v32  ;;  %7042 = vmatmul.mubr.msk.f32.gmra.mxu0 %vm391_vm2, %v7359_v15 }
 0x16d   :  { %11907 = vst [vmem:[#allocation90_spill] sm:$0xff] %v9773_v54  ;;  %v9782_v13 = vadd.f32 %v2022_v62, %v1347_v8  ;;  %v1362_v9 = vadd.f32 %v6601_v24, %v11911_v22  ;;  %6946 = vmatprep.mubr.msk.f32.mxu1 %vm391_vm2, %v11912_v21  ;;  %7044 = vmatprep.mubr.msk.f32.mxu0 %vm391_vm2, %v7360_v25  ;;  %v2032_v29 = vpop.f32.mrf.mxu0  ;;  %v11914_v54 = vld [vmem:[#allocation141_spill] sm:$0xff]  ;;  %v11915_v62 = vld [vmem:[#allocation127_spill] sm:$0xff]  ;;  %v11917_v25 = vld [vmem:[#allocation142_spill] sm:$0xff] }
 0x16e   :  { %v1356_v47 = vpop.f32.mrf.mxu1  ;;  %v7361_v24 = vld [vmem:[%s11169_s0 + $0x128] sm:$0xff]  ;;  %v11918_v21 = vld [vmem:[#allocation128_spill] sm:$0xff] }
 0x16f   :  { %11910 = vst [vmem:[#allocation76_spill] sm:$0xff] %v9782_v13  ;;  %v9791_v50 = vadd.f32 %v6699_v38, %v1362_v9  ;;  %v1357_v32 = vadd.f32 %v1356_v47, %v11914_v54  ;;  %v6702_v8 = vpop.f32.mrf.mxu0  ;;  %v7362_v9 = vld [vmem:[%s11169_s0 + $0x138] sm:$0xff] }
 0x170   :  { %v6604_v15 = vpop.f32.mrf.mxu1  ;;  %6947 = vmatmul.mubr.msk.f32.gmra.mxu1 %vm391_vm2, %v11915_v62  ;;  %7045 = vmatmul.mubr.msk.f32.gmra.mxu0 %vm391_vm2, %v7361_v24 }
 0x171   :  { %11913 = vst [vmem:[#allocation94_spill] sm:$0xff] %v9791_v50  ;;  %v9800_v22 = vadd.f32 %v2032_v29, %v1357_v32  ;;  %v1372_v13 = vadd.f32 %v6604_v15, %v11917_v25  ;;  %6949 = vmatprep.mubr.msk.f32.mxu1 %vm391_vm2, %v11918_v21  ;;  %7047 = vmatprep.mubr.msk.f32.mxu0 %vm391_vm2, %v7362_v9  ;;  %v2042_v38 = vpop.f32.mrf.mxu0  ;;  %v11920_v50 = vld [vmem:[#allocation143_spill] sm:$0xff]  ;;  %v7363_v15 = vld [vmem:[%s11169_s0 + $0x140] sm:$0xff]  ;;  %v11923_v9 = vld [vmem:[#allocation144_spill] sm:$0xff] }
 0x172   :  { %v1366_v54 = vpop.f32.mrf.mxu1  ;;  %v11921_v29 = vld [vmem:[#allocation83_spill] sm:$0xff]  ;;  %v11924_v21 = vld [vmem:[#allocation88_spill] sm:$0xff] }
 0x173   :  { %11916 = vst [vmem:[#allocation84_spill] sm:$0xff] %v9800_v22  ;;  %v9809_v47 = vadd.f32 %v6702_v8, %v1372_v13  ;;  %v1367_v62 = vadd.f32 %v1366_v54, %v11920_v50  ;;  %v6705_v32 = vpop.f32.mrf.mxu0  ;;  %v7364_v13 = vld [vmem:[%s11169_s0 + $0x150] sm:$0xff] }
 0x174   :  { %v6607_v24 = vpop.f32.mrf.mxu1  ;;  %6950 = vmatmul.mubr.msk.f32.gmra.mxu1 %vm391_vm2, %v11921_v29  ;;  %7048 = vmatmul.mubr.msk.f32.gmra.mxu0 %vm391_vm2, %v7363_v15 }
 0x175   :  { %11919 = vst [vmem:[#allocation101_spill] sm:$0xff] %v9809_v47  ;;  %v9818_v25 = vadd.f32 %v2042_v38, %v1367_v62  ;;  %v1382_v22 = vadd.f32 %v6607_v24, %v11923_v9  ;;  %6952 = vmatprep.mubr.msk.f32.mxu1 %vm391_vm2, %v11924_v21  ;;  %7050 = vmatprep.mubr.msk.f32.mxu0 %vm391_vm2, %v7364_v13  ;;  %v2052_v8 = vpop.f32.mrf.mxu0  ;;  %v11926_v47 = vld [vmem:[#allocation145_spill] sm:$0xff]  ;;  %v11927_v38 = vld [vmem:[#allocation92_spill] sm:$0xff] }
 0x176   :  { %v1376_v50 = vpop.f32.mrf.mxu1  ;;  %v7365_v24 = vld [vmem:[%s11169_s0 + $0x158] sm:$0xff]  ;;  %v11929_v13 = vld [vmem:[#allocation148_spill] sm:$0xff] }
 0x177   :  { %11922 = vst [vmem:[#allocation85_spill] sm:$0xff] %v9818_v25  ;;  %v9827_v54 = vadd.f32 %v6705_v32, %v1382_v22  ;;  %v1377_v29 = vadd.f32 %v1376_v50, %v11926_v47  ;;  %v6708_v62 = vpop.f32.mrf.mxu0  ;;  %v11930_v21 = vld [vmem:[#allocation93_spill] sm:$0xff]  ;;  %v7366_v22 = vld [vmem:[%s11169_s0 + $0x168] sm:$0xff]  ;;  %v11931_v47 = vld [vmem:[#allocation146_spill] sm:$0xff] }
 0x178   :  { %v6610_v15 = vpop.f32.mrf.mxu1  ;;  %6953 = vmatmul.mubr.msk.f32.gmra.mxu1 %vm391_vm2, %v11927_v38  ;;  %7051 = vmatmul.mubr.msk.f32.gmra.mxu0 %vm391_vm2, %v7365_v24  ;;  %v3101_v32 = vrot.slane %v11931_v47, 2  ;;  %v11932_v38 = vld [vmem:[#allocation147_spill] sm:$0xff] }
 0x179   :  { %11925 = vst [vmem:[#allocation9_spill] sm:$0xff] %v9827_v54  ;;  %v9836_v9 = vadd.f32 %v2052_v8, %v1377_v29  ;;  %v1392_v25 = vadd.f32 %v6610_v15, %v11929_v13  ;;  %6955 = vmatprep.mubr.msk.f32.mxu1 %vm391_vm2, %v11930_v21  ;;  %7053 = vmatprep.mubr.msk.f32.mxu0 %vm391_vm2, %v7366_v22  ;;  %v2062_v54 = vpop.f32.mrf.mxu0  ;;  %v3102_v42 = vrot.slane %v11932_v38, 2  ;;  %v11934_v29 = vld [vmem:[#allocation149_spill] sm:$0xff]  ;;  %v7367_v21 = vld [vmem:[%s11169_s0 + $0x170] sm:$0xff] }
 0x17a   :  { %v1386_v50 = vpop.f32.mrf.mxu1 }
 0x17b   :  { %11928 = vst [vmem:[#allocation95_spill] sm:$0xff] %v9836_v9  ;;  %v9847_v24 = vadd.f32 %v6708_v62, %v1392_v25  ;;  %v1387_v8 = vadd.f32 %v1386_v50, %v11934_v29  ;;  %v6711_v13 = vpop.f32.mrf.mxu0  ;;  %v11935_v9 = vld [vmem:[#allocation129_spill] sm:$0xff]  ;;  %v11939_v25 = vld [vmem:[#allocation150_spill] sm:$0xff] }
 0x17c   :  { %v6613_v15 = vpop.f32.mrf.mxu1  ;;  %6956 = vmatmul.mubr.msk.f32.gmra.mxu1 %vm391_vm2, %v11935_v9  ;;  %7054 = vmatmul.mubr.msk.f32.gmra.mxu0 %vm391_vm2, %v7367_v21  ;;  %v3104_v62 = vrot.slane %v11939_v25, 2  ;;  %v9870_v21 = vld [vmem:[%s11169_s0 + $0x198] sm:$0xff] }
 0x17d   :  { %11933 = vst [vmem:[#allocation132_spill] sm:$0xff] %v9847_v24  ;;  %v9856_v22 = vadd.f32 %v2062_v54, %v1387_v8  ;;  %v1402_v56 = vadd.f32 %v6613_v15, %v11937_v30  ;;  %6958 = vmatprep.mubr.msk.f32.mxu1 %vm391_vm2, %v11938_v18  ;;  %7056 = vmatprep.mubr.msk.f32.mxu0 %vm391_vm2, %v11931_v47  ;;  %v2072_v29 = vpop.f32.mrf.mxu0  ;;  %v11942_v30 = vld [vmem:[#allocation152_spill] sm:$0xff]  ;;  %v11943_v18 = vld [vmem:[#allocation2_spill] sm:$0xff] }
 0x17e   :  { %v1396_v50 = vpop.f32.mrf.mxu1  ;;  %v9865_v24 = vsel %vm520_vm0, %v3101_v32, %v3102_v42  ;;  %v11945_v32 = vld [vmem:[#allocation154_spill] sm:$0xff] }
 0x17f   :  { %11936 = vst [vmem:[#allocation100_spill] sm:$0xff] %v9856_v22  ;;  %11940 = vst [vmem:[#allocation133_spill] sm:$0xff] %v9865_v24  ;;  %v9872_v54 = vadd.f32 %v6711_v13, %v1402_v56  ;;  %v1397_v8 = vadd.f32 %v1396_v50, %v11942_v30  ;;  %v6714_v22 = vpop.f32.mrf.mxu0  ;;  %v9887_v56 = vsel %vm520_vm0, %v3102_v42, %v3104_v62  ;;  %v9892_v13 = vld [vmem:[%s11169_s0 + $0x1a0] sm:$0xff]  ;;  %v11948_v30 = vld [vmem:[#allocation156_spill] sm:$0xff] }
 0x180   :  { %v6616_v15 = vpop.f32.mrf.mxu1  ;;  %6959 = vmatmul.mubr.msk.f32.gmra.mxu1 %vm391_vm2, %v11943_v18  ;;  %7057 = vmatmul.mubr.msk.f32.gmra.mxu0 %vm391_vm2, %v11932_v38  ;;  %11946 = vst [vmem:[#allocation131_spill] sm:$0xff] %v9887_v56  ;;  %v11949_v62 = vld [vmem:[#allocation157_spill] sm:$0xff]  ;;  %v11953_v18 = vld [vmem:[#allocation4_spill] sm:$0xff] }
 0x181   :  { %11941 = vst [vmem:[#allocation12_spill] sm:$0xff] %v9872_v54  ;;  %v9879_v47 = vadd.f32 %v2072_v29, %v1397_v8  ;;  %v1412_v25 = vadd.f32 %v6616_v15, %v11945_v32  ;;  %6961 = vmatprep.mubr.msk.f32.mxu1 %vm391_vm2, %v9865_v24  ;;  %7059 = vmatprep.mubr.msk.f32.mxu0 %vm391_vm2, %v9870_v21  ;;  %v2082_v38 = vpop.f32.mrf.mxu0  ;;  %v11950_v24 = vld [vmem:[#allocation3_spill] sm:$0xff] }
 0x182   :  { %v1406_v50 = vpop.f32.mrf.mxu1 }
 0x183   :  { %11944 = vst [vmem:[#allocation136_spill] sm:$0xff] %v9879_v47  ;;  %v9894_v29 = vadd.f32 %v6714_v22, %v1412_v25  ;;  %v1407_v8 = vadd.f32 %v1406_v50, %v11948_v30  ;;  %v6717_v32 = vpop.f32.mrf.mxu0  ;;  %v11952_v30 = vld [vmem:[#allocation11_spill] sm:$0xff] }
 0x184   :  { %v6619_v15 = vpop.f32.mrf.mxu1  ;;  %6962 = vmatmul.mubr.msk.f32.gmra.mxu1 %vm391_vm2, %v9887_v56  ;;  %7060 = vmatmul.mubr.msk.f32.gmra.mxu0 %vm391_vm2, %v9892_v13 }
 0x185   :  { %11947 = vst [vmem:[#allocation137_spill] sm:$0xff] %v9894_v29  ;;  %v9901_v42 = vadd.f32 %v2082_v38, %v1407_v8  ;;  %v1422_v47 = vadd.f32 %v6619_v15, %v11949_v62  ;;  %6964 = vmatprep.mubr.msk.f32.mxu1 %vm391_vm2, %v11950_v24  ;;  %7062 = vmatprep.mubr.msk.f32.mxu0 %vm391_vm2, %v9266_v51  ;;  %v2092_v25 = vpop.f32.mrf.mxu0  ;;  %v11954_v38 = vld [vmem:[#allocation158_spill] sm:$0xff]  ;;  %v11955_v24 = vld [vmem:[#allocation13_spill] sm:$0xff] }
 0x186   :  { %v1416_v22 = vpop.f32.mrf.mxu1  ;;  %v11956_v62 = vld [vmem:[#allocation5_spill] sm:$0xff] }
 0x187   :  { %v9908_v50 = vadd.f32 %v6717_v32, %v1422_v47  ;;  %v1417_v29 = vadd.f32 %v1416_v22, %v11952_v30  ;;  %v6820_v54 = vpop.f32.mrf.mxu0 }
 0x188   :  { %v6722_v56 = vpop.f32.mrf.mxu1  ;;  %6965 = vmatmul.mubr.msk.f32.gmra.mxu1 %vm391_vm2, %v11953_v18  ;;  %7063 = vmatmul.mubr.msk.f32.gmra.mxu0 %vm391_vm2, %v11954_v38 }
 0x189   :  { %11951 = vst [vmem:[#allocation134_spill] sm:$0xff] %v9908_v50  ;;  %v9915_v8 = vadd.f32 %v2092_v25, %v1417_v29  ;;  %v2566_v15 = vadd.f32 %v6722_v56, %v11955_v24  ;;  %6967 = vmatprep.mubr.msk.f32.mxu1 %vm391_vm2, %v11956_v62  ;;  %7065 = vmatprep.mubr.msk.f32.mxu0 %vm391_vm2, %v9290_v45  ;;  %v2718_v47 = vpop.f32.mrf.mxu0  ;;  %v11958_v50 = vld [vmem:[#allocation6_spill] sm:$0xff]  ;;  %v11959_v29 = vld [vmem:[#allocation160_spill] sm:$0xff]  ;;  %v11960_v25 = vld [vmem:[#allocation159_spill] sm:$0xff] }
 0x18a   :  { %v2246_v51 = vpop.f32.mrf.mxu1  ;;  %v11961_v24 = vld [vmem:[#allocation7_spill] sm:$0xff] }
 0x18b   :  { %v9922_v32 = vadd.f32 %v6820_v54, %v2566_v15  ;;  %v2565_v22 = vadd.f32 %v2246_v51, %v9284_v14  ;;  %v6823_v30 = vpop.f32.mrf.mxu0 }
 0x18c   :  { %v6725_v18 = vpop.f32.mrf.mxu1  ;;  %6968 = vmatmul.mubr.msk.f32.gmra.mxu1 %vm391_vm2, %v11958_v50  ;;  %7066 = vmatmul.mubr.msk.f32.gmra.mxu0 %vm391_vm2, %v11959_v29  ;;  %v11963_v50 = vld [vmem:[#allocation8_spill] sm:$0xff] }
 0x18d   :  { %11957 = vst [vmem:[#allocation140_spill] sm:$0xff] %v9922_v32  ;;  %v9929_v56 = vadd.f32 %v2718_v47, %v2565_v22  ;;  %v2568_v38 = vadd.f32 %v6725_v18, %v11960_v25  ;;  %6970 = vmatprep.mubr.msk.f32.mxu1 %vm391_vm2, %v11961_v24  ;;  %7068 = vmatprep.mubr.msk.f32.mxu0 %vm391_vm2, %v9314_v1  ;;  %v2728_v14 = vpop.f32.mrf.mxu0  ;;  %v11964_v47 = vld [vmem:[#allocation162_spill] sm:$0xff]  ;;  %v11965_v18 = vld [vmem:[#allocation161_spill] sm:$0xff] }
 0x18e   :  { %v2256_v45 = vpop.f32.mrf.mxu1  ;;  %v11966_v25 = vld [vmem:[#allocation10_spill] sm:$0xff] }
 0x18f   :  { %v9936_v54 = vadd.f32 %v6823_v30, %v2568_v38  ;;  %v2567_v15 = vadd.f32 %v2256_v45, %v9308_v46  ;;  %v6826_v32 = vpop.f32.mrf.mxu0 }
 0x190   :  { %v6728_v51 = vpop.f32.mrf.mxu1  ;;  %6971 = vmatmul.mubr.msk.f32.gmra.mxu1 %vm391_vm2, %v11963_v50  ;;  %7069 = vmatmul.mubr.msk.f32.gmra.mxu0 %vm391_vm2, %v11964_v47  ;;  %v11968_v50 = vld [vmem:[#allocation14_spill] sm:$0xff] }
 0x191   :  { %11962 = vst [vmem:[#allocation135_spill] sm:$0xff] %v9936_v54  ;;  %v9943_v22 = vadd.f32 %v2728_v14, %v2567_v15  ;;  %v2570_v29 = vadd.f32 %v6728_v51, %v11965_v18  ;;  %6973 = vmatprep.mubr.msk.f32.mxu1 %vm391_vm2, %v11966_v25  ;;  %7071 = vmatprep.mubr.msk.f32.mxu0 %vm391_vm2, %v9338_v36  ;;  %v2738_v46 = vpop.f32.mrf.mxu0  ;;  %v11969_v14 = vld [vmem:[#allocation164_spill] sm:$0xff]  ;;  %v11970_v51 = vld [vmem:[#allocation163_spill] sm:$0xff] }
 0x192   :  { %v2266_v1 = vpop.f32.mrf.mxu1  ;;  %v11971_v18 = vld [vmem:[#allocation16_spill] sm:$0xff] }
 0x193   :  { %v9950_v30 = vadd.f32 %v6826_v32, %v2570_v29  ;;  %v2569_v38 = vadd.f32 %v2266_v1, %v9332_v49  ;;  %v6829_v54 = vpop.f32.mrf.mxu0 }
 0x194   :  { %v6731_v45 = vpop.f32.mrf.mxu1  ;;  %6974 = vmatmul.mubr.msk.f32.gmra.mxu1 %vm391_vm2, %v11968_v50  ;;  %7072 = vmatmul.mubr.msk.f32.gmra.mxu0 %vm391_vm2, %v11969_v14  ;;  %v11973_v50 = vld [vmem:[#allocation17_spill] sm:$0xff] }
 0x195   :  { %11967 = vst [vmem:[#allocation138_spill] sm:$0xff] %v9950_v30  ;;  %v9957_v15 = vadd.f32 %v2738_v46, %v2569_v38  ;;  %v2572_v47 = vadd.f32 %v6731_v45, %v11970_v51  ;;  %6976 = vmatprep.mubr.msk.f32.mxu1 %vm391_vm2, %v11971_v18  ;;  %7074 = vmatprep.mubr.msk.f32.mxu0 %vm391_vm2, %v9362_v17  ;;  %v2748_v49 = vpop.f32.mrf.mxu0  ;;  %v11974_v46 = vld [vmem:[#allocation166_spill] sm:$0xff]  ;;  %v11975_v45 = vld [vmem:[#allocation165_spill] sm:$0xff] }
 0x196   :  { %v2276_v36 = vpop.f32.mrf.mxu1  ;;  %v11976_v51 = vld [vmem:[#allocation21_spill] sm:$0xff] }
 0x197   :  { %v9964_v32 = vadd.f32 %v6829_v54, %v2572_v47  ;;  %v2571_v29 = vadd.f32 %v2276_v36, %v9356_v59  ;;  %v6832_v30 = vpop.f32.mrf.mxu0 }
 0x198   :  { %v6734_v1 = vpop.f32.mrf.mxu1  ;;  %6977 = vmatmul.mubr.msk.f32.gmra.mxu1 %vm391_vm2, %v11973_v50  ;;  %7075 = vmatmul.mubr.msk.f32.gmra.mxu0 %vm391_vm2, %v11974_v46  ;;  %v11978_v50 = vld [vmem:[#allocation22_spill] sm:$0xff] }
 0x199   :  { %11972 = vst [vmem:[#allocation139_spill] sm:$0xff] %v9964_v32  ;;  %v9971_v38 = vadd.f32 %v2748_v49, %v2571_v29  ;;  %v2574_v14 = vadd.f32 %v6734_v1, %v11975_v45  ;;  %6979 = vmatprep.mubr.msk.f32.mxu1 %vm391_vm2, %v11976_v51  ;;  %7077 = vmatprep.mubr.msk.f32.mxu0 %vm391_vm2, %v9386_v34  ;;  %v2758_v59 = vpop.f32.mrf.mxu0  ;;  %v11979_v49 = vld [vmem:[#allocation168_spill] sm:$0xff]  ;;  %v11980_v1 = vld [vmem:[#allocation167_spill] sm:$0xff] }
 0x19a   :  { %v2286_v17 = vpop.f32.mrf.mxu1  ;;  %v11981_v45 = vld [vmem:[#allocation23_spill] sm:$0xff] }
 0x19b   :  { %v9978_v54 = vadd.f32 %v6832_v30, %v2574_v14  ;;  %v2573_v47 = vadd.f32 %v2286_v17, %v9380_v39  ;;  %v6835_v32 = vpop.f32.mrf.mxu0 }
 0x19c   :  { %v6737_v36 = vpop.f32.mrf.mxu1  ;;  %6980 = vmatmul.mubr.msk.f32.gmra.mxu1 %vm391_vm2, %v11978_v50  ;;  %7078 = vmatmul.mubr.msk.f32.gmra.mxu0 %vm391_vm2, %v11979_v49  ;;  %v11983_v50 = vld [vmem:[#allocation26_spill] sm:$0xff] }
 0x19d   :  { %11977 = vst [vmem:[#allocation141_spill] sm:$0xff] %v9978_v54  ;;  %v9985_v29 = vadd.f32 %v2758_v59, %v2573_v47  ;;  %v2576_v46 = vadd.f32 %v6737_v36, %v11980_v1  ;;  %6982 = vmatprep.mubr.msk.f32.mxu1 %vm391_vm2, %v11981_v45  ;;  %7080 = vmatprep.mubr.msk.f32.mxu0 %vm391_vm2, %v9410_v19  ;;  %v2768_v39 = vpop.f32.mrf.mxu0  ;;  %v11984_v59 = vld [vmem:[#allocation170_spill] sm:$0xff]  ;;  %v11985_v36 = vld [vmem:[#allocation169_spill] sm:$0xff]  ;;  %v11986_v1 = vld [vmem:[#allocation27_spill] sm:$0xff] }
 0x19e   :  { %v2296_v34 = vpop.f32.mrf.mxu1 }
 0x19f   :  { %v9992_v30 = vadd.f32 %v6835_v32, %v2576_v46  ;;  %v2575_v14 = vadd.f32 %v2296_v34, %v9404_v4  ;;  %v6838_v54 = vpop.f32.mrf.mxu0 }
 0x1a0   :  { %v6740_v17 = vpop.f32.mrf.mxu1  ;;  %6983 = vmatmul.mubr.msk.f32.gmra.mxu1 %vm391_vm2, %v11983_v50  ;;  %7081 = vmatmul.mubr.msk.f32.gmra.mxu0 %vm391_vm2, %v11984_v59  ;;  %v11988_v50 = vld [vmem:[#allocation29_spill] sm:$0xff] }
 0x1a1   :  { %11982 = vst [vmem:[#allocation142_spill] sm:$0xff] %v9992_v30  ;;  %v9999_v47 = vadd.f32 %v2768_v39, %v2575_v14  ;;  %v2578_v49 = vadd.f32 %v6740_v17, %v11985_v36  ;;  %6985 = vmatprep.mubr.msk.f32.mxu1 %vm391_vm2, %v11986_v1  ;;  %7083 = vmatprep.mubr.msk.f32.mxu0 %vm391_vm2, %v9434_v40  ;;  %v2778_v4 = vpop.f32.mrf.mxu0  ;;  %v11989_v39 = vld [vmem:[#allocation172_spill] sm:$0xff]  ;;  %v11990_v17 = vld [vmem:[#allocation171_spill] sm:$0xff]  ;;  %v11991_v36 = vld [vmem:[#allocation33_spill] sm:$0xff] }
 0x1a2   :  { %v2306_v19 = vpop.f32.mrf.mxu1 }
 0x1a3   :  { %v10006_v32 = vadd.f32 %v6838_v54, %v2578_v49  ;;  %v2577_v46 = vadd.f32 %v2306_v19, %v9428_v3  ;;  %v6841_v30 = vpop.f32.mrf.mxu0 }
 0x1a4   :  { %v6743_v34 = vpop.f32.mrf.mxu1  ;;  %6986 = vmatmul.mubr.msk.f32.gmra.mxu1 %vm391_vm2, %v11988_v50  ;;  %7084 = vmatmul.mubr.msk.f32.gmra.mxu0 %vm391_vm2, %v11989_v39  ;;  %v11993_v50 = vld [vmem:[#allocation34_spill] sm:$0xff] }
 0x1a5   :  { %11987 = vst [vmem:[#allocation143_spill] sm:$0xff] %v10006_v32  ;;  %v10013_v14 = vadd.f32 %v2778_v4, %v2577_v46  ;;  %v2580_v59 = vadd.f32 %v6743_v34, %v11990_v17  ;;  %6988 = vmatprep.mubr.msk.f32.mxu1 %vm391_vm2, %v11991_v36  ;;  %7086 = vmatprep.mubr.msk.f32.mxu0 %vm391_vm2, %v9458_v58  ;;  %v2788_v3 = vpop.f32.mrf.mxu0  ;;  %v11994_v4 = vld [vmem:[#allocation174_spill] sm:$0xff]  ;;  %v11995_v34 = vld [vmem:[#allocation173_spill] sm:$0xff]  ;;  %v11996_v17 = vld [vmem:[#allocation35_spill] sm:$0xff] }
 0x1a6   :  { %v2316_v40 = vpop.f32.mrf.mxu1 }
 0x1a7   :  { %v10020_v54 = vadd.f32 %v6841_v30, %v2580_v59  ;;  %v2579_v49 = vadd.f32 %v2316_v40, %v9452_v61  ;;  %v6844_v32 = vpop.f32.mrf.mxu0 }
 0x1a8   :  { %v6746_v19 = vpop.f32.mrf.mxu1  ;;  %6989 = vmatmul.mubr.msk.f32.gmra.mxu1 %vm391_vm2, %v11993_v50  ;;  %7087 = vmatmul.mubr.msk.f32.gmra.mxu0 %vm391_vm2, %v11994_v4  ;;  %v11998_v50 = vld [vmem:[#allocation40_spill] sm:$0xff] }
 0x1a9   :  { %11992 = vst [vmem:[#allocation144_spill] sm:$0xff] %v10020_v54  ;;  %v10027_v46 = vadd.f32 %v2788_v3, %v2579_v49  ;;  %v2582_v39 = vadd.f32 %v6746_v19, %v11995_v34  ;;  %6991 = vmatprep.mubr.msk.f32.mxu1 %vm391_vm2, %v11996_v17  ;;  %7089 = vmatprep.mubr.msk.f32.mxu0 %vm391_vm2, %v9482_v63  ;;  %v2798_v61 = vpop.f32.mrf.mxu0  ;;  %v11999_v3 = vld [vmem:[#allocation176_spill] sm:$0xff]  ;;  %v12001_v19 = vld [vmem:[#allocation175_spill] sm:$0xff]  ;;  %v12002_v34 = vld [vmem:[#allocation41_spill] sm:$0xff] }
 0x1aa   :  { %v2326_v58 = vpop.f32.mrf.mxu1 }
 0x1ab   :  { %v10034_v30 = vadd.f32 %v6844_v32, %v2582_v39  ;;  %v2581_v59 = vadd.f32 %v2326_v58, %v9476_v44  ;;  %v6847_v54 = vpop.f32.mrf.mxu0 }
 0x1ac   :  { %v6749_v40 = vpop.f32.mrf.mxu1  ;;  %6992 = vmatmul.mubr.msk.f32.gmra.mxu1 %vm391_vm2, %v11998_v50  ;;  %7090 = vmatmul.mubr.msk.f32.gmra.mxu0 %vm391_vm2, %v11999_v3  ;;  %v12004_v50 = vld [vmem:[#allocation42_spill] sm:$0xff] }
 0x1ad   :  { %11997 = vst [vmem:[#allocation145_spill] sm:$0xff] %v10034_v30  ;;  %v10041_v49 = vadd.f32 %v2798_v61, %v2581_v59  ;;  %v2584_v4 = vadd.f32 %v6749_v40, %v12001_v19  ;;  %6994 = vmatprep.mubr.msk.f32.mxu1 %vm391_vm2, %v12002_v34  ;;  %7092 = vmatprep.mubr.msk.f32.mxu0 %vm391_vm2, %v9506_v10  ;;  %v2808_v44 = vpop.f32.mrf.mxu0  ;;  %v12005_v61 = vld [vmem:[#allocation178_spill] sm:$0xff]  ;;  %v12007_v40 = vld [vmem:[#allocation177_spill] sm:$0xff]  ;;  %v12008_v19 = vld [vmem:[#allocation47_spill] sm:$0xff] }
 0x1ae   :  { %v2336_v63 = vpop.f32.mrf.mxu1  ;;  %v12009_v10 = vld [vmem:[#allocation180_spill] sm:$0xff] }
 0x1af   :  { %12000 = vst [vmem:[#allocation148_spill] sm:$0xff] %v10041_v49  ;;  %v10048_v32 = vadd.f32 %v6847_v54, %v2584_v4  ;;  %v2583_v39 = vadd.f32 %v2336_v63, %v9500_v20  ;;  %v6850_v30 = vpop.f32.mrf.mxu0  ;;  %v12011_v63 = vld [vmem:[#allocation179_spill] sm:$0xff]  ;;  %v12012_v34 = vld [vmem:[#allocation48_spill] sm:$0xff] }
 0x1b0   :  { %v6752_v58 = vpop.f32.mrf.mxu1  ;;  %6995 = vmatmul.mubr.msk.f32.gmra.mxu1 %vm391_vm2, %v12004_v50  ;;  %7093 = vmatmul.mubr.msk.f32.gmra.mxu0 %vm391_vm2, %v12005_v61 }
 0x1b1   :  { %12003 = vst [vmem:[#allocation146_spill] sm:$0xff] %v10048_v32  ;;  %v10055_v59 = vadd.f32 %v2808_v44, %v2583_v39  ;;  %v2586_v3 = vadd.f32 %v6752_v58, %v12007_v40  ;;  %6997 = vmatprep.mubr.msk.f32.mxu1 %vm391_vm2, %v12008_v19  ;;  %7095 = vmatprep.mubr.msk.f32.mxu0 %vm391_vm2, %v12009_v10  ;;  %v2818_v20 = vpop.f32.mrf.mxu0  ;;  %v12013_v44 = vld [vmem:[#allocation182_spill] sm:$0xff]  ;;  %v12014_v58 = vld [vmem:[#allocation181_spill] sm:$0xff]  ;;  %v12016_v10 = vld [vmem:[#allocation184_spill] sm:$0xff] }
 0x1b2   :  { %v2346_v54 = vpop.f32.mrf.mxu1  ;;  %v12015_v40 = vld [vmem:[#allocation49_spill] sm:$0xff]  ;;  %v12018_v19 = vld [vmem:[#allocation54_spill] sm:$0xff] }
 0x1b3   :  { %12006 = vst [vmem:[#allocation147_spill] sm:$0xff] %v10055_v59  ;;  %v10062_v4 = vadd.f32 %v6850_v30, %v2586_v3  ;;  %v2585_v32 = vadd.f32 %v2346_v54, %v12011_v63  ;;  %v6853_v49 = vpop.f32.mrf.mxu0  ;;  %v12017_v63 = vld [vmem:[#allocation183_spill] sm:$0xff] }
 0x1b4   :  { %v6755_v50 = vpop.f32.mrf.mxu1  ;;  %6998 = vmatmul.mubr.msk.f32.gmra.mxu1 %vm391_vm2, %v12012_v34  ;;  %7096 = vmatmul.mubr.msk.f32.gmra.mxu0 %vm391_vm2, %v12013_v44  ;;  %v12021_v44 = vld [vmem:[#allocation55_spill] sm:$0xff] }
 0x1b5   :  { %12010 = vst [vmem:[#allocation149_spill] sm:$0xff] %v10062_v4  ;;  %v10069_v39 = vadd.f32 %v2818_v20, %v2585_v32  ;;  %v2588_v61 = vadd.f32 %v6755_v50, %v12014_v58  ;;  %7000 = vmatprep.mubr.msk.f32.mxu1 %vm391_vm2, %v12015_v40  ;;  %7098 = vmatprep.mubr.msk.f32.mxu0 %vm391_vm2, %v12016_v10  ;;  %v2828_v3 = vpop.f32.mrf.mxu0  ;;  %v12020_v32 = vld [vmem:[#allocation186_spill] sm:$0xff]  ;;  %v3107_v10 = vrot.slane %v9547_v53, 2 }
 0x1b6   :  { %v2356_v30 = vpop.f32.mrf.mxu1 }
 0x1b7   :  { %v10076_v54 = vadd.f32 %v6853_v49, %v2588_v61  ;;  %v2587_v4 = vadd.f32 %v2356_v30, %v12017_v63  ;;  %v6856_v59 = vpop.f32.mrf.mxu0  ;;  %v3106_v49 = vrot.slane %v9542_v43, 2  ;;  %v12023_v63 = vld [vmem:[#allocation187_spill] sm:$0xff] }
 0x1b8   :  { %v6758_v34 = vpop.f32.mrf.mxu1  ;;  %7001 = vmatmul.mubr.msk.f32.gmra.mxu1 %vm391_vm2, %v12018_v19  ;;  %7099 = vmatmul.mubr.msk.f32.gmra.mxu0 %vm391_vm2, %v9583_v12 }
 0x1b9   :  { %v10083_v50 = vadd.f32 %v2828_v3, %v2587_v4  ;;  %v2590_v20 = vadd.f32 %v6758_v34, %v12020_v32  ;;  %7003 = vmatprep.mubr.msk.f32.mxu1 %vm391_vm2, %v12021_v44  ;;  %7101 = vmatprep.mubr.msk.f32.mxu0 %vm391_vm2, %v9595_v55  ;;  %v2838_v61 = vpop.f32.mrf.mxu0  ;;  %v12026_v32 = vld [vmem:[#allocation60_spill] sm:$0xff] }
 0x1ba   :  { %v2366_v58 = vpop.f32.mrf.mxu1 }
 0x1bb   :  { %12019 = vst [vmem:[#allocation129_spill] sm:$0xff] %v10083_v50  ;;  %v10092_v30 = vadd.f32 %v6856_v59, %v2590_v20  ;;  %v2589_v12 = vadd.f32 %v2366_v58, %v12023_v63  ;;  %v6859_v3 = vpop.f32.mrf.mxu0  ;;  %v12024_v50 = vld [vmem:[#allocation56_spill] sm:$0xff]  ;;  %v12027_v59 = vld [vmem:[#allocation185_spill] sm:$0xff] }
 0x1bc   :  { %v6761_v4 = vpop.f32.mrf.mxu1  ;;  %7004 = vmatmul.mubr.msk.f32.gmra.mxu1 %vm391_vm2, %v12024_v50  ;;  %7102 = vmatmul.mubr.msk.f32.gmra.mxu0 %vm391_vm2, %v9611_v37  ;;  %v3109_v20 = vrot.slane %v12027_v59, 2  ;;  %v10113_v37 = vld [vmem:[%s11169_s0 + $0x348] sm:$0xff] }
 0x1bd   :  { %12022 = vst [vmem:[#allocation151_spill] sm:$0xff] %v10092_v30  ;;  %v10099_v34 = vadd.f32 %v2838_v61, %v2589_v12  ;;  %v2592_v55 = vadd.f32 %v6761_v4, %v9605_v35  ;;  %7006 = vmatprep.mubr.msk.f32.mxu1 %vm391_vm2, %v12026_v32  ;;  %7104 = vmatprep.mubr.msk.f32.mxu0 %vm391_vm2, %v9542_v43  ;;  %v2848_v63 = vpop.f32.mrf.mxu0 }
 0x1be   :  { %v2376_v58 = vpop.f32.mrf.mxu1  ;;  %v10108_v30 = vsel %vm520_vm0, %v3106_v49, %v3107_v10 }
 0x1bf   :  { %12025 = vst [vmem:[#allocation150_spill] sm:$0xff] %v10099_v34  ;;  %v10115_v61 = vadd.f32 %v6859_v3, %v2592_v55  ;;  %v2591_v35 = vadd.f32 %v2376_v58, %v9617_v11  ;;  %v6862_v4 = vpop.f32.mrf.mxu0  ;;  %v12028_v34 = vld [vmem:[#allocation62_spill] sm:$0xff]  ;;  %v10130_v11 = vsel %vm520_vm0, %v3107_v10, %v3109_v20  ;;  %v10135_v3 = vld [vmem:[%s11169_s0 + $0x350] sm:$0xff] }
 0x1c0   :  { %v6764_v12 = vpop.f32.mrf.mxu1  ;;  %7007 = vmatmul.mubr.msk.f32.gmra.mxu1 %vm391_vm2, %v12028_v34  ;;  %7105 = vmatmul.mubr.msk.f32.gmra.mxu0 %vm391_vm2, %v9547_v53  ;;  %12029 = vst [vmem:[#allocation152_spill] sm:$0xff] %v10130_v11 }
 0x1c1   :  { %v10122_v43 = vadd.f32 %v2848_v63, %v2591_v35  ;;  %v2594_v49 = vadd.f32 %v6764_v12, %v9627_v60  ;;  %7009 = vmatprep.mubr.msk.f32.mxu1 %vm391_vm2, %v10108_v30  ;;  %7107 = vmatprep.mubr.msk.f32.mxu0 %vm391_vm2, %v10113_v37  ;;  %v2858_v53 = vpop.f32.mrf.mxu0  ;;  %v12031_v35 = vld [vmem:[#allocation15_spill] sm:$0xff] }
 0x1c2   :  { %v2386_v55 = vpop.f32.mrf.mxu1 }
 0x1c3   :  { %v10137_v59 = vadd.f32 %v6862_v4, %v2594_v49  ;;  %v2593_v60 = vadd.f32 %v2386_v55, %v9634_v7  ;;  %v6865_v63 = vpop.f32.mrf.mxu0 }
 0x1c4   :  { %v6767_v58 = vpop.f32.mrf.mxu1  ;;  %7010 = vmatmul.mubr.msk.f32.gmra.mxu1 %vm391_vm2, %v10130_v11  ;;  %7108 = vmatmul.mubr.msk.f32.gmra.mxu0 %vm391_vm2, %v10135_v3  ;;  %v12032_v11 = vld [vmem:[#allocation19_spill] sm:$0xff] }
 0x1c5   :  { %12030 = vst [vmem:[#allocation154_spill] sm:$0xff] %v10137_v59  ;;  %v10144_v10 = vadd.f32 %v2858_v53, %v2593_v60  ;;  %v2596_v20 = vadd.f32 %v6767_v58, %v9641_v57  ;;  %7112 = vmatprep.mubr.msk.f32.mxu1 %vm391_vm2, %v12031_v35  ;;  %7210 = vmatprep.mubr.msk.f32.mxu0 %vm391_vm2, %v8350_v52  ;;  %v2868_v7 = vpop.f32.mrf.mxu0  ;;  %v12033_v60 = vld [vmem:[#allocation24_spill] sm:$0xff] }
 0x1c6   :  { %v2396_v12 = vpop.f32.mrf.mxu1  ;;  %v12034_v35 = vld [vmem:[#allocation28_spill] sm:$0xff] }
 0x1c7   :  { %v10151_v4 = vadd.f32 %v6865_v63, %v2596_v20  ;;  %v2595_v49 = vadd.f32 %v2396_v12, %v9648_v23  ;;  %v6868_v59 = vpop.f32.mrf.mxu0  ;;  %v12035_v12 = vld [vmem:[#allocation31_spill] sm:$0xff] }
 0x1c8   :  { %v6770_v55 = vpop.f32.mrf.mxu1  ;;  %7113 = vmatmul.mubr.msk.f32.vlgmr.msra.gmra.mxu1 %vm391_vm2, %v12032_v11  ;;  %7211 = vmatmul.mubr.msk.f32.vlgmr.msra.gmra.mxu0 %vm391_vm2, %v8367_v16 }
 0x1c9   :  { %v10158_v57 = vadd.f32 %v2868_v7, %v2595_v49  ;;  %v2598_v53 = vadd.f32 %v6770_v55, %v9659_v26  ;;  %7115 = vmatprep.mubr.msk.f32.mxu1 %vm391_vm2, %v12033_v60  ;;  %7213 = vmatprep.mubr.msk.f32.mxu0 %vm391_vm2, %v8371_v5  ;;  %v2878_v23 = vpop.f32.mrf.mxu0  ;;  %v12037_v60 = vld [vmem:[#allocation38_spill] sm:$0xff] }
 0x1ca   :  { %v2406_v52 = vpop.f32.mrf.mxu1 }
 0x1cb   :  { %v10165_v58 = vadd.f32 %v6868_v59, %v2598_v53  ;;  %v2597_v63 = vadd.f32 %v2406_v52, %v9666_v28  ;;  %v6871_v20 = vpop.f32.mrf.mxu0  ;;  %v12036_v53 = vld [vmem:[#allocation36_spill] sm:$0xff] }
 0x1cc   :  { %v6773_v11 = vpop.f32.mrf.mxu1  ;;  %7116 = vmatmul.mubr.msk.f32.gmra.mxu1 %vm391_vm2, %v12034_v35  ;;  %7214 = vmatmul.mubr.msk.f32.gmra.mxu0 %vm391_vm2, %v8384_v31  ;;  %v12040_v35 = vld [vmem:[#allocation63_spill] sm:$0xff] }
 0x1cd   :  { %v10172_v16 = vadd.f32 %v2878_v23, %v2597_v63  ;;  %v2600_v26 = vadd.f32 %v6773_v11, %v9673_v48  ;;  %7118 = vmatprep.mubr.msk.f32.mxu1 %vm391_vm2, %v12035_v12  ;;  %7216 = vmatprep.mubr.msk.f32.mxu0 %vm391_vm2, %v11860_v33  ;;  %v2888_v28 = vpop.f32.mrf.mxu0  ;;  %v12041_v12 = vld [vmem:[#allocation45_spill] sm:$0xff] }
 0x1ce   :  { %v2416_v5 = vpop.f32.mrf.mxu1 }
 0x1cf   :  { %v10179_v59 = vadd.f32 %v6871_v20, %v2600_v26  ;;  %v2599_v7 = vadd.f32 %v2416_v5, %v9680_v0  ;;  %v6874_v55 = vpop.f32.mrf.mxu0  ;;  %v12038_v20 = vld [vmem:[#allocation43_spill] sm:$0xff] }
 0x1d0   :  { %v6776_v49 = vpop.f32.mrf.mxu1  ;;  %7119 = vmatmul.mubr.msk.f32.gmra.mxu1 %vm391_vm2, %v12036_v53  ;;  %7217 = vmatmul.mubr.msk.f32.gmra.mxu0 %vm391_vm2, %v11863_v41  ;;  %v12039_v41 = vld [vmem:[#allocation115_spill] sm:$0xff] }
 0x1d1   :  { %v10186_v31 = vadd.f32 %v2888_v28, %v2599_v7  ;;  %v2602_v48 = vadd.f32 %v6776_v49, %v9687_v6  ;;  %7121 = vmatprep.mubr.msk.f32.mxu1 %vm391_vm2, %v12037_v60  ;;  %7219 = vmatprep.mubr.msk.f32.mxu0 %vm391_vm2, %v11866_v2  ;;  %v2898_v0 = vpop.f32.mrf.mxu0  ;;  %v12042_v2 = vld [vmem:[#allocation116_spill] sm:$0xff]  ;;  %v12045_v60 = vld [vmem:[#allocation117_spill] sm:$0xff] }
 0x1d2   :  { %v2426_v33 = vpop.f32.mrf.mxu1  ;;  %v12043_v7 = vld [vmem:[#allocation112_spill] sm:$0xff] }
 0x1d3   :  { %v10193_v52 = vadd.f32 %v6874_v55, %v2602_v48  ;;  %v2601_v23 = vadd.f32 %v2426_v33, %v9694_v27  ;;  %v6877_v11 = vpop.f32.mrf.mxu0  ;;  %v12044_v48 = vld [vmem:[#allocation50_spill] sm:$0xff] }
 0x1d4   :  { %v6779_v63 = vpop.f32.mrf.mxu1  ;;  %7122 = vmatmul.mubr.msk.f32.gmra.mxu1 %vm391_vm2, %v12038_v20  ;;  %7220 = vmatmul.mubr.msk.f32.gmra.mxu0 %vm391_vm2, %v12039_v41  ;;  %v12049_v20 = vld [vmem:[#allocation118_spill] sm:$0xff] }
 0x1d5   :  { %v10200_v6 = vadd.f32 %v2898_v0, %v2601_v23  ;;  %v2604_v26 = vadd.f32 %v6779_v63, %v12040_v35  ;;  %7124 = vmatprep.mubr.msk.f32.mxu1 %vm391_vm2, %v12041_v12  ;;  %7222 = vmatprep.mubr.msk.f32.mxu0 %vm391_vm2, %v12042_v2  ;;  %v2908_v27 = vpop.f32.mrf.mxu0  ;;  %v12047_v0 = vld [vmem:[#allocation70_spill] sm:$0xff]  ;;  %v12048_v63 = vld [vmem:[#allocation52_spill] sm:$0xff] }
 0x1d6   :  { %v2436_v5 = vpop.f32.mrf.mxu1 }
 0x1d7   :  { %v10207_v28 = vadd.f32 %v6877_v11, %v2604_v26  ;;  %v2603_v49 = vadd.f32 %v2436_v5, %v12043_v7  ;;  %v6880_v53 = vpop.f32.mrf.mxu0  ;;  %v12051_v26 = vld [vmem:[#allocation68_spill] sm:$0xff]  ;;  %v12052_v7 = vld [vmem:[#allocation57_spill] sm:$0xff] }
 0x1d8   :  { %v6782_v55 = vpop.f32.mrf.mxu1  ;;  %7125 = vmatmul.mubr.msk.f32.gmra.mxu1 %vm391_vm2, %v12044_v48  ;;  %7223 = vmatmul.mubr.msk.f32.gmra.mxu0 %vm391_vm2, %v12045_v60  ;;  %v12056_v60 = vld [vmem:[#allocation59_spill] sm:$0xff] }
 0x1d9   :  { %v10214_v33 = vadd.f32 %v2908_v27, %v2603_v49  ;;  %v2606_v23 = vadd.f32 %v6782_v55, %v12047_v0  ;;  %7127 = vmatprep.mubr.msk.f32.mxu1 %vm391_vm2, %v12048_v63  ;;  %7225 = vmatprep.mubr.msk.f32.mxu0 %vm391_vm2, %v12049_v20  ;;  %v2918_v41 = vpop.f32.mrf.mxu0  ;;  %v12053_v27 = vld [vmem:[#allocation119_spill] sm:$0xff]  ;;  %v12055_v55 = vld [vmem:[#allocation113_spill] sm:$0xff]  ;;  %v12057_v0 = vld [vmem:[#allocation120_spill] sm:$0xff] }
 0x1da   :  { %v2446_v11 = vpop.f32.mrf.mxu1  ;;  %v12059_v20 = vld [vmem:[#allocation77_spill] sm:$0xff] }
 0x1db   :  { %12046 = vst [vmem:[#allocation156_spill] sm:$0xff] %v10214_v33  ;;  %v10221_v35 = vadd.f32 %v6880_v53, %v2606_v23  ;;  %v2605_v12 = vadd.f32 %v2446_v11, %v12051_v26  ;;  %v6883_v5 = vpop.f32.mrf.mxu0  ;;  %v12119_v33 = vld [vmem:[#allocation153_spill] sm:$0xff] }
 0x1dc   :  { %v6785_v2 = vpop.f32.mrf.mxu1  ;;  %7128 = vmatmul.mubr.msk.f32.gmra.mxu1 %vm391_vm2, %v12052_v7  ;;  %7226 = vmatmul.mubr.msk.f32.gmra.mxu0 %vm391_vm2, %v12053_v27 }
 0x1dd   :  { %12050 = vst [vmem:[#allocation157_spill] sm:$0xff] %v10221_v35  ;;  %v10228_v49 = vadd.f32 %v2918_v41, %v2605_v12  ;;  %v2608_v48 = vadd.f32 %v6785_v2, %v12055_v55  ;;  %7130 = vmatprep.mubr.msk.f32.mxu1 %vm391_vm2, %v12056_v60  ;;  %7228 = vmatprep.mubr.msk.f32.mxu0 %vm391_vm2, %v12057_v0  ;;  %v2928_v23 = vpop.f32.mrf.mxu0  ;;  %v12060_v35 = vld [vmem:[#allocation64_spill] sm:$0xff]  ;;  %v12061_v41 = vld [vmem:[#allocation121_spill] sm:$0xff]  ;;  %v12064_v55 = vld [vmem:[#allocation66_spill] sm:$0xff] }
 0x1de   :  { %v2456_v53 = vpop.f32.mrf.mxu1  ;;  %v12063_v2 = vld [vmem:[#allocation69_spill] sm:$0xff]  ;;  %v12065_v60 = vld [vmem:[#allocation122_spill] sm:$0xff] }
 0x1df   :  { %12054 = vst [vmem:[#allocation3_spill] sm:$0xff] %v10228_v49  ;;  %v10235_v63 = vadd.f32 %v6883_v5, %v2608_v48  ;;  %v2607_v11 = vadd.f32 %v2456_v53, %v12059_v20  ;;  %v6886_v7 = vpop.f32.mrf.mxu0  ;;  %v12067_v53 = vld [vmem:[#allocation114_spill] sm:$0xff]  ;;  %v12068_v49 = vld [vmem:[#allocation71_spill] sm:$0xff] }
 0x1e0   :  { %v6788_v26 = vpop.f32.mrf.mxu1  ;;  %7131 = vmatmul.mubr.msk.f32.gmra.mxu1 %vm391_vm2, %v12060_v35  ;;  %7229 = vmatmul.mubr.msk.f32.gmra.mxu0 %vm391_vm2, %v12061_v41 }
 0x1e1   :  { %12058 = vst [vmem:[#allocation11_spill] sm:$0xff] %v10235_v63  ;;  %v10242_v12 = vadd.f32 %v2928_v23, %v2607_v11  ;;  %v2610_v27 = vadd.f32 %v6788_v26, %v12063_v2  ;;  %7133 = vmatprep.mubr.msk.f32.mxu1 %vm391_vm2, %v12064_v55  ;;  %7231 = vmatprep.mubr.msk.f32.mxu0 %vm391_vm2, %v12065_v60  ;;  %v2938_v48 = vpop.f32.mrf.mxu0  ;;  %v12069_v23 = vld [vmem:[#allocation123_spill] sm:$0xff]  ;;  %v12071_v26 = vld [vmem:[#allocation82_spill] sm:$0xff]  ;;  %v12072_v2 = vld [vmem:[#allocation73_spill] sm:$0xff] }
 0x1e2   :  { %v2466_v5 = vpop.f32.mrf.mxu1  ;;  %v12073_v55 = vld [vmem:[#allocation124_spill] sm:$0xff] }
 0x1e3   :  { %12062 = vst [vmem:[#allocation4_spill] sm:$0xff] %v10242_v12  ;;  %v10249_v0 = vadd.f32 %v6886_v7, %v2610_v27  ;;  %v2609_v20 = vadd.f32 %v2466_v5, %v12067_v53  ;;  %v6889_v63 = vpop.f32.mrf.mxu0  ;;  %v12075_v5 = vld [vmem:[#allocation74_spill] sm:$0xff] }
 0x1e4   :  { %v6791_v35 = vpop.f32.mrf.mxu1  ;;  %7134 = vmatmul.mubr.msk.f32.gmra.mxu1 %vm391_vm2, %v12068_v49  ;;  %7232 = vmatmul.mubr.msk.f32.gmra.mxu0 %vm391_vm2, %v12069_v23  ;;  %v12076_v12 = vld [vmem:[#allocation78_spill] sm:$0xff] }
 0x1e5   :  { %12066 = vst [vmem:[#allocation158_spill] sm:$0xff] %v10249_v0  ;;  %v10256_v11 = vadd.f32 %v2938_v48, %v2609_v20  ;;  %v2612_v41 = vadd.f32 %v6791_v35, %v12071_v26  ;;  %7136 = vmatprep.mubr.msk.f32.mxu1 %vm391_vm2, %v12072_v2  ;;  %7234 = vmatprep.mubr.msk.f32.mxu0 %vm391_vm2, %v12073_v55  ;;  %v2948_v27 = vpop.f32.mrf.mxu0  ;;  %v12077_v48 = vld [vmem:[#allocation125_spill] sm:$0xff]  ;;  %v12079_v35 = vld [vmem:[#allocation90_spill] sm:$0xff]  ;;  %v12080_v26 = vld [vmem:[#allocation80_spill] sm:$0xff] }
 0x1e6   :  { %v2476_v7 = vpop.f32.mrf.mxu1  ;;  %v12081_v2 = vld [vmem:[#allocation126_spill] sm:$0xff] }
 0x1e7   :  { %12070 = vst [vmem:[#allocation13_spill] sm:$0xff] %v10256_v11  ;;  %v10263_v60 = vadd.f32 %v6889_v63, %v2612_v41  ;;  %v2611_v53 = vadd.f32 %v2476_v7, %v12075_v5  ;;  %v6892_v0 = vpop.f32.mrf.mxu0  ;;  %v12083_v7 = vld [vmem:[#allocation76_spill] sm:$0xff]  ;;  %v12084_v11 = vld [vmem:[#allocation86_spill] sm:$0xff] }
 0x1e8   :  { %v6794_v49 = vpop.f32.mrf.mxu1  ;;  %7137 = vmatmul.mubr.msk.f32.gmra.mxu1 %vm391_vm2, %v12076_v12  ;;  %7235 = vmatmul.mubr.msk.f32.gmra.mxu0 %vm391_vm2, %v12077_v48 }
 0x1e9   :  { %12074 = vst [vmem:[#allocation5_spill] sm:$0xff] %v10263_v60  ;;  %v10270_v20 = vadd.f32 %v2948_v27, %v2611_v53  ;;  %v2614_v23 = vadd.f32 %v6794_v49, %v12079_v35  ;;  %7139 = vmatprep.mubr.msk.f32.mxu1 %vm391_vm2, %v12080_v26  ;;  %7237 = vmatprep.mubr.msk.f32.mxu0 %vm391_vm2, %v12081_v2  ;;  %v2958_v41 = vpop.f32.mrf.mxu0  ;;  %v12085_v27 = vld [vmem:[#allocation127_spill] sm:$0xff]  ;;  %v12087_v49 = vld [vmem:[#allocation94_spill] sm:$0xff]  ;;  %v12088_v35 = vld [vmem:[#allocation89_spill] sm:$0xff] }
 0x1ea   :  { %v2486_v63 = vpop.f32.mrf.mxu1  ;;  %v12089_v26 = vld [vmem:[#allocation128_spill] sm:$0xff] }
 0x1eb   :  { %12078 = vst [vmem:[#allocation160_spill] sm:$0xff] %v10270_v20  ;;  %v10277_v55 = vadd.f32 %v6892_v0, %v2614_v23  ;;  %v2613_v5 = vadd.f32 %v2486_v63, %v12083_v7  ;;  %v6895_v60 = vpop.f32.mrf.mxu0  ;;  %v12091_v63 = vld [vmem:[#allocation84_spill] sm:$0xff] }
 0x1ec   :  { %v6797_v12 = vpop.f32.mrf.mxu1  ;;  %7140 = vmatmul.mubr.msk.f32.gmra.mxu1 %vm391_vm2, %v12084_v11  ;;  %7238 = vmatmul.mubr.msk.f32.gmra.mxu0 %vm391_vm2, %v12085_v27  ;;  %v12092_v20 = vld [vmem:[#allocation96_spill] sm:$0xff] }
 0x1ed   :  { %12082 = vst [vmem:[#allocation159_spill] sm:$0xff] %v10277_v55  ;;  %v10284_v53 = vadd.f32 %v2958_v41, %v2613_v5  ;;  %v2616_v48 = vadd.f32 %v6797_v12, %v12087_v49  ;;  %7142 = vmatprep.mubr.msk.f32.mxu1 %vm391_vm2, %v12088_v35  ;;  %7240 = vmatprep.mubr.msk.f32.mxu0 %vm391_vm2, %v12089_v26  ;;  %v2968_v23 = vpop.f32.mrf.mxu0  ;;  %v12093_v41 = vld [vmem:[#allocation83_spill] sm:$0xff]  ;;  %v12095_v12 = vld [vmem:[#allocation101_spill] sm:$0xff]  ;;  %v12096_v49 = vld [vmem:[#allocation98_spill] sm:$0xff] }
 0x1ee   :  { %v2496_v0 = vpop.f32.mrf.mxu1  ;;  %v12097_v35 = vld [vmem:[#allocation88_spill] sm:$0xff] }
 0x1ef   :  { %12086 = vst [vmem:[#allocation7_spill] sm:$0xff] %v10284_v53  ;;  %v10291_v2 = vadd.f32 %v6895_v60, %v2616_v48  ;;  %v2615_v7 = vadd.f32 %v2496_v0, %v12091_v63  ;;  %v6898_v55 = vpop.f32.mrf.mxu0  ;;  %v12099_v0 = vld [vmem:[#allocation85_spill] sm:$0xff]  ;;  %v12100_v53 = vld [vmem:[#allocation102_spill] sm:$0xff] }
 0x1f0   :  { %v6800_v11 = vpop.f32.mrf.mxu1  ;;  %7143 = vmatmul.mubr.msk.f32.gmra.mxu1 %vm391_vm2, %v12092_v20  ;;  %7241 = vmatmul.mubr.msk.f32.gmra.mxu0 %vm391_vm2, %v12093_v41 }
 0x1f1   :  { %12090 = vst [vmem:[#allocation162_spill] sm:$0xff] %v10291_v2  ;;  %v10298_v5 = vadd.f32 %v2968_v23, %v2615_v7  ;;  %v2618_v27 = vadd.f32 %v6800_v11, %v12095_v12  ;;  %7145 = vmatprep.mubr.msk.f32.mxu1 %vm391_vm2, %v12096_v49  ;;  %7243 = vmatprep.mubr.msk.f32.mxu0 %vm391_vm2, %v12097_v35  ;;  %v2978_v48 = vpop.f32.mrf.mxu0  ;;  %v12101_v23 = vld [vmem:[#allocation92_spill] sm:$0xff]  ;;  %v12103_v11 = vld [vmem:[#allocation9_spill] sm:$0xff] }
 0x1f2   :  { %v2506_v60 = vpop.f32.mrf.mxu1  ;;  %v12104_v12 = vld [vmem:[#allocation104_spill] sm:$0xff]  ;;  %v12105_v49 = vld [vmem:[#allocation93_spill] sm:$0xff] }
 0x1f3   :  { %12094 = vst [vmem:[#allocation161_spill] sm:$0xff] %v10298_v5  ;;  %v10305_v26 = vadd.f32 %v6898_v55, %v2618_v27  ;;  %v2617_v63 = vadd.f32 %v2506_v60, %v12099_v0  ;;  %v6901_v2 = vpop.f32.mrf.mxu0  ;;  %v12107_v60 = vld [vmem:[#allocation95_spill] sm:$0xff]  ;;  %v12108_v5 = vld [vmem:[#allocation106_spill] sm:$0xff] }
 0x1f4   :  { %v6803_v20 = vpop.f32.mrf.mxu1  ;;  %7146 = vmatmul.mubr.msk.f32.gmra.mxu1 %vm391_vm2, %v12100_v53  ;;  %7244 = vmatmul.mubr.msk.f32.gmra.mxu0 %vm391_vm2, %v12101_v23  ;;  %v12111_v23 = vld [vmem:[#allocation108_spill] sm:$0xff] }
 0x1f5   :  { %12098 = vst [vmem:[#allocation10_spill] sm:$0xff] %v10305_v26  ;;  %v10312_v7 = vadd.f32 %v2978_v48, %v2617_v63  ;;  %v2620_v41 = vadd.f32 %v6803_v20, %v12103_v11  ;;  %7148 = vmatprep.mubr.msk.f32.mxu1 %vm391_vm2, %v12104_v12  ;;  %7246 = vmatprep.mubr.msk.f32.mxu0 %vm391_vm2, %v12105_v49  ;;  %v2988_v27 = vpop.f32.mrf.mxu0  ;;  %v12110_v63 = vld [vmem:[#allocation132_spill] sm:$0xff]  ;;  %v12112_v11 = vld [vmem:[#allocation130_spill] sm:$0xff]  ;;  %v4038_v49 = vrot.slane %v9892_v13, 1 }
 0x1f6   :  { %v2516_v55 = vpop.f32.mrf.mxu1 }
 0x1f7   :  { %12102 = vst [vmem:[#allocation164_spill] sm:$0xff] %v10312_v7  ;;  %v10319_v35 = vadd.f32 %v6901_v2, %v2620_v41  ;;  %v2619_v0 = vadd.f32 %v2516_v55, %v12107_v60  ;;  %v70_v2 = vld [vmem:[%s11169_s0 + $0x1a8] sm:$0x3]  ;;  %v4037_v41 = vrot.slane %v9870_v21, 1  ;;  %v4508_v55 = vrot.slane %v9892_v13, 2  ;;  %v12114_v60 = vld [vmem:[#allocation100_spill] sm:$0xff] }
 0x1f8   :  { %v6806_v53 = vpop.f32.mrf.mxu1  ;;  %v6904_v26 = vpop.f32.mrf.mxu0  ;;  %7149 = vmatmul.mubr.msk.f32.gmra.mxu1 %vm391_vm2, %v12108_v5  ;;  %7247 = vmatmul.mubr.msk.f32.gmra.mxu0 %vm391_vm2, %v11935_v9  ;;  %v4507_v5 = vrot.slane %v9870_v21, 2  ;;  %v12120_v13 = vld [vmem:[#allocation133_spill] sm:$0xff] }
 0x1f9   :  { %12106 = vst [vmem:[#allocation163_spill] sm:$0xff] %v10319_v35  ;;  %v10326_v48 = vadd.f32 %v2988_v27, %v2619_v0  ;;  %v2622_v20 = vadd.f32 %v6806_v53, %v12110_v63  ;;  %7151 = vmatprep.mubr.msk.f32.mxu1 %vm391_vm2, %v12111_v23  ;;  %7249 = vmatprep.mubr.msk.f32.mxu0 %vm391_vm2, %v12112_v11  ;;  %v12115_v23 = vld [vmem:[#allocation110_spill] sm:$0xff]  ;;  %v12118_v35 = vld [vmem:[#allocation12_spill] sm:$0xff] }
 0x1fa   :  { %v2526_v12 = vpop.f32.mrf.mxu1  ;;  %v2998_v9 = vpop.f32.mrf.mxu0  ;;  %v12116_v11 = vld [vmem:[#allocation2_spill] sm:$0xff] }
 0x1fb   :  { %12109 = vst [vmem:[#allocation16_spill] sm:$0xff] %v10326_v48  ;;  %v10340_v27 = vadd.f32 %v6904_v26, %v2622_v20  ;;  %v2621_v0 = vadd.f32 %v2526_v12, %v12114_v60  ;;  %v4040_v48 = vrot.slane %v70_v2, 1  ;;  %v4510_v26 = vrot.slane %v70_v2, 2 }
 0x1fc   :  { %v6809_v53 = vpop.f32.mrf.mxu1  ;;  %v6907_v63 = vpop.f32.mrf.mxu0  ;;  %7152 = vmatmul.mubr.msk.f32.gmra.mxu1 %vm391_vm2, %v12115_v23  ;;  %7250 = vmatmul.mubr.msk.f32.gmra.mxu0 %vm391_vm2, %v12116_v11  ;;  %v4039_v60 = vsel %vm230_vm1, %v4037_v41, %v4038_v49  ;;  %v4509_v23 = vsel %vm520_vm0, %v4507_v5, %v4508_v55  ;;  %v12121_v11 = vld [vmem:[#allocation136_spill] sm:$0xff] }
 0x1fd   :  { %12113 = vst [vmem:[#allocation166_spill] sm:$0xff] %v10340_v27  ;;  %v10347_v21 = vadd.f32 %v2998_v9, %v2621_v0  ;;  %v2624_v7 = vadd.f32 %v6809_v53, %v12118_v35  ;;  %7154 = vmatprep.mubr.msk.f32.mxu1 %vm391_vm2, %v12119_v33  ;;  %7252 = vmatprep.mubr.msk.f32.mxu0 %vm391_vm2, %v12120_v13  ;;  %v12122_v35 = vld [vmem:[#allocation155_spill] sm:$0xff]  ;;  %v12124_v13 = vld [vmem:[#allocation137_spill] sm:$0xff] }
 0x1fe   :  { %v2536_v20 = vpop.f32.mrf.mxu1  ;;  %v3008_v12 = vpop.f32.mrf.mxu0  ;;  %v12123_v33 = vld [vmem:[#allocation131_spill] sm:$0xff]  ;;  %v4041_v2 = vsel %vm230_vm1, %v4038_v49, %v4040_v48  ;;  %v12125_v49 = vld [vmem:[#allocation134_spill] sm:$0xff] }
 0x1ff   :  { %12117 = vst [vmem:[#allocation165_spill] sm:$0xff] %v10347_v21  ;;  %v10356_v27 = vadd.f32 %v6907_v63, %v2624_v7  ;;  %v2623_v9 = vadd.f32 %v2536_v20, %v12121_v11  ;;  %v4511_v7 = vsel %vm520_vm0, %v4508_v55, %v4510_v26 }
 0x200   :  { %v6812_v0 = vpop.f32.mrf.mxu1  ;;  %v6910_v21 = vpop.f32.mrf.mxu0  ;;  %7155 = vmatmul.mubr.msk.f32.gmra.mxu1 %vm391_vm2, %v12122_v35  ;;  %7253 = vmatmul.mubr.msk.f32.gmra.mxu0 %vm391_vm2, %v12123_v33 }
 0x201   :  { %v10364_v53 = vadd.f32 %v3008_v12, %v2623_v9  ;;  %v2626_v41 = vadd.f32 %v6812_v0, %v12124_v13  ;;  %7157 = vmatprep.mubr.msk.f32.mxu1 %vm391_vm2, %v4039_v60  ;;  %7255 = vmatprep.mubr.msk.f32.mxu0 %vm391_vm2, %v4509_v23  ;;  %v12126_v60 = vld [vmem:[#allocation18_spill] sm:$0xff]  ;;  %v12127_v0 = vld [vmem:[#allocation20_spill] sm:$0xff] }
 0x202   :  { %v2546_v5 = vpop.f32.mrf.mxu1  ;;  %v3018_v63 = vpop.f32.mrf.mxu0 }
 0x203   :  { %v10370_v20 = vadd.f32 %v6910_v21, %v2626_v41  ;;  %v2625_v11 = vadd.f32 %v2546_v5, %v9901_v42  ;;  %v12129_v41 = vld [vmem:[#allocation140_spill] sm:$0xff]  ;;  %v12130_v5 = vld [vmem:[#allocation25_spill] sm:$0xff] }
 0x204   :  { %v6815_v35 = vpop.f32.mrf.mxu1  ;;  %v6913_v33 = vpop.f32.mrf.mxu0  ;;  %7158 = vmatmul.mubr.msk.f32.gmra.mxu1 %vm391_vm2, %v4041_v2  ;;  %7256 = vmatmul.mubr.msk.f32.gmra.mxu0 %vm391_vm2, %v4511_v7  ;;  %v12128_v2 = vld [vmem:[#allocation6_spill] sm:$0xff] }
 0x205   :  { %v10375_v48 = vadd.f32 %v3018_v63, %v2625_v11  ;;  %v2628_v12 = vadd.f32 %v6815_v35, %v12125_v49  ;;  %7160 = vmatprep.mubr.msk.f32.mxu1 %vm391_vm2, %v12126_v60  ;;  %7258 = vmatprep.mubr.msk.f32.mxu0 %vm391_vm2, %v11956_v62  ;;  %v12131_v49 = vld [vmem:[#allocation30_spill] sm:$0xff] }
 0x206   :  { %v2556_v55 = vpop.f32.mrf.mxu1  ;;  %v3028_v21 = vpop.f32.mrf.mxu0 }
 0x207   :  { %v10382_v26 = vadd.f32 %v6913_v33, %v2628_v12  ;;  %v2627_v42 = vadd.f32 %v2556_v55, %v9915_v8  ;;  %v12132_v12 = vld [vmem:[#allocation8_spill] sm:$0xff]  ;;  %v12133_v55 = vld [vmem:[#allocation135_spill] sm:$0xff] }
 0x208   :  { %v6918_v23 = vpop.f32.mrf.mxu1  ;;  %v7016_v9 = vpop.f32.mrf.mxu0  ;;  %7161 = vmatmul.mubr.msk.f32.gmra.mxu1 %vm391_vm2, %v12127_v0  ;;  %7259 = vmatmul.mubr.msk.f32.gmra.mxu0 %vm391_vm2, %v12128_v2 }
 0x209   :  { %v10389_v13 = vadd.f32 %v3028_v21, %v2627_v42  ;;  %v3508_v7 = vadd.f32 %v6918_v23, %v12129_v41  ;;  %7163 = vmatprep.mubr.msk.f32.mxu1 %vm391_vm2, %v12130_v5  ;;  %7261 = vmatprep.mubr.msk.f32.mxu0 %vm391_vm2, %v11961_v24  ;;  %v12134_v42 = vld [vmem:[#allocation32_spill] sm:$0xff]  ;;  %v12135_v41 = vld [vmem:[#allocation37_spill] sm:$0xff] }
 0x20a   :  { %v3188_v62 = vpop.f32.mrf.mxu1  ;;  %v3652_v8 = vpop.f32.mrf.mxu0 }
 0x20b   :  { %v10396_v63 = vadd.f32 %v7016_v9, %v3508_v7  ;;  %v3507_v11 = vadd.f32 %v3188_v62, %v9929_v56  ;;  %v12136_v7 = vld [vmem:[#allocation14_spill] sm:$0xff] }
 0x20c   :  { %v6921_v35 = vpop.f32.mrf.mxu1  ;;  %v7019_v33 = vpop.f32.mrf.mxu0  ;;  %7164 = vmatmul.mubr.msk.f32.gmra.mxu1 %vm391_vm2, %v12131_v49  ;;  %7262 = vmatmul.mubr.msk.f32.gmra.mxu0 %vm391_vm2, %v12132_v12  ;;  %v12137_v62 = vld [vmem:[#allocation138_spill] sm:$0xff] }
 0x20d   :  { %v10403_v60 = vadd.f32 %v3652_v8, %v3507_v11  ;;  %v3510_v21 = vadd.f32 %v6921_v35, %v12133_v55  ;;  %7166 = vmatprep.mubr.msk.f32.mxu1 %vm391_vm2, %v12134_v42  ;;  %7264 = vmatprep.mubr.msk.f32.mxu0 %vm391_vm2, %v11966_v25  ;;  %v12138_v11 = vld [vmem:[#allocation39_spill] sm:$0xff]  ;;  %v12139_v55 = vld [vmem:[#allocation44_spill] sm:$0xff] }
 0x20e   :  { %v3198_v24 = vpop.f32.mrf.mxu1  ;;  %v3662_v56 = vpop.f32.mrf.mxu0 }
 0x20f   :  { %v10410_v23 = vadd.f32 %v7019_v33, %v3510_v21  ;;  %v3509_v9 = vadd.f32 %v3198_v24, %v9943_v22  ;;  %v12140_v21 = vld [vmem:[#allocation17_spill] sm:$0xff]  ;;  %v12141_v24 = vld [vmem:[#allocation139_spill] sm:$0xff] }
 0x210   :  { %v6924_v0 = vpop.f32.mrf.mxu1  ;;  %v7022_v2 = vpop.f32.mrf.mxu0  ;;  %7167 = vmatmul.mubr.msk.f32.gmra.mxu1 %vm391_vm2, %v12135_v41  ;;  %7265 = vmatmul.mubr.msk.f32.gmra.mxu0 %vm391_vm2, %v12136_v7 }
 0x211   :  { %v10417_v5 = vadd.f32 %v3662_v56, %v3509_v9  ;;  %v3512_v8 = vadd.f32 %v6924_v0, %v12137_v62  ;;  %7169 = vmatprep.mubr.msk.f32.mxu1 %vm391_vm2, %v12138_v11  ;;  %7267 = vmatprep.mubr.msk.f32.mxu0 %vm391_vm2, %v11971_v18  ;;  %v12142_v9 = vld [vmem:[#allocation46_spill] sm:$0xff]  ;;  %v12143_v62 = vld [vmem:[#allocation51_spill] sm:$0xff] }
 0x212   :  { %v3208_v25 = vpop.f32.mrf.mxu1  ;;  %v3672_v22 = vpop.f32.mrf.mxu0 }
 0x213   :  { %v10424_v35 = vadd.f32 %v7022_v2, %v3512_v8  ;;  %v3511_v33 = vadd.f32 %v3208_v25, %v9957_v15  ;;  %v12144_v8 = vld [vmem:[#allocation22_spill] sm:$0xff]  ;;  %v12145_v25 = vld [vmem:[#allocation141_spill] sm:$0xff] }
 0x214   :  { %v6927_v49 = vpop.f32.mrf.mxu1  ;;  %v7025_v12 = vpop.f32.mrf.mxu0  ;;  %7170 = vmatmul.mubr.msk.f32.gmra.mxu1 %vm391_vm2, %v12139_v55  ;;  %7268 = vmatmul.mubr.msk.f32.gmra.mxu0 %vm391_vm2, %v12140_v21 }
 0x215   :  { %v10431_v42 = vadd.f32 %v3672_v22, %v3511_v33  ;;  %v3514_v56 = vadd.f32 %v6927_v49, %v12141_v24  ;;  %7172 = vmatprep.mubr.msk.f32.mxu1 %vm391_vm2, %v12142_v9  ;;  %7270 = vmatprep.mubr.msk.f32.mxu0 %vm391_vm2, %v11976_v51  ;;  %v12146_v33 = vld [vmem:[#allocation53_spill] sm:$0xff]  ;;  %v12147_v24 = vld [vmem:[#allocation58_spill] sm:$0xff] }
 0x216   :  { %v3218_v18 = vpop.f32.mrf.mxu1  ;;  %v3682_v15 = vpop.f32.mrf.mxu0 }
 0x217   :  { %v10438_v0 = vadd.f32 %v7025_v12, %v3514_v56  ;;  %v3513_v2 = vadd.f32 %v3218_v18, %v9971_v38  ;;  %v12148_v56 = vld [vmem:[#allocation26_spill] sm:$0xff] }
 0x218   :  { %v6930_v41 = vpop.f32.mrf.mxu1  ;;  %v7028_v7 = vpop.f32.mrf.mxu0  ;;  %7173 = vmatmul.mubr.msk.f32.gmra.mxu1 %vm391_vm2, %v12143_v62  ;;  %7271 = vmatmul.mubr.msk.f32.gmra.mxu0 %vm391_vm2, %v12144_v8  ;;  %v12149_v18 = vld [vmem:[#allocation142_spill] sm:$0xff] }
 0x219   :  { %v10445_v11 = vadd.f32 %v3682_v15, %v3513_v2  ;;  %v3516_v22 = vadd.f32 %v6930_v41, %v12145_v25  ;;  %7175 = vmatprep.mubr.msk.f32.mxu1 %vm391_vm2, %v12146_v33  ;;  %7273 = vmatprep.mubr.msk.f32.mxu0 %vm391_vm2, %v11981_v45  ;;  %v12150_v2 = vld [vmem:[#allocation61_spill] sm:$0xff] }
 0x21a   :  { %v3228_v51 = vpop.f32.mrf.mxu1  ;;  %v3692_v38 = vpop.f32.mrf.mxu0  ;;  %v12151_v25 = vld [vmem:[#allocation65_spill] sm:$0xff] }
 0x21b   :  { %v10452_v49 = vadd.f32 %v7028_v7, %v3516_v22  ;;  %v3515_v12 = vadd.f32 %v3228_v51, %v9985_v29  ;;  %v12152_v22 = vld [vmem:[#allocation29_spill] sm:$0xff]  ;;  %v12153_v51 = vld [vmem:[#allocation143_spill] sm:$0xff] }
 0x21c   :  { %v6933_v55 = vpop.f32.mrf.mxu1  ;;  %v7031_v21 = vpop.f32.mrf.mxu0  ;;  %7176 = vmatmul.mubr.msk.f32.gmra.mxu1 %vm391_vm2, %v12147_v24  ;;  %7274 = vmatmul.mubr.msk.f32.gmra.mxu0 %vm391_vm2, %v12148_v56 }
 0x21d   :  { %v10459_v9 = vadd.f32 %v3692_v38, %v3515_v12  ;;  %v3518_v15 = vadd.f32 %v6933_v55, %v12149_v18  ;;  %7178 = vmatprep.mubr.msk.f32.mxu1 %vm391_vm2, %v12150_v2  ;;  %7276 = vmatprep.mubr.msk.f32.mxu0 %vm391_vm2, %v11986_v1  ;;  %v12154_v12 = vld [vmem:[#allocation67_spill] sm:$0xff]  ;;  %v12155_v18 = vld [vmem:[#allocation72_spill] sm:$0xff] }
 0x21e   :  { %v3238_v45 = vpop.f32.mrf.mxu1  ;;  %v3702_v29 = vpop.f32.mrf.mxu0 }
 0x21f   :  { %v10466_v41 = vadd.f32 %v7031_v21, %v3518_v15  ;;  %v3517_v7 = vadd.f32 %v3238_v45, %v9999_v47  ;;  %v12156_v15 = vld [vmem:[#allocation34_spill] sm:$0xff]  ;;  %v12157_v45 = vld [vmem:[#allocation144_spill] sm:$0xff] }
 0x220   :  { %v6936_v62 = vpop.f32.mrf.mxu1  ;;  %v7034_v8 = vpop.f32.mrf.mxu0  ;;  %7179 = vmatmul.mubr.msk.f32.gmra.mxu1 %vm391_vm2, %v12151_v25  ;;  %7277 = vmatmul.mubr.msk.f32.gmra.mxu0 %vm391_vm2, %v12152_v22 }
 0x221   :  { %v10473_v33 = vadd.f32 %v3702_v29, %v3517_v7  ;;  %v3520_v38 = vadd.f32 %v6936_v62, %v12153_v51  ;;  %7181 = vmatprep.mubr.msk.f32.mxu1 %vm391_vm2, %v12154_v12  ;;  %7279 = vmatprep.mubr.msk.f32.mxu0 %vm391_vm2, %v11991_v36  ;;  %v12158_v7 = vld [vmem:[#allocation75_spill] sm:$0xff] }
 0x222   :  { %v3248_v1 = vpop.f32.mrf.mxu1  ;;  %v3712_v47 = vpop.f32.mrf.mxu0  ;;  %v12159_v51 = vld [vmem:[#allocation79_spill] sm:$0xff] }
 0x223   :  { %v10480_v55 = vadd.f32 %v7034_v8, %v3520_v38  ;;  %v3519_v21 = vadd.f32 %v3248_v1, %v10013_v14  ;;  %v12160_v38 = vld [vmem:[#allocation40_spill] sm:$0xff]  ;;  %v12161_v1 = vld [vmem:[#allocation145_spill] sm:$0xff] }
 0x224   :  { %v6939_v24 = vpop.f32.mrf.mxu1  ;;  %v7037_v56 = vpop.f32.mrf.mxu0  ;;  %7182 = vmatmul.mubr.msk.f32.gmra.mxu1 %vm391_vm2, %v12155_v18  ;;  %7280 = vmatmul.mubr.msk.f32.gmra.mxu0 %vm391_vm2, %v12156_v15  ;;  %v12164_v18 = vld [vmem:[#allocation148_spill] sm:$0xff] }
 0x225   :  { %v10487_v2 = vadd.f32 %v3712_v47, %v3519_v21  ;;  %v3522_v29 = vadd.f32 %v6939_v24, %v12157_v45  ;;  %7184 = vmatprep.mubr.msk.f32.mxu1 %vm391_vm2, %v12158_v7  ;;  %7282 = vmatprep.mubr.msk.f32.mxu0 %vm391_vm2, %v11996_v17  ;;  %v12162_v21 = vld [vmem:[#allocation81_spill] sm:$0xff]  ;;  %v12165_v7 = vld [vmem:[#allocation87_spill] sm:$0xff] }
 0x226   :  { %v3258_v36 = vpop.f32.mrf.mxu1  ;;  %v3722_v14 = vpop.f32.mrf.mxu0  ;;  %v12163_v17 = vld [vmem:[#allocation41_spill] sm:$0xff] }
 0x227   :  { %v10494_v62 = vadd.f32 %v7037_v56, %v3522_v29  ;;  %v3521_v8 = vadd.f32 %v3258_v36, %v10027_v46  ;;  %v12166_v36 = vld [vmem:[#allocation42_spill] sm:$0xff] }
 0x228   :  { %v6942_v25 = vpop.f32.mrf.mxu1  ;;  %v7040_v22 = vpop.f32.mrf.mxu0  ;;  %7185 = vmatmul.mubr.msk.f32.gmra.mxu1 %vm391_vm2, %v12159_v51  ;;  %7283 = vmatmul.mubr.msk.f32.gmra.mxu0 %vm391_vm2, %v12160_v38  ;;  %v12168_v51 = vld [vmem:[#allocation91_spill] sm:$0xff] }
 0x229   :  { %v10501_v12 = vadd.f32 %v3722_v14, %v3521_v8  ;;  %v3524_v47 = vadd.f32 %v6942_v25, %v12161_v1  ;;  %7187 = vmatprep.mubr.msk.f32.mxu1 %vm391_vm2, %v12162_v21  ;;  %7285 = vmatprep.mubr.msk.f32.mxu0 %vm391_vm2, %v12163_v17  ;;  %v12167_v8 = vld [vmem:[#allocation146_spill] sm:$0xff]  ;;  %v12169_v38 = vld [vmem:[#allocation47_spill] sm:$0xff] }
 0x22a   :  { %v3268_v24 = vpop.f32.mrf.mxu1  ;;  %v3732_v46 = vpop.f32.mrf.mxu0  ;;  %v12170_v21 = vld [vmem:[#allocation147_spill] sm:$0xff] }
 0x22b   :  { %v10508_v56 = vadd.f32 %v7040_v22, %v3524_v47  ;;  %v3523_v15 = vadd.f32 %v3268_v24, %v12164_v18 }
 0x22c   :  { %v6945_v45 = vpop.f32.mrf.mxu1  ;;  %v7043_v29 = vpop.f32.mrf.mxu0  ;;  %7188 = vmatmul.mubr.msk.f32.gmra.mxu1 %vm391_vm2, %v12165_v7  ;;  %7286 = vmatmul.mubr.msk.f32.gmra.mxu0 %vm391_vm2, %v12166_v36  ;;  %v12171_v7 = vld [vmem:[#allocation97_spill] sm:$0xff] }
 0x22d   :  { %v10515_v14 = vadd.f32 %v3732_v46, %v3523_v15  ;;  %v3526_v25 = vadd.f32 %v6945_v45, %v12167_v8  ;;  %7190 = vmatprep.mubr.msk.f32.mxu1 %vm391_vm2, %v12168_v51  ;;  %7288 = vmatprep.mubr.msk.f32.mxu0 %vm391_vm2, %v12169_v38  ;;  %v12172_v46 = vld [vmem:[#allocation48_spill] sm:$0xff]  ;;  %v12173_v45 = vld [vmem:[#allocation149_spill] sm:$0xff]  ;;  %v12174_v8 = vld [vmem:[#allocation99_spill] sm:$0xff] }
 0x22e   :  { %v3278_v22 = vpop.f32.mrf.mxu1  ;;  %v3742_v1 = vpop.f32.mrf.mxu0 }
 0x22f   :  { %v10522_v47 = vadd.f32 %v7043_v29, %v3526_v25  ;;  %v3525_v17 = vadd.f32 %v3278_v22, %v12170_v21 }
 0x230   :  { %v6948_v24 = vpop.f32.mrf.mxu1  ;;  %v7046_v18 = vpop.f32.mrf.mxu0  ;;  %7191 = vmatmul.mubr.msk.f32.gmra.mxu1 %vm391_vm2, %v12171_v7  ;;  %7289 = vmatmul.mubr.msk.f32.gmra.mxu0 %vm391_vm2, %v12172_v46  ;;  %v12175_v7 = vld [vmem:[#allocation103_spill] sm:$0xff]  ;;  %v12177_v46 = vld [vmem:[#allocation129_spill] sm:$0xff] }
 0x231   :  { %v10529_v15 = vadd.f32 %v3742_v1, %v3525_v17  ;;  %v3528_v36 = vadd.f32 %v6948_v24, %v12173_v45  ;;  %7193 = vmatprep.mubr.msk.f32.mxu1 %vm391_vm2, %v12174_v8  ;;  %7291 = vmatprep.mubr.msk.f32.mxu0 %vm391_vm2, %v12015_v40  ;;  %v12176_v24 = vld [vmem:[#allocation105_spill] sm:$0xff] }
 0x232   :  { %v3288_v29 = vpop.f32.mrf.mxu1  ;;  %v3752_v25 = vpop.f32.mrf.mxu0 }
 0x233   :  { %v10536_v51 = vadd.f32 %v7046_v18, %v3528_v36  ;;  %v3527_v38 = vadd.f32 %v3288_v29, %v10069_v39  ;;  %v12178_v29 = vld [vmem:[#allocation107_spill] sm:$0xff] }
 0x234   :  { %v6951_v22 = vpop.f32.mrf.mxu1  ;;  %v7049_v21 = vpop.f32.mrf.mxu0  ;;  %7194 = vmatmul.mubr.msk.f32.gmra.mxu1 %vm391_vm2, %v12175_v7  ;;  %7292 = vmatmul.mubr.msk.f32.gmra.mxu0 %vm391_vm2, %v12018_v19 }
 0x235   :  { %v10543_v1 = vadd.f32 %v3752_v25, %v3527_v38  ;;  %v3530_v17 = vadd.f32 %v6951_v22, %v10076_v54  ;;  %7196 = vmatprep.mubr.msk.f32.mxu1 %vm391_vm2, %v12176_v24  ;;  %7294 = vmatprep.mubr.msk.f32.mxu0 %vm391_vm2, %v12021_v44  ;;  %v12179_v54 = vld [vmem:[#allocation151_spill] sm:$0xff]  ;;  %v12180_v38 = vld [vmem:[#allocation109_spill] sm:$0xff]  ;;  %v4042_v22 = vrot.slane %v10113_v37, 1  ;;  %v4513_v24 = vrot.slane %v10135_v3, 2 }
 0x236   :  { %v3298_v40 = vpop.f32.mrf.mxu1  ;;  %v3762_v39 = vpop.f32.mrf.mxu0  ;;  %v124_v44 = vld [vmem:[%s11169_s0 + $0x358] sm:$0x3] }
 0x237   :  { %v10550_v18 = vadd.f32 %v7049_v21, %v3530_v17  ;;  %v3529_v45 = vadd.f32 %v3298_v40, %v12177_v46  ;;  %v4512_v21 = vrot.slane %v10113_v37, 2  ;;  %v4043_v17 = vrot.slane %v10135_v3, 1 }
 0x238   :  { %v6954_v36 = vpop.f32.mrf.mxu1  ;;  %v7052_v8 = vpop.f32.mrf.mxu0  ;;  %7197 = vmatmul.mubr.msk.f32.gmra.mxu1 %vm391_vm2, %v12178_v29  ;;  %7295 = vmatmul.mubr.msk.f32.gmra.mxu0 %vm391_vm2, %v12024_v50  ;;  %v4045_v29 = vrot.slane %v124_v44, 1  ;;  %v4515_v3 = vrot.slane %v124_v44, 2 }
 0x239   :  { %v10557_v19 = vadd.f32 %v3762_v39, %v3529_v45  ;;  %v3532_v25 = vadd.f32 %v6954_v36, %v12179_v54  ;;  %7199 = vmatprep.mubr.msk.f32.mxu1 %vm391_vm2, %v12180_v38  ;;  %7297 = vmatprep.mubr.msk.f32.mxu0 %vm391_vm2, %v12026_v32  ;;  %v12181_v39 = vld [vmem:[#allocation150_spill] sm:$0xff]  ;;  %v12182_v36 = vld [vmem:[#allocation111_spill] sm:$0xff]  ;;  %v12183_v38 = vld [vmem:[#allocation188_spill] sm:$0xff] }
 0x23a   :  { %v3308_v7 = vpop.f32.mrf.mxu1  ;;  %v3772_v50 = vpop.f32.mrf.mxu0 }
 0x23b   :  { %v10571_v40 = vadd.f32 %v7052_v8, %v3532_v25  ;;  %v3531_v46 = vadd.f32 %v3308_v7, %v12181_v39  ;;  %v4044_v7 = vsel %vm230_vm1, %v4042_v22, %v4043_v17  ;;  %v4514_v39 = vsel %vm520_vm0, %v4512_v21, %v4513_v24 }
 0x23c   :  { %v6957_v45 = vpop.f32.mrf.mxu1  ;;  %v7055_v32 = vpop.f32.mrf.mxu0  ;;  %7200 = vmatmul.mubr.msk.f32.gmra.mxu1 %vm391_vm2, %v12182_v36  ;;  %7298 = vmatmul.mubr.msk.f32.gmra.mxu0 %vm391_vm2, %v12028_v34 }
 0x23d   :  { %v10578_v37 = vadd.f32 %v3772_v50, %v3531_v46  ;;  %v3534_v54 = vadd.f32 %v6957_v45, %v10115_v61  ;;  %7202 = vmatprep.mubr.msk.f32.mxu1 %vm391_vm2, %v12183_v38  ;;  %7300 = vmatprep.mubr.msk.f32.mxu0 %vm391_vm2, %v10108_v30  ;;  %v12184_v61 = vld [vmem:[#allocation189_spill] sm:$0xff]  ;;  %v12185_v45 = vld [vmem:[#allocation152_spill] sm:$0xff]  ;;  %v4046_v30 = vsel %vm230_vm1, %v4043_v17, %v4045_v29  ;;  %v12186_v38 = vld [vmem:[#allocation154_spill] sm:$0xff] }
 0x23e   :  { %v3318_v8 = vpop.f32.mrf.mxu1  ;;  %v3782_v25 = vpop.f32.mrf.mxu0 }
 0x23f   :  { %v10587_v36 = vadd.f32 %v7055_v32, %v3534_v54  ;;  %v3533_v34 = vadd.f32 %v3318_v8, %v10122_v43  ;;  %v4516_v43 = vsel %vm520_vm0, %v4513_v24, %v4515_v3 }
 0x240   :  { %v6960_v50 = vpop.f32.mrf.mxu1  ;;  %v7058_v46 = vpop.f32.mrf.mxu0  ;;  %7203 = vmatmul.mubr.msk.f32.gmra.mxu1 %vm391_vm2, %v12184_v61  ;;  %7301 = vmatmul.mubr.msk.f32.gmra.mxu0 %vm391_vm2, %v12185_v45 }
 0x241   :  { %v10595_v44 = vadd.f32 %v3782_v25, %v3533_v34  ;;  %v3536_v22 = vadd.f32 %v6960_v50, %v12186_v38  ;;  %7205 = vmatprep.mubr.msk.f32.mxu1 %vm391_vm2, %v4044_v7  ;;  %7303 = vmatprep.mubr.msk.f32.mxu0 %vm391_vm2, %v4514_v39 }
 0x242   :  { %v3328_v21 = vpop.f32.mrf.mxu1  ;;  %v3792_v32 = vpop.f32.mrf.mxu0 }
 0x243   :  { %v10601_v54 = vadd.f32 %v7058_v46, %v3536_v22  ;;  %v3535_v8 = vadd.f32 %v3328_v21, %v10144_v10 }
 0x244   :  { %v6963_v61 = vpop.f32.mrf.mxu1  ;;  %v7061_v45 = vpop.f32.mrf.mxu0  ;;  %7206 = vmatmul.mubr.msk.f32.gmra.mxu1 %vm391_vm2, %v4046_v30  ;;  %7304 = vmatmul.mubr.msk.f32.gmra.mxu0 %vm391_vm2, %v4516_v43 }
 0x245   :  { %v10606_v17 = vadd.f32 %v3792_v32, %v3535_v8  ;;  %v3538_v29 = vadd.f32 %v6963_v61, %v10151_v4 }
 0x246   :  { %v3338_v25 = vpop.f32.mrf.mxu1  ;;  %v3802_v7 = vpop.f32.mrf.mxu0 }
 0x247   :  { %v10609_v39 = vadd.f32 %v7061_v45, %v3538_v29  ;;  %v3537_v24 = vadd.f32 %v3338_v25, %v10158_v57 }
 0x248   :  { %v6966_v3 = vpop.f32.mrf.mxu1  ;;  %v7064_v34 = vpop.f32.mrf.mxu0 }
 0x249   :  { %v10612_v50 = vadd.f32 %v3802_v7, %v3537_v24  ;;  %v3540_v10 = vadd.f32 %v6966_v3, %v10165_v58 }
 0x24a   :  { %v3348_v46 = vpop.f32.mrf.mxu1  ;;  %v3812_v30 = vpop.f32.mrf.mxu0 }
 0x24b   :  { %v10615_v38 = vadd.f32 %v7064_v34, %v3540_v10  ;;  %v3539_v22 = vadd.f32 %v3348_v46, %v10172_v16 }
 0x24c   :  { %v6969_v43 = vpop.f32.mrf.mxu1  ;;  %v7067_v4 = vpop.f32.mrf.mxu0 }
 0x24d   :  { %v10618_v21 = vadd.f32 %v3812_v30, %v3539_v22  ;;  %v3542_v32 = vadd.f32 %v6969_v43, %v10179_v59 }
 0x24e   :  { %v3358_v8 = vpop.f32.mrf.mxu1  ;;  %v3822_v57 = vpop.f32.mrf.mxu0 }
 0x24f   :  { %v10621_v61 = vadd.f32 %v7067_v4, %v3542_v32  ;;  %v3541_v45 = vadd.f32 %v3358_v8, %v10186_v31  ;;  %v12188_v4 = vld [vmem:[#allocation156_spill] sm:$0xff] }
 0x250   :  { %v6972_v29 = vpop.f32.mrf.mxu1  ;;  %v7070_v58 = vpop.f32.mrf.mxu0 }
 0x251   :  { %v10624_v25 = vadd.f32 %v3822_v57, %v3541_v45  ;;  %v3544_v7 = vadd.f32 %v6972_v29, %v10193_v52  ;;  %v12190_v45 = vld [vmem:[#allocation157_spill] sm:$0xff] }
 0x252   :  { %v3368_v24 = vpop.f32.mrf.mxu1  ;;  %v3832_v16 = vpop.f32.mrf.mxu0 }
 0x253   :  { %v10627_v3 = vadd.f32 %v7070_v58, %v3544_v7  ;;  %v3543_v34 = vadd.f32 %v3368_v24, %v10200_v6  ;;  %v12192_v24 = vld [vmem:[#allocation3_spill] sm:$0xff] }
 0x254   :  { %v6975_v10 = vpop.f32.mrf.mxu1  ;;  %v7073_v59 = vpop.f32.mrf.mxu0 }
 0x255   :  { %v10630_v46 = vadd.f32 %v3832_v16, %v3543_v34  ;;  %v3546_v30 = vadd.f32 %v6975_v10, %v10207_v28 }
 0x256   :  { %v3378_v22 = vpop.f32.mrf.mxu1  ;;  %v3842_v31 = vpop.f32.mrf.mxu0 }
 0x257   :  { %v10633_v43 = vadd.f32 %v7073_v59, %v3546_v30  ;;  %v3545_v32 = vadd.f32 %v3378_v22, %v12188_v4  ;;  %v12194_v59 = vld [vmem:[#allocation11_spill] sm:$0xff] }
 0x258   :  { %v6978_v8 = vpop.f32.mrf.mxu1  ;;  %v7076_v52 = vpop.f32.mrf.mxu0 }
 0x259   :  { %12187 = vst [vmem:[#allocation21_spill] sm:$0xff] %v10633_v43  ;;  %v10636_v57 = vadd.f32 %v3842_v31, %v3545_v32  ;;  %v3548_v29 = vadd.f32 %v6978_v8, %v12190_v45  ;;  %v12196_v31 = vld [vmem:[#allocation4_spill] sm:$0xff] }
 0x25a   :  { %v3388_v58 = vpop.f32.mrf.mxu1  ;;  %v3852_v6 = vpop.f32.mrf.mxu0 }
 0x25b   :  { %12189 = vst [vmem:[#allocation168_spill] sm:$0xff] %v10636_v57  ;;  %v10639_v7 = vadd.f32 %v7076_v52, %v3548_v29  ;;  %v3547_v16 = vadd.f32 %v3388_v58, %v12192_v24  ;;  %v12198_v52 = vld [vmem:[#allocation158_spill] sm:$0xff] }
 0x25c   :  { %v6981_v34 = vpop.f32.mrf.mxu1  ;;  %v7079_v28 = vpop.f32.mrf.mxu0 }
 0x25d   :  { %12191 = vst [vmem:[#allocation167_spill] sm:$0xff] %v10639_v7  ;;  %v10642_v10 = vadd.f32 %v3852_v6, %v3547_v16  ;;  %v3550_v30 = vadd.f32 %v6981_v34, %v12194_v59  ;;  %v12200_v6 = vld [vmem:[#allocation13_spill] sm:$0xff] }
 0x25e   :  { %v3398_v43 = vpop.f32.mrf.mxu1  ;;  %v3862_v22 = vpop.f32.mrf.mxu0 }
 0x25f   :  { %12193 = vst [vmem:[#allocation23_spill] sm:$0xff] %v10642_v10  ;;  %v10645_v4 = vadd.f32 %v7079_v28, %v3550_v30  ;;  %v3549_v32 = vadd.f32 %v3398_v43, %v12196_v31  ;;  %v12202_v28 = vld [vmem:[#allocation5_spill] sm:$0xff] }
 0x260   :  { %v6984_v57 = vpop.f32.mrf.mxu1  ;;  %v7082_v8 = vpop.f32.mrf.mxu0 }
 0x261   :  { %12195 = vst [vmem:[#allocation170_spill] sm:$0xff] %v10645_v4  ;;  %v10648_v45 = vadd.f32 %v3862_v22, %v3549_v32  ;;  %v3552_v29 = vadd.f32 %v6984_v57, %v12198_v52  ;;  %v12204_v22 = vld [vmem:[#allocation160_spill] sm:$0xff] }
 0x262   :  { %v3408_v7 = vpop.f32.mrf.mxu1  ;;  %v3872_v58 = vpop.f32.mrf.mxu0 }
 0x263   :  { %12197 = vst [vmem:[#allocation169_spill] sm:$0xff] %v10648_v45  ;;  %v10651_v24 = vadd.f32 %v7082_v8, %v3552_v29  ;;  %v3551_v16 = vadd.f32 %v3408_v7, %v12200_v6  ;;  %v12206_v8 = vld [vmem:[#allocation159_spill] sm:$0xff] }
 0x264   :  { %v6987_v10 = vpop.f32.mrf.mxu1  ;;  %v7085_v34 = vpop.f32.mrf.mxu0 }
 0x265   :  { %12199 = vst [vmem:[#allocation27_spill] sm:$0xff] %v10651_v24  ;;  %v10654_v59 = vadd.f32 %v3872_v58, %v3551_v16  ;;  %v3554_v30 = vadd.f32 %v6987_v10, %v12202_v28  ;;  %v12208_v58 = vld [vmem:[#allocation7_spill] sm:$0xff] }
 0x266   :  { %v3418_v4 = vpop.f32.mrf.mxu1  ;;  %v3882_v43 = vpop.f32.mrf.mxu0 }
 0x267   :  { %12201 = vst [vmem:[#allocation172_spill] sm:$0xff] %v10654_v59  ;;  %v10657_v31 = vadd.f32 %v7085_v34, %v3554_v30  ;;  %v3553_v32 = vadd.f32 %v3418_v4, %v12204_v22  ;;  %v12210_v34 = vld [vmem:[#allocation162_spill] sm:$0xff] }
 0x268   :  { %v6990_v45 = vpop.f32.mrf.mxu1  ;;  %v7088_v57 = vpop.f32.mrf.mxu0 }
 0x269   :  { %12203 = vst [vmem:[#allocation171_spill] sm:$0xff] %v10657_v31  ;;  %v10660_v52 = vadd.f32 %v3882_v43, %v3553_v32  ;;  %v3556_v29 = vadd.f32 %v6990_v45, %v12206_v8  ;;  %v12212_v43 = vld [vmem:[#allocation161_spill] sm:$0xff] }
 0x26a   :  { %v3428_v24 = vpop.f32.mrf.mxu1  ;;  %v3892_v7 = vpop.f32.mrf.mxu0 }
 0x26b   :  { %12205 = vst [vmem:[#allocation33_spill] sm:$0xff] %v10660_v52  ;;  %v10663_v6 = vadd.f32 %v7088_v57, %v3556_v29  ;;  %v3555_v16 = vadd.f32 %v3428_v24, %v12208_v58  ;;  %v12214_v57 = vld [vmem:[#allocation10_spill] sm:$0xff] }
 0x26c   :  { %v6993_v59 = vpop.f32.mrf.mxu1  ;;  %v7091_v10 = vpop.f32.mrf.mxu0 }
 0x26d   :  { %12207 = vst [vmem:[#allocation174_spill] sm:$0xff] %v10663_v6  ;;  %v10666_v28 = vadd.f32 %v3892_v7, %v3555_v16  ;;  %v3558_v30 = vadd.f32 %v6993_v59, %v12210_v34  ;;  %v12216_v7 = vld [vmem:[#allocation164_spill] sm:$0xff] }
 0x26e   :  { %v3438_v31 = vpop.f32.mrf.mxu1  ;;  %v3902_v4 = vpop.f32.mrf.mxu0 }
 0x26f   :  { %12209 = vst [vmem:[#allocation173_spill] sm:$0xff] %v10666_v28  ;;  %v10669_v22 = vadd.f32 %v7091_v10, %v3558_v30  ;;  %v3557_v32 = vadd.f32 %v3438_v31, %v12212_v43  ;;  %v12218_v10 = vld [vmem:[#allocation163_spill] sm:$0xff] }
 0x270   :  { %v6996_v52 = vpop.f32.mrf.mxu1  ;;  %v7094_v45 = vpop.f32.mrf.mxu0 }
 0x271   :  { %12211 = vst [vmem:[#allocation35_spill] sm:$0xff] %v10669_v22  ;;  %v10672_v8 = vadd.f32 %v3902_v4, %v3557_v32  ;;  %v3560_v29 = vadd.f32 %v6996_v52, %v12214_v57  ;;  %v12219_v4 = vld [vmem:[#allocation16_spill] sm:$0xff] }
 0x272   :  { %v3448_v6 = vpop.f32.mrf.mxu1  ;;  %v3912_v24 = vpop.f32.mrf.mxu0 }
 0x273   :  { %12213 = vst [vmem:[#allocation176_spill] sm:$0xff] %v10672_v8  ;;  %v10675_v58 = vadd.f32 %v7094_v45, %v3560_v29  ;;  %v3559_v16 = vadd.f32 %v3448_v6, %v12216_v7  ;;  %v12220_v45 = vld [vmem:[#allocation166_spill] sm:$0xff] }
 0x274   :  { %v6999_v28 = vpop.f32.mrf.mxu1  ;;  %v7097_v59 = vpop.f32.mrf.mxu0 }
 0x275   :  { %12215 = vst [vmem:[#allocation175_spill] sm:$0xff] %v10675_v58  ;;  %v10678_v34 = vadd.f32 %v3912_v24, %v3559_v16  ;;  %v3562_v30 = vadd.f32 %v6999_v28, %v12218_v10  ;;  %v12221_v24 = vld [vmem:[#allocation165_spill] sm:$0xff] }
 0x276   :  { %v3458_v22 = vpop.f32.mrf.mxu1  ;;  %v3922_v31 = vpop.f32.mrf.mxu0 }
 0x277   :  { %12217 = vst [vmem:[#allocation178_spill] sm:$0xff] %v10678_v34  ;;  %v10681_v43 = vadd.f32 %v7097_v59, %v3562_v30  ;;  %v3561_v32 = vadd.f32 %v3458_v22, %v12219_v4 }
 0x278   :  { %v7002_v8 = vpop.f32.mrf.mxu1  ;;  %v7100_v52 = vpop.f32.mrf.mxu0 }
 0x279   :  { %v10684_v57 = vadd.f32 %v3922_v31, %v3561_v32  ;;  %v3564_v29 = vadd.f32 %v7002_v8, %v12220_v45 }
 0x27a   :  { %v3468_v58 = vpop.f32.mrf.mxu1  ;;  %v3932_v6 = vpop.f32.mrf.mxu0 }
 0x27b   :  { %v10687_v7 = vadd.f32 %v7100_v52, %v3564_v29  ;;  %v3563_v16 = vadd.f32 %v3468_v58, %v12221_v24 }
 0x27c   :  { %v7005_v34 = vpop.f32.mrf.mxu1  ;;  %v7103_v28 = vpop.f32.mrf.mxu0 }
 0x27d   :  { %v10690_v10 = vadd.f32 %v3932_v6, %v3563_v16  ;;  %v3566_v59 = vadd.f32 %v7005_v34, %v10356_v27 }
 0x27e   :  { %v3478_v30 = vpop.f32.mrf.mxu1  ;;  %v3942_v22 = vpop.f32.mrf.mxu0 }
 0x27f   :  { %v10693_v4 = vadd.f32 %v7103_v28, %v3566_v59  ;;  %v3565_v31 = vadd.f32 %v3478_v30, %v10364_v53 }
 0x280   :  { %v7008_v32 = vpop.f32.mrf.mxu1  ;;  %v7106_v8 = vpop.f32.mrf.mxu0 }
 0x281   :  { %v10696_v45 = vadd.f32 %v3942_v22, %v3565_v31  ;;  %v3568_v52 = vadd.f32 %v7008_v32, %v10370_v20 }
 0x282   :  { %v3488_v29 = vpop.f32.mrf.mxu1  ;;  %v3952_v58 = vpop.f32.mrf.mxu0 }
 0x283   :  { %v10699_v24 = vadd.f32 %v7106_v8, %v3568_v52  ;;  %v3567_v6 = vadd.f32 %v3488_v29, %v10375_v48  ;;  %v10714_v48 = vld [vmem:[%s11170_s2] ss:$0 sm:$0xff] }
 0x284   :  { %v7011_v16 = vpop.f32.mrf.mxu1  ;;  %v7109_v27 = vpop.f32.mrf.mxu0 }
 0x285   :  { %v10702_v34 = vadd.f32 %v3952_v58, %v3567_v6  ;;  %v3570_v28 = vadd.f32 %v7011_v16, %v10382_v26 }
 0x286   :  { %v3498_v59 = vpop.f32.mrf.mxu1  ;;  %v3962_v53 = vpop.f32.mrf.mxu0 }
 0x287   :  { %v10705_v30 = vadd.f32 %v7109_v27, %v3570_v28  ;;  %v3569_v22 = vadd.f32 %v3498_v59, %v10389_v13  ;;  %v10720_v13 = vld [vmem:[%s11171_s3] ss:$0 sm:$0xff] }
 0x288   :  { %v7114_v31 = vpop.f32.mrf.mxu1  ;;  %v7212_v20 = vpop.f32.mrf.mxu0 }
 0x289   :  { %12222 = vst [vmem:[#allocation177_spill] sm:$0xff] %v10705_v30  ;;  %v10708_v32 = vadd.f32 %v3962_v53, %v3569_v22  ;;  %v4444_v8 = vadd.f32 %v7114_v31, %v10396_v63 }
 0x28a   :  { %v4124_v52 = vpop.f32.mrf.mxu1  ;;  %v4594_v29 = vpop.f32.mrf.mxu0 }
 0x28b   :  { %12223 = vst [vmem:[#allocation180_spill] sm:$0xff] %v10708_v32  ;;  %v4914_v26 = vadd.f32 %v7212_v20, %v4444_v8  ;;  %v4443_v58 = vadd.f32 %v4124_v52, %v10403_v60 }
 0x28c   :  { %v7117_v6 = vpop.f32.mrf.mxu1  ;;  %v7215_v16 = vpop.f32.mrf.mxu0 }
 0x28d   :  { %v4985_v27 = vmul.f32 %v10714_v48, %v4914_v26  ;;  %v4913_v63 = vadd.f32 %v4594_v29, %v4443_v58  ;;  %v4446_v28 = vadd.f32 %v7117_v6, %v10410_v23 }
 0x28e   :  { %v4134_v59 = vpop.f32.mrf.mxu1  ;;  %v4604_v53 = vpop.f32.mrf.mxu0 }
 0x28f   :  { %v5056_v22 = vadd.f32 %v10720_v13, %v4985_v27  ;;  %v4984_v31 = vmul.f32 %v10714_v48, %v4913_v63  ;;  %v4916_v20 = vadd.f32 %v7215_v16, %v4446_v28  ;;  %v4445_v60 = vadd.f32 %v4134_v59, %v10417_v5 }
 0x290   :  { %v7120_v8 = vpop.f32.mrf.mxu1  ;;  %v7218_v52 = vpop.f32.mrf.mxu0 }
 0x291   :  { %v5120_v32 = vmax.f32 %v5056_v22, 0.0  ;;  %v5055_v30 = vadd.f32 %v10720_v13, %v4984_v31  ;;  %v4987_v26 = vmul.f32 %v10714_v48, %v4916_v20  ;;  %v4915_v29 = vadd.f32 %v4604_v53, %v4445_v60 }
 0x292   :  { %v4448_v23 = vadd.f32 %v7120_v8, %v10424_v35  ;;  %v4144_v58 = vpop.f32.mrf.mxu1  ;;  %v4614_v6 = vpop.f32.mrf.mxu0 }
 0x293   :  { %5185 = vst.msk [vmem:[%s11172_s4 + $0x8] sm:$0xff] %vm5183_vm3, %v5120_v32  ;;  %v5119_v16 = vmax.f32 %v5055_v30, 0.0  ;;  %v5058_v5 = vadd.f32 %v10720_v13, %v4987_v26  ;;  %v4986_v27 = vmul.f32 %v10714_v48, %v4915_v29  ;;  %v4447_v63 = vadd.f32 %v4144_v58, %v10431_v42 }
 0x294   :  { %v4918_v28 = vadd.f32 %v7218_v52, %v4448_v23  ;;  %v7123_v59 = vpop.f32.mrf.mxu1  ;;  %v7221_v22 = vpop.f32.mrf.mxu0 }
 0x295   :  { %5184 = vst.msk [vmem:[%s11172_s4] sm:$0xff] %vm5183_vm3, %v5119_v16  ;;  %v5122_v35 = vmax.f32 %v5058_v5, 0.0  ;;  %v5057_v53 = vadd.f32 %v10720_v13, %v4986_v27  ;;  %v4917_v31 = vadd.f32 %v4614_v6, %v4447_v63  ;;  %v4450_v30 = vadd.f32 %v7123_v59, %v10438_v0 }
 0x296   :  { %v4989_v32 = vmul.f32 %v10714_v48, %v4918_v28  ;;  %v4154_v20 = vpop.f32.mrf.mxu1  ;;  %v4624_v60 = vpop.f32.mrf.mxu0 }
 0x297   :  { %5187 = vst.msk [vmem:[%s11172_s4 + $0x18] sm:$0xff] %vm5183_vm3, %v5122_v35  ;;  %v5121_v42 = vmax.f32 %v5057_v53, 0.0  ;;  %v4988_v8 = vmul.f32 %v10714_v48, %v4917_v31  ;;  %v4920_v52 = vadd.f32 %v7221_v22, %v4450_v30  ;;  %v4449_v26 = vadd.f32 %v4154_v20, %v10445_v11 }
 0x298   :  { %v5060_v29 = vadd.f32 %v10720_v13, %v4989_v32  ;;  %v7126_v23 = vpop.f32.mrf.mxu1  ;;  %v7224_v58 = vpop.f32.mrf.mxu0 }
 0x299   :  { %5186 = vst.msk [vmem:[%s11172_s4 + $0x10] sm:$0xff] %vm5183_vm3, %v5121_v42  ;;  %v5059_v0 = vadd.f32 %v10720_v13, %v4988_v8  ;;  %v4991_v6 = vmul.f32 %v10714_v48, %v4920_v52  ;;  %v4919_v16 = vadd.f32 %v4624_v60, %v4449_v26  ;;  %v4452_v5 = vadd.f32 %v7126_v23, %v10452_v49 }
 0x29a   :  { %v5124_v27 = vmax.f32 %v5060_v29, 0.0  ;;  %v4164_v63 = vpop.f32.mrf.mxu1  ;;  %v4634_v28 = vpop.f32.mrf.mxu0 }
 0x29b   :  { %v5123_v11 = vmax.f32 %v5059_v0, 0.0  ;;  %v5062_v59 = vadd.f32 %v10720_v13, %v4991_v6  ;;  %v4990_v22 = vmul.f32 %v10714_v48, %v4919_v16  ;;  %v4922_v35 = vadd.f32 %v7224_v58, %v4452_v5 }
 0x29c   :  { %5189 = vst.msk [vmem:[%s11172_s4 + $0x28] sm:$0xff] %vm5183_vm3, %v5124_v27  ;;  %v4451_v53 = vadd.f32 %v4164_v63, %v10459_v9  ;;  %v7129_v31 = vpop.f32.mrf.mxu1  ;;  %v7227_v30 = vpop.f32.mrf.mxu0 }
 0x29d   :  { %5188 = vst.msk [vmem:[%s11172_s4 + $0x20] sm:$0xff] %vm5183_vm3, %v5123_v11  ;;  %v5126_v49 = vmax.f32 %v5062_v59, 0.0  ;;  %v5061_v32 = vadd.f32 %v10720_v13, %v4990_v22  ;;  %v4993_v20 = vmul.f32 %v10714_v48, %v4922_v35  ;;  %v4454_v60 = vadd.f32 %v7129_v31, %v10466_v41 }
 0x29e   :  { %v4921_v42 = vadd.f32 %v4634_v28, %v4451_v53  ;;  %v4174_v8 = vpop.f32.mrf.mxu1  ;;  %v4644_v52 = vpop.f32.mrf.mxu0 }
 0x29f   :  { %5191 = vst.msk [vmem:[%s11172_s4 + $0x38] sm:$0xff] %vm5183_vm3, %v5126_v49  ;;  %v5125_v9 = vmax.f32 %v5061_v32, 0.0  ;;  %v5064_v26 = vadd.f32 %v10720_v13, %v4993_v20  ;;  %v4924_v29 = vadd.f32 %v7227_v30, %v4454_v60  ;;  %v4453_v23 = vadd.f32 %v4174_v8, %v10473_v33 }
 0x2a0   :  { %v4992_v58 = vmul.f32 %v10714_v48, %v4921_v42  ;;  %v7132_v0 = vpop.f32.mrf.mxu1  ;;  %v7230_v6 = vpop.f32.mrf.mxu0 }
 0x2a1   :  { %5190 = vst.msk [vmem:[%s11172_s4 + $0x30] sm:$0xff] %vm5183_vm3, %v5125_v9  ;;  %v5128_v41 = vmax.f32 %v5064_v26, 0.0  ;;  %v4995_v16 = vmul.f32 %v10714_v48, %v4924_v29  ;;  %v4923_v5 = vadd.f32 %v4644_v52, %v4453_v23  ;;  %v4456_v27 = vadd.f32 %v7132_v0, %v10480_v55 }
 0x2a2   :  { %v5063_v63 = vadd.f32 %v10720_v13, %v4992_v58  ;;  %v4184_v28 = vpop.f32.mrf.mxu1  ;;  %v4654_v11 = vpop.f32.mrf.mxu0 }
 0x2a3   :  { %5193 = vst.msk [vmem:[%s11172_s4 + $0x48] sm:$0xff] %vm5183_vm3, %v5128_v41  ;;  %v5066_v33 = vadd.f32 %v10720_v13, %v4995_v16  ;;  %v4994_v59 = vmul.f32 %v10714_v48, %v4923_v5  ;;  %v4926_v22 = vadd.f32 %v7230_v6, %v4456_v27  ;;  %v4455_v35 = vadd.f32 %v4184_v28, %v10487_v2 }
 0x2a4   :  { %v5127_v53 = vmax.f32 %v5063_v63, 0.0  ;;  %v7135_v31 = vpop.f32.mrf.mxu1  ;;  %v7233_v30 = vpop.f32.mrf.mxu0 }
 0x2a5   :  { %v5130_v55 = vmax.f32 %v5066_v33, 0.0  ;;  %v5065_v49 = vadd.f32 %v10720_v13, %v4994_v59  ;;  %v4997_v32 = vmul.f32 %v10714_v48, %v4926_v22  ;;  %v4925_v20 = vadd.f32 %v4654_v11, %v4455_v35 }
 0x2a6   :  { %5192 = vst.msk [vmem:[%s11172_s4 + $0x40] sm:$0xff] %vm5183_vm3, %v5127_v53  ;;  %v4458_v60 = vadd.f32 %v7135_v31, %v10494_v62  ;;  %v4194_v42 = vpop.f32.mrf.mxu1  ;;  %v4664_v8 = vpop.f32.mrf.mxu0 }
 0x2a7   :  { %5195 = vst.msk [vmem:[%s11172_s4 + $0x58] sm:$0xff] %vm5183_vm3, %v5130_v55  ;;  %v5129_v2 = vmax.f32 %v5065_v49, 0.0  ;;  %v5068_v52 = vadd.f32 %v10720_v13, %v4997_v32  ;;  %v4996_v9 = vmul.f32 %v10714_v48, %v4925_v20  ;;  %v4457_v26 = vadd.f32 %v4194_v42, %v10501_v12 }
 0x2a8   :  { %v4928_v29 = vadd.f32 %v7233_v30, %v4458_v60  ;;  %v7138_v23 = vpop.f32.mrf.mxu1  ;;  %v7236_v58 = vpop.f32.mrf.mxu0 }
 0x2a9   :  { %5194 = vst.msk [vmem:[%s11172_s4 + $0x50] sm:$0xff] %vm5183_vm3, %v5129_v2  ;;  %v5132_v62 = vmax.f32 %v5068_v52, 0.0  ;;  %v5067_v0 = vadd.f32 %v10720_v13, %v4996_v9  ;;  %v4927_v6 = vadd.f32 %v4664_v8, %v4457_v26  ;;  %v4460_v41 = vadd.f32 %v7138_v23, %v10508_v56 }
 0x2aa   :  { %v4999_v16 = vmul.f32 %v10714_v48, %v4928_v29  ;;  %v4204_v5 = vpop.f32.mrf.mxu1  ;;  %v4674_v27 = vpop.f32.mrf.mxu0 }
 0x2ab   :  { %5197 = vst.msk [vmem:[%s11172_s4 + $0x68] sm:$0xff] %vm5183_vm3, %v5132_v62  ;;  %v5131_v12 = vmax.f32 %v5067_v0, 0.0  ;;  %v4998_v63 = vmul.f32 %v10714_v48, %v4927_v6  ;;  %v4930_v28 = vadd.f32 %v7236_v58, %v4460_v41  ;;  %v4459_v11 = vadd.f32 %v4204_v5, %v10515_v14 }
 0x2ac   :  { %v5070_v33 = vadd.f32 %v10720_v13, %v4999_v16  ;;  %v7141_v59 = vpop.f32.mrf.mxu1  ;;  %v7239_v22 = vpop.f32.mrf.mxu0 }
 0x2ad   :  { %5196 = vst.msk [vmem:[%s11172_s4 + $0x60] sm:$0xff] %vm5183_vm3, %v5131_v12  ;;  %v5069_v56 = vadd.f32 %v10720_v13, %v4998_v63  ;;  %v5001_v35 = vmul.f32 %v10714_v48, %v4930_v28  ;;  %v4929_v53 = vadd.f32 %v4674_v27, %v4459_v11  ;;  %v4462_v31 = vadd.f32 %v7141_v59, %v10522_v47 }
 0x2ae   :  { %v5134_v30 = vmax.f32 %v5070_v33, 0.0  ;;  %v4214_v55 = vpop.f32.mrf.mxu1  ;;  %v4684_v49 = vpop.f32.mrf.mxu0 }
 0x2af   :  { %v5133_v14 = vmax.f32 %v5069_v56, 0.0  ;;  %v5072_v32 = vadd.f32 %v10720_v13, %v5001_v35  ;;  %v5000_v20 = vmul.f32 %v10714_v48, %v4929_v53  ;;  %v4932_v60 = vadd.f32 %v7239_v22, %v4462_v31 }
 0x2b0   :  { %5199 = vst.msk [vmem:[%s11172_s4 + $0x78] sm:$0xff] %vm5183_vm3, %v5134_v30  ;;  %v4461_v42 = vadd.f32 %v4214_v55, %v10529_v15  ;;  %v7144_v8 = vpop.f32.mrf.mxu1  ;;  %v7242_v2 = vpop.f32.mrf.mxu0 }
 0x2b1   :  { %5198 = vst.msk [vmem:[%s11172_s4 + $0x70] sm:$0xff] %vm5183_vm3, %v5133_v14  ;;  %v5136_v47 = vmax.f32 %v5072_v32, 0.0  ;;  %v5071_v52 = vadd.f32 %v10720_v13, %v5000_v20  ;;  %v5003_v9 = vmul.f32 %v10714_v48, %v4932_v60  ;;  %v4464_v26 = vadd.f32 %v7144_v8, %v10536_v51 }
 0x2b2   :  { %v4931_v29 = vadd.f32 %v4684_v49, %v4461_v42  ;;  %v4224_v23 = vpop.f32.mrf.mxu1  ;;  %v4694_v58 = vpop.f32.mrf.mxu0 }
 0x2b3   :  { %5201 = vst.msk [vmem:[%s11172_s4 + $0x88] sm:$0xff] %vm5183_vm3, %v5136_v47  ;;  %v5135_v15 = vmax.f32 %v5071_v52, 0.0  ;;  %v5074_v62 = vadd.f32 %v10720_v13, %v5003_v9  ;;  %v4934_v0 = vadd.f32 %v7242_v2, %v4464_v26  ;;  %v4463_v6 = vadd.f32 %v4224_v23, %v10543_v1 }
 0x2b4   :  { %v5002_v41 = vmul.f32 %v10714_v48, %v4931_v29  ;;  %v7147_v16 = vpop.f32.mrf.mxu1  ;;  %v7245_v5 = vpop.f32.mrf.mxu0 }
 0x2b5   :  { %5200 = vst.msk [vmem:[%s11172_s4 + $0x80] sm:$0xff] %vm5183_vm3, %v5135_v15  ;;  %v5138_v51 = vmax.f32 %v5074_v62, 0.0  ;;  %v5005_v27 = vmul.f32 %v10714_v48, %v4934_v0  ;;  %v4933_v12 = vadd.f32 %v4694_v58, %v4463_v6  ;;  %v4466_v63 = vadd.f32 %v7147_v16, %v10550_v18 }
 0x2b6   :  { %v5073_v28 = vadd.f32 %v10720_v13, %v5002_v41  ;;  %v4234_v11 = vpop.f32.mrf.mxu1  ;;  %v4704_v33 = vpop.f32.mrf.mxu0 }
 0x2b7   :  { %5203 = vst.msk [vmem:[%s11172_s4 + $0x98] sm:$0xff] %vm5183_vm3, %v5138_v51  ;;  %v5076_v1 = vadd.f32 %v10720_v13, %v5005_v27  ;;  %v5004_v59 = vmul.f32 %v10714_v48, %v4933_v12  ;;  %v4936_v22 = vadd.f32 %v7245_v5, %v4466_v63  ;;  %v4465_v56 = vadd.f32 %v4234_v11, %v10557_v19 }
 0x2b8   :  { %v5137_v35 = vmax.f32 %v5073_v28, 0.0  ;;  %v7150_v53 = vpop.f32.mrf.mxu1  ;;  %v7248_v31 = vpop.f32.mrf.mxu0 }
 0x2b9   :  { %v5140_v18 = vmax.f32 %v5076_v1, 0.0  ;;  %v5075_v30 = vadd.f32 %v10720_v13, %v5004_v59  ;;  %v5007_v55 = vmul.f32 %v10714_v48, %v4936_v22  ;;  %v4935_v49 = vadd.f32 %v4704_v33, %v4465_v56 }
 0x2ba   :  { %5202 = vst.msk [vmem:[%s11172_s4 + $0x90] sm:$0xff] %vm5183_vm3, %v5137_v35  ;;  %v4468_v14 = vadd.f32 %v7150_v53, %v10571_v40  ;;  %v4244_v32 = vpop.f32.mrf.mxu1  ;;  %v4714_v20 = vpop.f32.mrf.mxu0 }
 0x2bb   :  { %5205 = vst.msk [vmem:[%s11172_s4 + $0xa8] sm:$0xff] %vm5183_vm3, %v5140_v18  ;;  %v5139_v19 = vmax.f32 %v5075_v30, 0.0  ;;  %v5078_v60 = vadd.f32 %v10720_v13, %v5007_v55  ;;  %v5006_v42 = vmul.f32 %v10714_v48, %v4935_v49  ;;  %v4467_v8 = vadd.f32 %v4244_v32, %v10578_v37 }
 0x2bc   :  { %v4938_v2 = vadd.f32 %v7248_v31, %v4468_v14  ;;  %v7153_v47 = vpop.f32.mrf.mxu1  ;;  %v7251_v52 = vpop.f32.mrf.mxu0 }
 0x2bd   :  { %5204 = vst.msk [vmem:[%s11172_s4 + $0xa0] sm:$0xff] %vm5183_vm3, %v5139_v19  ;;  %v5142_v40 = vmax.f32 %v5078_v60, 0.0  ;;  %v5077_v9 = vadd.f32 %v10720_v13, %v5006_v42  ;;  %v4937_v26 = vadd.f32 %v4714_v20, %v4467_v8  ;;  %v4470_v29 = vadd.f32 %v7153_v47, %v10587_v36 }
 0x2be   :  { %v5009_v23 = vmul.f32 %v10714_v48, %v4938_v2  ;;  %v4254_v58 = vpop.f32.mrf.mxu1  ;;  %v4724_v15 = vpop.f32.mrf.mxu0 }
 0x2bf   :  { %5207 = vst.msk [vmem:[%s11172_s4 + $0xb8] sm:$0xff] %vm5183_vm3, %v5142_v40  ;;  %v5141_v37 = vmax.f32 %v5077_v9, 0.0  ;;  %v5008_v62 = vmul.f32 %v10714_v48, %v4937_v26  ;;  %v4940_v0 = vadd.f32 %v7251_v52, %v4470_v29  ;;  %v4469_v6 = vadd.f32 %v4254_v58, %v10595_v44 }
 0x2c0   :  { %v5080_v41 = vadd.f32 %v10720_v13, %v5009_v23  ;;  %v7156_v16 = vpop.f32.mrf.mxu1  ;;  %v7254_v5 = vpop.f32.mrf.mxu0 }
 0x2c1   :  { %5206 = vst.msk [vmem:[%s11172_s4 + $0xb0] sm:$0xff] %vm5183_vm3, %v5141_v37  ;;  %v5079_v36 = vadd.f32 %v10720_v13, %v5008_v62  ;;  %v5011_v51 = vmul.f32 %v10714_v48, %v4940_v0  ;;  %v4939_v27 = vadd.f32 %v4724_v15, %v4469_v6  ;;  %v4472_v12 = vadd.f32 %v7156_v16, %v10601_v54 }
 0x2c2   :  { %v5144_v63 = vmax.f32 %v5080_v41, 0.0  ;;  %v4264_v28 = vpop.f32.mrf.mxu1  ;;  %v4734_v11 = vpop.f32.mrf.mxu0 }
 0x2c3   :  { %v5143_v44 = vmax.f32 %v5079_v36, 0.0  ;;  %v5082_v33 = vadd.f32 %v10720_v13, %v5011_v51  ;;  %v5010_v1 = vmul.f32 %v10714_v48, %v4939_v27  ;;  %v4942_v59 = vadd.f32 %v7254_v5, %v4472_v12 }
 0x2c4   :  { %5209 = vst.msk [vmem:[%s11172_s4 + $0xc8] sm:$0xff] %vm5183_vm3, %v5144_v63  ;;  %v4471_v22 = vadd.f32 %v4264_v28, %v10606_v17  ;;  %v7159_v56 = vpop.f32.mrf.mxu1  ;;  %v7257_v35 = vpop.f32.mrf.mxu0 }
 0x2c5   :  { %5208 = vst.msk [vmem:[%s11172_s4 + $0xc0] sm:$0xff] %vm5183_vm3, %v5143_v44  ;;  %v5146_v54 = vmax.f32 %v5082_v33, 0.0  ;;  %v5081_v53 = vadd.f32 %v10720_v13, %v5010_v1  ;;  %v5013_v31 = vmul.f32 %v10714_v48, %v4942_v59  ;;  %v4474_v18 = vadd.f32 %v7159_v56, %v10609_v39 }
 0x2c6   :  { %v4941_v30 = vadd.f32 %v4734_v11, %v4471_v22  ;;  %v4274_v55 = vpop.f32.mrf.mxu1  ;;  %v4744_v49 = vpop.f32.mrf.mxu0 }
 0x2c7   :  { %5211 = vst.msk [vmem:[%s11172_s4 + $0xd8] sm:$0xff] %vm5183_vm3, %v5146_v54  ;;  %v5145_v17 = vmax.f32 %v5081_v53, 0.0  ;;  %v5084_v14 = vadd.f32 %v10720_v13, %v5013_v31  ;;  %v4944_v32 = vadd.f32 %v7257_v35, %v4474_v18  ;;  %v4473_v20 = vadd.f32 %v4274_v55, %v10612_v50 }
 0x2c8   :  { %v5012_v19 = vmul.f32 %v10714_v48, %v4941_v30  ;;  %v7162_v60 = vpop.f32.mrf.mxu1  ;;  %v7260_v42 = vpop.f32.mrf.mxu0 }
 0x2c9   :  { %5210 = vst.msk [vmem:[%s11172_s4 + $0xd0] sm:$0xff] %vm5183_vm3, %v5145_v17  ;;  %v5148_v39 = vmax.f32 %v5084_v14, 0.0  ;;  %v5015_v8 = vmul.f32 %v10714_v48, %v4944_v32  ;;  %v4943_v2 = vadd.f32 %v4744_v49, %v4473_v20  ;;  %v4476_v47 = vadd.f32 %v7162_v60, %v10615_v38  ;;  %v12224_v49 = vld [vmem:[#allocation21_spill] sm:$0xff] }
 0x2ca   :  { %v5083_v52 = vadd.f32 %v10720_v13, %v5012_v19  ;;  %v4284_v40 = vpop.f32.mrf.mxu1  ;;  %v4754_v9 = vpop.f32.mrf.mxu0 }
 0x2cb   :  { %5213 = vst.msk [vmem:[%s11172_s4 + $0xe8] sm:$0xff] %vm5183_vm3, %v5148_v39  ;;  %v5086_v50 = vadd.f32 %v10720_v13, %v5015_v8  ;;  %v5014_v26 = vmul.f32 %v10714_v48, %v4943_v2  ;;  %v4946_v29 = vadd.f32 %v7260_v42, %v4476_v47  ;;  %v4475_v23 = vadd.f32 %v4284_v40, %v10618_v21  ;;  %v12225_v39 = vld [vmem:[#allocation168_spill] sm:$0xff] }
 0x2cc   :  { %v5147_v58 = vmax.f32 %v5083_v52, 0.0  ;;  %v7165_v15 = vpop.f32.mrf.mxu1  ;;  %v7263_v37 = vpop.f32.mrf.mxu0 }
 0x2cd   :  { %v5150_v38 = vmax.f32 %v5086_v50, 0.0  ;;  %v5085_v62 = vadd.f32 %v10720_v13, %v5014_v26  ;;  %v5017_v0 = vmul.f32 %v10714_v48, %v4946_v29  ;;  %v4945_v6 = vadd.f32 %v4754_v9, %v4475_v23  ;;  %v12226_v50 = vld [vmem:[#allocation167_spill] sm:$0xff] }
 0x2ce   :  { %5212 = vst.msk [vmem:[%s11172_s4 + $0xe0] sm:$0xff] %vm5183_vm3, %v5147_v58  ;;  %v4478_v41 = vadd.f32 %v7165_v15, %v10621_v61  ;;  %v4294_v16 = vpop.f32.mrf.mxu1  ;;  %v4764_v5 = vpop.f32.mrf.mxu0 }
 0x2cf   :  { %5215 = vst.msk [vmem:[%s11172_s4 + $0xf8] sm:$0xff] %vm5183_vm3, %v5150_v38  ;;  %v5149_v21 = vmax.f32 %v5085_v62, 0.0  ;;  %v5088_v36 = vadd.f32 %v10720_v13, %v5017_v0  ;;  %v5016_v51 = vmul.f32 %v10714_v48, %v4945_v6  ;;  %v4477_v27 = vadd.f32 %v4294_v16, %v10624_v25  ;;  %v12227_v62 = vld [vmem:[#allocation23_spill] sm:$0xff] }
 0x2d0   :  { %v4948_v12 = vadd.f32 %v7263_v37, %v4478_v41  ;;  %v7168_v63 = vpop.f32.mrf.mxu1  ;;  %v7266_v28 = vpop.f32.mrf.mxu0 }
 0x2d1   :  { %5214 = vst.msk [vmem:[%s11172_s4 + $0xf0] sm:$0xff] %vm5183_vm3, %v5149_v21  ;;  %v5152_v61 = vmax.f32 %v5088_v36, 0.0  ;;  %v5087_v11 = vadd.f32 %v10720_v13, %v5016_v51  ;;  %v4947_v44 = vadd.f32 %v4764_v5, %v4477_v27  ;;  %v4480_v33 = vadd.f32 %v7168_v63, %v10627_v3  ;;  %v12228_v51 = vld [vmem:[#allocation170_spill] sm:$0xff] }
 0x2d2   :  { %v5019_v1 = vmul.f32 %v10714_v48, %v4948_v12  ;;  %v4304_v59 = vpop.f32.mrf.mxu1  ;;  %v4774_v22 = vpop.f32.mrf.mxu0 }
 0x2d3   :  { %5217 = vst.msk [vmem:[%s11172_s4 + $0x108] sm:$0xff] %vm5183_vm3, %v5152_v61  ;;  %v5151_v25 = vmax.f32 %v5087_v11, 0.0  ;;  %v5018_v56 = vmul.f32 %v10714_v48, %v4947_v44  ;;  %v4950_v35 = vadd.f32 %v7266_v28, %v4480_v33  ;;  %v4479_v54 = vadd.f32 %v4304_v59, %v10630_v46  ;;  %v12229_v33 = vld [vmem:[#allocation169_spill] sm:$0xff] }
 0x2d4   :  { %v5090_v53 = vadd.f32 %v10720_v13, %v5019_v1  ;;  %v7171_v31 = vpop.f32.mrf.mxu1  ;;  %v7269_v18 = vpop.f32.mrf.mxu0 }
 0x2d5   :  { %5216 = vst.msk [vmem:[%s11172_s4 + $0x100] sm:$0xff] %vm5183_vm3, %v5151_v25  ;;  %v5089_v3 = vadd.f32 %v10720_v13, %v5018_v56  ;;  %v5021_v30 = vmul.f32 %v10714_v48, %v4950_v35  ;;  %v4949_v55 = vadd.f32 %v4774_v22, %v4479_v54  ;;  %v4482_v17 = vadd.f32 %v7171_v31, %v12224_v49  ;;  %v12230_v31 = vld [vmem:[#allocation27_spill] sm:$0xff] }
 0x2d6   :  { %v5154_v14 = vmax.f32 %v5090_v53, 0.0  ;;  %v4314_v32 = vpop.f32.mrf.mxu1  ;;  %v4784_v20 = vpop.f32.mrf.mxu0 }
 0x2d7   :  { %v5153_v46 = vmax.f32 %v5089_v3, 0.0  ;;  %v5092_v19 = vadd.f32 %v10720_v13, %v5021_v30  ;;  %v5020_v60 = vmul.f32 %v10714_v48, %v4949_v55  ;;  %v4952_v42 = vadd.f32 %v7269_v18, %v4482_v17 }
 0x2d8   :  { %5219 = vst.msk [vmem:[%s11172_s4 + $0x118] sm:$0xff] %vm5183_vm3, %v5154_v14  ;;  %v4481_v8 = vadd.f32 %v4314_v32, %v12225_v39  ;;  %v7174_v2 = vpop.f32.mrf.mxu1  ;;  %v7272_v47 = vpop.f32.mrf.mxu0  ;;  %v12231_v14 = vld [vmem:[#allocation172_spill] sm:$0xff] }
 0x2d9   :  { %5218 = vst.msk [vmem:[%s11172_s4 + $0x110] sm:$0xff] %vm5183_vm3, %v5153_v46  ;;  %v5156_v52 = vmax.f32 %v5092_v19, 0.0  ;;  %v5091_v40 = vadd.f32 %v10720_v13, %v5020_v60  ;;  %v5023_v9 = vmul.f32 %v10714_v48, %v4952_v42  ;;  %v4484_v26 = vadd.f32 %v7174_v2, %v12226_v50 }
 0x2da   :  { %v4951_v29 = vadd.f32 %v4784_v20, %v4481_v8  ;;  %v4324_v23 = vpop.f32.mrf.mxu1  ;;  %v4794_v58 = vpop.f32.mrf.mxu0  ;;  %v12232_v8 = vld [vmem:[#allocation171_spill] sm:$0xff] }
 0x2db   :  { %5221 = vst.msk [vmem:[%s11172_s4 + $0x128] sm:$0xff] %vm5183_vm3, %v5156_v52  ;;  %v5155_v15 = vmax.f32 %v5091_v40, 0.0  ;;  %v5094_v37 = vadd.f32 %v10720_v13, %v5023_v9  ;;  %v4954_v38 = vadd.f32 %v7272_v47, %v4484_v26  ;;  %v4483_v0 = vadd.f32 %v4324_v23, %v12227_v62 }
 0x2dc   :  { %v5022_v6 = vmul.f32 %v10714_v48, %v4951_v29  ;;  %v7177_v41 = vpop.f32.mrf.mxu1  ;;  %v7275_v16 = vpop.f32.mrf.mxu0  ;;  %v12233_v29 = vld [vmem:[#allocation33_spill] sm:$0xff] }
 0x2dd   :  { %5220 = vst.msk [vmem:[%s11172_s4 + $0x120] sm:$0xff] %vm5183_vm3, %v5155_v15  ;;  %v5158_v5 = vmax.f32 %v5094_v37, 0.0  ;;  %v5025_v21 = vmul.f32 %v10714_v48, %v4954_v38  ;;  %v4953_v36 = vadd.f32 %v4794_v58, %v4483_v0  ;;  %v4486_v27 = vadd.f32 %v7177_v41, %v12228_v51 }
 0x2de   :  { %v5093_v12 = vadd.f32 %v10720_v13, %v5022_v6  ;;  %v4334_v63 = vpop.f32.mrf.mxu1  ;;  %v4804_v28 = vpop.f32.mrf.mxu0  ;;  %v12234_v6 = vld [vmem:[#allocation174_spill] sm:$0xff] }
 0x2df   :  { %5223 = vst.msk [vmem:[%s11172_s4 + $0x138] sm:$0xff] %vm5183_vm3, %v5158_v5  ;;  %v5096_v61 = vadd.f32 %v10720_v13, %v5025_v21  ;;  %v5024_v11 = vmul.f32 %v10714_v48, %v4953_v36  ;;  %v4956_v44 = vadd.f32 %v7275_v16, %v4486_v27  ;;  %v4485_v1 = vadd.f32 %v4334_v63, %v12229_v33  ;;  %v12235_v63 = vld [vmem:[#allocation173_spill] sm:$0xff] }
 0x2e0   :  { %v5157_v59 = vmax.f32 %v5093_v12, 0.0  ;;  %v7180_v22 = vpop.f32.mrf.mxu1  ;;  %v7278_v25 = vpop.f32.mrf.mxu0 }
 0x2e1   :  { %v5160_v56 = vmax.f32 %v5096_v61, 0.0  ;;  %v5095_v35 = vadd.f32 %v10720_v13, %v5024_v11  ;;  %v5027_v54 = vmul.f32 %v10714_v48, %v4956_v44  ;;  %v4955_v53 = vadd.f32 %v4804_v28, %v4485_v1 }
 0x2e2   :  { %5222 = vst.msk [vmem:[%s11172_s4 + $0x130] sm:$0xff] %vm5183_vm3, %v5157_v59  ;;  %v4488_v18 = vadd.f32 %v7180_v22, %v12230_v31  ;;  %v4344_v3 = vpop.f32.mrf.mxu1  ;;  %v4814_v30 = vpop.f32.mrf.mxu0  ;;  %v12236_v59 = vld [vmem:[#allocation35_spill] sm:$0xff] }
 0x2e3   :  { %5225 = vst.msk [vmem:[%s11172_s4 + $0x148] sm:$0xff] %vm5183_vm3, %v5160_v56  ;;  %v5159_v55 = vmax.f32 %v5095_v35, 0.0  ;;  %v5098_v49 = vadd.f32 %v10720_v13, %v5027_v54  ;;  %v5026_v17 = vmul.f32 %v10714_v48, %v4955_v53  ;;  %v4487_v32 = vadd.f32 %v4344_v3, %v12231_v14 }
 0x2e4   :  { %v4958_v20 = vadd.f32 %v7278_v25, %v4488_v18  ;;  %v7183_v46 = vpop.f32.mrf.mxu1  ;;  %v7281_v19 = vpop.f32.mrf.mxu0  ;;  %v12237_v18 = vld [vmem:[#allocation176_spill] sm:$0xff] }
 0x2e5   :  { %5224 = vst.msk [vmem:[%s11172_s4 + $0x140] sm:$0xff] %vm5183_vm3, %v5159_v55  ;;  %v5162_v60 = vmax.f32 %v5098_v49, 0.0  ;;  %v5097_v42 = vadd.f32 %v10720_v13, %v5026_v17  ;;  %v4957_v39 = vadd.f32 %v4814_v30, %v4487_v32  ;;  %v4490_v2 = vadd.f32 %v7183_v46, %v12232_v8 }
 0x2e6   :  { %v5029_v47 = vmul.f32 %v10714_v48, %v4958_v20  ;;  %v4354_v52 = vpop.f32.mrf.mxu1  ;;  %v4824_v40 = vpop.f32.mrf.mxu0  ;;  %v12238_v20 = vld [vmem:[#allocation175_spill] sm:$0xff] }
 0x2e7   :  { %5227 = vst.msk [vmem:[%s11172_s4 + $0x158] sm:$0xff] %vm5183_vm3, %v5162_v60  ;;  %v5161_v9 = vmax.f32 %v5097_v42, 0.0  ;;  %v5028_v50 = vmul.f32 %v10714_v48, %v4957_v39  ;;  %v4960_v26 = vadd.f32 %v7281_v19, %v4490_v2  ;;  %v4489_v23 = vadd.f32 %v4354_v52, %v12233_v29 }
 0x2e8   :  { %v5100_v58 = vadd.f32 %v10720_v13, %v5029_v47  ;;  %v7186_v15 = vpop.f32.mrf.mxu1  ;;  %v7284_v37 = vpop.f32.mrf.mxu0  ;;  %v12239_v47 = vld [vmem:[#allocation178_spill] sm:$0xff] }
 0x2e9   :  { %5226 = vst.msk [vmem:[%s11172_s4 + $0x150] sm:$0xff] %vm5183_vm3, %v5161_v9  ;;  %v5099_v38 = vadd.f32 %v10720_v13, %v5028_v50  ;;  %v5031_v62 = vmul.f32 %v10714_v48, %v4960_v26  ;;  %v4959_v0 = vadd.f32 %v4824_v40, %v4489_v23  ;;  %v4492_v41 = vadd.f32 %v7186_v15, %v12234_v6 }
 0x2ea   :  { %v5164_v16 = vmax.f32 %v5100_v58, 0.0  ;;  %v4364_v5 = vpop.f32.mrf.mxu1  ;;  %v4834_v21 = vpop.f32.mrf.mxu0 }
 0x2eb   :  { %v5163_v36 = vmax.f32 %v5099_v38, 0.0  ;;  %v5102_v51 = vadd.f32 %v10720_v13, %v5031_v62  ;;  %v5030_v27 = vmul.f32 %v10714_v48, %v4959_v0  ;;  %v4962_v12 = vadd.f32 %v7284_v37, %v4492_v41 }
 0x2ec   :  { %5229 = vst.msk [vmem:[%s11172_s4 + $0x168] sm:$0xff] %vm5183_vm3, %v5164_v16  ;;  %v4491_v28 = vadd.f32 %v4364_v5, %v12235_v63  ;;  %v7189_v61 = vpop.f32.mrf.mxu1  ;;  %v7287_v11 = vpop.f32.mrf.mxu0 }
 0x2ed   :  { %5228 = vst.msk [vmem:[%s11172_s4 + $0x160] sm:$0xff] %vm5183_vm3, %v5163_v36  ;;  %v5166_v44 = vmax.f32 %v5102_v51, 0.0  ;;  %v5101_v33 = vadd.f32 %v10720_v13, %v5030_v27  ;;  %v5033_v1 = vmul.f32 %v10714_v48, %v4962_v12  ;;  %v4494_v22 = vadd.f32 %v7189_v61, %v12236_v59 }
 0x2ee   :  { %v4961_v25 = vadd.f32 %v4834_v21, %v4491_v28  ;;  %v4374_v56 = vpop.f32.mrf.mxu1  ;;  %v4844_v35 = vpop.f32.mrf.mxu0 }
 0x2ef   :  { %5231 = vst.msk [vmem:[%s11172_s4 + $0x178] sm:$0xff] %vm5183_vm3, %v5166_v44  ;;  %v5165_v54 = vmax.f32 %v5101_v33, 0.0  ;;  %v5104_v53 = vadd.f32 %v10720_v13, %v5033_v1  ;;  %v4964_v31 = vadd.f32 %v7287_v11, %v4494_v22  ;;  %v4493_v3 = vadd.f32 %v4374_v56, %v12237_v18 }
 0x2f0   :  { %v5032_v30 = vmul.f32 %v10714_v48, %v4961_v25  ;;  %v7192_v55 = vpop.f32.mrf.mxu1  ;;  %v7290_v49 = vpop.f32.mrf.mxu0 }
 0x2f1   :  { %5230 = vst.msk [vmem:[%s11172_s4 + $0x170] sm:$0xff] %vm5183_vm3, %v5165_v54  ;;  %v5168_v17 = vmax.f32 %v5104_v53, 0.0  ;;  %v5035_v14 = vmul.f32 %v10714_v48, %v4964_v31  ;;  %v4963_v32 = vadd.f32 %v4844_v35, %v4493_v3  ;;  %v4496_v46 = vadd.f32 %v7192_v55, %v12238_v20 }
 0x2f2   :  { %v5103_v19 = vadd.f32 %v10720_v13, %v5032_v30  ;;  %v4384_v60 = vpop.f32.mrf.mxu1  ;;  %v4854_v42 = vpop.f32.mrf.mxu0 }
 0x2f3   :  { %5233 = vst.msk [vmem:[%s11172_s4 + $0x188] sm:$0xff] %vm5183_vm3, %v5168_v17  ;;  %v5106_v39 = vadd.f32 %v10720_v13, %v5035_v14  ;;  %v5034_v8 = vmul.f32 %v10714_v48, %v4963_v32  ;;  %v4966_v2 = vadd.f32 %v7290_v49, %v4496_v46  ;;  %v4495_v52 = vadd.f32 %v4384_v60, %v12239_v47 }
 0x2f4   :  { %v5167_v40 = vmax.f32 %v5103_v19, 0.0  ;;  %v7195_v9 = vpop.f32.mrf.mxu1  ;;  %v7293_v50 = vpop.f32.mrf.mxu0 }
 0x2f5   :  { %v5170_v26 = vmax.f32 %v5106_v39, 0.0  ;;  %v5105_v29 = vadd.f32 %v10720_v13, %v5034_v8  ;;  %v5037_v23 = vmul.f32 %v10714_v48, %v4966_v2  ;;  %v4965_v58 = vadd.f32 %v4854_v42, %v4495_v52 }
 0x2f6   :  { %5232 = vst.msk [vmem:[%s11172_s4 + $0x180] sm:$0xff] %vm5183_vm3, %v5167_v40  ;;  %v4498_v15 = vadd.f32 %v7195_v9, %v10681_v43  ;;  %v4394_v37 = vpop.f32.mrf.mxu1  ;;  %v4864_v38 = vpop.f32.mrf.mxu0  ;;  %v12240_v9 = vld [vmem:[#allocation177_spill] sm:$0xff] }
 0x2f7   :  { %5235 = vst.msk [vmem:[%s11172_s4 + $0x198] sm:$0xff] %vm5183_vm3, %v5170_v26  ;;  %v5169_v62 = vmax.f32 %v5105_v29, 0.0  ;;  %v5108_v0 = vadd.f32 %v10720_v13, %v5037_v23  ;;  %v5036_v6 = vmul.f32 %v10714_v48, %v4965_v58  ;;  %v4497_v41 = vadd.f32 %v4394_v37, %v10684_v57 }
 0x2f8   :  { %v4968_v16 = vadd.f32 %v7293_v50, %v4498_v15  ;;  %v7198_v5 = vpop.f32.mrf.mxu1  ;;  %v7296_v21 = vpop.f32.mrf.mxu0  ;;  %v12241_v15 = vld [vmem:[#allocation180_spill] sm:$0xff] }
 0x2f9   :  { %5234 = vst.msk [vmem:[%s11172_s4 + $0x190] sm:$0xff] %vm5183_vm3, %v5169_v62  ;;  %v5172_v43 = vmax.f32 %v5108_v0, 0.0  ;;  %v5107_v36 = vadd.f32 %v10720_v13, %v5036_v6  ;;  %v4967_v51 = vadd.f32 %v4864_v38, %v4497_v41  ;;  %v4500_v27 = vadd.f32 %v7198_v5, %v10687_v7 }
 0x2fa   :  { %v5039_v12 = vmul.f32 %v10714_v48, %v4968_v16  ;;  %v4404_v63 = vpop.f32.mrf.mxu1  ;;  %v4874_v28 = vpop.f32.mrf.mxu0 }
 0x2fb   :  { %5237 = vst.msk [vmem:[%s11172_s4 + $0x1a8] sm:$0xff] %vm5183_vm3, %v5172_v43  ;;  %v5171_v57 = vmax.f32 %v5107_v36, 0.0  ;;  %v5038_v61 = vmul.f32 %v10714_v48, %v4967_v51  ;;  %v4970_v11 = vadd.f32 %v7296_v21, %v4500_v27  ;;  %v4499_v44 = vadd.f32 %v4404_v63, %v10690_v10 }
 0x2fc   :  { %v5110_v33 = vadd.f32 %v10720_v13, %v5039_v12  ;;  %v7201_v1 = vpop.f32.mrf.mxu1  ;;  %v7299_v59 = vpop.f32.mrf.mxu0 }
 0x2fd   :  { %5236 = vst.msk [vmem:[%s11172_s4 + $0x1a0] sm:$0xff] %vm5183_vm3, %v5171_v57  ;;  %v5109_v7 = vadd.f32 %v10720_v13, %v5038_v61  ;;  %v5041_v22 = vmul.f32 %v10714_v48, %v4970_v11  ;;  %v4969_v25 = vadd.f32 %v4874_v28, %v4499_v44  ;;  %v4502_v56 = vadd.f32 %v7201_v1, %v10693_v4 }
 0x2fe   :  { %v5174_v35 = vmax.f32 %v5110_v33, 0.0  ;;  %v4414_v54 = vpop.f32.mrf.mxu1  ;;  %v4884_v53 = vpop.f32.mrf.mxu0 }
 0x2ff   :  { %v5173_v10 = vmax.f32 %v5109_v7, 0.0  ;;  %v5112_v31 = vadd.f32 %v10720_v13, %v5041_v22  ;;  %v5040_v18 = vmul.f32 %v10714_v48, %v4969_v25  ;;  %v4972_v3 = vadd.f32 %v7299_v59, %v4502_v56 }
 0x300   :  { %5239 = vst.msk [vmem:[%s11172_s4 + $0x1b8] sm:$0xff] %vm5183_vm3, %v5174_v35  ;;  %v4501_v30 = vadd.f32 %v4414_v54, %v10696_v45  ;;  %v7204_v55 = vpop.f32.mrf.mxu1  ;;  %v7302_v49 = vpop.f32.mrf.mxu0 }
 0x301   :  { %5238 = vst.msk [vmem:[%s11172_s4 + $0x1b0] sm:$0xff] %vm5183_vm3, %v5173_v10  ;;  %v5176_v4 = vmax.f32 %v5112_v31, 0.0  ;;  %v5111_v17 = vadd.f32 %v10720_v13, %v5040_v18  ;;  %v5043_v14 = vmul.f32 %v10714_v48, %v4972_v3  ;;  %v4504_v32 = vadd.f32 %v7204_v55, %v10699_v24 }
 0x302   :  { %v4971_v20 = vadd.f32 %v4884_v53, %v4501_v30  ;;  %v4424_v46 = vpop.f32.mrf.mxu1  ;;  %v4894_v19 = vpop.f32.mrf.mxu0 }
 0x303   :  { %5241 = vst.msk [vmem:[%s11172_s4 + $0x1c8] sm:$0xff] %vm5183_vm3, %v5176_v4  ;;  %v5175_v45 = vmax.f32 %v5111_v17, 0.0  ;;  %v5114_v60 = vadd.f32 %v10720_v13, %v5043_v14  ;;  %v4974_v42 = vadd.f32 %v7302_v49, %v4504_v32  ;;  %v4503_v39 = vadd.f32 %v4424_v46, %v10702_v34 }
 0x304   :  { %v5042_v8 = vmul.f32 %v10714_v48, %v4971_v20  ;;  %v7207_v2 = vpop.f32.mrf.mxu1  ;;  %v7305_v47 = vpop.f32.mrf.mxu0 }
 0x305   :  { %5240 = vst.msk [vmem:[%s11172_s4 + $0x1c0] sm:$0xff] %vm5183_vm3, %v5175_v45  ;;  %v5178_v24 = vmax.f32 %v5114_v60, 0.0  ;;  %v5045_v52 = vmul.f32 %v10714_v48, %v4974_v42  ;;  %v4973_v40 = vadd.f32 %v4894_v19, %v4503_v39  ;;  %v4506_v50 = vadd.f32 %v7207_v2, %v12240_v9 }
 0x306   :  { %v5113_v26 = vadd.f32 %v10720_v13, %v5042_v8  ;;  %v4434_v29 = vpop.f32.mrf.mxu1  ;;  %v4904_v62 = vpop.f32.mrf.mxu0 }
 0x307   :  { %5243 = vst.msk [vmem:[%s11172_s4 + $0x1d8] sm:$0xff] %vm5183_vm3, %v5178_v24  ;;  %v5116_v34 = vadd.f32 %v10720_v13, %v5045_v52  ;;  %v5044_v23 = vmul.f32 %v10714_v48, %v4973_v40  ;;  %v4976_v58 = vadd.f32 %v7305_v47, %v4506_v50  ;;  %v4505_v37 = vadd.f32 %v4434_v29, %v12241_v15 }
 0x308   :  { %v5177_v38 = vmax.f32 %v5113_v26, 0.0 }
 0x309   :  { %v5180_v0 = vmax.f32 %v5116_v34, 0.0  ;;  %v5115_v6 = vadd.f32 %v10720_v13, %v5044_v23  ;;  %v5047_v41 = vmul.f32 %v10714_v48, %v4976_v58  ;;  %v4975_v16 = vadd.f32 %v4904_v62, %v4505_v37 }
 0x30a   :  { %5242 = vst.msk [vmem:[%s11172_s4 + $0x1d0] sm:$0xff] %vm5183_vm3, %v5177_v38 }
 0x30b   :  { %5245 = vst.msk [vmem:[%s11172_s4 + $0x1e8] sm:$0xff] %vm5183_vm3, %v5180_v0  ;;  %v5179_v5 = vmax.f32 %v5115_v6, 0.0  ;;  %v5118_v21 = vadd.f32 %v10720_v13, %v5047_v41  ;;  %v5046_v43 = vmul.f32 %v10714_v48, %v4975_v16 }
 0x30d   :  { %5244 = vst.msk [vmem:[%s11172_s4 + $0x1e0] sm:$0xff] %vm5183_vm3, %v5179_v5  ;;  %v5182_v36 = vmax.f32 %v5118_v21, 0.0  ;;  %v5117_v51 = vadd.f32 %v10720_v13, %v5046_v43 }
 0x30f   :  { %5247 = vst.msk [vmem:[%s11172_s4 + $0x1f8] sm:$0xff] %vm5183_vm3, %v5182_v36  ;;  %v5181_v27 = vmax.f32 %v5117_v51, 0.0 }
 0x311   :  { %5246 = vst.msk [vmem:[%s11172_s4 + $0x1f0] sm:$0xff] %vm5183_vm3, %v5181_v27 }

// kernel: frequency_module_forward.6
= control target key start
LH: loop header
LB: loop body
LE: loop exit
PB: predicated region body
PF: predicated region fallthrough
CT: control target
= control target key end

     0   :  { %vm200_vm0 = vcmask 523264   ;;  %vm603_vm1 = vcmask 1046528   ;;  %s4123_s4 = inlined_call_operand.vmem [shape: f32[9,64,128], index: 4, kind: input, shape index: {}]   ;;  %s4124_s1 = inlined_call_operand.vmem [shape: f32[2,9,9,64], index: 1, kind: input, shape index: {}]   ;;  %s4125_s0 = inlined_call_operand.vmem [shape: f32[2,9,9,64], index: 0, kind: input, shape index: {}]   ;;  %s4126_s2 = inlined_call_operand.vmem [shape: f32[2,9,9,64], index: 2, kind: input, shape index: {}]   ;;  %s4127_s3 = inlined_call_operand.vmem [shape: f32[2,9,9,64], index: 3, kind: input, shape index: {}]   ;;  %s4128_s5 = inlined_call_operand.vmem [shape: f32[1,128], index: 5, kind: input, shape index: {}]   ;;  %s4129_s6 = inlined_call_operand.vmem [shape: f32[1,128], index: 6, kind: input, shape index: {}]   ;;  %s4130_s7 = inlined_call_operand.vmem [shape: f32[128,128], index: 7, kind: output, shape index: {}]  }
   0x1   :  { %v143_v0 = vld [vmem:[%s4123_s4 + $0x78] sm:$0xff]  ;;  %v142_v1 = vld [vmem:[%s4123_s4 + $0x70] sm:$0xff]  ;;  %v141_v2 = vld [vmem:[%s4123_s4 + $0x68] sm:$0xff] }
   0x2   :  { %2831 = vmatprep.subr.mxu1 %v143_v0  ;;  %2471 = vmatprep.subr.mxu0 %v143_v0  ;;  %v140_v3 = vld [vmem:[%s4123_s4 + $0x60] sm:$0xff]  ;;  %v139_v4 = vld [vmem:[%s4123_s4 + $0x58] sm:$0xff]  ;;  %v138_v5 = vld [vmem:[%s4123_s4 + $0x50] sm:$0xff] }
   0x3   :  { %2839 = vmatpush3.msra.mxu1 %v143_v0  ;;  %2472 = vmatpush3.msra.mxu0 %v143_v0  ;;  %v137_v6 = vld [vmem:[%s4123_s4 + $0x48] sm:$0xff]  ;;  %v136_v7 = vld [vmem:[%s4123_s4 + $0x40] sm:$0xff]  ;;  %v71_v8 = vld [vmem:[%s4124_s1 + $0x90] sm:$0xff] }
   0x4   :  { %2832 = vmatprep.subr.mxu1 %v142_v1  ;;  %2473 = vmatprep.subr.mxu0 %v142_v1  ;;  %v62_v9 = vld [vmem:[%s4124_s1] sm:$0xff]  ;;  %v135_v11 = vld [vmem:[%s4123_s4 + $0x38] sm:$0xff]  ;;  %v2930_v12 = vld [vmem:[%s4124_s1 + $0x10] sm:$0xff] }
   0x5   :  { %2840 = vmatpush3.msra.mxu1 %v142_v1  ;;  %2474 = vmatpush3.msra.mxu0 %v142_v1  ;;  %v72_v10 = vld [vmem:[%s4124_s1 + $0xa0] sm:$0xff]  ;;  %v151_v13 = vld [vmem:[%s4123_s4 + $0xb8] sm:$0xff]  ;;  %v134_v14 = vld [vmem:[%s4123_s4 + $0x30] sm:$0xff] }
   0x6   :  { %2833 = vmatprep.subr.mxu1 %v141_v2  ;;  %2475 = vmatprep.subr.mxu0 %v141_v2  ;;  %v73_v15 = vld [vmem:[%s4124_s1 + $0xb0] sm:$0xff]  ;;  %v2951_v17 = vld [vmem:[%s4124_s1 + $0x20] sm:$0xff]  ;;  %v133_v19 = vld [vmem:[%s4123_s4 + $0x28] sm:$0xff] }
   0x7   :  { %2841 = vmatpush3.msra.mxu1 %v141_v2  ;;  %2476 = vmatpush3.msra.mxu0 %v141_v2  ;;  %v150_v16 = vld [vmem:[%s4123_s4 + $0xb0] sm:$0xff]  ;;  %v74_v18 = vld [vmem:[%s4124_s1 + $0xc0] sm:$0xff]  ;;  %v149_v21 = vld [vmem:[%s4123_s4 + $0xa8] sm:$0xff] }
   0x8   :  { %2834 = vmatprep.subr.mxu1 %v140_v3  ;;  %2477 = vmatprep.subr.mxu0 %v140_v3  ;;  %v2963_v20 = vld [vmem:[%s4124_s1 + $0x30] sm:$0xff]  ;;  %v132_v22 = vld [vmem:[%s4123_s4 + $0x20] sm:$0xff]  ;;  %v131_v27 = vld [vmem:[%s4123_s4 + $0x18] sm:$0xff] }
   0x9   :  { %2842 = vmatpush3.msra.mxu1 %v140_v3  ;;  %2478 = vmatpush3.msra.mxu0 %v140_v3  ;;  %v2977_v23 = vld [vmem:[%s4124_s1 + $0xd0] sm:$0xff]  ;;  %v148_v24 = vld [vmem:[%s4123_s4 + $0xa0] sm:$0xff]  ;;  %v147_v29 = vld [vmem:[%s4123_s4 + $0x98] sm:$0xff] }
   0xa   :  { %2835 = vmatprep.subr.mxu1 %v139_v4  ;;  %2479 = vmatprep.subr.mxu0 %v139_v4  ;;  %4140 = vst [vmem:[#allocation2_spill] sm:$0xff] %v2977_v23  ;;  %v2987_v25 = vld [vmem:[%s4124_s1 + $0x40] sm:$0xff]  ;;  %v3002_v28 = vld [vmem:[%s4124_s1 + $0x50] sm:$0xff]  ;;  %v27_v36 = vld [vmem:[%s4125_s0 + $0x8] sm:$0x1] }
   0xb   :  { %2843 = vmatpush3.msra.mxu1 %v139_v4  ;;  %2480 = vmatpush3.msra.mxu0 %v139_v4  ;;  %v2992_v26 = vld [vmem:[%s4124_s1 + $0xe0] sm:$0xff]  ;;  %v130_v30 = vld [vmem:[%s4123_s4 + $0x10] sm:$0xff]  ;;  %v129_v37 = vld [vmem:[%s4123_s4 + $0x8] sm:$0xff]  ;;  %v605_v44 = vrot.slane %v27_v36, 1 }
   0xc   :  { %2836 = vmatprep.subr.mxu1 %v138_v5  ;;  %2481 = vmatprep.subr.mxu0 %v138_v5  ;;  %4141 = vst [vmem:[#allocation3_spill] sm:$0xff] %v2992_v26  ;;  %v3017_v31 = vld [vmem:[%s4124_s1 + $0xf0] sm:$0xff]  ;;  %v3027_v33 = vld [vmem:[%s4124_s1 + $0x60] sm:$0xff]  ;;  %v29_v39 = vld [vmem:[%s4125_s0 + $0x18] sm:$0x1] }
   0xd   :  { %2844 = vmatpush3.msra.mxu1 %v138_v5  ;;  %2482 = vmatpush3.msra.mxu0 %v138_v5  ;;  %4142 = vst [vmem:[#allocation4_spill] sm:$0xff] %v3017_v31  ;;  %v146_v32 = vld [vmem:[%s4123_s4 + $0x90] sm:$0xff]  ;;  %v3032_v34 = vld [vmem:[%s4124_s1 + $0x100] sm:$0xff]  ;;  %v145_v41 = vld [vmem:[%s4123_s4 + $0x88] sm:$0xff]  ;;  %v608_v46 = vrot.slane %v29_v39, 1 }
   0xe   :  { %2837 = vmatprep.subr.mxu1 %v137_v6  ;;  %2483 = vmatprep.subr.mxu0 %v137_v6  ;;  %4143 = vst [vmem:[#allocation5_spill] sm:$0xff] %v3032_v34  ;;  %v26_v35 = vld [vmem:[%s4125_s0] sm:$0xff]  ;;  %v3048_v38 = vld [vmem:[%s4125_s0 + $0x10] sm:$0xff]  ;;  %v31_v48 = vld [vmem:[%s4125_s0 + $0x28] sm:$0x1] }
   0xf   :  { %2845 = vmatpush3.msra.mxu1 %v137_v6  ;;  %2484 = vmatpush3.msra.mxu0 %v137_v6  ;;  %v3056_v40 = vld [vmem:[%s4124_s1 + $0x70] sm:$0xff]  ;;  %v128_v42 = vld [vmem:[%s4123_s4] sm:$0xff]  ;;  %v604_v43 = vrot.slane %v26_v35, 1  ;;  %v607_v45 = vrot.slane %v3048_v38, 1  ;;  %v33_v51 = vld [vmem:[%s4125_s0 + $0x38] sm:$0x1] }
  0x10   :  { %2838 = vmatprep.subr.mxu1 %v136_v7  ;;  %2485 = vmatprep.subr.mxu0 %v136_v7  ;;  %v3072_v47 = vld [vmem:[%s4125_s0 + $0x20] sm:$0xff]  ;;  %v3085_v50 = vld [vmem:[%s4125_s0 + $0x30] sm:$0xff]  ;;  %v159_v53 = vld [vmem:[%s4123_s4 + $0xf8] sm:$0xff]  ;;  %v611_v55 = vrot.slane %v31_v48, 1  ;;  %v614_v58 = vrot.slane %v33_v51, 1 }
  0x11   :  { %2846 = vmatpush3.msra.mxu1 %v136_v7  ;;  %2499 = vmatprep.mubr.msk.f32.mxu1 %vm200_vm0, %v71_v8  ;;  %v144_v49 = vld [vmem:[%s4123_s4 + $0x80] sm:$0xff]  ;;  %v606_v52 = vsel %vm603_vm1, %v604_v43, %v605_v44  ;;  %v610_v54 = vrot.slane %v3072_v47, 1  ;;  %v3097_v56 = vsel %vm603_vm1, %v607_v45, %v608_v46  ;;  %v613_v57 = vrot.slane %v3085_v50, 1  ;;  %v35_v60 = vld [vmem:[%s4125_s0 + $0x48] sm:$0x1]  ;;  %v167_v61 = vld [vmem:[%s4123_s4 + $0x138] sm:$0xff] }
  0x12   :  { %2486 = vmatpush3.msra.mxu0 %v136_v7  ;;  %2487 = vmatprep.mubr.msk.f32.mxu0 %vm200_vm0, %v62_v9  ;;  %v3103_v59 = vld [vmem:[%s4125_s0 + $0x40] sm:$0xff]  ;;  %v3116_v62 = vld [vmem:[%s4125_s0 + $0x50] sm:$0xff]  ;;  %v37_v63 = vld [vmem:[%s4125_s0 + $0x58] sm:$0x1]  ;;  %v617_v3 = vrot.slane %v35_v60, 1 }
  0x13   :  { %2500 = vmatmul.mubr.msk.f32.vlgmr.msra.gmra.mxu1 %vm200_vm0, %v72_v10  ;;  %2511 = vmatprep.subr.mxu1 %v135_v11  ;;  %v3125_v0 = vsel %vm603_vm1, %v610_v54, %v611_v55  ;;  %v158_v1 = vld [vmem:[%s4123_s4 + $0xf0] sm:$0xff]  ;;  %v616_v2 = vrot.slane %v3103_v59, 1  ;;  %v3134_v4 = vsel %vm603_vm1, %v613_v57, %v614_v58  ;;  %v619_v5 = vrot.slane %v3116_v62, 1  ;;  %v3140_v7 = vld [vmem:[%s4125_s0 + $0x60] sm:$0xff]  ;;  %v39_v8 = vld [vmem:[%s4125_s0 + $0x68] sm:$0x1] }
  0x14   :  { %2488 = vmatmul.mubr.msk.f32.vlgmr.msra.gmra.mxu0 %vm200_vm0, %v2930_v12  ;;  %2512 = vmatpush3.msra.mxu1 %v135_v11  ;;  %v620_v6 = vrot.slane %v37_v63, 1  ;;  %v166_v9 = vld [vmem:[%s4123_s4 + $0x130] sm:$0xff]  ;;  %v41_v11 = vld [vmem:[%s4125_s0 + $0x78] sm:$0x1]  ;;  %v3218_v44 = vld [vmem:[%s4125_s0 + $0xc0] sm:$0xff] }
  0x15   :  { %2551 = vmatprep.subr.mxu0 %v151_v13  ;;  %2513 = vmatprep.subr.mxu1 %v134_v14  ;;  %v3153_v10 = vld [vmem:[%s4125_s0 + $0x70] sm:$0xff]  ;;  %v49_v45 = vld [vmem:[%s4125_s0 + $0xb8] sm:$0x1]  ;;  %v164_v46 = vld [vmem:[%s4123_s4 + $0x120] sm:$0xff]  ;;  %v637_v54 = vrot.slane %v3218_v44, 1 }
  0x16   :  { %2552 = vmatpush3.msra.mxu0 %v151_v13  ;;  %2502 = vmatprep.mubr.msk.f32.mxu1 %vm200_vm0, %v73_v15  ;;  %v3163_v13 = vsel %vm603_vm1, %v616_v2, %v617_v3  ;;  %v622_v15 = vrot.slane %v3140_v7, 1  ;;  %v3213_v43 = vld [vmem:[%s4125_s0 + $0xb0] sm:$0xff]  ;;  %v51_v48 = vld [vmem:[%s4125_s0 + $0xc8] sm:$0x1]  ;;  %v155_v51 = vld [vmem:[%s4123_s4 + $0xd8] sm:$0xff]  ;;  %v635_v55 = vrot.slane %v49_v45, 1 }
  0x17   :  { %2514 = vmatpush3.msra.mxu1 %v134_v14  ;;  %2553 = vmatprep.subr.mxu0 %v150_v16  ;;  %v157_v14 = vld [vmem:[%s4123_s4 + $0xe8] sm:$0xff]  ;;  %v3247_v57 = vld [vmem:[%s4125_s0 + $0x80] sm:$0xff]  ;;  %v638_v60 = vrot.slane %v51_v48, 1  ;;  %v53_v63 = vld [vmem:[%s4125_s0 + $0xd8] sm:$0x1] }
  0x18   :  { %2490 = vmatprep.mubr.msk.f32.mxu0 %vm200_vm0, %v2951_v17  ;;  %2503 = vmatmul.mubr.msk.f32.gmra.mxu1 %vm200_vm0, %v74_v18  ;;  %v3172_v18 = vsel %vm603_vm1, %v619_v5, %v620_v6  ;;  %v3265_v2 = vld [vmem:[%s4125_s0 + $0x110] sm:$0xff]  ;;  %v3272_v3 = vld [vmem:[%s4125_s0 + $0xe0] sm:$0xff]  ;;  %v55_v5 = vld [vmem:[%s4125_s0 + $0xe8] sm:$0x1] }
  0x19   :  { %2515 = vmatprep.subr.mxu1 %v133_v19  ;;  %2554 = vmatpush3.msra.mxu0 %v150_v16  ;;  %v623_v16 = vrot.slane %v39_v8, 1  ;;  %v1859_v6 = vrot.slane %v3265_v2, 1  ;;  %v43_v8 = vld [vmem:[%s4125_s0 + $0x88] sm:$0x1] }
  0x1a   :  { %2491 = vmatmul.mubr.msk.f32.gmra.mxu0 %vm200_vm0, %v2963_v20  ;;  %2516 = vmatpush3.msra.mxu1 %v133_v19  ;;  %v625_v19 = vrot.slane %v3153_v10, 1  ;;  %v153_v48 = vld [vmem:[%s4123_s4 + $0xc8] sm:$0xff] }
  0x1b   :  { %2555 = vmatprep.subr.mxu0 %v149_v21  ;;  %2517 = vmatprep.subr.mxu1 %v132_v22 }
  0x1c   :  { %2556 = vmatpush3.msra.mxu0 %v149_v21  ;;  %2505 = vmatprep.mubr.msk.f32.mxu1 %vm200_vm0, %v2977_v23  ;;  %v626_v21 = vrot.slane %v41_v11, 1  ;;  %v61_v11 = vld [vmem:[%s4125_s0 + $0x118] sm:$0x1] }
  0x1d   :  { %2518 = vmatpush3.msra.mxu1 %v132_v22  ;;  %2557 = vmatprep.subr.mxu0 %v148_v24  ;;  %v44_v22 = vld [vmem:[%s4125_s0 + $0x90] sm:$0xff] }
  0x1e   :  { %2493 = vmatprep.mubr.msk.f32.mxu0 %vm200_vm0, %v2987_v25  ;;  %2506 = vmatmul.mubr.msk.f32.gmra.mxu1 %vm200_vm0, %v2992_v26  ;;  %v628_v36 = vrot.slane %v44_v22, 1  ;;  %v3207_v39 = vsel %vm603_vm1, %v625_v19, %v626_v21  ;;  %v641_v19 = vrot.slane %v53_v63, 1  ;;  %v1860_v21 = vrot.slane %v61_v11, 1  ;;  %v152_v63 = vld [vmem:[%s4123_s4 + $0xc0] sm:$0xff]  ;;  %v175_v11 = vld [vmem:[%s4123_s4 + $0x178] sm:$0xff] }
  0x1f   :  { %2519 = vmatprep.subr.mxu1 %v131_v27  ;;  %2558 = vmatpush3.msra.mxu0 %v148_v24  ;;  %v45_v24 = vld [vmem:[%s4125_s0 + $0x98] sm:$0x1] }
  0x20   :  { %2494 = vmatmul.mubr.msk.f32.gmra.mxu0 %vm200_vm0, %v3002_v28  ;;  %2520 = vmatpush3.msra.mxu1 %v131_v27  ;;  %v165_v27 = vld [vmem:[%s4123_s4 + $0x128] sm:$0xff]  ;;  %v3325_v45 = vsel %vm603_vm1, %v1859_v6, %v1860_v21  ;;  %v3372_v6 = vld [vmem:[%s4126_s2] sm:$0xff]  ;;  %v3408_v21 = vld [vmem:[%s4126_s2 + $0x30] sm:$0xff] }
  0x21   :  { %2559 = vmatprep.subr.mxu0 %v147_v29  ;;  %2521 = vmatprep.subr.mxu1 %v130_v30  ;;  %4145 = vst [vmem:[#allocation7_spill] sm:$0xff] %v3325_v45  ;;  %v177_v45 = vld [vmem:[%s4123_s4 + $0x188] sm:$0xff]  ;;  %v1288_v26 = vrot.slane %v3408_v21, 1 }
  0x22   :  { %2560 = vmatpush3.msra.mxu0 %v147_v29  ;;  %2508 = vmatprep.mubr.msk.f32.mxu1 %vm200_vm0, %v3017_v31  ;;  %v3189_v29 = vld [vmem:[%s4125_s0 + $0xa0] sm:$0xff]  ;;  %v85_v31 = vld [vmem:[%s4126_s2 + $0x28] sm:$0x1] }
  0x23   :  { %2522 = vmatpush3.msra.mxu1 %v130_v30  ;;  %2561 = vmatprep.subr.mxu0 %v146_v32  ;;  %v47_v30 = vld [vmem:[%s4125_s0 + $0xa8] sm:$0x1] }
  0x24   :  { %2496 = vmatprep.mubr.msk.f32.mxu0 %vm200_vm0, %v3027_v33  ;;  %2509 = vmatmul.mubr.msk.f32.gmra.mxu1 %vm200_vm0, %v3032_v34 }
  0x25   :  { %2523 = vmatprep.subr.mxu1 %v129_v37  ;;  %2562 = vmatpush3.msra.mxu0 %v146_v32  ;;  %v3199_v32 = vsel %vm603_vm1, %v622_v15, %v623_v16  ;;  %v154_v15 = vld [vmem:[%s4123_s4 + $0xd0] sm:$0xff] }
  0x26   :  { %2497 = vmatmul.mubr.msk.f32.gmra.mxu0 %vm200_vm0, %v3056_v40  ;;  %2524 = vmatpush3.msra.mxu1 %v129_v37  ;;  %v629_v37 = vrot.slane %v45_v24, 1  ;;  %v643_v24 = vrot.slane %v3272_v3, 1 }
  0x27   :  { %2563 = vmatprep.subr.mxu0 %v145_v41  ;;  %2525 = vmatprep.subr.mxu1 %v128_v42 }
  0x28   :  { %2564 = vmatpush3.msra.mxu0 %v145_v41  ;;  %2526 = vmatpush3.msra.mxu1 %v128_v42  ;;  %v631_v41 = vrot.slane %v3189_v29, 1  ;;  %v632_v42 = vrot.slane %v47_v30, 1  ;;  %v3303_v30 = vld [vmem:[%s4125_s0 + $0xf0] sm:$0xff] }
  0x29   :  { %2527 = vmatprep.mubr.msk.f32.mxu1 %vm200_vm0, %v26_v35  ;;  %2565 = vmatprep.subr.mxu0 %v144_v49  ;;  %v156_v35 = vld [vmem:[%s4123_s4 + $0xe0] sm:$0xff] }
  0x2a   :  { %2528 = vmatmul.mubr.msk.f32.vlgmr.msra.gmra.mxu1 %vm200_vm0, %v3048_v38  ;;  %2566 = vmatpush3.msra.mxu0 %v144_v49  ;;  %v630_v49 = vsel %vm603_vm1, %v628_v36, %v629_v37  ;;  %v3251_v58 = vsel %vm603_vm1, %v631_v41, %v632_v42  ;;  %v162_v37 = vld [vmem:[%s4123_s4 + $0x110] sm:$0xff]  ;;  %v3319_v41 = vld [vmem:[%s4125_s0 + $0x100] sm:$0xff]  ;;  %v59_v42 = vld [vmem:[%s4125_s0 + $0x108] sm:$0x1] }
  0x2b   :  { %2567 = vmatprep.mubr.msk.f32.mxu0 %vm200_vm0, %v606_v52  ;;  %2591 = vmatprep.subr.mxu1 %v159_v53  ;;  %v163_v52 = vld [vmem:[%s4123_s4 + $0x118] sm:$0xff] }
  0x2c   :  { %2568 = vmatmul.mubr.msk.f32.vlgmr.msra.gmra.mxu0 %vm200_vm0, %v3097_v56  ;;  %2592 = vmatpush3.msra.mxu1 %v159_v53  ;;  %v634_v53 = vrot.slane %v3213_v43, 1 }
  0x2d   :  { %2631 = vmatprep.subr.mxu0 %v167_v61  ;;  %2530 = vmatprep.mubr.msk.f32.mxu1 %vm200_vm0, %v3072_v47 }
  0x2e   :  { %2632 = vmatpush3.msra.mxu0 %v167_v61  ;;  %2531 = vmatmul.mubr.msk.f32.gmra.mxu1 %vm200_vm0, %v3085_v50  ;;  %v3256_v61 = vld [vmem:[%s4125_s0 + $0xd0] sm:$0xff] }
  0x2f   :  { %2570 = vmatprep.mubr.msk.f32.mxu0 %vm200_vm0, %v3125_v0  ;;  %2593 = vmatprep.subr.mxu1 %v158_v1  ;;  %v640_v16 = vrot.slane %v3256_v61, 1 }
  0x30   :  { %2571 = vmatmul.mubr.msk.f32.gmra.mxu0 %vm200_vm0, %v3134_v4  ;;  %2594 = vmatpush3.msra.mxu1 %v158_v1  ;;  %v1856_v1 = vrot.slane %v3247_v57, 1 }
  0x31   :  { %2633 = vmatprep.subr.mxu0 %v166_v9  ;;  %2533 = vmatprep.mubr.msk.f32.mxu1 %vm200_vm0, %v3103_v59 }
  0x32   :  { %2634 = vmatpush3.msra.mxu0 %v166_v9  ;;  %2534 = vmatmul.mubr.msk.f32.gmra.mxu1 %vm200_vm0, %v3116_v62  ;;  %v1857_v9 = vrot.slane %v43_v8, 1  ;;  %v3379_v8 = vld [vmem:[%s4126_s2 + $0x10] sm:$0xff] }
  0x33   :  { %2573 = vmatprep.mubr.msk.f32.mxu0 %vm200_vm0, %v3163_v13  ;;  %2595 = vmatprep.subr.mxu1 %v157_v14  ;;  %v1282_v34 = vrot.slane %v3379_v8, 1 }
  0x34   :  { %2574 = vmatmul.mubr.msk.f32.gmra.mxu0 %vm200_vm0, %v3172_v18  ;;  %2596 = vmatpush3.msra.mxu1 %v157_v14  ;;  %v3288_v14 = vsel %vm603_vm1, %v634_v53, %v635_v55  ;;  %v3309_v36 = vsel %vm603_vm1, %v1856_v1, %v1857_v9  ;;  %v649_v53 = vrot.slane %v3319_v41, 1  ;;  %v161_v55 = vld [vmem:[%s4123_s4 + $0x108] sm:$0xff]  ;;  %v112_v9 = vld [vmem:[%s4127_s3] sm:$0xff] }
  0x35   :  { %2635 = vmatprep.subr.mxu0 %v165_v27  ;;  %2536 = vmatprep.mubr.msk.f32.mxu1 %vm200_vm0, %v3140_v7 }
  0x36   :  { %2636 = vmatpush3.msra.mxu0 %v165_v27  ;;  %2537 = vmatmul.mubr.msk.f32.gmra.mxu1 %vm200_vm0, %v3153_v10  ;;  %v644_v27 = vrot.slane %v55_v5, 1  ;;  %v160_v5 = vld [vmem:[%s4123_s4 + $0x100] sm:$0xff] }
  0x37   :  { %2576 = vmatprep.mubr.msk.f32.mxu0 %vm200_vm0, %v3199_v32  ;;  %2597 = vmatprep.subr.mxu1 %v156_v35 }
  0x38   :  { %2577 = vmatmul.mubr.msk.f32.gmra.mxu0 %vm200_vm0, %v3207_v39  ;;  %2598 = vmatpush3.msra.mxu1 %v156_v35  ;;  %v57_v35 = vld [vmem:[%s4125_s0 + $0xf8] sm:$0x1] }
  0x39   :  { %2637 = vmatprep.subr.mxu0 %v164_v46  ;;  %2539 = vmatprep.mubr.msk.f32.mxu1 %vm200_vm0, %v44_v22  ;;  %v3297_v22 = vsel %vm603_vm1, %v637_v54, %v638_v60  ;;  %v650_v54 = vrot.slane %v59_v42, 1  ;;  %v3430_v42 = vld [vmem:[%s4126_s2 + $0x40] sm:$0xff] }
  0x3a   :  { %2638 = vmatpush3.msra.mxu0 %v164_v46  ;;  %2540 = vmatmul.mubr.msk.f32.gmra.mxu1 %vm200_vm0, %v3189_v29  ;;  %4144 = vst [vmem:[#allocation6_spill] sm:$0xff] %v3297_v22  ;;  %v3332_v46 = vsel %vm603_vm1, %v640_v16, %v641_v19  ;;  %v183_v16 = vld [vmem:[%s4123_s4 + $0x1b8] sm:$0xff]  ;;  %v3402_v19 = vld [vmem:[%s4126_s2 + $0x20] sm:$0xff] }
  0x3b   :  { %2579 = vmatprep.mubr.msk.f32.mxu0 %vm200_vm0, %v630_v49  ;;  %2599 = vmatprep.subr.mxu1 %v155_v51  ;;  %4146 = vst [vmem:[#allocation8_spill] sm:$0xff] %v3332_v46  ;;  %v646_v49 = vrot.slane %v3303_v30, 1  ;;  %v3362_v1 = vsel %vm603_vm1, %v649_v53, %v650_v54  ;;  %v117_v53 = vld [vmem:[%s4127_s3 + $0x50] sm:$0xff]  ;;  %v181_v54 = vld [vmem:[%s4123_s4 + $0x1a8] sm:$0xff] }
  0x3c   :  { %2580 = vmatmul.mubr.msk.f32.gmra.mxu0 %vm200_vm0, %v3251_v58  ;;  %2600 = vmatpush3.msra.mxu1 %v155_v51  ;;  %v647_v51 = vrot.slane %v57_v35, 1  ;;  %4149 = vst [vmem:[#allocation11_spill] sm:$0xff] %v3362_v1  ;;  %v115_v35 = vld [vmem:[%s4127_s3 + $0x30] sm:$0xff] }
  0x3d   :  { %2639 = vmatprep.subr.mxu0 %v163_v52  ;;  %2542 = vmatprep.mubr.msk.f32.mxu1 %vm200_vm0, %v3213_v43 }
  0x3e   :  { %2640 = vmatpush3.msra.mxu0 %v163_v52  ;;  %2543 = vmatmul.mubr.msk.f32.gmra.mxu1 %vm200_vm0, %v3218_v44  ;;  %v3341_v52 = vsel %vm603_vm1, %v643_v24, %v644_v27  ;;  %v3354_v60 = vsel %vm603_vm1, %v646_v49, %v647_v51  ;;  %v114_v24 = vld [vmem:[%s4127_s3 + $0x20] sm:$0xff]  ;;  %v174_v27 = vld [vmem:[%s4123_s4 + $0x170] sm:$0xff]  ;;  %v173_v51 = vld [vmem:[%s4123_s4 + $0x168] sm:$0xff] }
  0x3f   :  { %2582 = vmatprep.mubr.msk.f32.mxu0 %vm200_vm0, %v3288_v14  ;;  %2601 = vmatprep.subr.mxu1 %v154_v15  ;;  %4147 = vst [vmem:[#allocation9_spill] sm:$0xff] %v3341_v52  ;;  %4148 = vst [vmem:[#allocation10_spill] sm:$0xff] %v3354_v60  ;;  %v116_v49 = vld [vmem:[%s4127_s3 + $0x40] sm:$0xff] }
  0x40   :  { %2583 = vmatmul.mubr.msk.f32.gmra.mxu0 %vm200_vm0, %v3297_v22  ;;  %2602 = vmatpush3.msra.mxu1 %v154_v15  ;;  %v113_v15 = vld [vmem:[%s4127_s3 + $0x10] sm:$0xff] }
  0x41   :  { %2641 = vmatprep.subr.mxu0 %v162_v37  ;;  %2545 = vmatprep.mubr.msk.f32.mxu1 %vm200_vm0, %v3256_v61 }
  0x42   :  { %2642 = vmatpush3.msra.mxu0 %v162_v37  ;;  %2546 = vmatmul.mubr.msk.f32.gmra.mxu1 %vm200_vm0, %v3272_v3  ;;  %v182_v37 = vld [vmem:[%s4123_s4 + $0x1b0] sm:$0xff] }
  0x43   :  { %2585 = vmatprep.mubr.msk.f32.mxu0 %vm200_vm0, %v3332_v46  ;;  %2603 = vmatprep.subr.mxu1 %v153_v48  ;;  %v1286_v46 = vrot.slane %v85_v31, 1  ;;  %v91_v31 = vld [vmem:[%s4126_s2 + $0x58] sm:$0x1] }
  0x44   :  { %2586 = vmatmul.mubr.msk.f32.gmra.mxu0 %vm200_vm0, %v3341_v52  ;;  %2604 = vmatpush3.msra.mxu1 %v153_v48  ;;  %v3436_v48 = vld [vmem:[%s4126_s2 + $0x50] sm:$0xff] }
  0x45   :  { %2643 = vmatprep.subr.mxu0 %v161_v55  ;;  %2548 = vmatprep.mubr.msk.f32.mxu1 %vm200_vm0, %v3303_v30 }
  0x46   :  { %2644 = vmatpush3.msra.mxu0 %v161_v55  ;;  %2549 = vmatmul.mubr.msk.f32.gmra.mxu1 %vm200_vm0, %v3319_v41  ;;  %v3458_v55 = vld [vmem:[%s4126_s2 + $0x60] sm:$0xff] }
  0x47   :  { %2588 = vmatprep.mubr.msk.f32.mxu0 %vm200_vm0, %v3354_v60  ;;  %2605 = vmatprep.subr.mxu1 %v152_v63 }
  0x48   :  { %2589 = vmatmul.mubr.msk.f32.gmra.mxu0 %vm200_vm0, %v3362_v1  ;;  %2606 = vmatpush3.msra.mxu1 %v152_v63  ;;  %v3464_v63 = vld [vmem:[%s4126_s2 + $0x70] sm:$0xff] }
  0x49   :  { %2645 = vmatprep.subr.mxu0 %v160_v5  ;;  %2607 = vmatprep.mubr.msk.f32.mxu1 %vm200_vm0, %v3372_v6  ;;  %v3577_v1 = vld [vmem:[%s4126_s2 + $0xf0] sm:$0xff] }
  0x4a   :  { %2646 = vmatpush3.msra.mxu0 %v160_v5  ;;  %2608 = vmatmul.mubr.msk.f32.vlgmr.msra.gmra.mxu1 %vm200_vm0, %v3379_v8  ;;  %v118_v5 = vld [vmem:[%s4127_s3 + $0x60] sm:$0xff]  ;;  %v126_v8 = vld [vmem:[%s4127_s3 + $0xf0] sm:$0xff] }
  0x4b   :  { %2647 = vmatprep.mubr.msk.f32.mxu0 %vm200_vm0, %v112_v9  ;;  %2671 = vmatprep.subr.mxu1 %v175_v11  ;;  %v172_v9 = vld [vmem:[%s4123_s4 + $0x160] sm:$0xff] }
  0x4c   :  { %2648 = vmatmul.mubr.msk.f32.vlgmr.msra.gmra.mxu0 %vm200_vm0, %v113_v15  ;;  %2672 = vmatpush3.msra.mxu1 %v175_v11  ;;  %v119_v11 = vld [vmem:[%s4127_s3 + $0x70] sm:$0xff]  ;;  %v180_v15 = vld [vmem:[%s4123_s4 + $0x1a0] sm:$0xff] }
  0x4d   :  { %2711 = vmatprep.subr.mxu0 %v183_v16  ;;  %2610 = vmatprep.mubr.msk.f32.mxu1 %vm200_vm0, %v3402_v19 }
  0x4e   :  { %2712 = vmatpush3.msra.mxu0 %v183_v16  ;;  %2611 = vmatmul.mubr.msk.f32.gmra.mxu1 %vm200_vm0, %v3408_v21  ;;  %v3486_v16 = vld [vmem:[%s4126_s2 + $0x90] sm:$0xff] }
  0x4f   :  { %2650 = vmatprep.mubr.msk.f32.mxu0 %vm200_vm0, %v114_v24  ;;  %2673 = vmatprep.subr.mxu1 %v174_v27  ;;  %v3492_v24 = vld [vmem:[%s4126_s2 + $0xa0] sm:$0xff] }
  0x50   :  { %2651 = vmatmul.mubr.msk.f32.gmra.mxu0 %vm200_vm0, %v115_v35  ;;  %2674 = vmatpush3.msra.mxu1 %v174_v27  ;;  %v120_v27 = vld [vmem:[%s4127_s3 + $0x90] sm:$0xff]  ;;  %v171_v35 = vld [vmem:[%s4123_s4 + $0x158] sm:$0xff] }
  0x51   :  { %2713 = vmatprep.subr.mxu0 %v182_v37  ;;  %2613 = vmatprep.mubr.msk.f32.mxu1 %vm200_vm0, %v3430_v42 }
  0x52   :  { %2714 = vmatpush3.msra.mxu0 %v182_v37  ;;  %2614 = vmatmul.mubr.msk.f32.gmra.mxu1 %vm200_vm0, %v3436_v48  ;;  %v121_v37 = vld [vmem:[%s4127_s3 + $0xa0] sm:$0xff] }
  0x53   :  { %2653 = vmatprep.mubr.msk.f32.mxu0 %vm200_vm0, %v116_v49  ;;  %2675 = vmatprep.subr.mxu1 %v173_v51  ;;  %v179_v49 = vld [vmem:[%s4123_s4 + $0x198] sm:$0xff] }
  0x54   :  { %2654 = vmatmul.mubr.msk.f32.gmra.mxu0 %vm200_vm0, %v117_v53  ;;  %2676 = vmatpush3.msra.mxu1 %v173_v51  ;;  %v3514_v51 = vld [vmem:[%s4126_s2 + $0xb0] sm:$0xff]  ;;  %v3520_v53 = vld [vmem:[%s4126_s2 + $0xc0] sm:$0xff] }
  0x55   :  { %2715 = vmatprep.subr.mxu0 %v181_v54  ;;  %2616 = vmatprep.mubr.msk.f32.mxu1 %vm200_vm0, %v3458_v55 }
  0x56   :  { %2716 = vmatpush3.msra.mxu0 %v181_v54  ;;  %2617 = vmatmul.mubr.msk.f32.gmra.mxu1 %vm200_vm0, %v3464_v63  ;;  %v122_v54 = vld [vmem:[%s4127_s3 + $0xb0] sm:$0xff] }
  0x57   :  { %2656 = vmatprep.mubr.msk.f32.mxu0 %vm200_vm0, %v118_v5  ;;  %2677 = vmatprep.subr.mxu1 %v172_v9  ;;  %v170_v5 = vld [vmem:[%s4123_s4 + $0x150] sm:$0xff] }
  0x58   :  { %2657 = vmatmul.mubr.msk.f32.gmra.mxu0 %vm200_vm0, %v119_v11  ;;  %2678 = vmatpush3.msra.mxu1 %v172_v9  ;;  %v123_v9 = vld [vmem:[%s4127_s3 + $0xc0] sm:$0xff]  ;;  %v178_v11 = vld [vmem:[%s4123_s4 + $0x190] sm:$0xff] }
  0x59   :  { %2717 = vmatprep.subr.mxu0 %v180_v15  ;;  %2619 = vmatprep.mubr.msk.f32.mxu1 %vm200_vm0, %v3486_v16 }
  0x5a   :  { %2718 = vmatpush3.msra.mxu0 %v180_v15  ;;  %2620 = vmatmul.mubr.msk.f32.gmra.mxu1 %vm200_vm0, %v3492_v24  ;;  %v3542_v15 = vld [vmem:[%s4126_s2 + $0xd0] sm:$0xff] }
  0x5b   :  { %2659 = vmatprep.mubr.msk.f32.mxu0 %vm200_vm0, %v120_v27  ;;  %2679 = vmatprep.subr.mxu1 %v171_v35  ;;  %v3548_v27 = vld [vmem:[%s4126_s2 + $0xe0] sm:$0xff] }
  0x5c   :  { %2660 = vmatmul.mubr.msk.f32.gmra.mxu0 %vm200_vm0, %v121_v37  ;;  %2680 = vmatpush3.msra.mxu1 %v171_v35  ;;  %v81_v35 = vld [vmem:[%s4126_s2 + $0x8] sm:$0x1]  ;;  %v124_v37 = vld [vmem:[%s4127_s3 + $0xd0] sm:$0xff] }
  0x5d   :  { %2719 = vmatprep.subr.mxu0 %v179_v49  ;;  %2622 = vmatprep.mubr.msk.f32.mxu1 %vm200_vm0, %v3514_v51  ;;  %v1280_v60 = vrot.slane %v81_v35, 1  ;;  %v168_v35 = vld [vmem:[%s4123_s4 + $0x140] sm:$0xff] }
  0x5e   :  { %2720 = vmatpush3.msra.mxu0 %v179_v49  ;;  %2623 = vmatmul.mubr.msk.f32.gmra.mxu1 %vm200_vm0, %v3520_v53  ;;  %v169_v49 = vld [vmem:[%s4123_s4 + $0x148] sm:$0xff] }
  0x5f   :  { %2662 = vmatprep.mubr.msk.f32.mxu0 %vm200_vm0, %v122_v54  ;;  %2681 = vmatprep.subr.mxu1 %v170_v5  ;;  %v83_v54 = vld [vmem:[%s4126_s2 + $0x18] sm:$0x1] }
  0x60   :  { %2663 = vmatmul.mubr.msk.f32.gmra.mxu0 %vm200_vm0, %v123_v9  ;;  %2682 = vmatpush3.msra.mxu1 %v170_v5  ;;  %v125_v5 = vld [vmem:[%s4127_s3 + $0xe0] sm:$0xff]  ;;  %v1279_v9 = vrot.slane %v3372_v6, 1 }
  0x61   :  { %2721 = vmatprep.subr.mxu0 %v178_v11  ;;  %2625 = vmatprep.mubr.msk.f32.mxu1 %vm200_vm0, %v3542_v15  ;;  %v3584_v6 = vld [vmem:[%s4126_s2 + $0x100] sm:$0xff] }
  0x62   :  { %2722 = vmatpush3.msra.mxu0 %v178_v11  ;;  %2626 = vmatmul.mubr.msk.f32.gmra.mxu1 %vm200_vm0, %v3548_v27  ;;  %v1283_v11 = vrot.slane %v83_v54, 1  ;;  %v1285_v54 = vrot.slane %v3402_v19, 1  ;;  %v1281_v52 = vsel %vm603_vm1, %v1279_v9, %v1280_v60  ;;  %v191_v60 = vld [vmem:[%s4123_s4 + $0x1f8] sm:$0xff] }
  0x63   :  { %2665 = vmatprep.mubr.msk.f32.mxu0 %vm200_vm0, %v124_v37  ;;  %2683 = vmatprep.subr.mxu1 %v169_v49  ;;  %v87_v37 = vld [vmem:[%s4126_s2 + $0x38] sm:$0x1] }
  0x64   :  { %2666 = vmatmul.mubr.msk.f32.gmra.mxu0 %vm200_vm0, %v125_v5  ;;  %2684 = vmatpush3.msra.mxu1 %v169_v49  ;;  %v127_v49 = vld [vmem:[%s4127_s3 + $0x100] sm:$0xff]  ;;  %v1284_v23 = vsel %vm603_vm1, %v1282_v34, %v1283_v11  ;;  %v1289_v22 = vrot.slane %v87_v37, 1  ;;  %v1291_v34 = vrot.slane %v3430_v42, 1  ;;  %v199_v19 = vld [vmem:[%s4123_s4 + $0x238] sm:$0xff]  ;;  %v1287_v21 = vsel %vm603_vm1, %v1285_v54, %v1286_v46  ;;  %v190_v46 = vld [vmem:[%s4123_s4 + $0x1f0] sm:$0xff] }
  0x65   :  { %2723 = vmatprep.subr.mxu0 %v177_v45  ;;  %2628 = vmatprep.mubr.msk.f32.mxu1 %vm200_vm0, %v3577_v1  ;;  %v176_v5 = vld [vmem:[%s4123_s4 + $0x180] sm:$0xff]  ;;  %v1294_v11 = vrot.slane %v3436_v48, 1  ;;  %v1300_v48 = vrot.slane %v3464_v63, 1  ;;  %v1303_v63 = vrot.slane %v3486_v16, 1  ;;  %v101_v16 = vld [vmem:[%s4126_s2 + $0xb8] sm:$0x1] }
  0x66   :  { %2724 = vmatpush3.msra.mxu0 %v177_v45  ;;  %2629 = vmatmul.mubr.msk.f32.gmra.mxu1 %vm200_vm0, %v3584_v6  ;;  %v89_v45 = vld [vmem:[%s4126_s2 + $0x48] sm:$0x1] }
  0x67   :  { %2668 = vmatprep.mubr.msk.f32.mxu0 %vm200_vm0, %v126_v8  ;;  %2685 = vmatprep.subr.mxu1 %v168_v35  ;;  %v1292_v9 = vrot.slane %v89_v45, 1  ;;  %v1295_v8 = vrot.slane %v91_v31, 1  ;;  %v1306_v45 = vrot.slane %v3492_v24, 1  ;;  %v1309_v24 = vrot.slane %v3514_v51, 1  ;;  %v105_v51 = vld [vmem:[%s4126_s2 + $0xd8] sm:$0x1] }
  0x68   :  { %2669 = vmatmul.mubr.msk.f32.gmra.mxu0 %vm200_vm0, %v127_v49  ;;  %2686 = vmatpush3.msra.mxu1 %v168_v35  ;;  %v189_v49 = vld [vmem:[%s4123_s4 + $0x1e8] sm:$0xff] }
  0x69   :  { %2725 = vmatprep.subr.mxu0 %v176_v5  ;;  %2687 = vmatprep.mubr.msk.f32.mxu1 %vm200_vm0, %v1281_v52  ;;  %v1290_v52 = vsel %vm603_vm1, %v1288_v26, %v1289_v22  ;;  %v1297_v26 = vrot.slane %v3458_v55, 1  ;;  %v1293_v22 = vsel %vm603_vm1, %v1291_v34, %v1292_v9  ;;  %v1296_v35 = vsel %vm603_vm1, %v1294_v11, %v1295_v8  ;;  %v97_v55 = vld [vmem:[%s4126_s2 + $0x98] sm:$0x1]  ;;  %v188_v34 = vld [vmem:[%s4123_s4 + $0x1e0] sm:$0xff] }
  0x6a   :  { %2726 = vmatpush3.msra.mxu0 %v176_v5  ;;  %2688 = vmatmul.mubr.msk.f32.vlgmr.msra.gmra.mxu1 %vm200_vm0, %v1284_v23  ;;  %v93_v23 = vld [vmem:[%s4126_s2 + $0x68] sm:$0x1]  ;;  %v1304_v5 = vrot.slane %v97_v55, 1  ;;  %v1312_v9 = vrot.slane %v3520_v53, 1  ;;  %v187_v8 = vld [vmem:[%s4123_s4 + $0x1d8] sm:$0xff]  ;;  %v1315_v53 = vrot.slane %v3542_v15, 1 }
  0x6b   :  { %2727 = vmatprep.mubr.msk.f32.mxu0 %vm200_vm0, %v3048_v38  ;;  %2751 = vmatprep.subr.mxu1 %v191_v60  ;;  %v95_v38 = vld [vmem:[%s4126_s2 + $0x78] sm:$0x1]  ;;  %v1298_v42 = vrot.slane %v93_v23, 1 }
  0x6c   :  { %2728 = vmatmul.mubr.msk.f32.vlgmr.msra.gmra.mxu0 %vm200_vm0, %v3072_v47  ;;  %2752 = vmatpush3.msra.mxu1 %v191_v60  ;;  %v198_v47 = vld [vmem:[%s4123_s4 + $0x230] sm:$0xff]  ;;  %v1301_v37 = vrot.slane %v95_v38, 1  ;;  %v1318_v38 = vrot.slane %v3548_v27, 1  ;;  %v109_v15 = vld [vmem:[%s4126_s2 + $0xf8] sm:$0x1]  ;;  %v1321_v27 = vrot.slane %v3577_v1, 1 }
  0x6d   :  { %2791 = vmatprep.subr.mxu0 %v199_v19  ;;  %2690 = vmatprep.mubr.msk.f32.mxu1 %vm200_vm0, %v1287_v21  ;;  %v1299_v54 = vsel %vm603_vm1, %v1297_v26, %v1298_v42  ;;  %v1310_v21 = vrot.slane %v101_v16, 1  ;;  %v185_v1 = vld [vmem:[%s4123_s4 + $0x1c8] sm:$0xff] }
  0x6e   :  { %2792 = vmatpush3.msra.mxu0 %v199_v19  ;;  %2691 = vmatmul.mubr.msk.f32.gmra.mxu1 %vm200_vm0, %v1290_v52  ;;  %v1302_v60 = vsel %vm603_vm1, %v1300_v48, %v1301_v37  ;;  %v1305_v19 = vsel %vm603_vm1, %v1303_v63, %v1304_v5  ;;  %v1322_v48 = vrot.slane %v109_v15, 1 }
  0x6f   :  { %2730 = vmatprep.mubr.msk.f32.mxu0 %vm200_vm0, %v3085_v50  ;;  %2753 = vmatprep.subr.mxu1 %v190_v46  ;;  %v99_v50 = vld [vmem:[%s4126_s2 + $0xa8] sm:$0x1]  ;;  %v1311_v23 = vsel %vm603_vm1, %v1309_v24, %v1310_v21 }
  0x70   :  { %2731 = vmatmul.mubr.msk.f32.gmra.mxu0 %vm200_vm0, %v3103_v59  ;;  %2754 = vmatpush3.msra.mxu1 %v190_v46  ;;  %v197_v59 = vld [vmem:[%s4123_s4 + $0x228] sm:$0xff]  ;;  %v1307_v31 = vrot.slane %v99_v50, 1  ;;  %v1316_v46 = vrot.slane %v105_v51, 1 }
  0x71   :  { %2793 = vmatprep.subr.mxu0 %v198_v47  ;;  %2693 = vmatprep.mubr.msk.f32.mxu1 %vm200_vm0, %v1293_v22  ;;  %v186_v22 = vld [vmem:[%s4123_s4 + $0x1d0] sm:$0xff] }
  0x72   :  { %2794 = vmatpush3.msra.mxu0 %v198_v47  ;;  %2694 = vmatmul.mubr.msk.f32.gmra.mxu1 %vm200_vm0, %v1296_v35  ;;  %v1308_v11 = vsel %vm603_vm1, %v1306_v45, %v1307_v31  ;;  %v1317_v42 = vsel %vm603_vm1, %v1315_v53, %v1316_v46  ;;  %v1324_v35 = vrot.slane %v3584_v6, 1  ;;  %v1323_v6 = vsel %vm603_vm1, %v1321_v27, %v1322_v48 }
  0x73   :  { %2733 = vmatprep.mubr.msk.f32.mxu0 %vm200_vm0, %v3116_v62  ;;  %2755 = vmatprep.subr.mxu1 %v189_v49  ;;  %v103_v62 = vld [vmem:[%s4126_s2 + $0xc8] sm:$0x1] }
  0x74   :  { %2734 = vmatmul.mubr.msk.f32.gmra.mxu0 %vm200_vm0, %v3140_v7  ;;  %2756 = vmatpush3.msra.mxu1 %v189_v49  ;;  %v196_v7 = vld [vmem:[%s4123_s4 + $0x220] sm:$0xff]  ;;  %v1313_v52 = vrot.slane %v103_v62, 1 }
  0x75   :  { %2795 = vmatprep.subr.mxu0 %v197_v59  ;;  %2696 = vmatprep.mubr.msk.f32.mxu1 %vm200_vm0, %v1299_v54  ;;  %v184_v49 = vld [vmem:[%s4123_s4 + $0x1c0] sm:$0xff] }
  0x76   :  { %2796 = vmatpush3.msra.mxu0 %v197_v59  ;;  %2697 = vmatmul.mubr.msk.f32.gmra.mxu1 %vm200_vm0, %v1302_v60  ;;  %v1314_v26 = vsel %vm603_vm1, %v1312_v9, %v1313_v52 }
  0x77   :  { %2736 = vmatprep.mubr.msk.f32.mxu0 %vm200_vm0, %v3153_v10  ;;  %2757 = vmatprep.subr.mxu1 %v188_v34  ;;  %v107_v10 = vld [vmem:[%s4126_s2 + $0xe8] sm:$0x1] }
  0x78   :  { %2737 = vmatmul.mubr.msk.f32.gmra.mxu0 %vm200_vm0, %v3247_v57  ;;  %2758 = vmatpush3.msra.mxu1 %v188_v34  ;;  %v195_v57 = vld [vmem:[%s4123_s4 + $0x218] sm:$0xff]  ;;  %v1319_v47 = vrot.slane %v107_v10, 1 }
  0x79   :  { %2797 = vmatprep.subr.mxu0 %v196_v7  ;;  %2699 = vmatprep.mubr.msk.f32.mxu1 %vm200_vm0, %v1305_v19 }
  0x7a   :  { %2798 = vmatpush3.msra.mxu0 %v196_v7  ;;  %2700 = vmatmul.mubr.msk.f32.gmra.mxu1 %vm200_vm0, %v1308_v11  ;;  %v1320_v37 = vsel %vm603_vm1, %v1318_v38, %v1319_v47 }
  0x7b   :  { %2739 = vmatprep.mubr.msk.f32.mxu0 %vm200_vm0, %v3189_v29  ;;  %2759 = vmatprep.subr.mxu1 %v187_v8  ;;  %v111_v29 = vld [vmem:[%s4126_s2 + $0x108] sm:$0x1] }
  0x7c   :  { %2740 = vmatmul.mubr.msk.f32.gmra.mxu0 %vm200_vm0, %v3213_v43  ;;  %2760 = vmatpush3.msra.mxu1 %v187_v8  ;;  %v194_v43 = vld [vmem:[%s4123_s4 + $0x210] sm:$0xff]  ;;  %v1325_v55 = vrot.slane %v111_v29, 1 }
  0x7d   :  { %2799 = vmatprep.subr.mxu0 %v195_v57  ;;  %2702 = vmatprep.mubr.msk.f32.mxu1 %vm200_vm0, %v1311_v23 }
  0x7e   :  { %2800 = vmatpush3.msra.mxu0 %v195_v57  ;;  %2703 = vmatmul.mubr.msk.f32.gmra.mxu1 %vm200_vm0, %v1314_v26 }
  0x7f   :  { %2742 = vmatprep.mubr.msk.f32.mxu0 %vm200_vm0, %v3218_v44  ;;  %2761 = vmatprep.subr.mxu1 %v186_v22  ;;  %v193_v44 = vld [vmem:[%s4123_s4 + $0x208] sm:$0xff] }
  0x80   :  { %2743 = vmatmul.mubr.msk.f32.gmra.mxu0 %vm200_vm0, %v3256_v61  ;;  %2762 = vmatpush3.msra.mxu1 %v186_v22  ;;  %v1326_v61 = vsel %vm603_vm1, %v1324_v35, %v1325_v55 }
  0x81   :  { %2801 = vmatprep.subr.mxu0 %v194_v43  ;;  %2705 = vmatprep.mubr.msk.f32.mxu1 %vm200_vm0, %v1317_v42 }
  0x82   :  { %2802 = vmatpush3.msra.mxu0 %v194_v43  ;;  %2706 = vmatmul.mubr.msk.f32.gmra.mxu1 %vm200_vm0, %v1320_v37 }
  0x83   :  { %2745 = vmatprep.mubr.msk.f32.mxu0 %vm200_vm0, %v3272_v3  ;;  %2763 = vmatprep.subr.mxu1 %v185_v1  ;;  %v192_v3 = vld [vmem:[%s4123_s4 + $0x200] sm:$0xff] }
  0x84   :  { %2746 = vmatmul.mubr.msk.f32.gmra.mxu0 %vm200_vm0, %v3303_v30  ;;  %2764 = vmatpush3.msra.mxu1 %v185_v1 }
  0x85   :  { %2803 = vmatprep.subr.mxu0 %v193_v44  ;;  %2708 = vmatprep.mubr.msk.f32.mxu1 %vm200_vm0, %v1323_v6 }
  0x86   :  { %2804 = vmatpush3.msra.mxu0 %v193_v44  ;;  %2709 = vmatmul.mubr.msk.f32.gmra.mxu1 %vm200_vm0, %v1326_v61 }
  0x87   :  { %2748 = vmatprep.mubr.msk.f32.mxu0 %vm200_vm0, %v3319_v41  ;;  %2765 = vmatprep.subr.mxu1 %v184_v49 }
  0x88   :  { %2749 = vmatmul.mubr.msk.f32.gmra.mxu0 %vm200_vm0, %v3265_v2  ;;  %2766 = vmatpush3.msra.mxu1 %v184_v49 }
  0x89   :  { %2805 = vmatprep.subr.mxu0 %v192_v3  ;;  %2767 = vmatprep.mubr.msk.f32.mxu1 %vm200_vm0, %v2930_v12  ;;  %v70_v12 = vld [vmem:[%s4124_s1 + $0x80] sm:$0xff] }
  0x8a   :  { %2806 = vmatpush3.msra.mxu0 %v192_v3  ;;  %2768 = vmatmul.mubr.msk.f32.vlgmr.msra.gmra.mxu1 %vm200_vm0, %v2951_v17  ;;  %v2847_v17 = vld [vmem:[%s4124_s1 + $0xa0] sm:$0xff] }
  0x8b   :  { %2807 = vmatprep.mubr.msk.f32.mxu0 %vm200_vm0, %v3097_v56  ;;  %2770 = vmatprep.mubr.msk.f32.mxu1 %vm200_vm0, %v2963_v20  ;;  %v2848_v20 = vld [vmem:[%s4124_s1 + $0xb0] sm:$0xff] }
  0x8c   :  { %2808 = vmatmul.mubr.msk.f32.vlgmr.msra.gmra.mxu0 %vm200_vm0, %v3125_v0  ;;  %v4153_v56 = vld [vmem:[#allocation8_spill] sm:$0xff]  ;;  %v4154_v0 = vld [vmem:[#allocation9_spill] sm:$0xff] }
  0x8d   :  { %2810 = vmatprep.mubr.msk.f32.mxu0 %vm200_vm0, %v3134_v4  ;;  %v4155_v4 = vld [vmem:[#allocation4_spill] sm:$0xff] }
  0x8e   :  { %2771 = vmatmul.mubr.msk.f32.gmra.mxu1 %vm200_vm0, %v2987_v25  ;;  %v2849_v25 = vld [vmem:[%s4124_s1 + $0xc0] sm:$0xff] }
  0x8f   :  { %2773 = vmatprep.mubr.msk.f32.mxu1 %vm200_vm0, %v3002_v28  ;;  %v4150_v28 = vld [vmem:[#allocation6_spill] sm:$0xff] }
  0x90   :  { %2811 = vmatmul.mubr.msk.f32.gmra.mxu0 %vm200_vm0, %v3163_v13  ;;  %v4156_v13 = vld [vmem:[#allocation5_spill] sm:$0xff] }
  0x91   :  { %2813 = vmatprep.mubr.msk.f32.mxu0 %vm200_vm0, %v3172_v18  ;;  %v79_v18 = vld [vmem:[%s4124_s1 + $0x110] sm:$0xff] }
  0x92   :  { %2774 = vmatmul.mubr.msk.f32.gmra.mxu1 %vm200_vm0, %v3027_v33  ;;  %v4151_v33 = vld [vmem:[#allocation2_spill] sm:$0xff] }
  0x93   :  { %2776 = vmatprep.mubr.msk.f32.mxu1 %vm200_vm0, %v3056_v40  ;;  %v4152_v40 = vld [vmem:[#allocation3_spill] sm:$0xff] }
  0x94   :  { %2814 = vmatmul.mubr.msk.f32.gmra.mxu0 %vm200_vm0, %v3199_v32  ;;  %v4157_v32 = vld [vmem:[#allocation10_spill] sm:$0xff] }
  0x95   :  { %2816 = vmatprep.mubr.msk.f32.mxu0 %vm200_vm0, %v3207_v39  ;;  %v4158_v39 = vld [vmem:[#allocation11_spill] sm:$0xff] }
  0x96   :  { %2777 = vmatmul.mubr.msk.f32.gmra.mxu1 %vm200_vm0, %v70_v12 }
  0x97   :  { %2779 = vmatprep.mubr.msk.f32.mxu1 %vm200_vm0, %v2847_v17 }
  0x98   :  { %2817 = vmatmul.mubr.msk.f32.gmra.mxu0 %vm200_vm0, %v3309_v36 }
  0x99   :  { %2819 = vmatprep.mubr.msk.f32.mxu0 %vm200_vm0, %v3251_v58  ;;  %v4159_v58 = vld [vmem:[#allocation7_spill] sm:$0xff] }
  0x9a   :  { %2780 = vmatmul.mubr.msk.f32.gmra.mxu1 %vm200_vm0, %v2848_v20 }
  0x9b   :  { %2782 = vmatprep.mubr.msk.f32.mxu1 %vm200_vm0, %v2849_v25 }
  0x9c   :  { %2820 = vmatmul.mubr.msk.f32.gmra.mxu0 %vm200_vm0, %v3288_v14 }
  0x9d   :  { %2822 = vmatprep.mubr.msk.f32.mxu0 %vm200_vm0, %v4150_v28 }
  0x9e   :  { %2783 = vmatmul.mubr.msk.f32.gmra.mxu1 %vm200_vm0, %v4151_v33 }
  0x9f   :  { %2785 = vmatprep.mubr.msk.f32.mxu1 %vm200_vm0, %v4152_v40 }
  0xa0   :  { %2823 = vmatmul.mubr.msk.f32.gmra.mxu0 %vm200_vm0, %v4153_v56 }
  0xa1   :  { %2825 = vmatprep.mubr.msk.f32.mxu0 %vm200_vm0, %v4154_v0 }
  0xa2   :  { %2786 = vmatmul.mubr.msk.f32.gmra.mxu1 %vm200_vm0, %v4155_v4 }
  0xa3   :  { %2788 = vmatprep.mubr.msk.f32.mxu1 %vm200_vm0, %v4156_v13 }
  0xa4   :  { %2826 = vmatmul.mubr.msk.f32.gmra.mxu0 %vm200_vm0, %v4157_v32 }
  0xa5   :  { %2828 = vmatprep.mubr.msk.f32.mxu0 %vm200_vm0, %v4158_v39 }
  0xa6   :  { %2789 = vmatmul.mubr.msk.f32.gmra.mxu1 %vm200_vm0, %v79_v18 }
  0xa8   :  { %2829 = vmatmul.mubr.msk.f32.gmra.mxu0 %vm200_vm0, %v4159_v58 }
  0xd3   :  { %v2501_v2 = vpop.f32.mrf.mxu1 }
  0xd4   :  { %v2489_v14 = vpop.f32.mrf.mxu0 }
  0xd5   :  { %v355_v30 = vpop.f32.mrf.mxu1 }
  0xd6   :  { %v315_v36 = vpop.f32.mrf.mxu0 }
  0xd8   :  { %v2504_v41 = vpop.f32.mrf.mxu1 }
  0xda   :  { %v2492_v50 = vpop.f32.mrf.mxu0  ;;  %v365_v63 = vpop.f32.mrf.mxu1 }
  0xdc   :  { %v325_v59 = vpop.f32.mrf.mxu0 }
  0xde   :  { %v2507_v54 = vpop.f32.mrf.mxu1 }
  0xe0   :  { %v2495_v5 = vpop.f32.mrf.mxu0  ;;  %v375_v45 = vpop.f32.mrf.mxu1 }
  0xe2   :  { %v335_v60 = vpop.f32.mrf.mxu0 }
  0xe4   :  { %v2510_v31 = vpop.f32.mrf.mxu1 }
  0xe6   :  { %v2498_v16 = vpop.f32.mrf.mxu0  ;;  %v3847_v34 = vpop.f32.mrf.mxu1 }
  0xe8   :  { %v345_v62 = vpop.f32.mrf.mxu0 }
  0xea   :  { %v2529_v24 = vpop.f32.mrf.mxu1 }
  0xeb   :  { %v514_v7 = vadd.f32 %v2529_v24, %v2489_v14 }
  0xec   :  { %v2569_v19 = vpop.f32.mrf.mxu0  ;;  %v508_v21 = vpop.f32.mrf.mxu1 }
  0xed   :  { %v3849_v9 = vadd.f32 %v2569_v19, %v514_v7  ;;  %v509_v11 = vadd.f32 %v508_v21, %v315_v36 }
  0xee   :  { %v750_v52 = vpop.f32.mrf.mxu0  ;;  %v2532_v51 = vpop.f32.mrf.mxu1 }
  0xef   :  { %v3851_v8 = vadd.f32 %v750_v52, %v509_v11  ;;  %v524_v10 = vadd.f32 %v2532_v51, %v2492_v50 }
  0xf0   :  { %v2572_v53 = vpop.f32.mrf.mxu0  ;;  %v518_v57 = vpop.f32.mrf.mxu1 }
  0xf1   :  { %v3853_v23 = vadd.f32 %v2572_v53, %v524_v10  ;;  %v519_v46 = vadd.f32 %v518_v57, %v325_v59 }
  0xf2   :  { %v760_v38 = vpop.f32.mrf.mxu0  ;;  %v2535_v26 = vpop.f32.mrf.mxu1 }
  0xf3   :  { %v3855_v47 = vadd.f32 %v760_v38, %v519_v46  ;;  %v534_v15 = vadd.f32 %v2535_v26, %v2495_v5 }
  0xf4   :  { %v2575_v22 = vpop.f32.mrf.mxu0  ;;  %v528_v29 = vpop.f32.mrf.mxu1 }
  0xf5   :  { %v3857_v27 = vadd.f32 %v2575_v22, %v534_v15  ;;  %v529_v43 = vadd.f32 %v528_v29, %v335_v60 }
  0xf6   :  { %v770_v42 = vpop.f32.mrf.mxu0  ;;  %v2538_v48 = vpop.f32.mrf.mxu1 }
  0xf7   :  { %v3859_v35 = vadd.f32 %v770_v42, %v529_v43  ;;  %v544_v37 = vadd.f32 %v2538_v48, %v2498_v16 }
  0xf8   :  { %v2578_v55 = vpop.f32.mrf.mxu0  ;;  %v538_v1 = vpop.f32.mrf.mxu1 }
  0xf9   :  { %v3861_v44 = vadd.f32 %v2578_v55, %v544_v37  ;;  %v539_v6 = vadd.f32 %v538_v1, %v345_v62 }
  0xfa   :  { %v780_v61 = vpop.f32.mrf.mxu0  ;;  %v2541_v49 = vpop.f32.mrf.mxu1 }
  0xfb   :  { %v3863_v3 = vadd.f32 %v780_v61, %v539_v6  ;;  %v554_v12 = vadd.f32 %v2541_v49, %v2501_v2 }
  0xfc   :  { %v2581_v17 = vpop.f32.mrf.mxu0  ;;  %v548_v20 = vpop.f32.mrf.mxu1 }
  0xfd   :  { %v3865_v25 = vadd.f32 %v2581_v17, %v554_v12  ;;  %v549_v28 = vadd.f32 %v548_v20, %v355_v30 }
  0xfe   :  { %v790_v33 = vpop.f32.mrf.mxu0  ;;  %v2544_v40 = vpop.f32.mrf.mxu1 }
  0xff   :  { %v3867_v56 = vadd.f32 %v790_v33, %v549_v28  ;;  %v564_v0 = vadd.f32 %v2544_v40, %v2504_v41 }
 0x100   :  { %v2584_v4 = vpop.f32.mrf.mxu0  ;;  %v558_v13 = vpop.f32.mrf.mxu1 }
 0x101   :  { %v3869_v18 = vadd.f32 %v2584_v4, %v564_v0  ;;  %v559_v32 = vadd.f32 %v558_v13, %v365_v63 }
 0x102   :  { %v800_v39 = vpop.f32.mrf.mxu0  ;;  %v2547_v58 = vpop.f32.mrf.mxu1 }
 0x103   :  { %v3871_v14 = vadd.f32 %v800_v39, %v559_v32  ;;  %v574_v2 = vadd.f32 %v2547_v58, %v2507_v54 }
 0x104   :  { %v2587_v36 = vpop.f32.mrf.mxu0  ;;  %v568_v50 = vpop.f32.mrf.mxu1 }
 0x105   :  { %v3873_v59 = vadd.f32 %v2587_v36, %v574_v2  ;;  %v569_v30 = vadd.f32 %v568_v50, %v375_v45 }
 0x106   :  { %v810_v5 = vpop.f32.mrf.mxu0  ;;  %v2550_v60 = vpop.f32.mrf.mxu1 }
 0x107   :  { %v3875_v16 = vadd.f32 %v810_v5, %v569_v30  ;;  %v584_v41 = vadd.f32 %v2550_v60, %v2510_v31 }
 0x108   :  { %v2590_v62 = vpop.f32.mrf.mxu0  ;;  %v578_v24 = vpop.f32.mrf.mxu1 }
 0x109   :  { %v3877_v7 = vadd.f32 %v2590_v62, %v584_v41  ;;  %v579_v63 = vadd.f32 %v578_v24, %v3847_v34 }
 0x10a   :  { %v820_v19 = vpop.f32.mrf.mxu0  ;;  %v2609_v21 = vpop.f32.mrf.mxu1 }
 0x10b   :  { %4160 = vst [vmem:[#allocation6_spill] sm:$0xff] %v3877_v7  ;;  %v3880_v11 = vadd.f32 %v820_v19, %v579_v63  ;;  %v1039_v7 = vadd.f32 %v2609_v21, %v3849_v9 }
 0x10c   :  { %v2649_v54 = vpop.f32.mrf.mxu0  ;;  %v959_v52 = vpop.f32.mrf.mxu1 }
 0x10d   :  { %4161 = vst [vmem:[#allocation2_spill] sm:$0xff] %v3880_v11 }
 0x10e   :  { %v1168_v51 = vpop.f32.mrf.mxu0  ;;  %v2612_v10 = vpop.f32.mrf.mxu1 }
 0x110   :  { %v3882_v45 = vpop.f32.mrf.mxu0  ;;  %v969_v53 = vpop.f32.mrf.mxu1 }
 0x111   :  { %v1040_v9 = vadd.f32 %v969_v53, %v3855_v47 }
 0x112   :  { %v3884_v57 = vpop.f32.mrf.mxu0  ;;  %v2615_v31 = vpop.f32.mrf.mxu1 }
 0x113   :  { %v1249_v47 = vadd.f32 %v3884_v57, %v1040_v9 }
 0x114   :  { %v3886_v46 = vpop.f32.mrf.mxu0  ;;  %v979_v38 = vpop.f32.mrf.mxu1 }
 0x116   :  { %v3888_v26 = vpop.f32.mrf.mxu0  ;;  %v2618_v34 = vpop.f32.mrf.mxu1 }
 0x118   :  { %v3890_v15 = vpop.f32.mrf.mxu0  ;;  %v989_v22 = vpop.f32.mrf.mxu1 }
 0x11a   :  { %v3892_v29 = vpop.f32.mrf.mxu0  ;;  %v3894_v43 = vpop.f32.mrf.mxu1 }
 0x11c   :  { %v3896_v42 = vpop.f32.mrf.mxu0  ;;  %v3898_v48 = vpop.f32.mrf.mxu1 }
 0x11e   :  { %v3900_v37 = vpop.f32.mrf.mxu0  ;;  %v3902_v55 = vpop.f32.mrf.mxu1 }
 0x120   :  { %v3904_v1 = vpop.f32.mrf.mxu0  ;;  %v3906_v6 = vpop.f32.mrf.mxu1 }
 0x122   :  { %v3908_v61 = vpop.f32.mrf.mxu0  ;;  %v3910_v49 = vpop.f32.mrf.mxu1 }
 0x123   :  { %4162 = vst [vmem:[#allocation3_spill] sm:$0xff] %v3908_v61 }
 0x124   :  { %v3912_v12 = vpop.f32.mrf.mxu0  ;;  %v3914_v17 = vpop.f32.mrf.mxu1 }
 0x125   :  { %4163 = vst [vmem:[#allocation8_spill] sm:$0xff] %v3912_v12 }
 0x126   :  { %v3916_v20 = vpop.f32.mrf.mxu0  ;;  %v3918_v28 = vpop.f32.mrf.mxu1 }
 0x127   :  { %4164 = vst [vmem:[#allocation9_spill] sm:$0xff] %v3916_v20  ;;  %4165 = vst [vmem:[#allocation4_spill] sm:$0xff] %v3918_v28 }
 0x128   :  { %v3920_v33 = vpop.f32.mrf.mxu0  ;;  %v3922_v40 = vpop.f32.mrf.mxu1 }
 0x129   :  { %4166 = vst [vmem:[#allocation5_spill] sm:$0xff] %v3920_v33  ;;  %4167 = vst [vmem:[#allocation10_spill] sm:$0xff] %v3922_v40 }
 0x12a   :  { %v3924_v0 = vpop.f32.mrf.mxu0  ;;  %v2689_v4 = vpop.f32.mrf.mxu1 }
 0x12b   :  { %4168 = vst [vmem:[#allocation11_spill] sm:$0xff] %v3924_v0 }
 0x12c   :  { %v2729_v13 = vpop.f32.mrf.mxu0  ;;  %v1425_v32 = vpop.f32.mrf.mxu1 }
 0x12e   :  { %v1592_v39 = vpop.f32.mrf.mxu0  ;;  %v2692_v58 = vpop.f32.mrf.mxu1 }
 0x130   :  { %v2732_v2 = vpop.f32.mrf.mxu0  ;;  %v1435_v36 = vpop.f32.mrf.mxu1 }
 0x132   :  { %v3926_v50 = vpop.f32.mrf.mxu0  ;;  %v2695_v30 = vpop.f32.mrf.mxu1 }
 0x134   :  { %v3928_v5 = vpop.f32.mrf.mxu0  ;;  %v1445_v60 = vpop.f32.mrf.mxu1 }
 0x136   :  { %v3930_v41 = vpop.f32.mrf.mxu0  ;;  %v3932_v62 = vpop.f32.mrf.mxu1 }
 0x138   :  { %v3934_v24 = vpop.f32.mrf.mxu0  ;;  %v3936_v63 = vpop.f32.mrf.mxu1 }
 0x139   :  { %4169 = vst [vmem:[#allocation7_spill] sm:$0xff] %v3934_v24  ;;  %v1038_v24 = vadd.f32 %v959_v52, %v3851_v8 }
 0x13a   :  { %v3938_v19 = vpop.f32.mrf.mxu0  ;;  %v3940_v0 = vpop.f32.mrf.mxu1 }
 0x13b   :  { %4170 = vst [vmem:[#allocation12_spill] sm:$0xff] %v3938_v19  ;;  %4171 = vst [vmem:[#allocation13_spill] sm:$0xff] %v3940_v0  ;;  %v1248_v0 = vadd.f32 %v2649_v54, %v1039_v7  ;;  %v1042_v7 = vadd.f32 %v979_v38, %v3859_v35  ;;  %v1506_v38 = vadd.f32 %v1435_v36, %v1249_v47 }
 0x13c   :  { %v3942_v33 = vpop.f32.mrf.mxu0  ;;  %v3944_v40 = vpop.f32.mrf.mxu1 }
 0x13d   :  { %4172 = vst [vmem:[#allocation14_spill] sm:$0xff] %v3942_v33  ;;  %4173 = vst [vmem:[#allocation15_spill] sm:$0xff] %v3944_v40  ;;  %v1041_v33 = vadd.f32 %v2612_v10, %v3853_v23  ;;  %v1505_v21 = vadd.f32 %v2689_v4, %v1248_v0  ;;  %v1045_v23 = vadd.f32 %v2618_v34, %v3861_v44 }
 0x13e   :  { %v3946_v11 = vpop.f32.mrf.mxu0  ;;  %v3948_v28 = vpop.f32.mrf.mxu1  ;;  %v1251_v57 = vadd.f32 %v3888_v26, %v1042_v7 }
 0x13f   :  { %4174 = vst [vmem:[#allocation16_spill] sm:$0xff] %v3946_v11  ;;  %4175 = vst [vmem:[#allocation17_spill] sm:$0xff] %v3948_v28  ;;  %v1247_v28 = vadd.f32 %v1168_v51, %v1038_v24  ;;  %v1250_v8 = vadd.f32 %v3882_v45, %v1041_v33  ;;  %v1044_v51 = vadd.f32 %v989_v22, %v3863_v3 }
 0x140   :  { %v3951_v20 = vpop.f32.mrf.mxu0  ;;  %v3953_v12 = vpop.f32.mrf.mxu1  ;;  %v1672_v53 = vadd.f32 %v2729_v13, %v1505_v21  ;;  %v1047_v45 = vadd.f32 %v3894_v43, %v3865_v25  ;;  %v1254_v3 = vadd.f32 %v3890_v15, %v1045_v23  ;;  %v1049_v22 = vadd.f32 %v3902_v55, %v3869_v18  ;;  %v3994_v25 = vld [vmem:[%s4128_s5] ss:$0 sm:$0xff] }
 0x141   :  { %4176 = vst [vmem:[#allocation18_spill] sm:$0xff] %v3951_v20  ;;  %4177 = vst [vmem:[#allocation19_spill] sm:$0xff] %v3953_v12  ;;  %v1504_v52 = vadd.f32 %v1425_v32, %v1247_v28  ;;  %v1507_v0 = vadd.f32 %v2692_v58, %v1250_v8  ;;  %v1253_v43 = vadd.f32 %v3892_v29, %v1044_v51  ;;  %v4002_v18 = vld [vmem:[%s4129_s6] ss:$0 sm:$0xff]  ;;  %v4179_v51 = vld [vmem:[#allocation3_spill] sm:$0xff] }
 0x142   :  { %v3956_v61 = vpop.f32.mrf.mxu0  ;;  %v3958_v19 = vpop.f32.mrf.mxu1  ;;  %v1258_v36 = vadd.f32 %v3904_v1, %v1049_v22  ;;  %v4184_v22 = vld [vmem:[#allocation12_spill] sm:$0xff] }
 0x143   :  { %4178 = vst [vmem:[#allocation20_spill] sm:$0xff] %v3956_v61  ;;  %v1043_v61 = vadd.f32 %v2615_v31, %v3857_v27  ;;  %v1046_v27 = vadd.f32 %v3898_v48, %v3867_v56  ;;  %v1671_v44 = vadd.f32 %v1592_v39, %v1504_v52  ;;  %v1674_v48 = vadd.f32 %v2732_v2, %v1507_v0  ;;  %v4180_v0 = vld [vmem:[#allocation7_spill] sm:$0xff] }
 0x144   :  { %v3961_v40 = vpop.f32.mrf.mxu0  ;;  %v3963_v11 = vpop.f32.mrf.mxu1  ;;  %v1673_v39 = vadd.f32 %v3926_v50, %v1506_v38  ;;  %v1050_v52 = vadd.f32 %v3914_v17, %v3875_v16 }
 0x145   :  { %v1252_v28 = vadd.f32 %v3886_v46, %v1043_v61  ;;  %v1256_v46 = vadd.f32 %v3896_v42, %v1047_v45  ;;  %v1255_v26 = vadd.f32 %v3900_v37, %v1046_v27  ;;  %v1508_v61 = vadd.f32 %v1445_v60, %v1251_v57  ;;  %v4181_v27 = vld [vmem:[#allocation13_spill] sm:$0xff] }
 0x146   :  { %v3966_v20 = vpop.f32.mrf.mxu0  ;;  %v3968_v12 = vpop.f32.mrf.mxu1  ;;  %v1048_v42 = vadd.f32 %v3906_v6, %v3871_v14  ;;  %v1051_v37 = vadd.f32 %v3910_v49, %v3873_v59  ;;  %v1510_v6 = vadd.f32 %v3936_v63, %v1253_v43  ;;  %v4183_v57 = vld [vmem:[#allocation9_spill] sm:$0xff] }
 0x147   :  { %v1509_v15 = vadd.f32 %v2695_v30, %v1252_v28  ;;  %v1511_v30 = vadd.f32 %v3932_v62, %v1254_v3  ;;  %v1675_v14 = vadd.f32 %v3930_v41, %v1508_v61  ;;  %v1513_v16 = vadd.f32 %v4181_v27, %v1256_v46  ;;  %v4185_v61 = vld [vmem:[#allocation14_spill] sm:$0xff] }
 0x148   :  { %v3974_v54 = vpop.f32.mrf.mxu0  ;;  %v3976_v10 = vpop.f32.mrf.mxu1  ;;  %v1259_v3 = vadd.f32 %v4183_v57, %v1050_v52  ;;  %v4190_v52 = vld [vmem:[#allocation2_spill] sm:$0xff] }
 0x149   :  { %v1676_v1 = vadd.f32 %v3928_v5, %v1509_v15  ;;  %v1678_v45 = vadd.f32 %v4180_v0, %v1511_v30 }
 0x14a   :  { %v3984_v31 = vpop.f32.mrf.mxu0  ;;  %v2769_v35 = vpop.f32.mrf.mxu1  ;;  %v1516_v57 = vadd.f32 %v3963_v11, %v1259_v3  ;;  %v4197_v11 = vld [vmem:[#allocation11_spill] sm:$0xff] }
 0x14b   :  { %v1839_v34 = vadd.f32 %v2769_v35, %v1672_v53  ;;  %v1257_v53 = vadd.f32 %v4179_v51, %v1048_v42  ;;  %v4193_v51 = vld [vmem:[#allocation16_spill] sm:$0xff] }
 0x14c   :  { %v2809_v33 = vpop.f32.mrf.mxu0  ;;  %v1759_v56 = vpop.f32.mrf.mxu1 }
 0x14d   :  { %v2012_v4 = vadd.f32 %v2809_v33, %v1839_v34  ;;  %v1838_v13 = vadd.f32 %v1759_v56, %v1671_v44  ;;  %v4182_v34 = vld [vmem:[#allocation8_spill] sm:$0xff]  ;;  %v1677_v33 = vadd.f32 %v4184_v22, %v1510_v6 }
 0x14e   :  { %v1932_v55 = vpop.f32.mrf.mxu0  ;;  %v2772_v32 = vpop.f32.mrf.mxu1  ;;  %v1260_v28 = vadd.f32 %v4182_v34, %v1051_v37 }
 0x14f   :  { %v2035_v29 = vmul.f32 %v3994_v25, %v2012_v4  ;;  %v2011_v58 = vadd.f32 %v1932_v55, %v1838_v13  ;;  %v1841_v2 = vadd.f32 %v2772_v32, %v1674_v48  ;;  %v1680_v55 = vadd.f32 %v4185_v61, %v1513_v16  ;;  %v4186_v32 = vld [vmem:[#allocation15_spill] sm:$0xff] }
 0x150   :  { %v2812_v60 = vpop.f32.mrf.mxu0  ;;  %v1769_v24 = vpop.f32.mrf.mxu1 }
 0x151   :  { %v2058_v9 = vadd.f32 %v4002_v18, %v2035_v29  ;;  %v2034_v50 = vmul.f32 %v3994_v25, %v2011_v58  ;;  %v2014_v21 = vadd.f32 %v2812_v60, %v1841_v2  ;;  %v1840_v8 = vadd.f32 %v1769_v24, %v1673_v39  ;;  %v4187_v29 = vld [vmem:[#allocation17_spill] sm:$0xff] }
 0x152   :  { %v1942_v59 = vpop.f32.mrf.mxu0  ;;  %v2775_v49 = vpop.f32.mrf.mxu1  ;;  %v1512_v39 = vadd.f32 %v4186_v32, %v1255_v26  ;;  %v1515_v58 = vadd.f32 %v4187_v29, %v1258_v36  ;;  %v4191_v26 = vld [vmem:[#allocation10_spill] sm:$0xff]  ;;  %v4192_v36 = vld [vmem:[#allocation19_spill] sm:$0xff] }
 0x153   :  { %v2074_v62 = vmax.f32 %v2058_v9, 0.0  ;;  %v2057_v7 = vadd.f32 %v4002_v18, %v2034_v50  ;;  %v2037_v23 = vmul.f32 %v3994_v25, %v2014_v21  ;;  %v2013_v47 = vadd.f32 %v1942_v59, %v1840_v8  ;;  %v4188_v50 = vld [vmem:[#allocation6_spill] sm:$0xff]  ;;  %v4189_v21 = vld [vmem:[#allocation4_spill] sm:$0xff] }
 0x154   :  { %v1843_v17 = vadd.f32 %v2775_v49, %v1676_v1  ;;  %v2815_v5 = vpop.f32.mrf.mxu0  ;;  %v1779_v35 = vpop.f32.mrf.mxu1  ;;  %v1053_v8 = vadd.f32 %v4189_v21, %v4188_v50  ;;  %v1052_v1 = vadd.f32 %v4191_v26, %v4190_v52  ;;  %v1679_v0 = vadd.f32 %v4193_v51, %v1512_v39 }
 0x155   :  { %2090 = vst [vmem:[%s4130_s7 + $0x8] sm:$0xff] %v2074_v62  ;;  %v2073_v41 = vmax.f32 %v2057_v7, 0.0  ;;  %v2060_v63 = vadd.f32 %v4002_v18, %v2037_v23  ;;  %v2036_v44 = vmul.f32 %v3994_v25, %v2013_v47  ;;  %v1842_v38 = vadd.f32 %v1779_v35, %v1675_v14 }
 0x156   :  { %v2016_v56 = vadd.f32 %v2815_v5, %v1843_v17  ;;  %v1952_v43 = vpop.f32.mrf.mxu0  ;;  %v2778_v48 = vpop.f32.mrf.mxu1  ;;  %v1514_v14 = vadd.f32 %v4192_v36, %v1257_v53  ;;  %v1517_v53 = vadd.f32 %v3958_v19, %v1260_v28  ;;  %v1261_v3 = vadd.f32 %v4197_v11, %v1052_v1 }
 0x157   :  { %2089 = vst [vmem:[%s4130_s7] sm:$0xff] %v2073_v41  ;;  %v2076_v4 = vmax.f32 %v2060_v63, 0.0  ;;  %v2059_v13 = vadd.f32 %v4002_v18, %v2036_v44  ;;  %v2015_v46 = vadd.f32 %v1952_v43, %v1842_v38  ;;  %v1845_v15 = vadd.f32 %v2778_v48, %v1678_v45  ;;  %v4194_v45 = vld [vmem:[#allocation18_spill] sm:$0xff]  ;;  %v4195_v38 = vld [vmem:[#allocation20_spill] sm:$0xff] }
 0x158   :  { %v2039_v2 = vmul.f32 %v3994_v25, %v2016_v56  ;;  %v2818_v42 = vpop.f32.mrf.mxu0  ;;  %v1789_v37 = vpop.f32.mrf.mxu1  ;;  %v1682_v27 = vadd.f32 %v4194_v45, %v1515_v58  ;;  %v1681_v34 = vadd.f32 %v4195_v38, %v1514_v14 }
 0x159   :  { %2092 = vst [vmem:[%s4130_s7 + $0x18] sm:$0xff] %v2076_v4  ;;  %v2075_v30 = vmax.f32 %v2059_v13, 0.0  ;;  %v2038_v60 = vmul.f32 %v3994_v25, %v2015_v46  ;;  %v2018_v24 = vadd.f32 %v2818_v42, %v1845_v15  ;;  %v1844_v9 = vadd.f32 %v1789_v37, %v1677_v33  ;;  %v4196_v4 = vld [vmem:[#allocation5_spill] sm:$0xff] }
 0x15a   :  { %v2062_v6 = vadd.f32 %v4002_v18, %v2039_v2  ;;  %v1962_v59 = vpop.f32.mrf.mxu0  ;;  %v2781_v49 = vpop.f32.mrf.mxu1  ;;  %v1262_v13 = vadd.f32 %v4196_v4, %v1053_v8  ;;  %v1684_v46 = vadd.f32 %v3961_v40, %v1517_v53  ;;  %v1683_v2 = vadd.f32 %v3966_v20, %v1516_v57 }
 0x15b   :  { %2091 = vst [vmem:[%s4130_s7 + $0x10] sm:$0xff] %v2075_v30  ;;  %v2061_v62 = vadd.f32 %v4002_v18, %v2038_v60  ;;  %v2041_v7 = vmul.f32 %v3994_v25, %v2018_v24  ;;  %v2017_v23 = vadd.f32 %v1962_v59, %v1844_v9  ;;  %v1847_v47 = vadd.f32 %v2781_v49, %v1680_v55 }
 0x15c   :  { %v2078_v16 = vmax.f32 %v2062_v6, 0.0  ;;  %v2821_v17 = vpop.f32.mrf.mxu0  ;;  %v1799_v5 = vpop.f32.mrf.mxu1  ;;  %v1519_v42 = vadd.f32 %v3968_v12, %v1262_v13  ;;  %v1518_v37 = vadd.f32 %v3976_v10, %v1261_v3 }
 0x15d   :  { %v2077_v35 = vmax.f32 %v2061_v62, 0.0  ;;  %v2064_v41 = vadd.f32 %v4002_v18, %v2041_v7  ;;  %v2040_v63 = vmul.f32 %v3994_v25, %v2017_v23  ;;  %v2020_v44 = vadd.f32 %v2821_v17, %v1847_v47 }
 0x15e   :  { %2094 = vst [vmem:[%s4130_s7 + $0x28] sm:$0xff] %v2078_v16  ;;  %v1846_v22 = vadd.f32 %v1799_v5, %v1679_v0  ;;  %v1972_v33 = vpop.f32.mrf.mxu0  ;;  %v2784_v19 = vpop.f32.mrf.mxu1  ;;  %v1686_v36 = vadd.f32 %v3974_v54, %v1519_v42  ;;  %v1685_v14 = vadd.f32 %v3984_v31, %v1518_v37 }
 0x15f   :  { %2093 = vst [vmem:[%s4130_s7 + $0x20] sm:$0xff] %v2077_v35  ;;  %v2080_v28 = vmax.f32 %v2064_v41, 0.0  ;;  %v2063_v56 = vadd.f32 %v4002_v18, %v2040_v63  ;;  %v2043_v43 = vmul.f32 %v3994_v25, %v2020_v44  ;;  %v1849_v48 = vadd.f32 %v2784_v19, %v1682_v27 }
 0x160   :  { %v2019_v15 = vadd.f32 %v1972_v33, %v1846_v22  ;;  %v2824_v61 = vpop.f32.mrf.mxu0  ;;  %v1809_v55 = vpop.f32.mrf.mxu1 }
 0x161   :  { %2096 = vst [vmem:[%s4130_s7 + $0x38] sm:$0xff] %v2080_v28  ;;  %v2079_v32 = vmax.f32 %v2063_v56, 0.0  ;;  %v2066_v39 = vadd.f32 %v4002_v18, %v2043_v43  ;;  %v2022_v29 = vadd.f32 %v2824_v61, %v1849_v48  ;;  %v1848_v58 = vadd.f32 %v1809_v55, %v1681_v34 }
 0x162   :  { %v2042_v40 = vmul.f32 %v3994_v25, %v2019_v15  ;;  %v1982_v30 = vpop.f32.mrf.mxu0  ;;  %v2787_v60 = vpop.f32.mrf.mxu1 }
 0x163   :  { %2095 = vst [vmem:[%s4130_s7 + $0x30] sm:$0xff] %v2079_v32  ;;  %v2082_v24 = vmax.f32 %v2066_v39, 0.0  ;;  %v2045_v9 = vmul.f32 %v3994_v25, %v2022_v29  ;;  %v2021_v50 = vadd.f32 %v1982_v30, %v1848_v58  ;;  %v1851_v21 = vadd.f32 %v2787_v60, %v1684_v46 }
 0x164   :  { %v2065_v8 = vadd.f32 %v4002_v18, %v2042_v40  ;;  %v2827_v20 = vpop.f32.mrf.mxu0  ;;  %v1819_v52 = vpop.f32.mrf.mxu1 }
 0x165   :  { %2098 = vst [vmem:[%s4130_s7 + $0x48] sm:$0xff] %v2082_v24  ;;  %v2068_v12 = vadd.f32 %v4002_v18, %v2045_v9  ;;  %v2044_v10 = vmul.f32 %v3994_v25, %v2021_v50  ;;  %v2024_v26 = vadd.f32 %v2827_v20, %v1851_v21  ;;  %v1850_v1 = vadd.f32 %v1819_v52, %v1683_v2 }
 0x166   :  { %v2081_v6 = vmax.f32 %v2065_v8, 0.0  ;;  %v1992_v59 = vpop.f32.mrf.mxu0  ;;  %v2790_v49 = vpop.f32.mrf.mxu1 }
 0x167   :  { %v2084_v62 = vmax.f32 %v2068_v12, 0.0  ;;  %v2067_v7 = vadd.f32 %v4002_v18, %v2044_v10  ;;  %v2047_v23 = vmul.f32 %v3994_v25, %v2024_v26  ;;  %v2023_v47 = vadd.f32 %v1992_v59, %v1850_v1 }
 0x168   :  { %2097 = vst [vmem:[%s4130_s7 + $0x40] sm:$0xff] %v2081_v6  ;;  %v1853_v51 = vadd.f32 %v2790_v49, %v1686_v36  ;;  %v2830_v0 = vpop.f32.mrf.mxu0  ;;  %v1829_v45 = vpop.f32.mrf.mxu1 }
 0x169   :  { %2100 = vst [vmem:[%s4130_s7 + $0x58] sm:$0xff] %v2084_v62  ;;  %v2083_v54 = vmax.f32 %v2067_v7, 0.0  ;;  %v2070_v31 = vadd.f32 %v4002_v18, %v2047_v23  ;;  %v2046_v27 = vmul.f32 %v3994_v25, %v2023_v47  ;;  %v1852_v53 = vadd.f32 %v1829_v45, %v1685_v14 }
 0x16a   :  { %v2026_v16 = vadd.f32 %v2830_v0, %v1853_v51  ;;  %v2002_v17 = vpop.f32.mrf.mxu0 }
 0x16b   :  { %2099 = vst [vmem:[%s4130_s7 + $0x50] sm:$0xff] %v2083_v54  ;;  %v2086_v5 = vmax.f32 %v2070_v31, 0.0  ;;  %v2069_v35 = vadd.f32 %v4002_v18, %v2046_v27  ;;  %v2025_v41 = vadd.f32 %v2002_v17, %v1852_v53 }
 0x16c   :  { %v2049_v63 = vmul.f32 %v3994_v25, %v2026_v16 }
 0x16d   :  { %2102 = vst [vmem:[%s4130_s7 + $0x68] sm:$0xff] %v2086_v5  ;;  %v2085_v44 = vmax.f32 %v2069_v35, 0.0  ;;  %v2048_v38 = vmul.f32 %v3994_v25, %v2025_v41 }
 0x16e   :  { %v2072_v34 = vadd.f32 %v4002_v18, %v2049_v63 }
 0x16f   :  { %2101 = vst [vmem:[%s4130_s7 + $0x60] sm:$0xff] %v2085_v44  ;;  %v2071_v57 = vadd.f32 %v4002_v18, %v2048_v38 }
 0x170   :  { %v2088_v22 = vmax.f32 %v2072_v34, 0.0 }
 0x171   :  { %v2087_v33 = vmax.f32 %v2071_v57, 0.0 }
 0x172   :  { %2104 = vst [vmem:[%s4130_s7 + $0x78] sm:$0xff] %v2088_v22 }
 0x173   :  { %2103 = vst [vmem:[%s4130_s7 + $0x70] sm:$0xff] %v2087_v33 }

// kernel: frequency_module_forward.7
= control target key start
LH: loop header
LB: loop body
LE: loop exit
PB: predicated region body
PF: predicated region fallthrough
CT: control target
= control target key end

     0   :  { %s3182_s24 = smov 0   ;;  %s3184_s25 = smov 0   ;;  %s4034_s0 = inlined_call_operand.vmem [shape: f32[2,5,5,128], index: 0, kind: input, shape index: {}]   ;;  %s4035_s1 = inlined_call_operand.vmem [shape: f32[2,5,5,128], index: 1, kind: input, shape index: {}]   ;;  %s4036_s2 = inlined_call_operand.vmem [shape: f32[2,5,5,128], index: 2, kind: input, shape index: {}]   ;;  %s4037_s3 = inlined_call_operand.vmem [shape: f32[2,5,5,128], index: 3, kind: input, shape index: {}]   ;;  %s4038_s4 = inlined_call_operand.vmem [shape: f32[9,128,256], index: 4, kind: input, shape index: {}]   ;;  %s4039_s5 = inlined_call_operand.vmem [shape: f32[1,256], index: 5, kind: input, shape index: {}]   ;;  %s4040_s6 = inlined_call_operand.vmem [shape: f32[1,256], index: 6, kind: input, shape index: {}]   ;;  %s4041_s7 = inlined_call_operand.vmem [shape: f32[32,256], index: 7, kind: output, shape index: {}]  }
   0x1   :  { %s3186_s26 = smov 0   ;;  %s3188_s27 = smov 0  }
   0x2   :  { %s3190_s28 = smov 0  }
   0x3 LB: > { %s26_s29 = sadd.s32 1, %s3136_s27  ;;  %s2429_s30 = sadd.s32 4294967295, %s3140_s28   ;;  %s3140_s28 = sphi %s3190_s28, %s17_s28   ;;  %s3136_s27 = sphi %s3188_s27, %s4048_s27   ;;  %s3132_s26 = sphi %s3186_s26, %s4047_s26   ;;  %s3128_s25 = sphi %s3184_s25, %s4046_s25   ;;  %s3124_s24 = sphi %s3182_s24, %s4045_s24  }
   0x4   : > { %p27_p0 = scmp.ge.s32.totalorder %s26_s29, 2  ;;  %p147_p1 = scmp.ne.s32.totalorder %s3128_s25, %s3124_s24 }
   0x5   : > { %p148_p2 = scmp.eq.s32.totalorder %s3140_s28, 0  ;;  %p231_p4 = scmp.eq.s32.totalorder %s2429_s30, 1 }
   0x6   : > { %s4050_s29 = smov (%p27_p0, %s26_s29), 0  ;;  %s140_s9 = sadd.s32 1, %s3128_s25 }
   0x7   : > { %p149_p3 = por %p148_p2, %p147_p1  ;;  %s137_s8 = ssub.s32 %s3136_s27, %s4050_s29 }
   0x8   : > { %p138_p5 = scmp.eq.s32.totalorder %s137_s8, 0  ;;  %p3217_p6 = por %p231_p4, %p147_p1 }
   0x9   : > { %p2436_p7 = scmp.ge.s32.totalorder %s3140_s28, 2 }
   0xa   : > { %s3222_s11 = scalar_select %p138_p5, %s3128_s25, %s140_s9  }
   0xb   : > { %293 = sbr.rel (%p2436_p7) target bundleno = 92 (0x5c), region = 32 }
  0x10   : > { %296 = sbr.rel (!%p149_p3) target bundleno = 92 (0x5c), region = 36  ;;  %s298_s12 = sand.u32 (%p149_p3), 1, %s3128_s25  }
  0x11   : > { %s2437_s13 = sshll.u32 (%p149_p3), %s3136_s27, 3  ;;  %s3018_s14 = smul.u32 (%p149_p3), 1152, %s298_s12 }
  0x12   : > { %s3230_s17 = scalar_lea.vmem (%p149_p3), %s4038_s4, %s2437_s13 }
  0x13   : > { %v617_v0 = vld [vmem:[%s3230_s17] sm:$0xff] (%p149_p3)  ;;  %v619_v1 = vld [vmem:[%s3230_s17 + $0x10] sm:$0xff] (%p149_p3)  ;;  %s3238_s18 = scalar_lea.vmem (%p149_p3), [#allocation2], %s3018_s14 }
  0x14   : > { %v621_v2 = vld [vmem:[%s3230_s17 + $0x20] sm:$0xff] (%p149_p3)  ;;  %v623_v3 = vld [vmem:[%s3230_s17 + $0x30] sm:$0xff] (%p149_p3)  ;;  %618 = vst [vmem:[%s3238_s18] sm:$0xff] (%p149_p3), %v617_v0  ;;  %620 = vst [vmem:[%s3238_s18 + $0x8] sm:$0xff] (%p149_p3), %v619_v1 }
  0x15   : > { %v625_v4 = vld [vmem:[%s3230_s17 + $0x40] sm:$0xff]  ;;  %v627_v5 = vld [vmem:[%s3230_s17 + $0x50] sm:$0xff]  ;;  %622 = vst [vmem:[%s3238_s18 + $0x10] sm:$0xff] %v621_v2  ;;  %624 = vst [vmem:[%s3238_s18 + $0x18] sm:$0xff] %v623_v3 }
  0x16   : > { %626 = vst [vmem:[%s3238_s18 + $0x20] sm:$0xff] %v625_v4  ;;  %628 = vst [vmem:[%s3238_s18 + $0x28] sm:$0xff] %v627_v5  ;;  %v629_v6 = vld [vmem:[%s3230_s17 + $0x60] sm:$0xff]  ;;  %v631_v7 = vld [vmem:[%s3230_s17 + $0x70] sm:$0xff] }
  0x17   : > { %v633_v8 = vld [vmem:[%s3230_s17 + $0x80] sm:$0xff]  ;;  %630 = vst [vmem:[%s3238_s18 + $0x30] sm:$0xff] %v629_v6  ;;  %632 = vst [vmem:[%s3238_s18 + $0x38] sm:$0xff] %v631_v7  ;;  %v635_v9 = vld [vmem:[%s3230_s17 + $0x90] sm:$0xff] }
  0x18   : > { %634 = vst [vmem:[%s3238_s18 + $0x40] sm:$0xff] %v633_v8  ;;  %v637_v10 = vld [vmem:[%s3230_s17 + $0xa0] sm:$0xff]  ;;  %v639_v11 = vld [vmem:[%s3230_s17 + $0xb0] sm:$0xff]  ;;  %636 = vst [vmem:[%s3238_s18 + $0x48] sm:$0xff] %v635_v9 }
  0x19   : > { %638 = vst [vmem:[%s3238_s18 + $0x50] sm:$0xff] %v637_v10  ;;  %640 = vst [vmem:[%s3238_s18 + $0x58] sm:$0xff] %v639_v11  ;;  %v641_v12 = vld [vmem:[%s3230_s17 + $0xc0] sm:$0xff]  ;;  %v643_v13 = vld [vmem:[%s3230_s17 + $0xd0] sm:$0xff] }
  0x1a   : > { %v645_v14 = vld [vmem:[%s3230_s17 + $0xe0] sm:$0xff]  ;;  %642 = vst [vmem:[%s3238_s18 + $0x60] sm:$0xff] %v641_v12  ;;  %644 = vst [vmem:[%s3238_s18 + $0x68] sm:$0xff] %v643_v13  ;;  %v647_v15 = vld [vmem:[%s3230_s17 + $0xf0] sm:$0xff] }
  0x1b   : > { %646 = vst [vmem:[%s3238_s18 + $0x70] sm:$0xff] %v645_v14  ;;  %v649_v16 = vld [vmem:[%s3230_s17 + $0x100] sm:$0xff]  ;;  %v651_v17 = vld [vmem:[%s3230_s17 + $0x110] sm:$0xff]  ;;  %648 = vst [vmem:[%s3238_s18 + $0x78] sm:$0xff] %v647_v15 }
  0x1c   : > { %650 = vst [vmem:[%s3238_s18 + $0x80] sm:$0xff] %v649_v16  ;;  %652 = vst [vmem:[%s3238_s18 + $0x88] sm:$0xff] %v651_v17  ;;  %v653_v18 = vld [vmem:[%s3230_s17 + $0x120] sm:$0xff]  ;;  %v655_v19 = vld [vmem:[%s3230_s17 + $0x130] sm:$0xff] }
  0x1d   : > { %v657_v20 = vld [vmem:[%s3230_s17 + $0x140] sm:$0xff]  ;;  %654 = vst [vmem:[%s3238_s18 + $0x90] sm:$0xff] %v653_v18  ;;  %656 = vst [vmem:[%s3238_s18 + $0x98] sm:$0xff] %v655_v19  ;;  %v659_v21 = vld [vmem:[%s3230_s17 + $0x150] sm:$0xff] }
  0x1e   : > { %658 = vst [vmem:[%s3238_s18 + $0xa0] sm:$0xff] %v657_v20  ;;  %v661_v22 = vld [vmem:[%s3230_s17 + $0x160] sm:$0xff]  ;;  %v663_v23 = vld [vmem:[%s3230_s17 + $0x170] sm:$0xff]  ;;  %660 = vst [vmem:[%s3238_s18 + $0xa8] sm:$0xff] %v659_v21 }
  0x1f   : > { %662 = vst [vmem:[%s3238_s18 + $0xb0] sm:$0xff] %v661_v22  ;;  %664 = vst [vmem:[%s3238_s18 + $0xb8] sm:$0xff] %v663_v23  ;;  %v665_v24 = vld [vmem:[%s3230_s17 + $0x180] sm:$0xff]  ;;  %v667_v25 = vld [vmem:[%s3230_s17 + $0x190] sm:$0xff] }
  0x20   : > { %v669_v26 = vld [vmem:[%s3230_s17 + $0x1a0] sm:$0xff]  ;;  %666 = vst [vmem:[%s3238_s18 + $0xc0] sm:$0xff] %v665_v24  ;;  %668 = vst [vmem:[%s3238_s18 + $0xc8] sm:$0xff] %v667_v25  ;;  %v671_v27 = vld [vmem:[%s3230_s17 + $0x1b0] sm:$0xff] }
  0x21   : > { %670 = vst [vmem:[%s3238_s18 + $0xd0] sm:$0xff] %v669_v26  ;;  %v673_v28 = vld [vmem:[%s3230_s17 + $0x1c0] sm:$0xff]  ;;  %v675_v29 = vld [vmem:[%s3230_s17 + $0x1d0] sm:$0xff]  ;;  %672 = vst [vmem:[%s3238_s18 + $0xd8] sm:$0xff] %v671_v27 }
  0x22   : > { %674 = vst [vmem:[%s3238_s18 + $0xe0] sm:$0xff] %v673_v28  ;;  %676 = vst [vmem:[%s3238_s18 + $0xe8] sm:$0xff] %v675_v29  ;;  %v677_v30 = vld [vmem:[%s3230_s17 + $0x1e0] sm:$0xff]  ;;  %v679_v31 = vld [vmem:[%s3230_s17 + $0x1f0] sm:$0xff] }
  0x23   : > { %v681_v32 = vld [vmem:[%s3230_s17 + $0x200] sm:$0xff]  ;;  %678 = vst [vmem:[%s3238_s18 + $0xf0] sm:$0xff] %v677_v30  ;;  %680 = vst [vmem:[%s3238_s18 + $0xf8] sm:$0xff] %v679_v31  ;;  %v683_v33 = vld [vmem:[%s3230_s17 + $0x210] sm:$0xff] }
  0x24   : > { %682 = vst [vmem:[%s3238_s18 + $0x100] sm:$0xff] %v681_v32  ;;  %v685_v34 = vld [vmem:[%s3230_s17 + $0x220] sm:$0xff]  ;;  %v687_v35 = vld [vmem:[%s3230_s17 + $0x230] sm:$0xff]  ;;  %684 = vst [vmem:[%s3238_s18 + $0x108] sm:$0xff] %v683_v33 }
  0x25   : > { %686 = vst [vmem:[%s3238_s18 + $0x110] sm:$0xff] %v685_v34  ;;  %688 = vst [vmem:[%s3238_s18 + $0x118] sm:$0xff] %v687_v35  ;;  %v689_v36 = vld [vmem:[%s3230_s17 + $0x240] sm:$0xff]  ;;  %v691_v37 = vld [vmem:[%s3230_s17 + $0x250] sm:$0xff] }
  0x26   : > { %v693_v38 = vld [vmem:[%s3230_s17 + $0x260] sm:$0xff]  ;;  %690 = vst [vmem:[%s3238_s18 + $0x120] sm:$0xff] %v689_v36  ;;  %692 = vst [vmem:[%s3238_s18 + $0x128] sm:$0xff] %v691_v37  ;;  %v695_v39 = vld [vmem:[%s3230_s17 + $0x270] sm:$0xff] }
  0x27   : > { %694 = vst [vmem:[%s3238_s18 + $0x130] sm:$0xff] %v693_v38  ;;  %v697_v40 = vld [vmem:[%s3230_s17 + $0x280] sm:$0xff]  ;;  %v699_v41 = vld [vmem:[%s3230_s17 + $0x290] sm:$0xff]  ;;  %696 = vst [vmem:[%s3238_s18 + $0x138] sm:$0xff] %v695_v39 }
  0x28   : > { %698 = vst [vmem:[%s3238_s18 + $0x140] sm:$0xff] %v697_v40  ;;  %700 = vst [vmem:[%s3238_s18 + $0x148] sm:$0xff] %v699_v41  ;;  %v701_v42 = vld [vmem:[%s3230_s17 + $0x2a0] sm:$0xff]  ;;  %v703_v43 = vld [vmem:[%s3230_s17 + $0x2b0] sm:$0xff] }
  0x29   : > { %v705_v44 = vld [vmem:[%s3230_s17 + $0x2c0] sm:$0xff]  ;;  %702 = vst [vmem:[%s3238_s18 + $0x150] sm:$0xff] %v701_v42  ;;  %704 = vst [vmem:[%s3238_s18 + $0x158] sm:$0xff] %v703_v43  ;;  %v707_v45 = vld [vmem:[%s3230_s17 + $0x2d0] sm:$0xff] }
  0x2a   : > { %706 = vst [vmem:[%s3238_s18 + $0x160] sm:$0xff] %v705_v44  ;;  %v709_v46 = vld [vmem:[%s3230_s17 + $0x2e0] sm:$0xff]  ;;  %v711_v47 = vld [vmem:[%s3230_s17 + $0x2f0] sm:$0xff]  ;;  %708 = vst [vmem:[%s3238_s18 + $0x168] sm:$0xff] %v707_v45 }
  0x2b   : > { %710 = vst [vmem:[%s3238_s18 + $0x170] sm:$0xff] %v709_v46  ;;  %712 = vst [vmem:[%s3238_s18 + $0x178] sm:$0xff] %v711_v47  ;;  %v713_v48 = vld [vmem:[%s3230_s17 + $0x300] sm:$0xff]  ;;  %v715_v49 = vld [vmem:[%s3230_s17 + $0x310] sm:$0xff] }
  0x2c   : > { %v717_v50 = vld [vmem:[%s3230_s17 + $0x320] sm:$0xff]  ;;  %714 = vst [vmem:[%s3238_s18 + $0x180] sm:$0xff] %v713_v48  ;;  %716 = vst [vmem:[%s3238_s18 + $0x188] sm:$0xff] %v715_v49  ;;  %v719_v51 = vld [vmem:[%s3230_s17 + $0x330] sm:$0xff] }
  0x2d   : > { %718 = vst [vmem:[%s3238_s18 + $0x190] sm:$0xff] %v717_v50  ;;  %v721_v52 = vld [vmem:[%s3230_s17 + $0x340] sm:$0xff]  ;;  %v723_v53 = vld [vmem:[%s3230_s17 + $0x350] sm:$0xff]  ;;  %720 = vst [vmem:[%s3238_s18 + $0x198] sm:$0xff] %v719_v51 }
  0x2e   : > { %722 = vst [vmem:[%s3238_s18 + $0x1a0] sm:$0xff] %v721_v52  ;;  %724 = vst [vmem:[%s3238_s18 + $0x1a8] sm:$0xff] %v723_v53  ;;  %v725_v54 = vld [vmem:[%s3230_s17 + $0x360] sm:$0xff]  ;;  %v727_v55 = vld [vmem:[%s3230_s17 + $0x370] sm:$0xff] }
  0x2f   : > { %v729_v56 = vld [vmem:[%s3230_s17 + $0x380] sm:$0xff]  ;;  %726 = vst [vmem:[%s3238_s18 + $0x1b0] sm:$0xff] %v725_v54  ;;  %728 = vst [vmem:[%s3238_s18 + $0x1b8] sm:$0xff] %v727_v55  ;;  %v731_v57 = vld [vmem:[%s3230_s17 + $0x390] sm:$0xff] }
  0x30   : > { %730 = vst [vmem:[%s3238_s18 + $0x1c0] sm:$0xff] %v729_v56  ;;  %v733_v58 = vld [vmem:[%s3230_s17 + $0x3a0] sm:$0xff]  ;;  %v735_v59 = vld [vmem:[%s3230_s17 + $0x3b0] sm:$0xff]  ;;  %732 = vst [vmem:[%s3238_s18 + $0x1c8] sm:$0xff] %v731_v57 }
  0x31   : > { %734 = vst [vmem:[%s3238_s18 + $0x1d0] sm:$0xff] %v733_v58  ;;  %736 = vst [vmem:[%s3238_s18 + $0x1d8] sm:$0xff] %v735_v59  ;;  %v737_v60 = vld [vmem:[%s3230_s17 + $0x3c0] sm:$0xff]  ;;  %v739_v61 = vld [vmem:[%s3230_s17 + $0x3d0] sm:$0xff] }
  0x32   : > { %v741_v62 = vld [vmem:[%s3230_s17 + $0x3e0] sm:$0xff]  ;;  %738 = vst [vmem:[%s3238_s18 + $0x1e0] sm:$0xff] %v737_v60  ;;  %740 = vst [vmem:[%s3238_s18 + $0x1e8] sm:$0xff] %v739_v61  ;;  %v743_v63 = vld [vmem:[%s3230_s17 + $0x3f0] sm:$0xff] }
  0x33   : > { %742 = vst [vmem:[%s3238_s18 + $0x1f0] sm:$0xff] %v741_v62  ;;  %v745_v0 = vld [vmem:[%s3230_s17 + $0x400] sm:$0xff]  ;;  %v747_v1 = vld [vmem:[%s3230_s17 + $0x410] sm:$0xff]  ;;  %744 = vst [vmem:[%s3238_s18 + $0x1f8] sm:$0xff] %v743_v63 }
  0x34   : > { %746 = vst [vmem:[%s3238_s18 + $0x200] sm:$0xff] %v745_v0  ;;  %748 = vst [vmem:[%s3238_s18 + $0x208] sm:$0xff] %v747_v1  ;;  %v749_v2 = vld [vmem:[%s3230_s17 + $0x420] sm:$0xff]  ;;  %v751_v3 = vld [vmem:[%s3230_s17 + $0x430] sm:$0xff] }
  0x35   : > { %v753_v4 = vld [vmem:[%s3230_s17 + $0x440] sm:$0xff]  ;;  %750 = vst [vmem:[%s3238_s18 + $0x210] sm:$0xff] %v749_v2  ;;  %752 = vst [vmem:[%s3238_s18 + $0x218] sm:$0xff] %v751_v3  ;;  %v755_v5 = vld [vmem:[%s3230_s17 + $0x450] sm:$0xff] }
  0x36   : > { %754 = vst [vmem:[%s3238_s18 + $0x220] sm:$0xff] %v753_v4  ;;  %v757_v6 = vld [vmem:[%s3230_s17 + $0x460] sm:$0xff]  ;;  %v759_v7 = vld [vmem:[%s3230_s17 + $0x470] sm:$0xff]  ;;  %756 = vst [vmem:[%s3238_s18 + $0x228] sm:$0xff] %v755_v5 }
  0x37   : > { %758 = vst [vmem:[%s3238_s18 + $0x230] sm:$0xff] %v757_v6  ;;  %760 = vst [vmem:[%s3238_s18 + $0x238] sm:$0xff] %v759_v7  ;;  %v761_v8 = vld [vmem:[%s3230_s17 + $0x480] sm:$0xff]  ;;  %v763_v9 = vld [vmem:[%s3230_s17 + $0x490] sm:$0xff] }
  0x38   : > { %v765_v10 = vld [vmem:[%s3230_s17 + $0x4a0] sm:$0xff]  ;;  %762 = vst [vmem:[%s3238_s18 + $0x240] sm:$0xff] %v761_v8  ;;  %764 = vst [vmem:[%s3238_s18 + $0x248] sm:$0xff] %v763_v9  ;;  %v767_v11 = vld [vmem:[%s3230_s17 + $0x4b0] sm:$0xff] }
  0x39   : > { %766 = vst [vmem:[%s3238_s18 + $0x250] sm:$0xff] %v765_v10  ;;  %v769_v12 = vld [vmem:[%s3230_s17 + $0x4c0] sm:$0xff]  ;;  %v771_v13 = vld [vmem:[%s3230_s17 + $0x4d0] sm:$0xff]  ;;  %768 = vst [vmem:[%s3238_s18 + $0x258] sm:$0xff] %v767_v11 }
  0x3a   : > { %770 = vst [vmem:[%s3238_s18 + $0x260] sm:$0xff] %v769_v12  ;;  %772 = vst [vmem:[%s3238_s18 + $0x268] sm:$0xff] %v771_v13  ;;  %v773_v14 = vld [vmem:[%s3230_s17 + $0x4e0] sm:$0xff]  ;;  %v775_v15 = vld [vmem:[%s3230_s17 + $0x4f0] sm:$0xff] }
  0x3b   : > { %v777_v16 = vld [vmem:[%s3230_s17 + $0x500] sm:$0xff]  ;;  %774 = vst [vmem:[%s3238_s18 + $0x270] sm:$0xff] %v773_v14  ;;  %776 = vst [vmem:[%s3238_s18 + $0x278] sm:$0xff] %v775_v15  ;;  %v779_v17 = vld [vmem:[%s3230_s17 + $0x510] sm:$0xff] }
  0x3c   : > { %778 = vst [vmem:[%s3238_s18 + $0x280] sm:$0xff] %v777_v16  ;;  %v781_v18 = vld [vmem:[%s3230_s17 + $0x520] sm:$0xff]  ;;  %v783_v19 = vld [vmem:[%s3230_s17 + $0x530] sm:$0xff]  ;;  %780 = vst [vmem:[%s3238_s18 + $0x288] sm:$0xff] %v779_v17 }
  0x3d   : > { %782 = vst [vmem:[%s3238_s18 + $0x290] sm:$0xff] %v781_v18  ;;  %784 = vst [vmem:[%s3238_s18 + $0x298] sm:$0xff] %v783_v19  ;;  %v785_v20 = vld [vmem:[%s3230_s17 + $0x540] sm:$0xff]  ;;  %v787_v21 = vld [vmem:[%s3230_s17 + $0x550] sm:$0xff] }
  0x3e   : > { %v789_v22 = vld [vmem:[%s3230_s17 + $0x560] sm:$0xff]  ;;  %786 = vst [vmem:[%s3238_s18 + $0x2a0] sm:$0xff] %v785_v20  ;;  %788 = vst [vmem:[%s3238_s18 + $0x2a8] sm:$0xff] %v787_v21  ;;  %v791_v23 = vld [vmem:[%s3230_s17 + $0x570] sm:$0xff] }
  0x3f   : > { %790 = vst [vmem:[%s3238_s18 + $0x2b0] sm:$0xff] %v789_v22  ;;  %v793_v24 = vld [vmem:[%s3230_s17 + $0x580] sm:$0xff]  ;;  %v795_v25 = vld [vmem:[%s3230_s17 + $0x590] sm:$0xff]  ;;  %792 = vst [vmem:[%s3238_s18 + $0x2b8] sm:$0xff] %v791_v23 }
  0x40   : > { %794 = vst [vmem:[%s3238_s18 + $0x2c0] sm:$0xff] %v793_v24  ;;  %796 = vst [vmem:[%s3238_s18 + $0x2c8] sm:$0xff] %v795_v25  ;;  %v797_v26 = vld [vmem:[%s3230_s17 + $0x5a0] sm:$0xff]  ;;  %v799_v27 = vld [vmem:[%s3230_s17 + $0x5b0] sm:$0xff] }
  0x41   : > { %v801_v28 = vld [vmem:[%s3230_s17 + $0x5c0] sm:$0xff]  ;;  %798 = vst [vmem:[%s3238_s18 + $0x2d0] sm:$0xff] %v797_v26  ;;  %800 = vst [vmem:[%s3238_s18 + $0x2d8] sm:$0xff] %v799_v27  ;;  %v803_v29 = vld [vmem:[%s3230_s17 + $0x5d0] sm:$0xff] }
  0x42   : > { %802 = vst [vmem:[%s3238_s18 + $0x2e0] sm:$0xff] %v801_v28  ;;  %v805_v30 = vld [vmem:[%s3230_s17 + $0x5e0] sm:$0xff]  ;;  %v807_v31 = vld [vmem:[%s3230_s17 + $0x5f0] sm:$0xff]  ;;  %804 = vst [vmem:[%s3238_s18 + $0x2e8] sm:$0xff] %v803_v29 }
  0x43   : > { %806 = vst [vmem:[%s3238_s18 + $0x2f0] sm:$0xff] %v805_v30  ;;  %808 = vst [vmem:[%s3238_s18 + $0x2f8] sm:$0xff] %v807_v31  ;;  %v809_v32 = vld [vmem:[%s3230_s17 + $0x600] sm:$0xff]  ;;  %v811_v33 = vld [vmem:[%s3230_s17 + $0x610] sm:$0xff] }
  0x44   : > { %v813_v34 = vld [vmem:[%s3230_s17 + $0x620] sm:$0xff]  ;;  %810 = vst [vmem:[%s3238_s18 + $0x300] sm:$0xff] %v809_v32  ;;  %812 = vst [vmem:[%s3238_s18 + $0x308] sm:$0xff] %v811_v33  ;;  %v815_v35 = vld [vmem:[%s3230_s17 + $0x630] sm:$0xff] }
  0x45   : > { %814 = vst [vmem:[%s3238_s18 + $0x310] sm:$0xff] %v813_v34  ;;  %v817_v36 = vld [vmem:[%s3230_s17 + $0x640] sm:$0xff]  ;;  %v819_v37 = vld [vmem:[%s3230_s17 + $0x650] sm:$0xff]  ;;  %816 = vst [vmem:[%s3238_s18 + $0x318] sm:$0xff] %v815_v35 }
  0x46   : > { %818 = vst [vmem:[%s3238_s18 + $0x320] sm:$0xff] %v817_v36  ;;  %820 = vst [vmem:[%s3238_s18 + $0x328] sm:$0xff] %v819_v37  ;;  %v821_v38 = vld [vmem:[%s3230_s17 + $0x660] sm:$0xff]  ;;  %v823_v39 = vld [vmem:[%s3230_s17 + $0x670] sm:$0xff] }
  0x47   : > { %v825_v40 = vld [vmem:[%s3230_s17 + $0x680] sm:$0xff]  ;;  %822 = vst [vmem:[%s3238_s18 + $0x330] sm:$0xff] %v821_v38  ;;  %824 = vst [vmem:[%s3238_s18 + $0x338] sm:$0xff] %v823_v39  ;;  %v827_v41 = vld [vmem:[%s3230_s17 + $0x690] sm:$0xff] }
  0x48   : > { %826 = vst [vmem:[%s3238_s18 + $0x340] sm:$0xff] %v825_v40  ;;  %v829_v42 = vld [vmem:[%s3230_s17 + $0x6a0] sm:$0xff]  ;;  %v831_v43 = vld [vmem:[%s3230_s17 + $0x6b0] sm:$0xff]  ;;  %828 = vst [vmem:[%s3238_s18 + $0x348] sm:$0xff] %v827_v41 }
  0x49   : > { %830 = vst [vmem:[%s3238_s18 + $0x350] sm:$0xff] %v829_v42  ;;  %832 = vst [vmem:[%s3238_s18 + $0x358] sm:$0xff] %v831_v43  ;;  %v833_v44 = vld [vmem:[%s3230_s17 + $0x6c0] sm:$0xff]  ;;  %v835_v45 = vld [vmem:[%s3230_s17 + $0x6d0] sm:$0xff] }
  0x4a   : > { %v837_v46 = vld [vmem:[%s3230_s17 + $0x6e0] sm:$0xff]  ;;  %834 = vst [vmem:[%s3238_s18 + $0x360] sm:$0xff] %v833_v44  ;;  %836 = vst [vmem:[%s3238_s18 + $0x368] sm:$0xff] %v835_v45  ;;  %v839_v47 = vld [vmem:[%s3230_s17 + $0x6f0] sm:$0xff] }
  0x4b   : > { %838 = vst [vmem:[%s3238_s18 + $0x370] sm:$0xff] %v837_v46  ;;  %v841_v48 = vld [vmem:[%s3230_s17 + $0x700] sm:$0xff]  ;;  %v843_v49 = vld [vmem:[%s3230_s17 + $0x710] sm:$0xff]  ;;  %840 = vst [vmem:[%s3238_s18 + $0x378] sm:$0xff] %v839_v47 }
  0x4c   : > { %842 = vst [vmem:[%s3238_s18 + $0x380] sm:$0xff] %v841_v48  ;;  %844 = vst [vmem:[%s3238_s18 + $0x388] sm:$0xff] %v843_v49  ;;  %v845_v50 = vld [vmem:[%s3230_s17 + $0x720] sm:$0xff]  ;;  %v847_v51 = vld [vmem:[%s3230_s17 + $0x730] sm:$0xff] }
  0x4d   : > { %v849_v52 = vld [vmem:[%s3230_s17 + $0x740] sm:$0xff]  ;;  %846 = vst [vmem:[%s3238_s18 + $0x390] sm:$0xff] %v845_v50  ;;  %848 = vst [vmem:[%s3238_s18 + $0x398] sm:$0xff] %v847_v51  ;;  %v851_v53 = vld [vmem:[%s3230_s17 + $0x750] sm:$0xff] }
  0x4e   : > { %850 = vst [vmem:[%s3238_s18 + $0x3a0] sm:$0xff] %v849_v52  ;;  %v853_v54 = vld [vmem:[%s3230_s17 + $0x760] sm:$0xff]  ;;  %v855_v55 = vld [vmem:[%s3230_s17 + $0x770] sm:$0xff]  ;;  %852 = vst [vmem:[%s3238_s18 + $0x3a8] sm:$0xff] %v851_v53 }
  0x4f   : > { %854 = vst [vmem:[%s3238_s18 + $0x3b0] sm:$0xff] %v853_v54  ;;  %856 = vst [vmem:[%s3238_s18 + $0x3b8] sm:$0xff] %v855_v55  ;;  %v857_v56 = vld [vmem:[%s3230_s17 + $0x780] sm:$0xff]  ;;  %v859_v57 = vld [vmem:[%s3230_s17 + $0x790] sm:$0xff] }
  0x50   : > { %v861_v58 = vld [vmem:[%s3230_s17 + $0x7a0] sm:$0xff]  ;;  %858 = vst [vmem:[%s3238_s18 + $0x3c0] sm:$0xff] %v857_v56  ;;  %860 = vst [vmem:[%s3238_s18 + $0x3c8] sm:$0xff] %v859_v57  ;;  %v863_v59 = vld [vmem:[%s3230_s17 + $0x7b0] sm:$0xff] }
  0x51   : > { %862 = vst [vmem:[%s3238_s18 + $0x3d0] sm:$0xff] %v861_v58  ;;  %v865_v60 = vld [vmem:[%s3230_s17 + $0x7c0] sm:$0xff]  ;;  %v867_v61 = vld [vmem:[%s3230_s17 + $0x7d0] sm:$0xff]  ;;  %864 = vst [vmem:[%s3238_s18 + $0x3d8] sm:$0xff] %v863_v59 }
  0x52   : > { %866 = vst [vmem:[%s3238_s18 + $0x3e0] sm:$0xff] %v865_v60  ;;  %868 = vst [vmem:[%s3238_s18 + $0x3e8] sm:$0xff] %v867_v61  ;;  %v869_v62 = vld [vmem:[%s3230_s17 + $0x7e0] sm:$0xff]  ;;  %v871_v63 = vld [vmem:[%s3230_s17 + $0x7f0] sm:$0xff] }
  0x53   : > { %v873_v0 = vld [vmem:[%s3230_s17 + $0x800] sm:$0xff]  ;;  %870 = vst [vmem:[%s3238_s18 + $0x3f0] sm:$0xff] %v869_v62  ;;  %872 = vst [vmem:[%s3238_s18 + $0x3f8] sm:$0xff] %v871_v63  ;;  %v875_v1 = vld [vmem:[%s3230_s17 + $0x810] sm:$0xff] }
  0x54   : > { %874 = vst [vmem:[%s3238_s18 + $0x400] sm:$0xff] %v873_v0  ;;  %v877_v2 = vld [vmem:[%s3230_s17 + $0x820] sm:$0xff]  ;;  %v879_v3 = vld [vmem:[%s3230_s17 + $0x830] sm:$0xff]  ;;  %876 = vst [vmem:[%s3238_s18 + $0x408] sm:$0xff] %v875_v1 }
  0x55   : > { %878 = vst [vmem:[%s3238_s18 + $0x410] sm:$0xff] %v877_v2  ;;  %880 = vst [vmem:[%s3238_s18 + $0x418] sm:$0xff] %v879_v3  ;;  %v881_v4 = vld [vmem:[%s3230_s17 + $0x840] sm:$0xff]  ;;  %v883_v5 = vld [vmem:[%s3230_s17 + $0x850] sm:$0xff] }
  0x56   : > { %v885_v6 = vld [vmem:[%s3230_s17 + $0x860] sm:$0xff]  ;;  %882 = vst [vmem:[%s3238_s18 + $0x420] sm:$0xff] %v881_v4  ;;  %884 = vst [vmem:[%s3238_s18 + $0x428] sm:$0xff] %v883_v5  ;;  %v887_v7 = vld [vmem:[%s3230_s17 + $0x870] sm:$0xff] }
  0x57   : > { %886 = vst [vmem:[%s3238_s18 + $0x430] sm:$0xff] %v885_v6  ;;  %v889_v8 = vld [vmem:[%s3230_s17 + $0x880] sm:$0xff]  ;;  %v891_v9 = vld [vmem:[%s3230_s17 + $0x890] sm:$0xff]  ;;  %888 = vst [vmem:[%s3238_s18 + $0x438] sm:$0xff] %v887_v7 }
  0x58   : > { %890 = vst [vmem:[%s3238_s18 + $0x440] sm:$0xff] %v889_v8  ;;  %892 = vst [vmem:[%s3238_s18 + $0x448] sm:$0xff] %v891_v9  ;;  %v893_v10 = vld [vmem:[%s3230_s17 + $0x8a0] sm:$0xff]  ;;  %v895_v11 = vld [vmem:[%s3230_s17 + $0x8b0] sm:$0xff] }
  0x59   : > { %v897_v12 = vld [vmem:[%s3230_s17 + $0x8c0] sm:$0xff]  ;;  %894 = vst [vmem:[%s3238_s18 + $0x450] sm:$0xff] %v893_v10  ;;  %896 = vst [vmem:[%s3238_s18 + $0x458] sm:$0xff] %v895_v11  ;;  %v899_v13 = vld [vmem:[%s3230_s17 + $0x8d0] sm:$0xff] }
  0x5a   : > { %898 = vst [vmem:[%s3238_s18 + $0x460] sm:$0xff] %v897_v12  ;;  %v901_v14 = vld [vmem:[%s3230_s17 + $0x8e0] sm:$0xff]  ;;  %v903_v15 = vld [vmem:[%s3230_s17 + $0x8f0] sm:$0xff]  ;;  %900 = vst [vmem:[%s3238_s18 + $0x468] sm:$0xff] %v899_v13 }
  0x5b   : > { %902 = vst [vmem:[%s3238_s18 + $0x470] sm:$0xff] %v901_v14  ;;  %904 = vst [vmem:[%s3238_s18 + $0x478] sm:$0xff] %v903_v15 }
  0x5c PF: > { %p2438_p8 = scmp.ge.s32.totalorder %s3140_s28, 1  ;;  %p921_p9 = scmp.lt.s32.totalorder %s3140_s28, 3 }
  0x5e   : > { %p922_p10 = pnand %p2438_p8, %p921_p9 }
  0x5f   : > { %s928_s19 = sand.u32 (!%p922_p10), 1, %s3124_s24   ;;  %p1016_p11 = scmp.lt.s32.totalorder (!%p922_p10), %s3132_s26, 1 }
  0x60   : > { %925 = sbr.rel (%p922_p10) target bundleno = 493 (0x1ed), region = 82  ;;  %s2439_s9 = sshll.u32 (!%p922_p10), %s928_s19, 5 }
  0x61   : > { %s3019_s30 = smul.u32 (!%p922_p10), 1152, %s928_s19  ;;  %s987_s13 = scalar_lea.vmem (!%p922_p10), [#allocation3], %s2439_s9 }
  0x63   : > { %s3543_s12 = scalar_lea.vmem (!%p922_p10), [#allocation2], %s3019_s30 }
  0x65   : > { %v1033_v16 = vld [vmem:[%s4035_s1] sm:$0x1f]  ;;  %v3531_v17 = vld [vmem:[%s4035_s1 + $0x8] sm:$0x1f]  ;;  %v3538_v18 = vld [vmem:[%s4035_s1 + $0x10] sm:$0x1f] }
  0x66   : > { %v1211_v19 = vcombine.low %v1033_v16, %v3531_v17  ;;  %v1993_v20 = vcombine.low %v3531_v17, %v3538_v18  ;;  %v1090_v21 = vld [vmem:[%s3543_s12 + $0xf8] sm:$0xff]  ;;  %v1089_v23 = vld [vmem:[%s3543_s12 + $0xf0] sm:$0xff]  ;;  %v1088_v25 = vld [vmem:[%s3543_s12 + $0xe8] sm:$0xff]  ;;  %vm1413_vm0 = vcmask 1042432   ;;  %vm1414_vm1 = vcmask 1046532   ;;  %s2461_s24 = sshll.u32 (%p3217_p6), %s3132_s26, 3 }
  0x67   : > { %v1074_v22 = vld [vmem:[%s3543_s12 + $0x78] sm:$0xff]  ;;  %2644 = vmatprep.subr.mxu0 %v1090_v21  ;;  %v1073_v24 = vld [vmem:[%s3543_s12 + $0x70] sm:$0xff]  ;;  %v1072_v26 = vld [vmem:[%s3543_s12 + $0x68] sm:$0xff]  ;;  %s2238_s15 = scalar_lea.vmem (%p3217_p6), %s4041_s7, %s2461_s24 }
  0x68   : > { %2676 = vmatprep.mubr.f32.mxu0 %v1211_v19  ;;  %2682 = vmatprep.subr.mxu1 %v1074_v22  ;;  %v1087_v27 = vld [vmem:[%s3543_s12 + $0xe0] sm:$0xff]  ;;  %v1086_v29 = vld [vmem:[%s3543_s12 + $0xd8] sm:$0xff]  ;;  %v1085_v31 = vld [vmem:[%s3543_s12 + $0xd0] sm:$0xff] }
  0x69   : > { %2645 = vmatpush3.msra.mxu0 %v1090_v21  ;;  %2683 = vmatpush3.msra.mxu1 %v1074_v22  ;;  %v1071_v28 = vld [vmem:[%s3543_s12 + $0x60] sm:$0xff]  ;;  %v1070_v30 = vld [vmem:[%s3543_s12 + $0x58] sm:$0xff]  ;;  %v1069_v32 = vld [vmem:[%s3543_s12 + $0x50] sm:$0xff] }
  0x6a   : > { %2646 = vmatprep.subr.mxu0 %v1089_v23  ;;  %2684 = vmatprep.subr.mxu1 %v1073_v24  ;;  %v3560_v33 = vld [vmem:[%s4034_s0 + $0x8] sm:$0x1f]  ;;  %v3565_v34 = vld [vmem:[%s4034_s0 + $0x10] sm:$0x1f]  ;;  %v1083_v38 = vld [vmem:[%s3543_s12 + $0xc0] sm:$0xff] }
  0x6b   : > { %2647 = vmatpush3.msra.mxu0 %v1089_v23  ;;  %2685 = vmatpush3.msra.mxu1 %v1073_v24  ;;  %v1084_v35 = vld [vmem:[%s3543_s12 + $0xc8] sm:$0xff]  ;;  %v1894_v37 = vcombine.low %v3560_v33, %v3565_v34  ;;  %v1067_v39 = vld [vmem:[%s3543_s12 + $0x40] sm:$0xff]  ;;  %v1082_v40 = vld [vmem:[%s3543_s12 + $0xb8] sm:$0xff]  ;;  %v1406_v22 = vcombine.high %v3560_v33, %v3560_v33 }
  0x6c   : > { %2648 = vmatprep.subr.mxu0 %v1088_v25  ;;  %2686 = vmatprep.subr.mxu1 %v1072_v26  ;;  %v1068_v36 = vld [vmem:[%s3543_s12 + $0x48] sm:$0xff]  ;;  %v1066_v41 = vld [vmem:[%s3543_s12 + $0x38] sm:$0xff]  ;;  %v1081_v42 = vld [vmem:[%s3543_s12 + $0xb0] sm:$0xff] }
  0x6d   : > { %2649 = vmatpush3.msra.mxu0 %v1088_v25  ;;  %2687 = vmatpush3.msra.mxu1 %v1072_v26  ;;  %v1065_v43 = vld [vmem:[%s3543_s12 + $0x30] sm:$0xff]  ;;  %v1080_v44 = vld [vmem:[%s3543_s12 + $0xa8] sm:$0xff]  ;;  %v1079_v46 = vld [vmem:[%s3543_s12 + $0xa0] sm:$0xff]  ;;  %v1407_v25 = vcombine.high %v3565_v34, %v3565_v34 }
  0x6e   : > { %2650 = vmatprep.subr.mxu0 %v1087_v27  ;;  %2688 = vmatprep.subr.mxu1 %v1071_v28  ;;  %v1064_v45 = vld [vmem:[%s3543_s12 + $0x28] sm:$0xff]  ;;  %v1063_v47 = vld [vmem:[%s3543_s12 + $0x20] sm:$0xff]  ;;  %v3584_v48 = vld [vmem:[%s4035_s1 + $0x30] sm:$0x1f] }
  0x6f   : > { %2651 = vmatpush3.msra.mxu0 %v1087_v27  ;;  %2689 = vmatpush3.msra.mxu1 %v1071_v28  ;;  %v3589_v49 = vld [vmem:[%s4035_s1 + $0x38] sm:$0x1f]  ;;  %v3598_v53 = vld [vmem:[%s4034_s0 + $0x30] sm:$0x1f]  ;;  %v3612_v58 = vld [vmem:[%s4034_s0] sm:$0x1f] }
  0x70   : > { %2652 = vmatprep.subr.mxu0 %v1086_v29  ;;  %2690 = vmatprep.subr.mxu1 %v1070_v30  ;;  %v1078_v50 = vld [vmem:[%s3543_s12 + $0x98] sm:$0xff]  ;;  %v1995_v52 = vcombine.low %v3584_v48, %v3589_v49  ;;  %v1077_v55 = vld [vmem:[%s3543_s12 + $0x90] sm:$0xff]  ;;  %v3622_v60 = vld [vmem:[%s4034_s0 + $0x40] sm:$0x1f]  ;;  %v1312_v3 = vcombine.low %v3612_v58, %v3560_v33  ;;  %v1410_v28 = vcombine.high %v3598_v53, %v3598_v53 }
  0x71   : > { %2653 = vmatpush3.msra.mxu0 %v1086_v29  ;;  %2691 = vmatpush3.msra.mxu1 %v1070_v30  ;;  %v1062_v51 = vld [vmem:[%s3543_s12 + $0x18] sm:$0xff]  ;;  %v1061_v56 = vld [vmem:[%s3543_s12 + $0x10] sm:$0xff]  ;;  %v1076_v61 = vld [vmem:[%s3543_s12 + $0x88] sm:$0xff]  ;;  %v1412_v0 = vcombine.high %v3622_v60, %v3622_v60  ;;  %v2447_v7 = vrot.slane %v3622_v60, 9  ;;  %v2441_v30 = vrot.slane %v3560_v33, 9 }
  0x72   : > { %2654 = vmatprep.subr.mxu0 %v1085_v31  ;;  %2692 = vmatprep.subr.mxu1 %v1069_v32  ;;  %v3603_v54 = vld [vmem:[%s4034_s0 + $0x38] sm:$0x1f]  ;;  %v1060_v62 = vld [vmem:[%s3543_s12 + $0x8] sm:$0xff]  ;;  %v1075_v1 = vld [vmem:[%s3543_s12 + $0x80] sm:$0xff] }
  0x73   : > { %2655 = vmatpush3.msra.mxu0 %v1085_v31  ;;  %2693 = vmatpush3.msra.mxu1 %v1069_v32  ;;  %v1896_v57 = vcombine.low %v3598_v53, %v3603_v54  ;;  %v3617_v59 = vld [vmem:[%s4035_s1 + $0x18] sm:$0x1f]  ;;  %v1059_v2 = vld [vmem:[%s3543_s12] sm:$0xff]  ;;  %v3644_v6 = vld [vmem:[%s4034_s0 + $0x48] sm:$0x1f]  ;;  %v1446_v8 = vrot.slane %v1412_v0, 5  ;;  %v1411_v29 = vcombine.high %v3603_v54, %v3603_v54 }
  0x74   : > { %2656 = vmatprep.subr.mxu0 %v1084_v35  ;;  %2694 = vmatprep.subr.mxu1 %v1068_v36  ;;  %v3629_v63 = vld [vmem:[%s4034_s0 + $0x18] sm:$0x1f]  ;;  %v1212_v4 = vcombine.low %v3538_v18, %v3617_v59  ;;  %v2091_v9 = vcombine.high %v3644_v6, %v3644_v6  ;;  %v2457_v10 = vrot.slane %v3644_v6, 9  ;;  %v1105_v14 = vld [vmem:[%s3543_s12 + $0x170] sm:$0xff]  ;;  %vm3655_vm2 = vmor %vm1413_vm0, %vm1414_vm1  ;;  %v2442_v31 = vrot.slane %v3565_v34, 9 }
  0x75   : > { %2657 = vmatpush3.msra.mxu0 %v1084_v35  ;;  %2695 = vmatpush3.msra.mxu1 %v1068_v36  ;;  %v1313_v5 = vcombine.low %v3565_v34, %v3629_v63  ;;  %v1106_v11 = vld [vmem:[%s3543_s12 + $0x178] sm:$0xff]  ;;  %v1121_v16 = vld [vmem:[%s3543_s12 + $0x1f0] sm:$0xff]  ;;  %v3662_v19 = vsel %vm3655_vm2, %v2447_v7, %v1446_v8  ;;  %v1104_v23 = vld [vmem:[%s3543_s12 + $0x168] sm:$0xff]  ;;  %v1422_v35 = vrot.slane %v1406_v22, 5  ;;  %v1408_v7 = vcombine.high %v3629_v63, %v3629_v63 }
  0x76   : > { %2658 = vmatprep.subr.mxu0 %v1083_v38  ;;  %2696 = vmatprep.subr.mxu1 %v1067_v39  ;;  %v1122_v12 = vld [vmem:[%s3543_s12 + $0x1f8] sm:$0xff]  ;;  %v2098_v13 = vrot.slane %v2091_v9, 5  ;;  %v1120_v26 = vld [vmem:[%s3543_s12 + $0x1e8] sm:$0xff]  ;;  %v1103_v27 = vld [vmem:[%s3543_s12 + $0x160] sm:$0xff]  ;;  %v2443_v22 = vrot.slane %v3629_v63, 9 }
  0x77   : > { %2659 = vmatpush3.msra.mxu0 %v1083_v38  ;;  %2697 = vmatpush3.msra.mxu1 %v1067_v39  ;;  %v1119_v32 = vld [vmem:[%s3543_s12 + $0x1e0] sm:$0xff]  ;;  %v1102_v36 = vld [vmem:[%s3543_s12 + $0x158] sm:$0xff]  ;;  %v1426_v38 = vrot.slane %v1407_v25, 5  ;;  %v1096_v8 = vld [vmem:[%s3543_s12 + $0x128] sm:$0xff] }
  0x78   : > { %2660 = vmatprep.subr.mxu0 %v1082_v40  ;;  %2698 = vmatprep.subr.mxu1 %v1066_v41  ;;  %v3666_v21 = vsel %vm3655_vm2, %v2457_v10, %v2098_v13  ;;  %v1118_v39 = vld [vmem:[%s3543_s12 + $0x1d8] sm:$0xff]  ;;  %v1112_v9 = vld [vmem:[%s3543_s12 + $0x1a8] sm:$0xff]  ;;  %v1405_v10 = vcombine.high %v3612_v58, %v3612_v58  ;;  %v1111_v13 = vld [vmem:[%s3543_s12 + $0x1a0] sm:$0xff] }
  0x79   : > { %2661 = vmatpush3.msra.mxu0 %v1082_v40  ;;  %2699 = vmatpush3.msra.mxu1 %v1066_v41  ;;  %v2103_v24 = vcombine.low %v3662_v19, %v3666_v21  ;;  %v1101_v40 = vld [vmem:[%s3543_s12 + $0x150] sm:$0xff]  ;;  %v2445_v41 = vrot.slane %v3598_v53, 9  ;;  %v1094_v25 = vld [vmem:[%s3543_s12 + $0x118] sm:$0xff]  ;;  %v1183_v15 = vld [vmem:[%s3543_s12 + $0x3e0] sm:$0xff] }
  0x7a   : > { %2662 = vmatprep.subr.mxu0 %v1081_v42  ;;  %2700 = vmatprep.subr.mxu1 %v1065_v43  ;;  %v1042_v33 = vld [vmem:[%s4035_s1 + $0x48] sm:$0x1f]  ;;  %v1199_v18 = vld [vmem:[%s3543_s12 + $0x460] sm:$0xff] }
  0x7b   : > { %2663 = vmatpush3.msra.mxu0 %v1081_v42  ;;  %2701 = vmatpush3.msra.mxu1 %v1065_v43  ;;  %v1438_v42 = vrot.slane %v1410_v28, 5  ;;  %v2446_v43 = vrot.slane %v3603_v54, 9  ;;  %v1200_v34 = vld [vmem:[%s3543_s12 + $0x468] sm:$0xff] }
  0x7c   : > { %2664 = vmatprep.subr.mxu0 %v1080_v44  ;;  %2702 = vmatprep.subr.mxu1 %v1064_v45 }
  0x7d   : > { %2665 = vmatpush3.msra.mxu0 %v1080_v44  ;;  %2703 = vmatpush3.msra.mxu1 %v1064_v45  ;;  %v1442_v44 = vrot.slane %v1411_v29, 5  ;;  %v1117_v45 = vld [vmem:[%s3543_s12 + $0x1d0] sm:$0xff]  ;;  %v1110_v29 = vld [vmem:[%s3543_s12 + $0x198] sm:$0xff] }
  0x7e   : > { %2666 = vmatprep.subr.mxu0 %v1079_v46  ;;  %2704 = vmatprep.subr.mxu1 %v1063_v47 }
  0x7f   : > { %2667 = vmatpush3.msra.mxu0 %v1079_v46  ;;  %2705 = vmatpush3.msra.mxu1 %v1063_v47  ;;  %v1100_v46 = vld [vmem:[%s3543_s12 + $0x148] sm:$0xff] }
  0x80   : > { %2668 = vmatprep.subr.mxu0 %v1078_v50  ;;  %2706 = vmatprep.subr.mxu1 %v1062_v51  ;;  %v1116_v47 = vld [vmem:[%s3543_s12 + $0x1c8] sm:$0xff] }
  0x81   : > { %2669 = vmatpush3.msra.mxu0 %v1078_v50  ;;  %2707 = vmatpush3.msra.mxu1 %v1062_v51  ;;  %v3694_v50 = vsel %vm3655_vm2, %v2441_v30, %v1422_v35  ;;  %v1099_v51 = vld [vmem:[%s3543_s12 + $0x140] sm:$0xff] }
  0x82   : > { %2670 = vmatprep.subr.mxu0 %v1077_v55  ;;  %2708 = vmatprep.subr.mxu1 %v1061_v56 }
  0x83   : > { %2671 = vmatpush3.msra.mxu0 %v1077_v55  ;;  %2709 = vmatpush3.msra.mxu1 %v1061_v56  ;;  %v3699_v55 = vsel %vm3655_vm2, %v2442_v31, %v1426_v38  ;;  %v3703_v56 = vsel %vm3655_vm2, %v2445_v41, %v1438_v42  ;;  %v2440_v31 = vrot.slane %v3612_v58, 9  ;;  %v1109_v58 = vld [vmem:[%s3543_s12 + $0x190] sm:$0xff]  ;;  %v1315_v41 = vcombine.low %v3603_v54, %v3622_v60  ;;  %v1192_v54 = vld [vmem:[%s3543_s12 + $0x428] sm:$0xff] }
  0x84   : > { %2672 = vmatprep.subr.mxu0 %v1076_v61  ;;  %2710 = vmatprep.subr.mxu1 %v1060_v62  ;;  %v2100_v0 = vcombine.low %v3694_v50, %v3699_v55 }
  0x85   : > { %2673 = vmatpush3.msra.mxu0 %v1076_v61  ;;  %2711 = vmatpush3.msra.mxu1 %v1060_v62  ;;  %v3707_v61 = vsel %vm3655_vm2, %v2446_v43, %v1442_v44  ;;  %v1115_v62 = vld [vmem:[%s3543_s12 + $0x1c0] sm:$0xff] }
  0x86   : > { %2674 = vmatprep.subr.mxu0 %v1075_v1  ;;  %2712 = vmatprep.subr.mxu1 %v1059_v2 }
  0x87   : > { %2675 = vmatpush3.msra.mxu0 %v1075_v1  ;;  %2713 = vmatpush3.msra.mxu1 %v1059_v2  ;;  %v2102_v1 = vcombine.low %v3703_v56, %v3707_v61  ;;  %v1098_v2 = vld [vmem:[%s3543_s12 + $0x138] sm:$0xff] }
  0x88   : > { %2714 = vmatprep.mubr.f32.mxu1 %v1312_v3  ;;  %2677 = vmatmul.mubr.f32.vlgmr.msra.gmra.mxu0 %v1212_v4  ;;  %v1114_v3 = vld [vmem:[%s3543_s12 + $0x1b8] sm:$0xff]  ;;  %v1097_v4 = vld [vmem:[%s3543_s12 + $0x130] sm:$0xff] }
  0x89   : > { %2715 = vmatmul.mubr.f32.vlgmr.msra.gmra.mxu1 %v1313_v5  ;;  %2720 = vmatprep.subr.mxu0 %v1106_v11  ;;  %v1113_v5 = vld [vmem:[%s3543_s12 + $0x1b0] sm:$0xff] }
  0x8a   : > { %2758 = vmatprep.subr.mxu1 %v1122_v12  ;;  %2721 = vmatpush3.msra.mxu0 %v1106_v11  ;;  %v1095_v11 = vld [vmem:[%s3543_s12 + $0x120] sm:$0xff] }
  0x8b   : > { %2759 = vmatpush3.msra.mxu1 %v1122_v12  ;;  %2722 = vmatprep.subr.mxu0 %v1105_v14  ;;  %v1038_v12 = vld [vmem:[%s4035_s1 + $0x28] sm:$0x1f] }
  0x8c   : > { %2760 = vmatprep.subr.mxu1 %v1121_v16  ;;  %2723 = vmatpush3.msra.mxu0 %v1105_v14  ;;  %v3732_v14 = vld [vmem:[%s4034_s0 + $0x28] sm:$0x1f]  ;;  %v1213_v30 = vcombine.low %v1038_v12, %v3584_v48  ;;  %v1195_v48 = vld [vmem:[%s3543_s12 + $0x440] sm:$0xff] }
  0x8d   : > { %2761 = vmatpush3.msra.mxu1 %v1121_v16  ;;  %2724 = vmatprep.subr.mxu0 %v1104_v23  ;;  %v3737_v16 = vld [vmem:[%s4034_s0 + $0x20] sm:$0x1f]  ;;  %v1314_v35 = vcombine.low %v3732_v14, %v3598_v53  ;;  %v1409_v38 = vcombine.high %v3732_v14, %v3732_v14  ;;  %v1196_v53 = vld [vmem:[%s3543_s12 + $0x448] sm:$0xff] }
  0x8e   : > { %2762 = vmatprep.subr.mxu1 %v1120_v26  ;;  %2725 = vmatpush3.msra.mxu0 %v1104_v23  ;;  %v1430_v23 = vrot.slane %v1408_v7, 5  ;;  %v2456_v28 = vrot.slane %v3737_v16, 9  ;;  %v3796_v7 = vld [vmem:[%s4036_s2 + $0x18] sm:$0x1f] }
  0x8f   : > { %2763 = vmatpush3.msra.mxu1 %v1120_v26  ;;  %2726 = vmatprep.subr.mxu0 %v1103_v27  ;;  %v3744_v26 = vld [vmem:[%s4035_s1 + $0x40] sm:$0x1f] }
  0x90   : > { %2764 = vmatprep.subr.mxu1 %v1119_v32  ;;  %2727 = vmatpush3.msra.mxu0 %v1103_v27  ;;  %v2090_v27 = vcombine.high %v3737_v16, %v3737_v16  ;;  %v3764_v42 = vsel %vm3655_vm2, %v2443_v22, %v1430_v23  ;;  %v1154_v22 = vld [vmem:[%s3543_s12 + $0x2f8] sm:$0xff]  ;;  %v1137_v23 = vld [vmem:[%s3543_s12 + $0x270] sm:$0xff]  ;;  %v1996_v17 = vcombine.low %v3744_v26, %v1042_v33 }
  0x91   : > { %2765 = vmatpush3.msra.mxu1 %v1119_v32  ;;  %2728 = vmatprep.subr.mxu0 %v1102_v36  ;;  %v1418_v32 = vrot.slane %v1405_v10, 5 }
  0x92   : > { %2766 = vmatprep.subr.mxu1 %v1118_v39  ;;  %2729 = vmatpush3.msra.mxu0 %v1102_v36  ;;  %v2094_v36 = vrot.slane %v2090_v27, 5  ;;  %v3815_v27 = vld [vmem:[%s4036_s2 + $0x28] sm:$0x1f] }
  0x93   : > { %2767 = vmatpush3.msra.mxu1 %v1118_v39  ;;  %2730 = vmatprep.subr.mxu0 %v1101_v40  ;;  %v1093_v39 = vld [vmem:[%s3543_s12 + $0x110] sm:$0xff] }
  0x94   : > { %2768 = vmatprep.subr.mxu1 %v1117_v45  ;;  %2731 = vmatpush3.msra.mxu0 %v1101_v40  ;;  %v1214_v40 = vcombine.low %v3589_v49, %v3744_v26  ;;  %v3768_v43 = vsel %vm3655_vm2, %v2456_v28, %v2094_v36  ;;  %v3820_v28 = vld [vmem:[%s4036_s2 + $0x30] sm:$0x1f]  ;;  %v1194_v49 = vld [vmem:[%s3543_s12 + $0x438] sm:$0xff] }
  0x95   : > { %2769 = vmatpush3.msra.mxu1 %v1117_v45  ;;  %2732 = vmatprep.subr.mxu0 %v1100_v46  ;;  %v2101_v44 = vcombine.low %v3764_v42, %v3768_v43  ;;  %v2444_v45 = vrot.slane %v3732_v14, 9  ;;  %v1138_v14 = vld [vmem:[%s3543_s12 + $0x278] sm:$0xff]  ;;  %v1555_v36 = vcombine.low %v3815_v27, %v3820_v28 }
  0x96   : > { %2770 = vmatprep.subr.mxu1 %v1116_v47  ;;  %2733 = vmatpush3.msra.mxu0 %v1100_v46  ;;  %v1092_v46 = vld [vmem:[%s3543_s12 + $0x108] sm:$0xff] }
  0x97   : > { %2771 = vmatpush3.msra.mxu1 %v1116_v47  ;;  %2734 = vmatprep.subr.mxu0 %v1099_v51  ;;  %v1419_v47 = vsel %vm3655_vm2, %v2440_v31, %v1418_v32  ;;  %v3828_v31 = vld [vmem:[%s4036_s2 + $0x38] sm:$0x1f]  ;;  %v3833_v32 = vld [vmem:[%s4036_s2 + $0x40] sm:$0x1f] }
  0x98   : > { %2772 = vmatprep.subr.mxu1 %v1115_v62  ;;  %2735 = vmatpush3.msra.mxu0 %v1099_v51  ;;  %v1434_v51 = vrot.slane %v1409_v38, 5  ;;  %v1152_v38 = vld [vmem:[%s3543_s12 + $0x2e8] sm:$0xff] }
  0x99   : > { %2773 = vmatpush3.msra.mxu1 %v1115_v62  ;;  %2736 = vmatprep.subr.mxu0 %v1098_v2  ;;  %v1108_v62 = vld [vmem:[%s3543_s12 + $0x188] sm:$0xff] }
  0x9a   : > { %2774 = vmatprep.subr.mxu1 %v1114_v3  ;;  %2737 = vmatpush3.msra.mxu0 %v1098_v2  ;;  %v3780_v2 = vld [vmem:[%s4036_s2] sm:$0x1f] }
  0x9b   : > { %2775 = vmatpush3.msra.mxu1 %v1114_v3  ;;  %2738 = vmatprep.subr.mxu0 %v1097_v4  ;;  %v3785_v3 = vld [vmem:[%s4036_s2 + $0x8] sm:$0x1f] }
  0x9c   : > { %2776 = vmatprep.subr.mxu1 %v1113_v5  ;;  %2739 = vmatpush3.msra.mxu0 %v1097_v4  ;;  %v1091_v4 = vld [vmem:[%s3543_s12 + $0x100] sm:$0xff]  ;;  %v1553_v10 = vcombine.low %v3780_v2, %v3785_v3 }
  0x9d   : > { %2777 = vmatpush3.msra.mxu1 %v1113_v5  ;;  %2740 = vmatprep.subr.mxu0 %v1096_v8  ;;  %v3791_v5 = vld [vmem:[%s4036_s2 + $0x10] sm:$0x1f] }
  0x9e   : > { %2778 = vmatprep.subr.mxu1 %v1112_v9  ;;  %2741 = vmatpush3.msra.mxu0 %v1096_v8  ;;  %v1107_v8 = vld [vmem:[%s3543_s12 + $0x180] sm:$0xff]  ;;  %v1554_v12 = vcombine.low %v3791_v5, %v3796_v7 }
  0x9f   : > { %2779 = vmatpush3.msra.mxu1 %v1112_v9  ;;  %2742 = vmatprep.subr.mxu0 %v1095_v11  ;;  %v1448_v9 = vcombine.low %v1419_v47, %v3694_v50  ;;  %v1149_v47 = vld [vmem:[%s3543_s12 + $0x2d0] sm:$0xff] }
  0xa0   : > { %2780 = vmatprep.subr.mxu1 %v1111_v13  ;;  %2743 = vmatpush3.msra.mxu0 %v1095_v11  ;;  %v1449_v11 = vcombine.low %v3699_v55, %v3764_v42 }
  0xa1   : > { %2781 = vmatpush3.msra.mxu1 %v1111_v13  ;;  %2744 = vmatprep.subr.mxu0 %v1094_v25  ;;  %v1435_v13 = vsel %vm3655_vm2, %v2444_v45, %v1434_v51  ;;  %v1150_v45 = vld [vmem:[%s3543_s12 + $0x2d8] sm:$0xff]  ;;  %v1132_v51 = vld [vmem:[%s3543_s12 + $0x248] sm:$0xff] }
  0xa2   : > { %2782 = vmatprep.subr.mxu1 %v1110_v29  ;;  %2745 = vmatpush3.msra.mxu0 %v1094_v25  ;;  %v1450_v25 = vcombine.low %v1435_v13, %v3703_v56  ;;  %v1128_v13 = vld [vmem:[%s3543_s12 + $0x228] sm:$0xff] }
  0xa3   : > { %2783 = vmatpush3.msra.mxu1 %v1110_v29  ;;  %2679 = vmatprep.mubr.f32.mxu0 %v1213_v30  ;;  %v1153_v29 = vld [vmem:[%s3543_s12 + $0x2f0] sm:$0xff]  ;;  %v1451_v30 = vcombine.low %v3707_v61, %v3662_v19 }
  0xa4   : > { %2717 = vmatprep.mubr.f32.mxu1 %v1314_v35  ;;  %2746 = vmatprep.subr.mxu0 %v1093_v39  ;;  %v1136_v35 = vld [vmem:[%s3543_s12 + $0x268] sm:$0xff] }
  0xa5   : > { %2784 = vmatprep.subr.mxu1 %v1109_v58  ;;  %2680 = vmatmul.mubr.f32.gmra.mxu0 %v1214_v40  ;;  %v1135_v40 = vld [vmem:[%s3543_s12 + $0x260] sm:$0xff] }
  0xa6   : > { %2718 = vmatmul.mubr.f32.gmra.mxu1 %v1315_v41  ;;  %2747 = vmatpush3.msra.mxu0 %v1093_v39  ;;  %v1556_v39 = vcombine.low %v3828_v31, %v3833_v32  ;;  %v1134_v41 = vld [vmem:[%s3543_s12 + $0x258] sm:$0xff] }
  0xa7   : > { %2785 = vmatpush3.msra.mxu1 %v1109_v58  ;;  %2748 = vmatprep.subr.mxu0 %v1092_v46  ;;  %v1151_v58 = vld [vmem:[%s3543_s12 + $0x2e0] sm:$0xff] }
  0xa8   : > { %2786 = vmatprep.subr.mxu1 %v1108_v62  ;;  %2749 = vmatpush3.msra.mxu0 %v1092_v46  ;;  %v1133_v46 = vld [vmem:[%s3543_s12 + $0x250] sm:$0xff] }
  0xa9   : > { %2787 = vmatpush3.msra.mxu1 %v1108_v62  ;;  %2750 = vmatprep.subr.mxu0 %v1091_v4  ;;  %v1148_v62 = vld [vmem:[%s3543_s12 + $0x2c8] sm:$0xff] }
  0xaa   : > { %2788 = vmatprep.subr.mxu1 %v1107_v8  ;;  %2751 = vmatpush3.msra.mxu0 %v1091_v4  ;;  %v1131_v4 = vld [vmem:[%s3543_s12 + $0x240] sm:$0xff] }
  0xab   : > { %2752 = vmatprep.mubr.f32.mxu0 %v1448_v9  ;;  %2789 = vmatpush3.msra.mxu1 %v1107_v8  ;;  %v1147_v8 = vld [vmem:[%s3543_s12 + $0x2c0] sm:$0xff]  ;;  %v1130_v9 = vld [vmem:[%s3543_s12 + $0x238] sm:$0xff] }
  0xac   : > { %2790 = vmatprep.mubr.f32.mxu1 %v1553_v10  ;;  %2753 = vmatmul.mubr.f32.vlgmr.msra.gmra.mxu0 %v1449_v11  ;;  %v1146_v10 = vld [vmem:[%s3543_s12 + $0x2b8] sm:$0xff]  ;;  %v1129_v11 = vld [vmem:[%s3543_s12 + $0x230] sm:$0xff] }
  0xad   : > { %2791 = vmatmul.mubr.f32.vlgmr.msra.gmra.mxu1 %v1554_v12  ;;  %2796 = vmatprep.subr.mxu0 %v1138_v14  ;;  %v1145_v12 = vld [vmem:[%s3543_s12 + $0x2b0] sm:$0xff] }
  0xae   : > { %2834 = vmatprep.subr.mxu1 %v1154_v22  ;;  %2797 = vmatpush3.msra.mxu0 %v1138_v14  ;;  %v1755_v14 = vcombine.high %v3780_v2, %v3780_v2 }
  0xaf   : > { %2835 = vmatpush3.msra.mxu1 %v1154_v22  ;;  %2798 = vmatprep.subr.mxu0 %v1137_v23  ;;  %v1756_v22 = vcombine.high %v3785_v3, %v3785_v3 }
  0xb0   : > { %2836 = vmatprep.subr.mxu1 %v1153_v29  ;;  %2755 = vmatprep.mubr.f32.mxu0 %v1450_v25  ;;  %v1757_v25 = vcombine.high %v3791_v5, %v3791_v5 }
  0xb1   : > { %2799 = vmatpush3.msra.mxu0 %v1137_v23  ;;  %2837 = vmatpush3.msra.mxu1 %v1153_v29  ;;  %v1144_v23 = vld [vmem:[%s3543_s12 + $0x2a8] sm:$0xff]  ;;  %v1758_v29 = vcombine.high %v3796_v7, %v3796_v7 }
  0xb2   : > { %2756 = vmatmul.mubr.f32.gmra.mxu0 %v1451_v30  ;;  %2800 = vmatprep.subr.mxu0 %v1136_v35  ;;  %v1127_v30 = vld [vmem:[%s3543_s12 + $0x220] sm:$0xff] }
  0xb3   : > { %2838 = vmatprep.subr.mxu1 %v1152_v38  ;;  %2793 = vmatprep.mubr.f32.mxu1 %v1555_v36  ;;  %v1126_v36 = vld [vmem:[%s3543_s12 + $0x218] sm:$0xff] }
  0xb4   : > { %2801 = vmatpush3.msra.mxu0 %v1136_v35  ;;  %2839 = vmatpush3.msra.mxu1 %v1152_v38  ;;  %v1143_v35 = vld [vmem:[%s3543_s12 + $0x2a0] sm:$0xff]  ;;  %v2448_v38 = vrot.slane %v3780_v2, 9  ;;  %v1141_v2 = vld [vmem:[%s3543_s12 + $0x290] sm:$0xff] }
  0xb5   : > { %2794 = vmatmul.mubr.f32.gmra.mxu1 %v1556_v39  ;;  %2802 = vmatprep.subr.mxu0 %v1135_v40  ;;  %v1765_v39 = vrot.slane %v1755_v14, 5 }
  0xb6   : > { %2840 = vmatprep.subr.mxu1 %v1151_v58  ;;  %2803 = vmatpush3.msra.mxu0 %v1135_v40  ;;  %v2449_v40 = vrot.slane %v3785_v3, 9  ;;  %v1759_v3 = vcombine.high %v3815_v27, %v3815_v27 }
  0xb7   : > { %2841 = vmatpush3.msra.mxu1 %v1151_v58  ;;  %2804 = vmatprep.subr.mxu0 %v1134_v41  ;;  %v1769_v58 = vrot.slane %v1756_v22, 5  ;;  %v2452_v22 = vrot.slane %v3815_v27, 9  ;;  %v3092_v27 = vld [vmem:[%s4037_s3 + $0x10] ss:$8 sps:$4 sm:$0xff]  }
  0xb8   : > { %2842 = vmatprep.subr.mxu1 %v1150_v45  ;;  %2805 = vmatpush3.msra.mxu0 %v1134_v41  ;;  %v1142_v41 = vld [vmem:[%s3543_s12 + $0x298] sm:$0xff] }
  0xb9   : > { %2843 = vmatpush3.msra.mxu1 %v1150_v45  ;;  %2806 = vmatprep.subr.mxu0 %v1133_v46  ;;  %v2450_v45 = vrot.slane %v3791_v5, 9  ;;  %v1124_v5 = vld [vmem:[%s3543_s12 + $0x208] sm:$0xff] }
  0xba   : > { %2844 = vmatprep.subr.mxu1 %v1149_v47  ;;  %2807 = vmatpush3.msra.mxu0 %v1133_v46  ;;  %v1773_v46 = vrot.slane %v1757_v25, 5  ;;  %v3091_v25 = vld [vmem:[%s4037_s3] ss:$8 sps:$4 sm:$0xff]  }
  0xbb   : > { %2845 = vmatpush3.msra.mxu1 %v1149_v47  ;;  %2808 = vmatprep.subr.mxu0 %v1132_v51  ;;  %v2451_v47 = vrot.slane %v3796_v7, 9  ;;  %v1761_v7 = vcombine.high %v3828_v31, %v3828_v31 }
  0xbc   : > { %2846 = vmatprep.subr.mxu1 %v1148_v62  ;;  %2809 = vmatpush3.msra.mxu0 %v1132_v51  ;;  %v1777_v51 = vrot.slane %v1758_v29, 5  ;;  %v1781_v29 = vrot.slane %v1759_v3, 5 }
  0xbd   : > { %2847 = vmatpush3.msra.mxu1 %v1148_v62  ;;  %2810 = vmatprep.subr.mxu0 %v1131_v4  ;;  %v1125_v62 = vld [vmem:[%s3543_s12 + $0x210] sm:$0xff] }
  0xbe   : > { %2848 = vmatprep.subr.mxu1 %v1147_v8  ;;  %2811 = vmatpush3.msra.mxu0 %v1131_v4  ;;  %v1760_v4 = vcombine.high %v3820_v28, %v3820_v28  ;;  %v1778_v14 = vsel %vm3655_vm2, %v2451_v47, %v1777_v51  ;;  %v3093_v47 = vld [vmem:[%s4037_s3 + $0x28] ss:$8 sps:$4 sm:$0xff]  }
  0xbf   : > { %2849 = vmatpush3.msra.mxu1 %v1147_v8  ;;  %2812 = vmatprep.subr.mxu0 %v1130_v9  ;;  %v1140_v8 = vld [vmem:[%s3543_s12 + $0x288] sm:$0xff]  ;;  %v1185_v51 = vld [vmem:[%s3543_s12 + $0x3f0] sm:$0xff] }
  0xc0   : > { %2850 = vmatprep.subr.mxu1 %v1146_v10  ;;  %2813 = vmatpush3.msra.mxu0 %v1130_v9  ;;  %v1766_v9 = vsel %vm3655_vm2, %v2448_v38, %v1765_v39  ;;  %v2454_v39 = vrot.slane %v3828_v31, 9  ;;  %v1782_v31 = vsel %vm3655_vm2, %v2452_v22, %v1781_v29  ;;  %v1180_v22 = vld [vmem:[%s3543_s12 + $0x3c8] sm:$0xff]  ;;  %v1162_v29 = vld [vmem:[%s3543_s12 + $0x338] sm:$0xff] }
  0xc1   : > { %2851 = vmatpush3.msra.mxu1 %v1146_v10  ;;  %2814 = vmatprep.subr.mxu0 %v1129_v11  ;;  %v1770_v10 = vsel %vm3655_vm2, %v2449_v40, %v1769_v58  ;;  %v1789_v40 = vrot.slane %v1761_v7, 5  ;;  %v2455_v58 = vrot.slane %v3833_v32, 9  ;;  %v1184_v7 = vld [vmem:[%s3543_s12 + $0x3e8] sm:$0xff] }
  0xc2   : > { %2852 = vmatprep.subr.mxu1 %v1145_v12  ;;  %2815 = vmatpush3.msra.mxu0 %v1129_v11  ;;  %v1762_v11 = vcombine.high %v3833_v32, %v3833_v32 }
  0xc3   : > { %2853 = vmatpush3.msra.mxu1 %v1145_v12  ;;  %2816 = vmatprep.subr.mxu0 %v1128_v13  ;;  %v1123_v12 = vld [vmem:[%s3543_s12 + $0x200] sm:$0xff] }
  0xc4   : > { %2854 = vmatprep.subr.mxu1 %v1144_v23  ;;  %2817 = vmatpush3.msra.mxu0 %v1128_v13  ;;  %v1774_v13 = vsel %vm3655_vm2, %v2450_v45, %v1773_v46  ;;  %v1186_v45 = vld [vmem:[%s3543_s12 + $0x3f8] sm:$0xff]  ;;  %v1169_v46 = vld [vmem:[%s3543_s12 + $0x370] sm:$0xff] }
  0xc5   : > { %2855 = vmatpush3.msra.mxu1 %v1144_v23  ;;  %2818 = vmatprep.subr.mxu0 %v1127_v30  ;;  %v1139_v23 = vld [vmem:[%s3543_s12 + $0x280] sm:$0xff]  ;;  %v1796_v38 = vcombine.low %v1774_v13, %v1778_v14  ;;  %v1181_v13 = vld [vmem:[%s3543_s12 + $0x3d0] sm:$0xff]  ;;  %v1164_v14 = vld [vmem:[%s3543_s12 + $0x348] sm:$0xff] }
  0xc6   : > { %2856 = vmatprep.subr.mxu1 %v1143_v35  ;;  %2819 = vmatpush3.msra.mxu0 %v1127_v30  ;;  %v2453_v30 = vrot.slane %v3820_v28, 9  ;;  %v1793_v28 = vrot.slane %v1762_v11, 5  ;;  %v1182_v11 = vld [vmem:[%s3543_s12 + $0x3d8] sm:$0xff] }
  0xc7   : > { %2857 = vmatpush3.msra.mxu1 %v1143_v35  ;;  %2820 = vmatprep.subr.mxu0 %v1126_v36  ;;  %v1785_v35 = vrot.slane %v1760_v4, 5  ;;  %v1168_v4 = vld [vmem:[%s3543_s12 + $0x368] sm:$0xff] }
  0xc8   : > { %2858 = vmatprep.subr.mxu1 %v1142_v41  ;;  %2821 = vmatpush3.msra.mxu0 %v1126_v36  ;;  %v1795_v36 = vcombine.low %v1766_v9, %v1770_v10  ;;  %v1794_v3 = vsel %vm3655_vm2, %v2455_v58, %v1793_v28  ;;  %v1167_v9 = vld [vmem:[%s3543_s12 + $0x360] sm:$0xff]  ;;  %v1166_v10 = vld [vmem:[%s3543_s12 + $0x358] sm:$0xff] }
  0xc9   : > { %2859 = vmatpush3.msra.mxu1 %v1142_v41  ;;  %2822 = vmatprep.subr.mxu0 %v1125_v62  ;;  %v1170_v41 = vld [vmem:[%s3543_s12 + $0x378] sm:$0xff]  ;;  %v1786_v32 = vsel %vm3655_vm2, %v2453_v30, %v1785_v35  ;;  %v1161_v35 = vld [vmem:[%s3543_s12 + $0x330] sm:$0xff] }
  0xca   : > { %2860 = vmatprep.subr.mxu1 %v1141_v2  ;;  %2823 = vmatpush3.msra.mxu0 %v1125_v62  ;;  %v3094_v62 = vld [vmem:[%s4037_s3 + $0x38] ss:$8 sps:$4 sm:$0xff]  }
  0xcb   : > { %2861 = vmatpush3.msra.mxu1 %v1141_v2  ;;  %2824 = vmatprep.subr.mxu0 %v1124_v5  ;;  %v1790_v2 = vsel %vm3655_vm2, %v2454_v39, %v1789_v40  ;;  %v1178_v30 = vld [vmem:[%s3543_s12 + $0x3b8] sm:$0xff]  ;;  %v1159_v39 = vld [vmem:[%s3543_s12 + $0x320] sm:$0xff] }
  0xcc   : > { %2862 = vmatprep.subr.mxu1 %v1140_v8  ;;  %2825 = vmatpush3.msra.mxu0 %v1124_v5  ;;  %v1797_v5 = vcombine.low %v1782_v31, %v1786_v32  ;;  %v1175_v40 = vld [vmem:[%s3543_s12 + $0x3a0] sm:$0xff]  ;;  %v1158_v58 = vld [vmem:[%s3543_s12 + $0x318] sm:$0xff] }
  0xcd   : > { %2863 = vmatpush3.msra.mxu1 %v1140_v8  ;;  %2826 = vmatprep.subr.mxu0 %v1123_v12  ;;  %v1798_v8 = vcombine.low %v1790_v2, %v1794_v3  ;;  %v1174_v28 = vld [vmem:[%s3543_s12 + $0x398] sm:$0xff]  ;;  %v1037_v31 = vld [vmem:[%s4035_s1 + $0x20] sm:$0x1f] }
  0xce   : > { %2864 = vmatprep.subr.mxu1 %v1139_v23  ;;  %2827 = vmatpush3.msra.mxu0 %v1123_v12  ;;  %v1165_v12 = vld [vmem:[%s3543_s12 + $0x350] sm:$0xff]  ;;  %v1155_v32 = vld [vmem:[%s3543_s12 + $0x300] sm:$0xff]  ;;  %v1994_v2 = vcombine.low %v3617_v59, %v1037_v31  ;;  %v1202_v3 = vld [vmem:[%s3543_s12 + $0x478] sm:$0xff]  ;;  %v1897_v59 = vcombine.low %v3622_v60, %v3644_v6 }
  0xcf   : > { %2828 = vmatprep.mubr.f32.mxu0 %v3091_v25  ;;  %2865 = vmatpush3.msra.mxu1 %v1139_v23  ;;  %v1163_v23 = vld [vmem:[%s3543_s12 + $0x340] sm:$0xff]  ;;  %v1190_v60 = vld [vmem:[%s3543_s12 + $0x418] sm:$0xff]  ;;  %v1188_v6 = vld [vmem:[%s3543_s12 + $0x408] sm:$0xff] }
  0xd0   : > { %2866 = vmatprep.mubr.f32.mxu1 %v1795_v36  ;;  %2829 = vmatmul.mubr.f32.vlgmr.msra.gmra.mxu0 %v3092_v27  ;;  %v1179_v25 = vld [vmem:[%s3543_s12 + $0x3c0] sm:$0xff]  ;;  %v1177_v36 = vld [vmem:[%s3543_s12 + $0x3b0] sm:$0xff]  ;;  %v1160_v27 = vld [vmem:[%s3543_s12 + $0x328] sm:$0xff] }
  0xd1   : > { %2867 = vmatmul.mubr.f32.vlgmr.msra.gmra.mxu1 %v1796_v38  ;;  %2872 = vmatprep.subr.mxu0 %v1170_v41  ;;  %v1176_v38 = vld [vmem:[%s3543_s12 + $0x3a8] sm:$0xff] }
  0xd2   : > { %2910 = vmatprep.subr.mxu1 %v1186_v45  ;;  %2873 = vmatpush3.msra.mxu0 %v1170_v41  ;;  %v1157_v41 = vld [vmem:[%s3543_s12 + $0x310] sm:$0xff] }
  0xd3   : > { %2911 = vmatpush3.msra.mxu1 %v1186_v45  ;;  %2874 = vmatprep.subr.mxu0 %v1169_v46  ;;  %v1173_v45 = vld [vmem:[%s3543_s12 + $0x390] sm:$0xff] }
  0xd4   : > { %2912 = vmatprep.subr.mxu1 %v1185_v51  ;;  %2831 = vmatprep.mubr.f32.mxu0 %v3093_v47  ;;  %v1172_v47 = vld [vmem:[%s3543_s12 + $0x388] sm:$0xff] }
  0xd5   : > { %2875 = vmatpush3.msra.mxu0 %v1169_v46  ;;  %2913 = vmatpush3.msra.mxu1 %v1185_v51  ;;  %v1156_v46 = vld [vmem:[%s3543_s12 + $0x308] sm:$0xff]  ;;  %v1171_v51 = vld [vmem:[%s3543_s12 + $0x380] sm:$0xff] }
  0xd6   : > { %2832 = vmatmul.mubr.f32.gmra.mxu0 %v3094_v62  ;;  %2876 = vmatprep.subr.mxu0 %v1168_v4  ;;  %v1895_v62 = vcombine.low %v3629_v63, %v3737_v16  ;;  %v1189_v63 = vld [vmem:[%s3543_s12 + $0x410] sm:$0xff]  ;;  %v1187_v16 = vld [vmem:[%s3543_s12 + $0x400] sm:$0xff] }
  0xd7   : > { %2914 = vmatprep.subr.mxu1 %v1184_v7  ;;  %2869 = vmatprep.mubr.f32.mxu1 %v1797_v5 }
  0xd8   : > { %2877 = vmatpush3.msra.mxu0 %v1168_v4  ;;  %2915 = vmatpush3.msra.mxu1 %v1184_v7  ;;  %v1201_v4 = vld [vmem:[%s3543_s12 + $0x470] sm:$0xff] }
  0xd9   : > { %2870 = vmatmul.mubr.f32.gmra.mxu1 %v1798_v8  ;;  %2878 = vmatprep.subr.mxu0 %v1167_v9 }
  0xda   : > { %2916 = vmatprep.subr.mxu1 %v1183_v15  ;;  %2879 = vmatpush3.msra.mxu0 %v1167_v9 }
  0xdb   : > { %2917 = vmatpush3.msra.mxu1 %v1183_v15  ;;  %2880 = vmatprep.subr.mxu0 %v1166_v10 }
  0xdc   : > { %2918 = vmatprep.subr.mxu1 %v1182_v11  ;;  %2881 = vmatpush3.msra.mxu0 %v1166_v10 }
  0xdd   : > { %2919 = vmatpush3.msra.mxu1 %v1182_v11  ;;  %2882 = vmatprep.subr.mxu0 %v1165_v12 }
  0xde   : > { %2920 = vmatprep.subr.mxu1 %v1181_v13  ;;  %2883 = vmatpush3.msra.mxu0 %v1165_v12 }
  0xdf   : > { %2921 = vmatpush3.msra.mxu1 %v1181_v13  ;;  %2884 = vmatprep.subr.mxu0 %v1164_v14 }
  0xe0   : > { %2922 = vmatprep.subr.mxu1 %v1180_v22  ;;  %2885 = vmatpush3.msra.mxu0 %v1164_v14 }
  0xe1   : > { %2923 = vmatpush3.msra.mxu1 %v1180_v22  ;;  %2886 = vmatprep.subr.mxu0 %v1163_v23 }
  0xe2   : > { %2924 = vmatprep.subr.mxu1 %v1179_v25  ;;  %2887 = vmatpush3.msra.mxu0 %v1163_v23 }
  0xe3   : > { %2925 = vmatpush3.msra.mxu1 %v1179_v25  ;;  %2888 = vmatprep.subr.mxu0 %v1162_v29 }
  0xe4   : > { %2926 = vmatprep.subr.mxu1 %v1178_v30  ;;  %2889 = vmatpush3.msra.mxu0 %v1162_v29 }
  0xe5   : > { %2927 = vmatpush3.msra.mxu1 %v1178_v30  ;;  %2890 = vmatprep.subr.mxu0 %v1161_v35 }
  0xe6   : > { %2928 = vmatprep.subr.mxu1 %v1177_v36  ;;  %2891 = vmatpush3.msra.mxu0 %v1161_v35 }
  0xe7   : > { %2929 = vmatpush3.msra.mxu1 %v1177_v36  ;;  %2892 = vmatprep.subr.mxu0 %v1160_v27 }
  0xe8   : > { %2930 = vmatprep.subr.mxu1 %v1176_v38  ;;  %2893 = vmatpush3.msra.mxu0 %v1160_v27 }
  0xe9   : > { %2931 = vmatpush3.msra.mxu1 %v1176_v38  ;;  %2894 = vmatprep.subr.mxu0 %v1159_v39 }
  0xea   : > { %2932 = vmatprep.subr.mxu1 %v1175_v40  ;;  %2895 = vmatpush3.msra.mxu0 %v1159_v39 }
  0xeb   : > { %2933 = vmatpush3.msra.mxu1 %v1175_v40  ;;  %2896 = vmatprep.subr.mxu0 %v1158_v58 }
  0xec   : > { %2934 = vmatprep.subr.mxu1 %v1174_v28  ;;  %2897 = vmatpush3.msra.mxu0 %v1158_v58 }
  0xed   : > { %2935 = vmatpush3.msra.mxu1 %v1174_v28  ;;  %2898 = vmatprep.subr.mxu0 %v1157_v41 }
  0xee   : > { %2936 = vmatprep.subr.mxu1 %v1173_v45  ;;  %2899 = vmatpush3.msra.mxu0 %v1157_v41 }
  0xef   : > { %2937 = vmatpush3.msra.mxu1 %v1173_v45  ;;  %2900 = vmatprep.subr.mxu0 %v1156_v46 }
  0xf0   : > { %2938 = vmatprep.subr.mxu1 %v1172_v47  ;;  %2901 = vmatpush3.msra.mxu0 %v1156_v46 }
  0xf1   : > { %2939 = vmatpush3.msra.mxu1 %v1172_v47  ;;  %2902 = vmatprep.subr.mxu0 %v1155_v32 }
  0xf2   : > { %2940 = vmatprep.subr.mxu1 %v1171_v51  ;;  %2903 = vmatpush3.msra.mxu0 %v1155_v32 }
  0xf3   : > { %2904 = vmatprep.mubr.f32.mxu0 %v1894_v37  ;;  %2941 = vmatpush3.msra.mxu1 %v1171_v51  ;;  %v1197_v37 = vld [vmem:[%s3543_s12 + $0x450] sm:$0xff] }
  0xf4   : > { %2942 = vmatprep.mubr.f32.mxu1 %v1993_v20  ;;  %2905 = vmatmul.mubr.f32.vlgmr.msra.gmra.mxu0 %v1895_v62  ;;  %v1198_v20 = vld [vmem:[%s3543_s12 + $0x458] sm:$0xff] }
  0xf5   : > { %2943 = vmatmul.mubr.f32.vlgmr.msra.gmra.mxu1 %v1994_v2  ;;  %2948 = vmatprep.subr.mxu0 %v1202_v3 }
  0xf6   : > { %2986 = vmatprep.subr.mxu1 %v1202_v3  ;;  %2949 = vmatpush3.msra.mxu0 %v1202_v3 }
  0xf7   : > { %3002 = vmatpush3.msra.mxu1 %v1202_v3  ;;  %2950 = vmatprep.subr.mxu0 %v1201_v4 }
  0xf8   : > { %2987 = vmatprep.subr.mxu1 %v1201_v4  ;;  %2907 = vmatprep.mubr.f32.mxu0 %v1896_v57  ;;  %v1191_v57 = vld [vmem:[%s3543_s12 + $0x420] sm:$0xff] }
  0xf9   : > { %2951 = vmatpush3.msra.mxu0 %v1201_v4  ;;  %3003 = vmatpush3.msra.mxu1 %v1201_v4 }
  0xfa   : > { %2908 = vmatmul.mubr.f32.gmra.mxu0 %v1897_v59  ;;  %2952 = vmatprep.subr.mxu0 %v1200_v34 }
  0xfb   : > { %2988 = vmatprep.subr.mxu1 %v1200_v34  ;;  %2945 = vmatprep.mubr.f32.mxu1 %v1995_v52  ;;  %v1193_v52 = vld [vmem:[%s3543_s12 + $0x430] sm:$0xff]  ;;  %s1017_s12 = scalar_select %p1016_p11, %s3132_s26, 1 }
  0xfc   : > { %2953 = vmatpush3.msra.mxu0 %v1200_v34  ;;  %3004 = vmatpush3.msra.mxu1 %v1200_v34 }
  0xfd   : > { %2946 = vmatmul.mubr.f32.gmra.mxu1 %v1996_v17  ;;  %2954 = vmatprep.subr.mxu0 %v1199_v18  ;;  %s1018_s22 = scalar_lea.vmem %s4039_s5, %s1017_s12  ;;  %s1021_s8 = scalar_lea.vmem %s4040_s6, %s1017_s12 }
  0xfe   : > { %2989 = vmatprep.subr.mxu1 %v1199_v18  ;;  %2955 = vmatpush3.msra.mxu0 %v1199_v18 }
  0xff   : > { %3005 = vmatpush3.msra.mxu1 %v1199_v18  ;;  %2956 = vmatprep.subr.mxu0 %v1198_v20 }
 0x100   : > { %2990 = vmatprep.subr.mxu1 %v1198_v20  ;;  %2957 = vmatpush3.msra.mxu0 %v1198_v20 }
 0x101   : > { %3006 = vmatpush3.msra.mxu1 %v1198_v20  ;;  %2958 = vmatprep.subr.mxu0 %v1197_v37 }
 0x102   : > { %2991 = vmatprep.subr.mxu1 %v1197_v37  ;;  %2959 = vmatpush3.msra.mxu0 %v1197_v37 }
 0x103   : > { %3007 = vmatpush3.msra.mxu1 %v1197_v37  ;;  %2960 = vmatprep.subr.mxu0 %v1196_v53 }
 0x104   : > { %2992 = vmatprep.subr.mxu1 %v1196_v53  ;;  %2961 = vmatpush3.msra.mxu0 %v1196_v53 }
 0x105   : > { %3008 = vmatpush3.msra.mxu1 %v1196_v53  ;;  %2962 = vmatprep.subr.mxu0 %v1195_v48 }
 0x106   : > { %2993 = vmatprep.subr.mxu1 %v1195_v48  ;;  %2963 = vmatpush3.msra.mxu0 %v1195_v48 }
 0x107   : > { %3009 = vmatpush3.msra.mxu1 %v1195_v48  ;;  %2964 = vmatprep.subr.mxu0 %v1194_v49 }
 0x108   : > { %2994 = vmatprep.subr.mxu1 %v1194_v49  ;;  %2965 = vmatpush3.msra.mxu0 %v1194_v49 }
 0x109   : > { %3010 = vmatpush3.msra.mxu1 %v1194_v49  ;;  %2966 = vmatprep.subr.mxu0 %v1193_v52 }
 0x10a   : > { %2995 = vmatprep.subr.mxu1 %v1193_v52  ;;  %2967 = vmatpush3.msra.mxu0 %v1193_v52 }
 0x10b   : > { %3011 = vmatpush3.msra.mxu1 %v1193_v52  ;;  %2968 = vmatprep.subr.mxu0 %v1192_v54 }
 0x10c   : > { %2996 = vmatprep.subr.mxu1 %v1192_v54  ;;  %2969 = vmatpush3.msra.mxu0 %v1192_v54 }
 0x10d   : > { %3012 = vmatpush3.msra.mxu1 %v1192_v54  ;;  %2970 = vmatprep.subr.mxu0 %v1191_v57 }
 0x10e   : > { %2997 = vmatprep.subr.mxu1 %v1191_v57  ;;  %2971 = vmatpush3.msra.mxu0 %v1191_v57 }
 0x10f   : > { %3013 = vmatpush3.msra.mxu1 %v1191_v57  ;;  %2972 = vmatprep.subr.mxu0 %v1190_v60  ;;  %v2458_v57 = vld [vmem:[%s1018_s22] ss:$0 sm:$0xff] }
 0x110   : > { %2998 = vmatprep.subr.mxu1 %v1190_v60  ;;  %2973 = vmatpush3.msra.mxu0 %v1190_v60 }
 0x111   : > { %3014 = vmatpush3.msra.mxu1 %v1190_v60  ;;  %2974 = vmatprep.subr.mxu0 %v1189_v63 }
 0x112   : > { %2999 = vmatprep.subr.mxu1 %v1189_v63  ;;  %2975 = vmatpush3.msra.mxu0 %v1189_v63 }
 0x113   : > { %3015 = vmatpush3.msra.mxu1 %v1189_v63  ;;  %2976 = vmatprep.subr.mxu0 %v1188_v6 }
 0x114   : > { %3000 = vmatprep.subr.mxu1 %v1188_v6  ;;  %2977 = vmatpush3.msra.mxu0 %v1188_v6 }
 0x115   : > { %3016 = vmatpush3.msra.mxu1 %v1188_v6  ;;  %2978 = vmatprep.subr.mxu0 %v1187_v16 }
 0x116   : > { %3001 = vmatprep.subr.mxu1 %v1187_v16  ;;  %2979 = vmatpush3.msra.mxu0 %v1187_v16 }
 0x117   : > { %3017 = vmatpush3.msra.mxu1 %v1187_v16  ;;  %2980 = vmatprep.mubr.f32.mxu0 %v2100_v0 }
 0x118   : > { %2983 = vmatprep.mubr.f32.mxu1 %v2102_v1  ;;  %2981 = vmatmul.mubr.f32.vlgmr.msra.gmra.mxu0 %v2101_v44 }
 0x119   : > { %2984 = vmatmul.mubr.f32.vlgmr.msra.gmra.mxu1 %v2103_v24 }
 0x148   : > { %v2678_v26 = vpop.f32.mrf.mxu0 }
 0x149   : > { %v2716_v8 = vpop.f32.mrf.mxu1 }
 0x14a   : > { %v1285_v5 = vpop.f32.mrf.mxu0  ;;  %v1392_v24 = vadd.f32 %v2716_v8, %v2678_v26  ;;  %v2459_v26 = vld [vmem:[%s1021_s8] ss:$0 sm:$0xff] }
 0x14b   : > { %v1386_v15 = vpop.f32.mrf.mxu1 }
 0x14c   : > { %v1387_v23 = vadd.f32 %v1386_v15, %v1285_v5 }
 0x165   : > { %v2681_v7 = vpop.f32.mrf.mxu0 }
 0x166   : > { %v2719_v55 = vpop.f32.mrf.mxu1 }
 0x167   : > { %v1295_v9 = vpop.f32.mrf.mxu0  ;;  %v1402_v22 = vadd.f32 %v2719_v55, %v2681_v7 }
 0x168   : > { %v1396_v10 = vpop.f32.mrf.mxu1 }
 0x169   : > { %v1397_v35 = vadd.f32 %v1396_v10, %v1295_v9 }
 0x16c   : > { %v2754_v50 = vpop.f32.mrf.mxu0 }
 0x16d   : > { %v2792_v61 = vpop.f32.mrf.mxu1  ;;  %v1542_v25 = vadd.f32 %v2754_v50, %v1392_v24 }
 0x16e   : > { %v1522_v0 = vpop.f32.mrf.mxu0 }
 0x16f   : > { %v1627_v11 = vpop.f32.mrf.mxu1  ;;  %v1541_v27 = vadd.f32 %v1522_v0, %v1387_v23  ;;  %v1647_v39 = vadd.f32 %v2792_v61, %v1542_v25 }
 0x171   : > { %v1646_v41 = vadd.f32 %v1627_v11, %v1541_v27 }
 0x172   : > { %v2757_v56 = vpop.f32.mrf.mxu0 }
 0x173   : > { %v1544_v36 = vadd.f32 %v2757_v56, %v1402_v22 }
 0x174   : > { %v1532_v1 = vpop.f32.mrf.mxu0 }
 0x175   : > { %v2795_v43 = vpop.f32.mrf.mxu1  ;;  %v1543_v38 = vadd.f32 %v1532_v1, %v1397_v35 }
 0x176   : > { %v1649_v28 = vadd.f32 %v2795_v43, %v1544_v36 }
 0x177   : > { %v1637_v12 = vpop.f32.mrf.mxu1 }
 0x178   : > { %v1648_v47 = vadd.f32 %v1637_v12, %v1543_v38 }
 0x190   : > { %v2830_v42 = vpop.f32.mrf.mxu0 }
 0x191   : > { %v2868_v19 = vpop.f32.mrf.mxu1  ;;  %v1752_v45 = vadd.f32 %v2830_v42, %v1647_v39 }
 0x192   : > { %v1732_v44 = vpop.f32.mrf.mxu0 }
 0x193   : > { %v1869_v13 = vpop.f32.mrf.mxu1  ;;  %v1751_v32 = vadd.f32 %v1732_v44, %v1646_v41  ;;  %v1889_v2 = vadd.f32 %v2868_v19, %v1752_v45 }
 0x195   : > { %v1888_v59 = vadd.f32 %v1869_v13, %v1751_v32 }
 0x196   : > { %v2833_v21 = vpop.f32.mrf.mxu0 }
 0x197   : > { %v1754_v31 = vadd.f32 %v2833_v21, %v1649_v28 }
 0x198   : > { %v1742_v14 = vpop.f32.mrf.mxu0 }
 0x199   : > { %v2871_v29 = vpop.f32.mrf.mxu1  ;;  %v1753_v62 = vadd.f32 %v1742_v14, %v1648_v47 }
 0x19a   : > { %v1891_v4 = vadd.f32 %v2871_v29, %v1754_v31 }
 0x19b   : > { %v1879_v40 = vpop.f32.mrf.mxu1 }
 0x19c   : > { %v1890_v18 = vadd.f32 %v1879_v40, %v1753_v62 }
 0x1b4   : > { %v2906_v30 = vpop.f32.mrf.mxu0 }
 0x1b5   : > { %v2944_v46 = vpop.f32.mrf.mxu1  ;;  %v1988_v33 = vadd.f32 %v2906_v30, %v1889_v2 }
 0x1b6   : > { %v1968_v58 = vpop.f32.mrf.mxu0 }
 0x1b7   : > { %v2067_v3 = vpop.f32.mrf.mxu1  ;;  %v1987_v37 = vadd.f32 %v1968_v58, %v1888_v59  ;;  %v2087_v48 = vadd.f32 %v2944_v46, %v1988_v33 }
 0x1b9   : > { %v2086_v60 = vadd.f32 %v2067_v3, %v1987_v37 }
 0x1ba   : > { %v2909_v51 = vpop.f32.mrf.mxu0 }
 0x1bb   : > { %v1990_v20 = vadd.f32 %v2909_v51, %v1891_v4 }
 0x1bc   : > { %v1978_v34 = vpop.f32.mrf.mxu0 }
 0x1bd   : > { %v2947_v17 = vpop.f32.mrf.mxu1  ;;  %v1989_v53 = vadd.f32 %v1978_v34, %v1890_v18 }
 0x1be   : > { %v2089_v52 = vadd.f32 %v2947_v17, %v1990_v20 }
 0x1bf   : > { %v2077_v49 = vpop.f32.mrf.mxu1 }
 0x1c0   : > { %v2088_v16 = vadd.f32 %v2077_v49, %v1989_v53 }
 0x1d8   : > { %v2982_v54 = vpop.f32.mrf.mxu0 }
 0x1d9   : > { %v2194_v63 = vadd.f32 %v2982_v54, %v2087_v48  ;;  %v2985_v6 = vpop.f32.mrf.mxu1 }
 0x1da   : > { %v2196_v5 = vadd.f32 %v2985_v6, %v2089_v52  ;;  %v2174_v7 = vpop.f32.mrf.mxu0 }
 0x1db   : > { %v2205_v8 = vmul.f32 %v2458_v57, %v2194_v63  ;;  %v2193_v9 = vadd.f32 %v2174_v7, %v2086_v60  ;;  %v2184_v15 = vpop.f32.mrf.mxu1 }
 0x1dc   : > { %v2207_v50 = vmul.f32 %v2458_v57, %v2196_v5  ;;  %v2195_v55 = vadd.f32 %v2184_v15, %v2088_v16 }
 0x1dd   : > { %v2216_v0 = vadd.f32 %v2459_v26, %v2205_v8  ;;  %v2204_v10 = vmul.f32 %v2458_v57, %v2193_v9 }
 0x1de   : > { %v2218_v56 = vadd.f32 %v2459_v26, %v2207_v50  ;;  %v2206_v61 = vmul.f32 %v2458_v57, %v2195_v55 }
 0x1df   : > { %v2220_v1 = vmax.f32 %v2216_v0, 0.0  ;;  %v2215_v11 = vadd.f32 %v2459_v26, %v2204_v10 }
 0x1e0   : > { %v2222_v42 = vmax.f32 %v2218_v56, 0.0  ;;  %v2217_v43 = vadd.f32 %v2459_v26, %v2206_v61  ;;  %2233 = sbr.rel (!%p3217_p6) target bundleno = 493 (0x1ed), region = 90 }
 0x1e1   : > { %2224 = vst [vmem:[%s987_s13 + $0x8] sm:$0xff] %v2220_v1  ;;  %v2219_v44 = vmax.f32 %v2215_v11, 0.0 }
 0x1e2   : > { %2226 = vst [vmem:[%s987_s13 + $0x18] sm:$0xff] %v2222_v42  ;;  %v2221_v12 = vmax.f32 %v2217_v43, 0.0 }
 0x1e3   : > { %2223 = vst [vmem:[%s987_s13] sm:$0xff] %v2219_v44 }
 0x1e4   : > { %2225 = vst [vmem:[%s987_s13 + $0x10] sm:$0xff] %v2221_v12 }
 0x1e8   : > { %v2275_v21 = vld [vmem:[%s987_s13 + $0x8] sm:$0xff] }
 0x1e9   : > { %v2279_v13 = vld [vmem:[%s987_s13 + $0x18] sm:$0xff]  ;;  %2276 = vst [vmem:[%s2238_s15 + $0x10] sm:$0xff] %v2275_v21 }
 0x1ea   : > { %v2273_v19 = vld [vmem:[%s987_s13] sm:$0xff]  ;;  %2280 = vst [vmem:[%s2238_s15 + $0x30] sm:$0xff] %v2279_v13 }
 0x1eb   : > { %v2277_v24 = vld [vmem:[%s987_s13 + $0x10] sm:$0xff]  ;;  %2274 = vst [vmem:[%s2238_s15] sm:$0xff] %v2273_v19 }
 0x1ec   : > { %2278 = vst [vmem:[%s2238_s15 + $0x20] sm:$0xff] %v2277_v24 }
 0x1ed PF: > { %s17_s28 = sadd.s32 1, %s3140_s28   ;;  %s4045_s24 = smov %s3128_s25 }
 0x1ee   : > { %p14_p12 = scmp.ge.s32.totalorder %s17_s28, 4   ;;  %s4046_s25 = smov %s3222_s11 }
 0x1ef   : > { %s4047_s26 = smov %s3136_s27  ;;  %s4048_s27 = smov %s4050_s29 }
 0x1f0   :  { %16 = sbr.rel (!%p14_p12) target bundleno = 3 (0x3), region = 177 }

</bundles_post_ra>
